<compile_context>
chip_gen: v6e
topology: v6e:2x2x1
jax: 0.10.0
libtpu: 0.0.40
codegen_flags: <defaults>
</compile_context>

<pallas_src>
import jax
import jax.numpy as jnp
from jax.experimental import pallas as pl
from jax.experimental.pallas import tpu as pltpu

_K = 4            # conv kernel size
_PAD = 1          # conv padding
_NEG = 0.2        # LeakyReLU negative slope
_EPS = 1e-5       # InstanceNorm eps (PyTorch default)


def _leaky(x):
    return jnp.where(x > 0, x, _NEG * x)


def _instance_norm(x):
    # x: (positions, channels); per-sample, per-channel stats over positions,
    # biased variance, eps inside rsqrt (InstanceNorm2d(affine=False) defaults).
    mu = jnp.mean(x, axis=0, keepdims=True)
    var = jnp.mean(jnp.square(x - mu), axis=0, keepdims=True)
    return (x - mu) * jax.lax.rsqrt(var + _EPS)


def _zero_border(ref):
    # Only the 1-pixel conv-padding border needs zeros; the interior is fully
    # overwritten every grid step, so no full-buffer memset.
    hp, wp, c = ref.shape
    ref[0:1, :, :] = jnp.zeros((1, wp, c), ref.dtype)
    ref[hp - 1:hp, :, :] = jnp.zeros((1, wp, c), ref.dtype)
    ref[:, 0:1, :] = jnp.zeros((hp, 1, c), ref.dtype)
    ref[:, wp - 1:wp, :] = jnp.zeros((hp, 1, c), ref.dtype)


def _make_kernel(dims):
    (ho0, wo0), (ho1, wo1), (ho2, wo2), (ho3, wo3), (ho4, wo4) = dims

    def kernel(p0_ref, w0_ref, b0_ref, w1_ref, w2_ref, w3_ref, w4_ref, b4_ref,
               o_ref,
               pad1, pad2, pad3, pad4, patch1, patch2, patch3):
        # ---------------- layer 0: Conv(3->64, s2) + bias + LeakyReLU --------
        # Patches were built in the wrapper; cout is zero-padded to 128 so the
        # scatter below writes the full lane width (padded channels stay 0).
        act0 = jnp.dot(p0_ref[...], w0_ref[...],
                       preferred_element_type=jnp.float32)        # (ho0*wo0, 128)
        act0 = _leaky(act0 + b0_ref[...])

        _zero_border(pad1)
        pad1[_PAD:_PAD + ho0, _PAD:_PAD + wo0, :] = act0.reshape(ho0, wo0, 128)

        # ---------------- layer 1: Conv(64->128, s2) + IN + LeakyReLU --------
        # Single fused-K matmul: one strided 3-D slice per (di, dj) tap, stored
        # bf16 at 128-aligned lane offsets (cin padded 64->128, zero wt rows).
        for di in range(_K):
            for dj in range(_K):
                tap = pad1[pl.ds(di, ho1, 2), pl.ds(dj, wo1, 2), :]  # (ho1,wo1,128)
                k = di * _K + dj
                patch1[:, k * 128:(k + 1) * 128] = (
                    tap.reshape(ho1 * wo1, 128).astype(jnp.bfloat16))
        act1 = jnp.dot(patch1[...], w1_ref[...],
                       preferred_element_type=jnp.float32)        # (ho1*wo1, 128)
        act1 = _leaky(_instance_norm(act1))

        _zero_border(pad2)
        pad2[_PAD:_PAD + ho1, _PAD:_PAD + wo1, :] = act1.reshape(ho1, wo1, 128)

        # ---------------- layer 2: Conv(128->256, s2) + IN + LeakyReLU -------
        # (K, positions, K*cin) bf16 patch; 4 small matmuls over kernel-row di.
        for i in range(ho2):
            for dj in range(_K):
                tap = pad2[pl.ds(2 * i, _K), pl.ds(dj, wo2, 2), :]   # (4,wo2,128)
                patch2[:, i * wo2:(i + 1) * wo2, dj * 128:(dj + 1) * 128] = (
                    tap.astype(jnp.bfloat16))
        acc2 = None
        for di in range(_K):
            part = jnp.dot(patch2[di], w2_ref[di],
                           preferred_element_type=jnp.float32)    # (ho2*wo2, 256)
            acc2 = part if acc2 is None else acc2 + part
        act2 = _leaky(_instance_norm(acc2))

        _zero_border(pad3)
        for i in range(ho2):
            pad3[_PAD + i, _PAD:_PAD + wo2, :] = act2[i * wo2:(i + 1) * wo2, :]

        # ---------------- layer 3: Conv(256->512, s1) + IN + LeakyReLU -------
        for i in range(ho3):
            for dj in range(_K):
                tap = pad3[pl.ds(i, _K), pl.ds(dj, wo3), :]          # (4,wo3,256)
                patch3[:, i * wo3:(i + 1) * wo3, dj * 256:(dj + 1) * 256] = tap
        acc3 = None
        for di in range(_K):
            part = jnp.dot(patch3[di].astype(jnp.bfloat16), w3_ref[di],
                           preferred_element_type=jnp.float32)    # (ho3*wo3, 512)
            acc3 = part if acc3 is None else acc3 + part
        act3 = _leaky(_instance_norm(acc3))

        _zero_border(pad4)
        for i in range(ho3):
            pad4[_PAD + i, _PAD:_PAD + wo3, :] = act3[i * wo3:(i + 1) * wo3, :]

        # ---------------- layer 4 + global average pool -----------------------
        # Conv(512->1) followed by the mean over its ho4*wo4 outputs is linear:
        # average the shifted input slabs first (box filter), then reduce
        # against the lane-dense (4, 4, 512) f32 weight. No cout=1 matmul.
        m = None
        for i in range(ho4):
            for j in range(wo4):
                slab = pad4[i:i + _K, j:j + _K, :]                   # (4, 4, 512)
                m = slab if m is None else m + slab
        m = m * (1.0 / (ho4 * wo4))
        t = m * w4_ref[...]                                          # (4, 4, 512)
        t = jnp.sum(t, axis=0)                                       # (4, 512)
        t = jnp.sum(t, axis=0, keepdims=True)                        # (1, 512)
        val = jnp.sum(t, axis=1, keepdims=True)                      # (1, 1)
        o_ref[...] = val + b4_ref[...]

    return kernel


def _im2col_l0(x_nhwc, stride, pad):
    """XLA-side im2col for the first conv. Lane order is (di, dj, c)."""
    B, H, W, C = x_nhwc.shape
    xp = jnp.pad(x_nhwc, ((0, 0), (pad, pad), (pad, pad), (0, 0)))
    ho = (H + 2 * pad - _K) // stride + 1
    wo = (W + 2 * pad - _K) // stride + 1
    taps = []
    for di in range(_K):
        for dj in range(_K):
            taps.append(xp[:, di:di + stride * (ho - 1) + 1:stride,
                           dj:dj + stride * (wo - 1) + 1:stride, :])
    patches = jnp.concatenate(taps, axis=-1)           # (B, ho, wo, K*K*C)
    return patches.reshape(B, ho * wo, _K * _K * C), ho, wo


def _pack_params(params, input_nc):
    """Re-layout module weights into the kernel's matmul-friendly shapes."""
    (w0, b0), (w1, _b1), (w2, _b2), (w3, _b3), (w4, b4) = params
    # Layer 0: rows = (di, dj, c) padded to 128; cout padded 64 -> 128 (zeros).
    k0 = _K * _K * input_nc
    w0m = w0.reshape(k0, 64)
    w0m = jnp.pad(w0m, ((0, 128 - k0), (0, 128 - 64))).astype(jnp.bfloat16)
    b0m = jnp.pad(b0, (0, 128 - 64)).reshape(1, 128).astype(jnp.float32)
    # Layer 1: cin padded 64 -> 128 with zero rows; fused-K (2048, 128) layout.
    w1p = jnp.pad(w1, ((0, 0), (0, 0), (0, 128 - 64), (0, 0)))
    w1m = w1p.reshape(_K * _K * 128, 128).astype(jnp.bfloat16)
    # Layers 2, 3: (di, dj*cin + c, cout).
    w2m = w2.reshape(_K, _K * 128, 256).astype(jnp.bfloat16)
    w3m = w3.reshape(_K, _K * 256, 512).astype(jnp.bfloat16)
    # Layer 4: lane-dense (di, dj, c) f32 weight; (1, 1) bias.
    w4m = w4[..., 0].astype(jnp.float32)                 # (4, 4, 512)
    b4m = b4.reshape(1, 1).astype(jnp.float32)
    # b1..b3 dropped: conv bias before InstanceNorm(affine=False) cancels exactly.
    return w0m, b0m, w1m, w2m, w3m, w4m, b4m


def discriminator_forward(x_nchw, params):
    """x_nchw: (B, C, H, W) f32.  params: 5 x (w (4,4,cin,cout) f32, b (cout,) f32)."""
    B, C, H, W = x_nchw.shape
    x = jnp.transpose(x_nchw, (0, 2, 3, 1)).astype(jnp.float32)   # NHWC
    p0, ho0, wo0 = _im2col_l0(x, stride=2, pad=_PAD)
    kdim = _K * _K * C
    kpad = ((kdim + 127) // 128) * 128
    p0 = jnp.pad(p0, ((0, 0), (0, 0), (0, kpad - kdim))).astype(jnp.bfloat16)

    # Remaining layer geometry (k=4, p=1; s=2,2,1,1).
    ho1, wo1 = ho0 // 2, wo0 // 2
    ho2, wo2 = ho1 // 2, wo1 // 2
    ho3, wo3 = ho2 - 1, wo2 - 1
    ho4, wo4 = ho3 - 1, wo3 - 1
    assert kpad == 128, "layer-0 patch K dim must pad to exactly 128 lanes"
    assert wo0 % 8 == 0 and wo1 % 8 == 0, "W/2 and W/4 must be multiples of 8"
    assert ho4 >= 1 and wo4 >= 1, "input too small for the 5-layer stack"

    w0m, b0m, w1m, w2m, w3m, w4m, b4m = _pack_params(params, C)
    dims = ((ho0, wo0), (ho1, wo1), (ho2, wo2), (ho3, wo3), (ho4, wo4))

    in_specs = [
        pl.BlockSpec((None, ho0 * wo0, kpad), lambda b: (b, 0, 0)),  # L0 patches
        pl.BlockSpec(w0m.shape, lambda b: (0, 0)),
        pl.BlockSpec(b0m.shape, lambda b: (0, 0)),
        pl.BlockSpec(w1m.shape, lambda b: (0, 0)),
        pl.BlockSpec(w2m.shape, lambda b: (0, 0, 0)),
        pl.BlockSpec(w3m.shape, lambda b: (0, 0, 0)),
        pl.BlockSpec(w4m.shape, lambda b: (0, 0, 0)),
        pl.BlockSpec(b4m.shape, lambda b: (0, 0)),
    ]

    scratch = [
        pltpu.VMEM((ho0 + 2, wo0 + 2, 128), jnp.float32),           # pad1
        pltpu.VMEM((ho1 + 2, wo1 + 2, 128), jnp.float32),           # pad2
        pltpu.VMEM((ho2 + 2, wo2 + 2, 256), jnp.float32),           # pad3
        pltpu.VMEM((ho3 + 2, wo3 + 2, 512), jnp.float32),           # pad4
        pltpu.VMEM((ho1 * wo1, _K * _K * 128), jnp.bfloat16),       # patch1 (fused K)
        pltpu.VMEM((_K, ho2 * wo2, _K * 128), jnp.bfloat16),        # patch2
        pltpu.VMEM((_K, ho3 * wo3, _K * 256), jnp.float32),         # patch3
    ]

    out = pl.pallas_call(
        _make_kernel(dims),
        out_shape=jax.ShapeDtypeStruct((B, 1, 1), jnp.float32),
        grid=(B,),
        in_specs=in_specs,
        out_specs=pl.BlockSpec((None, 1, 1), lambda b: (b, 0, 0)),
        scratch_shapes=scratch,
        compiler_params=pltpu.CompilerParams(
            dimension_semantics=("parallel",),   # 2-TC split on v7x; cheap loop elsewhere
            vmem_limit_bytes=32 * 1024 * 1024,   # ~12.5 MiB actually used
        ),
    )(p0, w0m, b0m, w1m, w2m, w3m, w4m, b4m)
    return out.reshape(B, 1)


def init_params(key, input_nc):
    """Deterministic synthetic parameters in a PyTorch-like (kh, kw, cin, cout) layout."""
    channels = [input_nc, 64, 128, 256, 512, 1]
    params = []
    for i in range(5):
        cin, cout = channels[i], channels[i + 1]
        key, kw, kb = jax.random.split(key, 3)
        w = 0.02 * jax.random.normal(kw, (_K, _K, cin, cout), jnp.float32)
        b = 0.01 * jax.random.normal(kb, (cout,), jnp.float32)
        params.append((w, b))
    return params


if __name__ == "__main__":
    key = jax.random.PRNGKey(0)
    k_x, k_p = jax.random.split(key)

    # input_nc = 3 (CycleGAN); 32x32 is the smallest spatial size for which all
    # five layers produce at least one output position.
    B, C, H, W = 2, 3, 32, 32
    x = jax.random.normal(k_x, (B, C, H, W), dtype=jnp.float32)
    params = init_params(k_p, C)

    fwd = jax.jit(discriminator_forward)
    y = jax.block_until_ready(fwd(x, params))
    assert y.shape == (B, 1), y.shape
    assert bool(jnp.all(jnp.isfinite(y)))
    print("KERNEL_OK")
</pallas_src>

<mosaic_0001>
module attributes {stable_mosaic.version = 11 : i64} {
  func.func @kernel(%arg0: i32, %arg1: memref<1x256x128xbf16, #tpu.memory_space<vmem>>, %arg2: memref<128x128xbf16, #tpu.memory_space<vmem>>, %arg3: memref<1x128xf32, #tpu.memory_space<vmem>>, %arg4: memref<2048x128xbf16, #tpu.memory_space<vmem>>, %arg5: memref<4x512x256xbf16, #tpu.memory_space<vmem>>, %arg6: memref<4x1024x512xbf16, #tpu.memory_space<vmem>>, %arg7: memref<4x4x512xf32, #tpu.memory_space<vmem>>, %arg8: memref<1x1xf32, #tpu.memory_space<vmem>>, %arg9: memref<1x1x1xf32, #tpu.memory_space<vmem>>, %arg10: memref<18x18x128xf32, #tpu.memory_space<vmem>>, %arg11: memref<10x10x128xf32, #tpu.memory_space<vmem>>, %arg12: memref<6x6x256xf32, #tpu.memory_space<vmem>>, %arg13: memref<5x5x512xf32, #tpu.memory_space<vmem>>, %arg14: memref<64x2048xbf16, #tpu.memory_space<vmem>>, %arg15: memref<4x16x512xbf16, #tpu.memory_space<vmem>>, %arg16: memref<4x9x1024xf32, #tpu.memory_space<vmem>>) attributes {dimension_semantics = [#tpu.dimension_semantics<parallel>], iteration_bounds = array<i64: 2>, scalar_prefetch = 0 : i64, scratch_operands = 7 : i64, tpu.core_type = #tpu.core_type<tc>, window_params = [{transform_indices = @transform_0, window_bounds = array<i64: 1, 256, 128>}, {pipeline_mode = #tpu.pipeline_mode<synchronous>, transform_indices = @transform_1, window_bounds = array<i64: 128, 128>}, {pipeline_mode = #tpu.pipeline_mode<synchronous>, transform_indices = @transform_2, window_bounds = array<i64: 1, 128>}, {pipeline_mode = #tpu.pipeline_mode<synchronous>, transform_indices = @transform_3, window_bounds = array<i64: 2048, 128>}, {pipeline_mode = #tpu.pipeline_mode<synchronous>, transform_indices = @transform_4, window_bounds = array<i64: 4, 512, 256>}, {pipeline_mode = #tpu.pipeline_mode<synchronous>, transform_indices = @transform_5, window_bounds = array<i64: 4, 1024, 512>}, {pipeline_mode = #tpu.pipeline_mode<synchronous>, transform_indices = @transform_6, window_bounds = array<i64: 4, 4, 512>}, {pipeline_mode = #tpu.pipeline_mode<synchronous>, transform_indices = @transform_7, window_bounds = array<i64: 1, 1>}, {transform_indices = @transform_8, window_bounds = array<i64: 1, 1, 1>}]} {
    %c0 = arith.constant 0 : index
    %c0_0 = arith.constant 0 : index
    %c0_1 = arith.constant 0 : index
    %0 = vector.load %arg1[%c0, %c0_0, %c0_1] : memref<1x256x128xbf16, #tpu.memory_space<vmem>>, vector<1x256x128xbf16>
    %1 = vector.shape_cast %0 : vector<1x256x128xbf16> to vector<256x128xbf16>
    %c0_2 = arith.constant 0 : index
    %c0_3 = arith.constant 0 : index
    %2 = vector.load %arg2[%c0_2, %c0_3] : memref<128x128xbf16, #tpu.memory_space<vmem>>, vector<128x128xbf16>
    %cst = arith.constant dense<0.000000e+00> : vector<256x128xf32>
    %3 = tpu.matmul %1, %2, %cst {dimension_numbers = #tpu.dot_dimension_numbers<[1], [0], [0], [1], [0, 0, 1, 1], [], []>} : vector<256x128xbf16>, vector<128x128xbf16>, vector<256x128xf32> -> vector<256x128xf32>
    %c0_4 = arith.constant 0 : index
    %c0_5 = arith.constant 0 : index
    %4 = vector.load %arg3[%c0_4, %c0_5] : memref<1x128xf32, #tpu.memory_space<vmem>>, vector<1x128xf32>
    %5 = vector.broadcast %4 : vector<1x128xf32> to vector<256x128xf32>
    %6 = arith.addf %3, %5 : vector<256x128xf32>
    %cst_6 = arith.constant 0.000000e+00 : f32
    %7 = vector.broadcast %cst_6 : f32 to vector<256x128xf32>
    %8 = arith.cmpf ogt, %6, %7 : vector<256x128xf32>
    %cst_7 = arith.constant 2.000000e-01 : f32
    %9 = vector.broadcast %cst_7 : f32 to vector<256x128xf32>
    %10 = arith.mulf %9, %6 : vector<256x128xf32>
    %11 = arith.select %8, %6, %10 : vector<256x128xi1>, vector<256x128xf32>
    %cst_8 = arith.constant 0.000000e+00 : f32
    %12 = vector.broadcast %cst_8 : f32 to vector<1x18x128xf32>
    %c0_9 = arith.constant 0 : index
    %c0_10 = arith.constant 0 : index
    %c0_11 = arith.constant 0 : index
    %13 = vector.load %arg10[%c0_9, %c0_10, %c0_11] : memref<18x18x128xf32, #tpu.memory_space<vmem>>, vector<1x18x128xf32>
    tpu.vector_store %arg10[%c0_9, %c0_10, %c0_11], %12 {strides = array<i32>} : memref<18x18x128xf32, #tpu.memory_space<vmem>>, vector<1x18x128xf32>,
    %cst_12 = arith.constant 0.000000e+00 : f32
    %14 = vector.broadcast %cst_12 : f32 to vector<1x18x128xf32>
    %c17 = arith.constant 17 : index
    %c0_13 = arith.constant 0 : index
    %c0_14 = arith.constant 0 : index
    %15 = vector.load %arg10[%c17, %c0_13, %c0_14] : memref<18x18x128xf32, #tpu.memory_space<vmem>>, vector<1x18x128xf32>
    tpu.vector_store %arg10[%c17, %c0_13, %c0_14], %14 {strides = array<i32>} : memref<18x18x128xf32, #tpu.memory_space<vmem>>, vector<1x18x128xf32>,
    %cst_15 = arith.constant 0.000000e+00 : f32
    %16 = vector.broadcast %cst_15 : f32 to vector<18x1x128xf32>
    %c0_16 = arith.constant 0 : index
    %c0_17 = arith.constant 0 : index
    %c0_18 = arith.constant 0 : index
    %17 = vector.load %arg10[%c0_16, %c0_17, %c0_18] : memref<18x18x128xf32, #tpu.memory_space<vmem>>, vector<18x1x128xf32>
    tpu.vector_store %arg10[%c0_16, %c0_17, %c0_18], %16 {strides = array<i32>} : memref<18x18x128xf32, #tpu.memory_space<vmem>>, vector<18x1x128xf32>,
    %cst_19 = arith.constant 0.000000e+00 : f32
    %18 = vector.broadcast %cst_19 : f32 to vector<18x1x128xf32>
    %c0_20 = arith.constant 0 : index
    %c17_21 = arith.constant 17 : index
    %c0_22 = arith.constant 0 : index
    %19 = vector.load %arg10[%c0_20, %c17_21, %c0_22] : memref<18x18x128xf32, #tpu.memory_space<vmem>>, vector<18x1x128xf32>
    tpu.vector_store %arg10[%c0_20, %c17_21, %c0_22], %18 {strides = array<i32>} : memref<18x18x128xf32, #tpu.memory_space<vmem>>, vector<18x1x128xf32>,
    %20 = vector.shape_cast %11 : vector<256x128xf32> to vector<16x16x128xf32>
    %c1 = arith.constant 1 : index
    %c1_23 = arith.constant 1 : index
    %c0_24 = arith.constant 0 : index
    %21 = vector.load %arg10[%c1, %c1_23, %c0_24] : memref<18x18x128xf32, #tpu.memory_space<vmem>>, vector<16x16x128xf32>
    tpu.vector_store %arg10[%c1, %c1_23, %c0_24], %20 {strides = array<i32>} : memref<18x18x128xf32, #tpu.memory_space<vmem>>, vector<16x16x128xf32>,
    %c0_25 = arith.constant 0 : index
    %c0_26 = arith.constant 0 : index
    %c0_27 = arith.constant 0 : index
    %22 = tpu.strided_load %arg10[%c0_25, %c0_26, %c0_27] {strides = array<i32: 2, 2, 1>} : memref<18x18x128xf32, #tpu.memory_space<vmem>>, vector<8x8x128xf32>
    %23 = vector.shape_cast %22 : vector<8x8x128xf32> to vector<64x128xf32>
    %24 = arith.truncf %23 : vector<64x128xf32> to vector<64x128xbf16>
    %c0_28 = arith.constant 0 : index
    %c0_29 = arith.constant 0 : index
    %25 = vector.load %arg14[%c0_28, %c0_29] : memref<64x2048xbf16, #tpu.memory_space<vmem>>, vector<64x128xbf16>
    tpu.vector_store %arg14[%c0_28, %c0_29], %24 {strides = array<i32>} : memref<64x2048xbf16, #tpu.memory_space<vmem>>, vector<64x128xbf16>,
    %c0_30 = arith.constant 0 : index
    %c1_31 = arith.constant 1 : index
    %c0_32 = arith.constant 0 : index
    %26 = tpu.strided_load %arg10[%c0_30, %c1_31, %c0_32] {strides = array<i32: 2, 2, 1>} : memref<18x18x128xf32, #tpu.memory_space<vmem>>, vector<8x8x128xf32>
    %27 = vector.shape_cast %26 : vector<8x8x128xf32> to vector<64x128xf32>
    %28 = arith.truncf %27 : vector<64x128xf32> to vector<64x128xbf16>
    %c0_33 = arith.constant 0 : index
    %c128 = arith.constant 128 : index
    %29 = vector.load %arg14[%c0_33, %c128] : memref<64x2048xbf16, #tpu.memory_space<vmem>>, vector<64x128xbf16>
    tpu.vector_store %arg14[%c0_33, %c128], %28 {strides = array<i32>} : memref<64x2048xbf16, #tpu.memory_space<vmem>>, vector<64x128xbf16>,
    %c0_34 = arith.constant 0 : index
    %c2 = arith.constant 2 : index
    %c0_35 = arith.constant 0 : index
    %30 = tpu.strided_load %arg10[%c0_34, %c2, %c0_35] {strides = array<i32: 2, 2, 1>} : memref<18x18x128xf32, #tpu.memory_space<vmem>>, vector<8x8x128xf32>
    %31 = vector.shape_cast %30 : vector<8x8x128xf32> to vector<64x128xf32>
    %32 = arith.truncf %31 : vector<64x128xf32> to vector<64x128xbf16>
    %c0_36 = arith.constant 0 : index
    %c256 = arith.constant 256 : index
    %33 = vector.load %arg14[%c0_36, %c256] : memref<64x2048xbf16, #tpu.memory_space<vmem>>, vector<64x128xbf16>
    tpu.vector_store %arg14[%c0_36, %c256], %32 {strides = array<i32>} : memref<64x2048xbf16, #tpu.memory_space<vmem>>, vector<64x128xbf16>,
    %c0_37 = arith.constant 0 : index
    %c3 = arith.constant 3 : index
    %c0_38 = arith.constant 0 : index
    %34 = tpu.strided_load %arg10[%c0_37, %c3, %c0_38] {strides = array<i32: 2, 2, 1>} : memref<18x18x128xf32, #tpu.memory_space<vmem>>, vector<8x8x128xf32>
    %35 = vector.shape_cast %34 : vector<8x8x128xf32> to vector<64x128xf32>
    %36 = arith.truncf %35 : vector<64x128xf32> to vector<64x128xbf16>
    %c0_39 = arith.constant 0 : index
    %c384 = arith.constant 384 : index
    %37 = vector.load %arg14[%c0_39, %c384] : memref<64x2048xbf16, #tpu.memory_space<vmem>>, vector<64x128xbf16>
    tpu.vector_store %arg14[%c0_39, %c384], %36 {strides = array<i32>} : memref<64x2048xbf16, #tpu.memory_space<vmem>>, vector<64x128xbf16>,
    %c1_40 = arith.constant 1 : index
    %c0_41 = arith.constant 0 : index
    %c0_42 = arith.constant 0 : index
    %38 = tpu.strided_load %arg10[%c1_40, %c0_41, %c0_42] {strides = array<i32: 2, 2, 1>} : memref<18x18x128xf32, #tpu.memory_space<vmem>>, vector<8x8x128xf32>
    %39 = vector.shape_cast %38 : vector<8x8x128xf32> to vector<64x128xf32>
    %40 = arith.truncf %39 : vector<64x128xf32> to vector<64x128xbf16>
    %c0_43 = arith.constant 0 : index
    %c512 = arith.constant 512 : index
    %41 = vector.load %arg14[%c0_43, %c512] : memref<64x2048xbf16, #tpu.memory_space<vmem>>, vector<64x128xbf16>
    tpu.vector_store %arg14[%c0_43, %c512], %40 {strides = array<i32>} : memref<64x2048xbf16, #tpu.memory_space<vmem>>, vector<64x128xbf16>,
    %c1_44 = arith.constant 1 : index
    %c1_45 = arith.constant 1 : index
    %c0_46 = arith.constant 0 : index
    %42 = tpu.strided_load %arg10[%c1_44, %c1_45, %c0_46] {strides = array<i32: 2, 2, 1>} : memref<18x18x128xf32, #tpu.memory_space<vmem>>, vector<8x8x128xf32>
    %43 = vector.shape_cast %42 : vector<8x8x128xf32> to vector<64x128xf32>
    %44 = arith.truncf %43 : vector<64x128xf32> to vector<64x128xbf16>
    %c0_47 = arith.constant 0 : index
    %c640 = arith.constant 640 : index
    %45 = vector.load %arg14[%c0_47, %c640] : memref<64x2048xbf16, #tpu.memory_space<vmem>>, vector<64x128xbf16>
    tpu.vector_store %arg14[%c0_47, %c640], %44 {strides = array<i32>} : memref<64x2048xbf16, #tpu.memory_space<vmem>>, vector<64x128xbf16>,
    %c1_48 = arith.constant 1 : index
    %c2_49 = arith.constant 2 : index
    %c0_50 = arith.constant 0 : index
    %46 = tpu.strided_load %arg10[%c1_48, %c2_49, %c0_50] {strides = array<i32: 2, 2, 1>} : memref<18x18x128xf32, #tpu.memory_space<vmem>>, vector<8x8x128xf32>
    %47 = vector.shape_cast %46 : vector<8x8x128xf32> to vector<64x128xf32>
    %48 = arith.truncf %47 : vector<64x128xf32> to vector<64x128xbf16>
    %c0_51 = arith.constant 0 : index
    %c768 = arith.constant 768 : index
    %49 = vector.load %arg14[%c0_51, %c768] : memref<64x2048xbf16, #tpu.memory_space<vmem>>, vector<64x128xbf16>
    tpu.vector_store %arg14[%c0_51, %c768], %48 {strides = array<i32>} : memref<64x2048xbf16, #tpu.memory_space<vmem>>, vector<64x128xbf16>,
    %c1_52 = arith.constant 1 : index
    %c3_53 = arith.constant 3 : index
    %c0_54 = arith.constant 0 : index
    %50 = tpu.strided_load %arg10[%c1_52, %c3_53, %c0_54] {strides = array<i32: 2, 2, 1>} : memref<18x18x128xf32, #tpu.memory_space<vmem>>, vector<8x8x128xf32>
    %51 = vector.shape_cast %50 : vector<8x8x128xf32> to vector<64x128xf32>
    %52 = arith.truncf %51 : vector<64x128xf32> to vector<64x128xbf16>
    %c0_55 = arith.constant 0 : index
    %c896 = arith.constant 896 : index
    %53 = vector.load %arg14[%c0_55, %c896] : memref<64x2048xbf16, #tpu.memory_space<vmem>>, vector<64x128xbf16>
    tpu.vector_store %arg14[%c0_55, %c896], %52 {strides = array<i32>} : memref<64x2048xbf16, #tpu.memory_space<vmem>>, vector<64x128xbf16>,
    %c2_56 = arith.constant 2 : index
    %c0_57 = arith.constant 0 : index
    %c0_58 = arith.constant 0 : index
    %54 = tpu.strided_load %arg10[%c2_56, %c0_57, %c0_58] {strides = array<i32: 2, 2, 1>} : memref<18x18x128xf32, #tpu.memory_space<vmem>>, vector<8x8x128xf32>
    %55 = vector.shape_cast %54 : vector<8x8x128xf32> to vector<64x128xf32>
    %56 = arith.truncf %55 : vector<64x128xf32> to vector<64x128xbf16>
    %c0_59 = arith.constant 0 : index
    %c1024 = arith.constant 1024 : index
    %57 = vector.load %arg14[%c0_59, %c1024] : memref<64x2048xbf16, #tpu.memory_space<vmem>>, vector<64x128xbf16>
    tpu.vector_store %arg14[%c0_59, %c1024], %56 {strides = array<i32>} : memref<64x2048xbf16, #tpu.memory_space<vmem>>, vector<64x128xbf16>,
    %c2_60 = arith.constant 2 : index
    %c1_61 = arith.constant 1 : index
    %c0_62 = arith.constant 0 : index
    %58 = tpu.strided_load %arg10[%c2_60, %c1_61, %c0_62] {strides = array<i32: 2, 2, 1>} : memref<18x18x128xf32, #tpu.memory_space<vmem>>, vector<8x8x128xf32>
    %59 = vector.shape_cast %58 : vector<8x8x128xf32> to vector<64x128xf32>
    %60 = arith.truncf %59 : vector<64x128xf32> to vector<64x128xbf16>
    %c0_63 = arith.constant 0 : index
    %c1152 = arith.constant 1152 : index
    %61 = vector.load %arg14[%c0_63, %c1152] : memref<64x2048xbf16, #tpu.memory_space<vmem>>, vector<64x128xbf16>
    tpu.vector_store %arg14[%c0_63, %c1152], %60 {strides = array<i32>} : memref<64x2048xbf16, #tpu.memory_space<vmem>>, vector<64x128xbf16>,
    %c2_64 = arith.constant 2 : index
    %c2_65 = arith.constant 2 : index
    %c0_66 = arith.constant 0 : index
    %62 = tpu.strided_load %arg10[%c2_64, %c2_65, %c0_66] {strides = array<i32: 2, 2, 1>} : memref<18x18x128xf32, #tpu.memory_space<vmem>>, vector<8x8x128xf32>
    %63 = vector.shape_cast %62 : vector<8x8x128xf32> to vector<64x128xf32>
    %64 = arith.truncf %63 : vector<64x128xf32> to vector<64x128xbf16>
    %c0_67 = arith.constant 0 : index
    %c1280 = arith.constant 1280 : index
    %65 = vector.load %arg14[%c0_67, %c1280] : memref<64x2048xbf16, #tpu.memory_space<vmem>>, vector<64x128xbf16>
    tpu.vector_store %arg14[%c0_67, %c1280], %64 {strides = array<i32>} : memref<64x2048xbf16, #tpu.memory_space<vmem>>, vector<64x128xbf16>,
    %c2_68 = arith.constant 2 : index
    %c3_69 = arith.constant 3 : index
    %c0_70 = arith.constant 0 : index
    %66 = tpu.strided_load %arg10[%c2_68, %c3_69, %c0_70] {strides = array<i32: 2, 2, 1>} : memref<18x18x128xf32, #tpu.memory_space<vmem>>, vector<8x8x128xf32>
    %67 = vector.shape_cast %66 : vector<8x8x128xf32> to vector<64x128xf32>
    %68 = arith.truncf %67 : vector<64x128xf32> to vector<64x128xbf16>
    %c0_71 = arith.constant 0 : index
    %c1408 = arith.constant 1408 : index
    %69 = vector.load %arg14[%c0_71, %c1408] : memref<64x2048xbf16, #tpu.memory_space<vmem>>, vector<64x128xbf16>
    tpu.vector_store %arg14[%c0_71, %c1408], %68 {strides = array<i32>} : memref<64x2048xbf16, #tpu.memory_space<vmem>>, vector<64x128xbf16>,
    %c3_72 = arith.constant 3 : index
    %c0_73 = arith.constant 0 : index
    %c0_74 = arith.constant 0 : index
    %70 = tpu.strided_load %arg10[%c3_72, %c0_73, %c0_74] {strides = array<i32: 2, 2, 1>} : memref<18x18x128xf32, #tpu.memory_space<vmem>>, vector<8x8x128xf32>
    %71 = vector.shape_cast %70 : vector<8x8x128xf32> to vector<64x128xf32>
    %72 = arith.truncf %71 : vector<64x128xf32> to vector<64x128xbf16>
    %c0_75 = arith.constant 0 : index
    %c1536 = arith.constant 1536 : index
    %73 = vector.load %arg14[%c0_75, %c1536] : memref<64x2048xbf16, #tpu.memory_space<vmem>>, vector<64x128xbf16>
    tpu.vector_store %arg14[%c0_75, %c1536], %72 {strides = array<i32>} : memref<64x2048xbf16, #tpu.memory_space<vmem>>, vector<64x128xbf16>,
    %c3_76 = arith.constant 3 : index
    %c1_77 = arith.constant 1 : index
    %c0_78 = arith.constant 0 : index
    %74 = tpu.strided_load %arg10[%c3_76, %c1_77, %c0_78] {strides = array<i32: 2, 2, 1>} : memref<18x18x128xf32, #tpu.memory_space<vmem>>, vector<8x8x128xf32>
    %75 = vector.shape_cast %74 : vector<8x8x128xf32> to vector<64x128xf32>
    %76 = arith.truncf %75 : vector<64x128xf32> to vector<64x128xbf16>
    %c0_79 = arith.constant 0 : index
    %c1664 = arith.constant 1664 : index
    %77 = vector.load %arg14[%c0_79, %c1664] : memref<64x2048xbf16, #tpu.memory_space<vmem>>, vector<64x128xbf16>
    tpu.vector_store %arg14[%c0_79, %c1664], %76 {strides = array<i32>} : memref<64x2048xbf16, #tpu.memory_space<vmem>>, vector<64x128xbf16>,
    %c3_80 = arith.constant 3 : index
    %c2_81 = arith.constant 2 : index
    %c0_82 = arith.constant 0 : index
    %78 = tpu.strided_load %arg10[%c3_80, %c2_81, %c0_82] {strides = array<i32: 2, 2, 1>} : memref<18x18x128xf32, #tpu.memory_space<vmem>>, vector<8x8x128xf32>
    %79 = vector.shape_cast %78 : vector<8x8x128xf32> to vector<64x128xf32>
    %80 = arith.truncf %79 : vector<64x128xf32> to vector<64x128xbf16>
    %c0_83 = arith.constant 0 : index
    %c1792 = arith.constant 1792 : index
    %81 = vector.load %arg14[%c0_83, %c1792] : memref<64x2048xbf16, #tpu.memory_space<vmem>>, vector<64x128xbf16>
    tpu.vector_store %arg14[%c0_83, %c1792], %80 {strides = array<i32>} : memref<64x2048xbf16, #tpu.memory_space<vmem>>, vector<64x128xbf16>,
    %c3_84 = arith.constant 3 : index
    %c3_85 = arith.constant 3 : index
    %c0_86 = arith.constant 0 : index
    %82 = tpu.strided_load %arg10[%c3_84, %c3_85, %c0_86] {strides = array<i32: 2, 2, 1>} : memref<18x18x128xf32, #tpu.memory_space<vmem>>, vector<8x8x128xf32>
    %83 = vector.shape_cast %82 : vector<8x8x128xf32> to vector<64x128xf32>
    %84 = arith.truncf %83 : vector<64x128xf32> to vector<64x128xbf16>
    %c0_87 = arith.constant 0 : index
    %c1920 = arith.constant 1920 : index
    %85 = vector.load %arg14[%c0_87, %c1920] : memref<64x2048xbf16, #tpu.memory_space<vmem>>, vector<64x128xbf16>
    tpu.vector_store %arg14[%c0_87, %c1920], %84 {strides = array<i32>} : memref<64x2048xbf16, #tpu.memory_space<vmem>>, vector<64x128xbf16>,
    %c0_88 = arith.constant 0 : index
    %c0_89 = arith.constant 0 : index
    %86 = vector.load %arg14[%c0_88, %c0_89] : memref<64x2048xbf16, #tpu.memory_space<vmem>>, vector<64x2048xbf16>
    %c0_90 = arith.constant 0 : index
    %c0_91 = arith.constant 0 : index
    %87 = vector.load %arg4[%c0_90, %c0_91] : memref<2048x128xbf16, #tpu.memory_space<vmem>>, vector<2048x128xbf16>
    %cst_92 = arith.constant dense<0.000000e+00> : vector<64x128xf32>
    %88 = tpu.matmul %86, %87, %cst_92 {dimension_numbers = #tpu.dot_dimension_numbers<[1], [0], [0], [1], [0, 0, 1, 1], [], []>} : vector<64x2048xbf16>, vector<2048x128xbf16>, vector<64x128xf32> -> vector<64x128xf32>
    %cst_93 = arith.constant dense<0.000000e+00> : vector<128xf32>
    %89 = vector.multi_reduction <add>, %88, %cst_93 [0] : vector<64x128xf32> to vector<128xf32>
    %90 = vector.shape_cast %89 : vector<128xf32> to vector<1x128xf32>
    %cst_94 = arith.constant 6.400000e+01 : f32
    %91 = vector.broadcast %cst_94 : f32 to vector<1x128xf32>
    %92 = arith.divf %90, %91 : vector<1x128xf32>
    %93 = vector.broadcast %92 : vector<1x128xf32> to vector<64x128xf32>
    %94 = arith.subf %88, %93 : vector<64x128xf32>
    %95 = arith.mulf %94, %94 : vector<64x128xf32>
    %cst_95 = arith.constant dense<0.000000e+00> : vector<128xf32>
    %96 = vector.multi_reduction <add>, %95, %cst_95 [0] : vector<64x128xf32> to vector<128xf32>
    %97 = vector.shape_cast %96 : vector<128xf32> to vector<1x128xf32>
    %cst_96 = arith.constant 6.400000e+01 : f32
    %98 = vector.broadcast %cst_96 : f32 to vector<1x128xf32>
    %99 = arith.divf %97, %98 : vector<1x128xf32>
    %100 = vector.broadcast %92 : vector<1x128xf32> to vector<64x128xf32>
    %101 = arith.subf %88, %100 : vector<64x128xf32>
    %cst_97 = arith.constant 9.99999974E-6 : f32
    %102 = vector.broadcast %cst_97 : f32 to vector<1x128xf32>
    %103 = arith.addf %99, %102 : vector<1x128xf32>
    %104 = math.rsqrt %103 : vector<1x128xf32>
    %105 = vector.broadcast %104 : vector<1x128xf32> to vector<64x128xf32>
    %106 = arith.mulf %101, %105 : vector<64x128xf32>
    %cst_98 = arith.constant 0.000000e+00 : f32
    %107 = vector.broadcast %cst_98 : f32 to vector<64x128xf32>
    %108 = arith.cmpf ogt, %106, %107 : vector<64x128xf32>
    %cst_99 = arith.constant 2.000000e-01 : f32
    %109 = vector.broadcast %cst_99 : f32 to vector<64x128xf32>
    %110 = arith.mulf %109, %106 : vector<64x128xf32>
    %111 = arith.select %108, %106, %110 : vector<64x128xi1>, vector<64x128xf32>
    %cst_100 = arith.constant 0.000000e+00 : f32
    %112 = vector.broadcast %cst_100 : f32 to vector<1x10x128xf32>
    %c0_101 = arith.constant 0 : index
    %c0_102 = arith.constant 0 : index
    %c0_103 = arith.constant 0 : index
    %113 = vector.load %arg11[%c0_101, %c0_102, %c0_103] : memref<10x10x128xf32, #tpu.memory_space<vmem>>, vector<1x10x128xf32>
    tpu.vector_store %arg11[%c0_101, %c0_102, %c0_103], %112 {strides = array<i32>} : memref<10x10x128xf32, #tpu.memory_space<vmem>>, vector<1x10x128xf32>,
    %cst_104 = arith.constant 0.000000e+00 : f32
    %114 = vector.broadcast %cst_104 : f32 to vector<1x10x128xf32>
    %c9 = arith.constant 9 : index
    %c0_105 = arith.constant 0 : index
    %c0_106 = arith.constant 0 : index
    %115 = vector.load %arg11[%c9, %c0_105, %c0_106] : memref<10x10x128xf32, #tpu.memory_space<vmem>>, vector<1x10x128xf32>
    tpu.vector_store %arg11[%c9, %c0_105, %c0_106], %114 {strides = array<i32>} : memref<10x10x128xf32, #tpu.memory_space<vmem>>, vector<1x10x128xf32>,
    %cst_107 = arith.constant 0.000000e+00 : f32
    %116 = vector.broadcast %cst_107 : f32 to vector<10x1x128xf32>
    %c0_108 = arith.constant 0 : index
    %c0_109 = arith.constant 0 : index
    %c0_110 = arith.constant 0 : index
    %117 = vector.load %arg11[%c0_108, %c0_109, %c0_110] : memref<10x10x128xf32, #tpu.memory_space<vmem>>, vector<10x1x128xf32>
    tpu.vector_store %arg11[%c0_108, %c0_109, %c0_110], %116 {strides = array<i32>} : memref<10x10x128xf32, #tpu.memory_space<vmem>>, vector<10x1x128xf32>,
    %cst_111 = arith.constant 0.000000e+00 : f32
    %118 = vector.broadcast %cst_111 : f32 to vector<10x1x128xf32>
    %c0_112 = arith.constant 0 : index
    %c9_113 = arith.constant 9 : index
    %c0_114 = arith.constant 0 : index
    %119 = vector.load %arg11[%c0_112, %c9_113, %c0_114] : memref<10x10x128xf32, #tpu.memory_space<vmem>>, vector<10x1x128xf32>
    tpu.vector_store %arg11[%c0_112, %c9_113, %c0_114], %118 {strides = array<i32>} : memref<10x10x128xf32, #tpu.memory_space<vmem>>, vector<10x1x128xf32>,
    %120 = vector.shape_cast %111 : vector<64x128xf32> to vector<8x8x128xf32>
    %c1_115 = arith.constant 1 : index
    %c1_116 = arith.constant 1 : index
    %c0_117 = arith.constant 0 : index
    %121 = vector.load %arg11[%c1_115, %c1_116, %c0_117] : memref<10x10x128xf32, #tpu.memory_space<vmem>>, vector<8x8x128xf32>
    tpu.vector_store %arg11[%c1_115, %c1_116, %c0_117], %120 {strides = array<i32>} : memref<10x10x128xf32, #tpu.memory_space<vmem>>, vector<8x8x128xf32>,
    %c0_118 = arith.constant 0 : index
    %c0_119 = arith.constant 0 : index
    %c0_120 = arith.constant 0 : index
    %122 = tpu.strided_load %arg11[%c0_118, %c0_119, %c0_120] {strides = array<i32: 1, 2, 1>} : memref<10x10x128xf32, #tpu.memory_space<vmem>>, vector<4x4x128xf32>
    %123 = arith.truncf %122 : vector<4x4x128xf32> to vector<4x4x128xbf16>
    %c0_121 = arith.constant 0 : index
    %c0_122 = arith.constant 0 : index
    %c0_123 = arith.constant 0 : index
    %124 = vector.load %arg15[%c0_121, %c0_122, %c0_123] : memref<4x16x512xbf16, #tpu.memory_space<vmem>>, vector<4x4x128xbf16>
    tpu.vector_store %arg15[%c0_121, %c0_122, %c0_123], %123 {strides = array<i32>} : memref<4x16x512xbf16, #tpu.memory_space<vmem>>, vector<4x4x128xbf16>,
    %c0_124 = arith.constant 0 : index
    %c1_125 = arith.constant 1 : index
    %c0_126 = arith.constant 0 : index
    %125 = tpu.strided_load %arg11[%c0_124, %c1_125, %c0_126] {strides = array<i32: 1, 2, 1>} : memref<10x10x128xf32, #tpu.memory_space<vmem>>, vector<4x4x128xf32>
    %126 = arith.truncf %125 : vector<4x4x128xf32> to vector<4x4x128xbf16>
    %c0_127 = arith.constant 0 : index
    %c0_128 = arith.constant 0 : index
    %c128_129 = arith.constant 128 : index
    %127 = vector.load %arg15[%c0_127, %c0_128, %c128_129] : memref<4x16x512xbf16, #tpu.memory_space<vmem>>, vector<4x4x128xbf16>
    tpu.vector_store %arg15[%c0_127, %c0_128, %c128_129], %126 {strides = array<i32>} : memref<4x16x512xbf16, #tpu.memory_space<vmem>>, vector<4x4x128xbf16>,
    %c0_130 = arith.constant 0 : index
    %c2_131 = arith.constant 2 : index
    %c0_132 = arith.constant 0 : index
    %128 = tpu.strided_load %arg11[%c0_130, %c2_131, %c0_132] {strides = array<i32: 1, 2, 1>} : memref<10x10x128xf32, #tpu.memory_space<vmem>>, vector<4x4x128xf32>
    %129 = arith.truncf %128 : vector<4x4x128xf32> to vector<4x4x128xbf16>
    %c0_133 = arith.constant 0 : index
    %c0_134 = arith.constant 0 : index
    %c256_135 = arith.constant 256 : index
    %130 = vector.load %arg15[%c0_133, %c0_134, %c256_135] : memref<4x16x512xbf16, #tpu.memory_space<vmem>>, vector<4x4x128xbf16>
    tpu.vector_store %arg15[%c0_133, %c0_134, %c256_135], %129 {strides = array<i32>} : memref<4x16x512xbf16, #tpu.memory_space<vmem>>, vector<4x4x128xbf16>,
    %c0_136 = arith.constant 0 : index
    %c3_137 = arith.constant 3 : index
    %c0_138 = arith.constant 0 : index
    %131 = tpu.strided_load %arg11[%c0_136, %c3_137, %c0_138] {strides = array<i32: 1, 2, 1>} : memref<10x10x128xf32, #tpu.memory_space<vmem>>, vector<4x4x128xf32>
    %132 = arith.truncf %131 : vector<4x4x128xf32> to vector<4x4x128xbf16>
    %c0_139 = arith.constant 0 : index
    %c0_140 = arith.constant 0 : index
    %c384_141 = arith.constant 384 : index
    %133 = vector.load %arg15[%c0_139, %c0_140, %c384_141] : memref<4x16x512xbf16, #tpu.memory_space<vmem>>, vector<4x4x128xbf16>
    tpu.vector_store %arg15[%c0_139, %c0_140, %c384_141], %132 {strides = array<i32>} : memref<4x16x512xbf16, #tpu.memory_space<vmem>>, vector<4x4x128xbf16>,
    %c2_142 = arith.constant 2 : index
    %c0_143 = arith.constant 0 : index
    %c0_144 = arith.constant 0 : index
    %134 = tpu.strided_load %arg11[%c2_142, %c0_143, %c0_144] {strides = array<i32: 1, 2, 1>} : memref<10x10x128xf32, #tpu.memory_space<vmem>>, vector<4x4x128xf32>
    %135 = arith.truncf %134 : vector<4x4x128xf32> to vector<4x4x128xbf16>
    %c0_145 = arith.constant 0 : index
    %c4 = arith.constant 4 : index
    %c0_146 = arith.constant 0 : index
    %136 = vector.load %arg15[%c0_145, %c4, %c0_146] : memref<4x16x512xbf16, #tpu.memory_space<vmem>>, vector<4x4x128xbf16>
    tpu.vector_store %arg15[%c0_145, %c4, %c0_146], %135 {strides = array<i32>} : memref<4x16x512xbf16, #tpu.memory_space<vmem>>, vector<4x4x128xbf16>,
    %c2_147 = arith.constant 2 : index
    %c1_148 = arith.constant 1 : index
    %c0_149 = arith.constant 0 : index
    %137 = tpu.strided_load %arg11[%c2_147, %c1_148, %c0_149] {strides = array<i32: 1, 2, 1>} : memref<10x10x128xf32, #tpu.memory_space<vmem>>, vector<4x4x128xf32>
    %138 = arith.truncf %137 : vector<4x4x128xf32> to vector<4x4x128xbf16>
    %c0_150 = arith.constant 0 : index
    %c4_151 = arith.constant 4 : index
    %c128_152 = arith.constant 128 : index
    %139 = vector.load %arg15[%c0_150, %c4_151, %c128_152] : memref<4x16x512xbf16, #tpu.memory_space<vmem>>, vector<4x4x128xbf16>
    tpu.vector_store %arg15[%c0_150, %c4_151, %c128_152], %138 {strides = array<i32>} : memref<4x16x512xbf16, #tpu.memory_space<vmem>>, vector<4x4x128xbf16>,
    %c2_153 = arith.constant 2 : index
    %c2_154 = arith.constant 2 : index
    %c0_155 = arith.constant 0 : index
    %140 = tpu.strided_load %arg11[%c2_153, %c2_154, %c0_155] {strides = array<i32: 1, 2, 1>} : memref<10x10x128xf32, #tpu.memory_space<vmem>>, vector<4x4x128xf32>
    %141 = arith.truncf %140 : vector<4x4x128xf32> to vector<4x4x128xbf16>
    %c0_156 = arith.constant 0 : index
    %c4_157 = arith.constant 4 : index
    %c256_158 = arith.constant 256 : index
    %142 = vector.load %arg15[%c0_156, %c4_157, %c256_158] : memref<4x16x512xbf16, #tpu.memory_space<vmem>>, vector<4x4x128xbf16>
    tpu.vector_store %arg15[%c0_156, %c4_157, %c256_158], %141 {strides = array<i32>} : memref<4x16x512xbf16, #tpu.memory_space<vmem>>, vector<4x4x128xbf16>,
    %c2_159 = arith.constant 2 : index
    %c3_160 = arith.constant 3 : index
    %c0_161 = arith.constant 0 : index
    %143 = tpu.strided_load %arg11[%c2_159, %c3_160, %c0_161] {strides = array<i32: 1, 2, 1>} : memref<10x10x128xf32, #tpu.memory_space<vmem>>, vector<4x4x128xf32>
    %144 = arith.truncf %143 : vector<4x4x128xf32> to vector<4x4x128xbf16>
    %c0_162 = arith.constant 0 : index
    %c4_163 = arith.constant 4 : index
    %c384_164 = arith.constant 384 : index
    %145 = vector.load %arg15[%c0_162, %c4_163, %c384_164] : memref<4x16x512xbf16, #tpu.memory_space<vmem>>, vector<4x4x128xbf16>
    tpu.vector_store %arg15[%c0_162, %c4_163, %c384_164], %144 {strides = array<i32>} : memref<4x16x512xbf16, #tpu.memory_space<vmem>>, vector<4x4x128xbf16>,
    %c4_165 = arith.constant 4 : index
    %c0_166 = arith.constant 0 : index
    %c0_167 = arith.constant 0 : index
    %146 = tpu.strided_load %arg11[%c4_165, %c0_166, %c0_167] {strides = array<i32: 1, 2, 1>} : memref<10x10x128xf32, #tpu.memory_space<vmem>>, vector<4x4x128xf32>
    %147 = arith.truncf %146 : vector<4x4x128xf32> to vector<4x4x128xbf16>
    %c0_168 = arith.constant 0 : index
    %c8 = arith.constant 8 : index
    %c0_169 = arith.constant 0 : index
    %148 = vector.load %arg15[%c0_168, %c8, %c0_169] : memref<4x16x512xbf16, #tpu.memory_space<vmem>>, vector<4x4x128xbf16>
    tpu.vector_store %arg15[%c0_168, %c8, %c0_169], %147 {strides = array<i32>} : memref<4x16x512xbf16, #tpu.memory_space<vmem>>, vector<4x4x128xbf16>,
    %c4_170 = arith.constant 4 : index
    %c1_171 = arith.constant 1 : index
    %c0_172 = arith.constant 0 : index
    %149 = tpu.strided_load %arg11[%c4_170, %c1_171, %c0_172] {strides = array<i32: 1, 2, 1>} : memref<10x10x128xf32, #tpu.memory_space<vmem>>, vector<4x4x128xf32>
    %150 = arith.truncf %149 : vector<4x4x128xf32> to vector<4x4x128xbf16>
    %c0_173 = arith.constant 0 : index
    %c8_174 = arith.constant 8 : index
    %c128_175 = arith.constant 128 : index
    %151 = vector.load %arg15[%c0_173, %c8_174, %c128_175] : memref<4x16x512xbf16, #tpu.memory_space<vmem>>, vector<4x4x128xbf16>
    tpu.vector_store %arg15[%c0_173, %c8_174, %c128_175], %150 {strides = array<i32>} : memref<4x16x512xbf16, #tpu.memory_space<vmem>>, vector<4x4x128xbf16>,
    %c4_176 = arith.constant 4 : index
    %c2_177 = arith.constant 2 : index
    %c0_178 = arith.constant 0 : index
    %152 = tpu.strided_load %arg11[%c4_176, %c2_177, %c0_178] {strides = array<i32: 1, 2, 1>} : memref<10x10x128xf32, #tpu.memory_space<vmem>>, vector<4x4x128xf32>
    %153 = arith.truncf %152 : vector<4x4x128xf32> to vector<4x4x128xbf16>
    %c0_179 = arith.constant 0 : index
    %c8_180 = arith.constant 8 : index
    %c256_181 = arith.constant 256 : index
    %154 = vector.load %arg15[%c0_179, %c8_180, %c256_181] : memref<4x16x512xbf16, #tpu.memory_space<vmem>>, vector<4x4x128xbf16>
    tpu.vector_store %arg15[%c0_179, %c8_180, %c256_181], %153 {strides = array<i32>} : memref<4x16x512xbf16, #tpu.memory_space<vmem>>, vector<4x4x128xbf16>,
    %c4_182 = arith.constant 4 : index
    %c3_183 = arith.constant 3 : index
    %c0_184 = arith.constant 0 : index
    %155 = tpu.strided_load %arg11[%c4_182, %c3_183, %c0_184] {strides = array<i32: 1, 2, 1>} : memref<10x10x128xf32, #tpu.memory_space<vmem>>, vector<4x4x128xf32>
    %156 = arith.truncf %155 : vector<4x4x128xf32> to vector<4x4x128xbf16>
    %c0_185 = arith.constant 0 : index
    %c8_186 = arith.constant 8 : index
    %c384_187 = arith.constant 384 : index
    %157 = vector.load %arg15[%c0_185, %c8_186, %c384_187] : memref<4x16x512xbf16, #tpu.memory_space<vmem>>, vector<4x4x128xbf16>
    tpu.vector_store %arg15[%c0_185, %c8_186, %c384_187], %156 {strides = array<i32>} : memref<4x16x512xbf16, #tpu.memory_space<vmem>>, vector<4x4x128xbf16>,
    %c6 = arith.constant 6 : index
    %c0_188 = arith.constant 0 : index
    %c0_189 = arith.constant 0 : index
    %158 = tpu.strided_load %arg11[%c6, %c0_188, %c0_189] {strides = array<i32: 1, 2, 1>} : memref<10x10x128xf32, #tpu.memory_space<vmem>>, vector<4x4x128xf32>
    %159 = arith.truncf %158 : vector<4x4x128xf32> to vector<4x4x128xbf16>
    %c0_190 = arith.constant 0 : index
    %c12 = arith.constant 12 : index
    %c0_191 = arith.constant 0 : index
    %160 = vector.load %arg15[%c0_190, %c12, %c0_191] : memref<4x16x512xbf16, #tpu.memory_space<vmem>>, vector<4x4x128xbf16>
    tpu.vector_store %arg15[%c0_190, %c12, %c0_191], %159 {strides = array<i32>} : memref<4x16x512xbf16, #tpu.memory_space<vmem>>, vector<4x4x128xbf16>,
    %c6_192 = arith.constant 6 : index
    %c1_193 = arith.constant 1 : index
    %c0_194 = arith.constant 0 : index
    %161 = tpu.strided_load %arg11[%c6_192, %c1_193, %c0_194] {strides = array<i32: 1, 2, 1>} : memref<10x10x128xf32, #tpu.memory_space<vmem>>, vector<4x4x128xf32>
    %162 = arith.truncf %161 : vector<4x4x128xf32> to vector<4x4x128xbf16>
    %c0_195 = arith.constant 0 : index
    %c12_196 = arith.constant 12 : index
    %c128_197 = arith.constant 128 : index
    %163 = vector.load %arg15[%c0_195, %c12_196, %c128_197] : memref<4x16x512xbf16, #tpu.memory_space<vmem>>, vector<4x4x128xbf16>
    tpu.vector_store %arg15[%c0_195, %c12_196, %c128_197], %162 {strides = array<i32>} : memref<4x16x512xbf16, #tpu.memory_space<vmem>>, vector<4x4x128xbf16>,
    %c6_198 = arith.constant 6 : index
    %c2_199 = arith.constant 2 : index
    %c0_200 = arith.constant 0 : index
    %164 = tpu.strided_load %arg11[%c6_198, %c2_199, %c0_200] {strides = array<i32: 1, 2, 1>} : memref<10x10x128xf32, #tpu.memory_space<vmem>>, vector<4x4x128xf32>
    %165 = arith.truncf %164 : vector<4x4x128xf32> to vector<4x4x128xbf16>
    %c0_201 = arith.constant 0 : index
    %c12_202 = arith.constant 12 : index
    %c256_203 = arith.constant 256 : index
    %166 = vector.load %arg15[%c0_201, %c12_202, %c256_203] : memref<4x16x512xbf16, #tpu.memory_space<vmem>>, vector<4x4x128xbf16>
    tpu.vector_store %arg15[%c0_201, %c12_202, %c256_203], %165 {strides = array<i32>} : memref<4x16x512xbf16, #tpu.memory_space<vmem>>, vector<4x4x128xbf16>,
    %c6_204 = arith.constant 6 : index
    %c3_205 = arith.constant 3 : index
    %c0_206 = arith.constant 0 : index
    %167 = tpu.strided_load %arg11[%c6_204, %c3_205, %c0_206] {strides = array<i32: 1, 2, 1>} : memref<10x10x128xf32, #tpu.memory_space<vmem>>, vector<4x4x128xf32>
    %168 = arith.truncf %167 : vector<4x4x128xf32> to vector<4x4x128xbf16>
    %c0_207 = arith.constant 0 : index
    %c12_208 = arith.constant 12 : index
    %c384_209 = arith.constant 384 : index
    %169 = vector.load %arg15[%c0_207, %c12_208, %c384_209] : memref<4x16x512xbf16, #tpu.memory_space<vmem>>, vector<4x4x128xbf16>
    tpu.vector_store %arg15[%c0_207, %c12_208, %c384_209], %168 {strides = array<i32>} : memref<4x16x512xbf16, #tpu.memory_space<vmem>>, vector<4x4x128xbf16>,
    %c0_210 = arith.constant 0 : index
    %c0_211 = arith.constant 0 : index
    %c0_212 = arith.constant 0 : index
    %170 = vector.load %arg15[%c0_210, %c0_211, %c0_212] : memref<4x16x512xbf16, #tpu.memory_space<vmem>>, vector<1x16x512xbf16>
    %171 = vector.shape_cast %170 : vector<1x16x512xbf16> to vector<16x512xbf16>
    %c0_213 = arith.constant 0 : index
    %c0_214 = arith.constant 0 : index
    %c0_215 = arith.constant 0 : index
    %172 = vector.load %arg5[%c0_213, %c0_214, %c0_215] : memref<4x512x256xbf16, #tpu.memory_space<vmem>>, vector<1x512x256xbf16>
    %173 = vector.shape_cast %172 : vector<1x512x256xbf16> to vector<512x256xbf16>
    %cst_216 = arith.constant dense<0.000000e+00> : vector<16x256xf32>
    %174 = tpu.matmul %171, %173, %cst_216 {dimension_numbers = #tpu.dot_dimension_numbers<[1], [0], [0], [1], [0, 0, 1, 1], [], []>} : vector<16x512xbf16>, vector<512x256xbf16>, vector<16x256xf32> -> vector<16x256xf32>
    %c1_217 = arith.constant 1 : index
    %c0_218 = arith.constant 0 : index
    %c0_219 = arith.constant 0 : index
    %175 = vector.load %arg15[%c1_217, %c0_218, %c0_219] : memref<4x16x512xbf16, #tpu.memory_space<vmem>>, vector<1x16x512xbf16>
    %176 = vector.shape_cast %175 : vector<1x16x512xbf16> to vector<16x512xbf16>
    %c1_220 = arith.constant 1 : index
    %c0_221 = arith.constant 0 : index
    %c0_222 = arith.constant 0 : index
    %177 = vector.load %arg5[%c1_220, %c0_221, %c0_222] : memref<4x512x256xbf16, #tpu.memory_space<vmem>>, vector<1x512x256xbf16>
    %178 = vector.shape_cast %177 : vector<1x512x256xbf16> to vector<512x256xbf16>
    %cst_223 = arith.constant dense<0.000000e+00> : vector<16x256xf32>
    %179 = tpu.matmul %176, %178, %cst_223 {dimension_numbers = #tpu.dot_dimension_numbers<[1], [0], [0], [1], [0, 0, 1, 1], [], []>} : vector<16x512xbf16>, vector<512x256xbf16>, vector<16x256xf32> -> vector<16x256xf32>
    %180 = arith.addf %174, %179 : vector<16x256xf32>
    %c2_224 = arith.constant 2 : index
    %c0_225 = arith.constant 0 : index
    %c0_226 = arith.constant 0 : index
    %181 = vector.load %arg15[%c2_224, %c0_225, %c0_226] : memref<4x16x512xbf16, #tpu.memory_space<vmem>>, vector<1x16x512xbf16>
    %182 = vector.shape_cast %181 : vector<1x16x512xbf16> to vector<16x512xbf16>
    %c2_227 = arith.constant 2 : index
    %c0_228 = arith.constant 0 : index
    %c0_229 = arith.constant 0 : index
    %183 = vector.load %arg5[%c2_227, %c0_228, %c0_229] : memref<4x512x256xbf16, #tpu.memory_space<vmem>>, vector<1x512x256xbf16>
    %184 = vector.shape_cast %183 : vector<1x512x256xbf16> to vector<512x256xbf16>
    %cst_230 = arith.constant dense<0.000000e+00> : vector<16x256xf32>
    %185 = tpu.matmul %182, %184, %cst_230 {dimension_numbers = #tpu.dot_dimension_numbers<[1], [0], [0], [1], [0, 0, 1, 1], [], []>} : vector<16x512xbf16>, vector<512x256xbf16>, vector<16x256xf32> -> vector<16x256xf32>
    %186 = arith.addf %180, %185 : vector<16x256xf32>
    %c3_231 = arith.constant 3 : index
    %c0_232 = arith.constant 0 : index
    %c0_233 = arith.constant 0 : index
    %187 = vector.load %arg15[%c3_231, %c0_232, %c0_233] : memref<4x16x512xbf16, #tpu.memory_space<vmem>>, vector<1x16x512xbf16>
    %188 = vector.shape_cast %187 : vector<1x16x512xbf16> to vector<16x512xbf16>
    %c3_234 = arith.constant 3 : index
    %c0_235 = arith.constant 0 : index
    %c0_236 = arith.constant 0 : index
    %189 = vector.load %arg5[%c3_234, %c0_235, %c0_236] : memref<4x512x256xbf16, #tpu.memory_space<vmem>>, vector<1x512x256xbf16>
    %190 = vector.shape_cast %189 : vector<1x512x256xbf16> to vector<512x256xbf16>
    %cst_237 = arith.constant dense<0.000000e+00> : vector<16x256xf32>
    %191 = tpu.matmul %188, %190, %cst_237 {dimension_numbers = #tpu.dot_dimension_numbers<[1], [0], [0], [1], [0, 0, 1, 1], [], []>} : vector<16x512xbf16>, vector<512x256xbf16>, vector<16x256xf32> -> vector<16x256xf32>
    %192 = arith.addf %186, %191 : vector<16x256xf32>
    %cst_238 = arith.constant dense<0.000000e+00> : vector<256xf32>
    %193 = vector.multi_reduction <add>, %192, %cst_238 [0] : vector<16x256xf32> to vector<256xf32>
    %194 = vector.shape_cast %193 : vector<256xf32> to vector<1x256xf32>
    %cst_239 = arith.constant 1.600000e+01 : f32
    %195 = vector.broadcast %cst_239 : f32 to vector<1x256xf32>
    %196 = arith.divf %194, %195 : vector<1x256xf32>
    %197 = vector.broadcast %196 : vector<1x256xf32> to vector<16x256xf32>
    %198 = arith.subf %192, %197 : vector<16x256xf32>
    %199 = arith.mulf %198, %198 : vector<16x256xf32>
    %cst_240 = arith.constant dense<0.000000e+00> : vector<256xf32>
    %200 = vector.multi_reduction <add>, %199, %cst_240 [0] : vector<16x256xf32> to vector<256xf32>
    %201 = vector.shape_cast %200 : vector<256xf32> to vector<1x256xf32>
    %cst_241 = arith.constant 1.600000e+01 : f32
    %202 = vector.broadcast %cst_241 : f32 to vector<1x256xf32>
    %203 = arith.divf %201, %202 : vector<1x256xf32>
    %204 = vector.broadcast %196 : vector<1x256xf32> to vector<16x256xf32>
    %205 = arith.subf %192, %204 : vector<16x256xf32>
    %cst_242 = arith.constant 9.99999974E-6 : f32
    %206 = vector.broadcast %cst_242 : f32 to vector<1x256xf32>
    %207 = arith.addf %203, %206 : vector<1x256xf32>
    %208 = math.rsqrt %207 : vector<1x256xf32>
    %209 = vector.broadcast %208 : vector<1x256xf32> to vector<16x256xf32>
    %210 = arith.mulf %205, %209 : vector<16x256xf32>
    %cst_243 = arith.constant 0.000000e+00 : f32
    %211 = vector.broadcast %cst_243 : f32 to vector<16x256xf32>
    %212 = arith.cmpf ogt, %210, %211 : vector<16x256xf32>
    %cst_244 = arith.constant 2.000000e-01 : f32
    %213 = vector.broadcast %cst_244 : f32 to vector<16x256xf32>
    %214 = arith.mulf %213, %210 : vector<16x256xf32>
    %215 = arith.select %212, %210, %214 : vector<16x256xi1>, vector<16x256xf32>
    %cst_245 = arith.constant 0.000000e+00 : f32
    %216 = vector.broadcast %cst_245 : f32 to vector<1x6x256xf32>
    %c0_246 = arith.constant 0 : index
    %c0_247 = arith.constant 0 : index
    %c0_248 = arith.constant 0 : index
    %217 = vector.load %arg12[%c0_246, %c0_247, %c0_248] : memref<6x6x256xf32, #tpu.memory_space<vmem>>, vector<1x6x256xf32>
    tpu.vector_store %arg12[%c0_246, %c0_247, %c0_248], %216 {strides = array<i32>} : memref<6x6x256xf32, #tpu.memory_space<vmem>>, vector<1x6x256xf32>,
    %cst_249 = arith.constant 0.000000e+00 : f32
    %218 = vector.broadcast %cst_249 : f32 to vector<1x6x256xf32>
    %c5 = arith.constant 5 : index
    %c0_250 = arith.constant 0 : index
    %c0_251 = arith.constant 0 : index
    %219 = vector.load %arg12[%c5, %c0_250, %c0_251] : memref<6x6x256xf32, #tpu.memory_space<vmem>>, vector<1x6x256xf32>
    tpu.vector_store %arg12[%c5, %c0_250, %c0_251], %218 {strides = array<i32>} : memref<6x6x256xf32, #tpu.memory_space<vmem>>, vector<1x6x256xf32>,
    %cst_252 = arith.constant 0.000000e+00 : f32
    %220 = vector.broadcast %cst_252 : f32 to vector<6x1x256xf32>
    %c0_253 = arith.constant 0 : index
    %c0_254 = arith.constant 0 : index
    %c0_255 = arith.constant 0 : index
    %221 = vector.load %arg12[%c0_253, %c0_254, %c0_255] : memref<6x6x256xf32, #tpu.memory_space<vmem>>, vector<6x1x256xf32>
    tpu.vector_store %arg12[%c0_253, %c0_254, %c0_255], %220 {strides = array<i32>} : memref<6x6x256xf32, #tpu.memory_space<vmem>>, vector<6x1x256xf32>,
    %cst_256 = arith.constant 0.000000e+00 : f32
    %222 = vector.broadcast %cst_256 : f32 to vector<6x1x256xf32>
    %c0_257 = arith.constant 0 : index
    %c5_258 = arith.constant 5 : index
    %c0_259 = arith.constant 0 : index
    %223 = vector.load %arg12[%c0_257, %c5_258, %c0_259] : memref<6x6x256xf32, #tpu.memory_space<vmem>>, vector<6x1x256xf32>
    tpu.vector_store %arg12[%c0_257, %c5_258, %c0_259], %222 {strides = array<i32>} : memref<6x6x256xf32, #tpu.memory_space<vmem>>, vector<6x1x256xf32>,
    %224 = vector.extract_strided_slice %215 {offsets = [0, 0], sizes = [4, 256], strides = [1, 1]} : vector<16x256xf32> to vector<4x256xf32>
    %c1_260 = arith.constant 1 : index
    %c1_261 = arith.constant 1 : index
    %c0_262 = arith.constant 0 : index
    %225 = vector.load %arg12[%c1_260, %c1_261, %c0_262] : memref<6x6x256xf32, #tpu.memory_space<vmem>>, vector<1x4x256xf32>
    %226 = vector.shape_cast %225 : vector<1x4x256xf32> to vector<4x256xf32>
    %227 = vector.shape_cast %224 : vector<4x256xf32> to vector<1x4x256xf32>
    tpu.vector_store %arg12[%c1_260, %c1_261, %c0_262], %227 {strides = array<i32>} : memref<6x6x256xf32, #tpu.memory_space<vmem>>, vector<1x4x256xf32>,
    %228 = vector.extract_strided_slice %215 {offsets = [4, 0], sizes = [4, 256], strides = [1, 1]} : vector<16x256xf32> to vector<4x256xf32>
    %c2_263 = arith.constant 2 : index
    %c1_264 = arith.constant 1 : index
    %c0_265 = arith.constant 0 : index
    %229 = vector.load %arg12[%c2_263, %c1_264, %c0_265] : memref<6x6x256xf32, #tpu.memory_space<vmem>>, vector<1x4x256xf32>
    %230 = vector.shape_cast %229 : vector<1x4x256xf32> to vector<4x256xf32>
    %231 = vector.shape_cast %228 : vector<4x256xf32> to vector<1x4x256xf32>
    tpu.vector_store %arg12[%c2_263, %c1_264, %c0_265], %231 {strides = array<i32>} : memref<6x6x256xf32, #tpu.memory_space<vmem>>, vector<1x4x256xf32>,
    %232 = vector.extract_strided_slice %215 {offsets = [8, 0], sizes = [4, 256], strides = [1, 1]} : vector<16x256xf32> to vector<4x256xf32>
    %c3_266 = arith.constant 3 : index
    %c1_267 = arith.constant 1 : index
    %c0_268 = arith.constant 0 : index
    %233 = vector.load %arg12[%c3_266, %c1_267, %c0_268] : memref<6x6x256xf32, #tpu.memory_space<vmem>>, vector<1x4x256xf32>
    %234 = vector.shape_cast %233 : vector<1x4x256xf32> to vector<4x256xf32>
    %235 = vector.shape_cast %232 : vector<4x256xf32> to vector<1x4x256xf32>
    tpu.vector_store %arg12[%c3_266, %c1_267, %c0_268], %235 {strides = array<i32>} : memref<6x6x256xf32, #tpu.memory_space<vmem>>, vector<1x4x256xf32>,
    %236 = vector.extract_strided_slice %215 {offsets = [12, 0], sizes = [4, 256], strides = [1, 1]} : vector<16x256xf32> to vector<4x256xf32>
    %c4_269 = arith.constant 4 : index
    %c1_270 = arith.constant 1 : index
    %c0_271 = arith.constant 0 : index
    %237 = vector.load %arg12[%c4_269, %c1_270, %c0_271] : memref<6x6x256xf32, #tpu.memory_space<vmem>>, vector<1x4x256xf32>
    %238 = vector.shape_cast %237 : vector<1x4x256xf32> to vector<4x256xf32>
    %239 = vector.shape_cast %236 : vector<4x256xf32> to vector<1x4x256xf32>
    tpu.vector_store %arg12[%c4_269, %c1_270, %c0_271], %239 {strides = array<i32>} : memref<6x6x256xf32, #tpu.memory_space<vmem>>, vector<1x4x256xf32>,
    %c0_272 = arith.constant 0 : index
    %c0_273 = arith.constant 0 : index
    %c0_274 = arith.constant 0 : index
    %240 = vector.load %arg12[%c0_272, %c0_273, %c0_274] : memref<6x6x256xf32, #tpu.memory_space<vmem>>, vector<4x3x256xf32>
    %c0_275 = arith.constant 0 : index
    %c0_276 = arith.constant 0 : index
    %c0_277 = arith.constant 0 : index
    %241 = vector.load %arg16[%c0_275, %c0_276, %c0_277] : memref<4x9x1024xf32, #tpu.memory_space<vmem>>, vector<4x3x256xf32>
    tpu.vector_store %arg16[%c0_275, %c0_276, %c0_277], %240 {strides = array<i32>} : memref<4x9x1024xf32, #tpu.memory_space<vmem>>, vector<4x3x256xf32>,
    %c0_278 = arith.constant 0 : index
    %c1_279 = arith.constant 1 : index
    %c0_280 = arith.constant 0 : index
    %242 = vector.load %arg12[%c0_278, %c1_279, %c0_280] : memref<6x6x256xf32, #tpu.memory_space<vmem>>, vector<4x3x256xf32>
    %c0_281 = arith.constant 0 : index
    %c0_282 = arith.constant 0 : index
    %c256_283 = arith.constant 256 : index
    %243 = vector.load %arg16[%c0_281, %c0_282, %c256_283] : memref<4x9x1024xf32, #tpu.memory_space<vmem>>, vector<4x3x256xf32>
    tpu.vector_store %arg16[%c0_281, %c0_282, %c256_283], %242 {strides = array<i32>} : memref<4x9x1024xf32, #tpu.memory_space<vmem>>, vector<4x3x256xf32>,
    %c0_284 = arith.constant 0 : index
    %c2_285 = arith.constant 2 : index
    %c0_286 = arith.constant 0 : index
    %244 = vector.load %arg12[%c0_284, %c2_285, %c0_286] : memref<6x6x256xf32, #tpu.memory_space<vmem>>, vector<4x3x256xf32>
    %c0_287 = arith.constant 0 : index
    %c0_288 = arith.constant 0 : index
    %c512_289 = arith.constant 512 : index
    %245 = vector.load %arg16[%c0_287, %c0_288, %c512_289] : memref<4x9x1024xf32, #tpu.memory_space<vmem>>, vector<4x3x256xf32>
    tpu.vector_store %arg16[%c0_287, %c0_288, %c512_289], %244 {strides = array<i32>} : memref<4x9x1024xf32, #tpu.memory_space<vmem>>, vector<4x3x256xf32>,
    %c0_290 = arith.constant 0 : index
    %c3_291 = arith.constant 3 : index
    %c0_292 = arith.constant 0 : index
    %246 = vector.load %arg12[%c0_290, %c3_291, %c0_292] : memref<6x6x256xf32, #tpu.memory_space<vmem>>, vector<4x3x256xf32>
    %c0_293 = arith.constant 0 : index
    %c0_294 = arith.constant 0 : index
    %c768_295 = arith.constant 768 : index
    %247 = vector.load %arg16[%c0_293, %c0_294, %c768_295] : memref<4x9x1024xf32, #tpu.memory_space<vmem>>, vector<4x3x256xf32>
    tpu.vector_store %arg16[%c0_293, %c0_294, %c768_295], %246 {strides = array<i32>} : memref<4x9x1024xf32, #tpu.memory_space<vmem>>, vector<4x3x256xf32>,
    %c1_296 = arith.constant 1 : index
    %c0_297 = arith.constant 0 : index
    %c0_298 = arith.constant 0 : index
    %248 = vector.load %arg12[%c1_296, %c0_297, %c0_298] : memref<6x6x256xf32, #tpu.memory_space<vmem>>, vector<4x3x256xf32>
    %c0_299 = arith.constant 0 : index
    %c3_300 = arith.constant 3 : index
    %c0_301 = arith.constant 0 : index
    %249 = vector.load %arg16[%c0_299, %c3_300, %c0_301] : memref<4x9x1024xf32, #tpu.memory_space<vmem>>, vector<4x3x256xf32>
    tpu.vector_store %arg16[%c0_299, %c3_300, %c0_301], %248 {strides = array<i32>} : memref<4x9x1024xf32, #tpu.memory_space<vmem>>, vector<4x3x256xf32>,
    %c1_302 = arith.constant 1 : index
    %c1_303 = arith.constant 1 : index
    %c0_304 = arith.constant 0 : index
    %250 = vector.load %arg12[%c1_302, %c1_303, %c0_304] : memref<6x6x256xf32, #tpu.memory_space<vmem>>, vector<4x3x256xf32>
    %c0_305 = arith.constant 0 : index
    %c3_306 = arith.constant 3 : index
    %c256_307 = arith.constant 256 : index
    %251 = vector.load %arg16[%c0_305, %c3_306, %c256_307] : memref<4x9x1024xf32, #tpu.memory_space<vmem>>, vector<4x3x256xf32>
    tpu.vector_store %arg16[%c0_305, %c3_306, %c256_307], %250 {strides = array<i32>} : memref<4x9x1024xf32, #tpu.memory_space<vmem>>, vector<4x3x256xf32>,
    %c1_308 = arith.constant 1 : index
    %c2_309 = arith.constant 2 : index
    %c0_310 = arith.constant 0 : index
    %252 = vector.load %arg12[%c1_308, %c2_309, %c0_310] : memref<6x6x256xf32, #tpu.memory_space<vmem>>, vector<4x3x256xf32>
    %c0_311 = arith.constant 0 : index
    %c3_312 = arith.constant 3 : index
    %c512_313 = arith.constant 512 : index
    %253 = vector.load %arg16[%c0_311, %c3_312, %c512_313] : memref<4x9x1024xf32, #tpu.memory_space<vmem>>, vector<4x3x256xf32>
    tpu.vector_store %arg16[%c0_311, %c3_312, %c512_313], %252 {strides = array<i32>} : memref<4x9x1024xf32, #tpu.memory_space<vmem>>, vector<4x3x256xf32>,
    %c1_314 = arith.constant 1 : index
    %c3_315 = arith.constant 3 : index
    %c0_316 = arith.constant 0 : index
    %254 = vector.load %arg12[%c1_314, %c3_315, %c0_316] : memref<6x6x256xf32, #tpu.memory_space<vmem>>, vector<4x3x256xf32>
    %c0_317 = arith.constant 0 : index
    %c3_318 = arith.constant 3 : index
    %c768_319 = arith.constant 768 : index
    %255 = vector.load %arg16[%c0_317, %c3_318, %c768_319] : memref<4x9x1024xf32, #tpu.memory_space<vmem>>, vector<4x3x256xf32>
    tpu.vector_store %arg16[%c0_317, %c3_318, %c768_319], %254 {strides = array<i32>} : memref<4x9x1024xf32, #tpu.memory_space<vmem>>, vector<4x3x256xf32>,
    %c2_320 = arith.constant 2 : index
    %c0_321 = arith.constant 0 : index
    %c0_322 = arith.constant 0 : index
    %256 = vector.load %arg12[%c2_320, %c0_321, %c0_322] : memref<6x6x256xf32, #tpu.memory_space<vmem>>, vector<4x3x256xf32>
    %c0_323 = arith.constant 0 : index
    %c6_324 = arith.constant 6 : index
    %c0_325 = arith.constant 0 : index
    %257 = vector.load %arg16[%c0_323, %c6_324, %c0_325] : memref<4x9x1024xf32, #tpu.memory_space<vmem>>, vector<4x3x256xf32>
    tpu.vector_store %arg16[%c0_323, %c6_324, %c0_325], %256 {strides = array<i32>} : memref<4x9x1024xf32, #tpu.memory_space<vmem>>, vector<4x3x256xf32>,
    %c2_326 = arith.constant 2 : index
    %c1_327 = arith.constant 1 : index
    %c0_328 = arith.constant 0 : index
    %258 = vector.load %arg12[%c2_326, %c1_327, %c0_328] : memref<6x6x256xf32, #tpu.memory_space<vmem>>, vector<4x3x256xf32>
    %c0_329 = arith.constant 0 : index
    %c6_330 = arith.constant 6 : index
    %c256_331 = arith.constant 256 : index
    %259 = vector.load %arg16[%c0_329, %c6_330, %c256_331] : memref<4x9x1024xf32, #tpu.memory_space<vmem>>, vector<4x3x256xf32>
    tpu.vector_store %arg16[%c0_329, %c6_330, %c256_331], %258 {strides = array<i32>} : memref<4x9x1024xf32, #tpu.memory_space<vmem>>, vector<4x3x256xf32>,
    %c2_332 = arith.constant 2 : index
    %c2_333 = arith.constant 2 : index
    %c0_334 = arith.constant 0 : index
    %260 = vector.load %arg12[%c2_332, %c2_333, %c0_334] : memref<6x6x256xf32, #tpu.memory_space<vmem>>, vector<4x3x256xf32>
    %c0_335 = arith.constant 0 : index
    %c6_336 = arith.constant 6 : index
    %c512_337 = arith.constant 512 : index
    %261 = vector.load %arg16[%c0_335, %c6_336, %c512_337] : memref<4x9x1024xf32, #tpu.memory_space<vmem>>, vector<4x3x256xf32>
    tpu.vector_store %arg16[%c0_335, %c6_336, %c512_337], %260 {strides = array<i32>} : memref<4x9x1024xf32, #tpu.memory_space<vmem>>, vector<4x3x256xf32>,
    %c2_338 = arith.constant 2 : index
    %c3_339 = arith.constant 3 : index
    %c0_340 = arith.constant 0 : index
    %262 = vector.load %arg12[%c2_338, %c3_339, %c0_340] : memref<6x6x256xf32, #tpu.memory_space<vmem>>, vector<4x3x256xf32>
    %c0_341 = arith.constant 0 : index
    %c6_342 = arith.constant 6 : index
    %c768_343 = arith.constant 768 : index
    %263 = vector.load %arg16[%c0_341, %c6_342, %c768_343] : memref<4x9x1024xf32, #tpu.memory_space<vmem>>, vector<4x3x256xf32>
    tpu.vector_store %arg16[%c0_341, %c6_342, %c768_343], %262 {strides = array<i32>} : memref<4x9x1024xf32, #tpu.memory_space<vmem>>, vector<4x3x256xf32>,
    %c0_344 = arith.constant 0 : index
    %c0_345 = arith.constant 0 : index
    %c0_346 = arith.constant 0 : index
    %264 = vector.load %arg16[%c0_344, %c0_345, %c0_346] : memref<4x9x1024xf32, #tpu.memory_space<vmem>>, vector<1x9x1024xf32>
    %265 = vector.shape_cast %264 : vector<1x9x1024xf32> to vector<9x1024xf32>
    %266 = arith.truncf %265 : vector<9x1024xf32> to vector<9x1024xbf16>
    %c0_347 = arith.constant 0 : index
    %c0_348 = arith.constant 0 : index
    %c0_349 = arith.constant 0 : index
    %267 = vector.load %arg6[%c0_347, %c0_348, %c0_349] : memref<4x1024x512xbf16, #tpu.memory_space<vmem>>, vector<1x1024x512xbf16>
    %268 = vector.shape_cast %267 : vector<1x1024x512xbf16> to vector<1024x512xbf16>
    %cst_350 = arith.constant dense<0.000000e+00> : vector<9x512xf32>
    %269 = tpu.matmul %266, %268, %cst_350 {dimension_numbers = #tpu.dot_dimension_numbers<[1], [0], [0], [1], [0, 0, 1, 1], [], []>} : vector<9x1024xbf16>, vector<1024x512xbf16>, vector<9x512xf32> -> vector<9x512xf32>
    %c1_351 = arith.constant 1 : index
    %c0_352 = arith.constant 0 : index
    %c0_353 = arith.constant 0 : index
    %270 = vector.load %arg16[%c1_351, %c0_352, %c0_353] : memref<4x9x1024xf32, #tpu.memory_space<vmem>>, vector<1x9x1024xf32>
    %271 = vector.shape_cast %270 : vector<1x9x1024xf32> to vector<9x1024xf32>
    %272 = arith.truncf %271 : vector<9x1024xf32> to vector<9x1024xbf16>
    %c1_354 = arith.constant 1 : index
    %c0_355 = arith.constant 0 : index
    %c0_356 = arith.constant 0 : index
    %273 = vector.load %arg6[%c1_354, %c0_355, %c0_356] : memref<4x1024x512xbf16, #tpu.memory_space<vmem>>, vector<1x1024x512xbf16>
    %274 = vector.shape_cast %273 : vector<1x1024x512xbf16> to vector<1024x512xbf16>
    %cst_357 = arith.constant dense<0.000000e+00> : vector<9x512xf32>
    %275 = tpu.matmul %272, %274, %cst_357 {dimension_numbers = #tpu.dot_dimension_numbers<[1], [0], [0], [1], [0, 0, 1, 1], [], []>} : vector<9x1024xbf16>, vector<1024x512xbf16>, vector<9x512xf32> -> vector<9x512xf32>
    %276 = arith.addf %269, %275 : vector<9x512xf32>
    %c2_358 = arith.constant 2 : index
    %c0_359 = arith.constant 0 : index
    %c0_360 = arith.constant 0 : index
    %277 = vector.load %arg16[%c2_358, %c0_359, %c0_360] : memref<4x9x1024xf32, #tpu.memory_space<vmem>>, vector<1x9x1024xf32>
    %278 = vector.shape_cast %277 : vector<1x9x1024xf32> to vector<9x1024xf32>
    %279 = arith.truncf %278 : vector<9x1024xf32> to vector<9x1024xbf16>
    %c2_361 = arith.constant 2 : index
    %c0_362 = arith.constant 0 : index
    %c0_363 = arith.constant 0 : index
    %280 = vector.load %arg6[%c2_361, %c0_362, %c0_363] : memref<4x1024x512xbf16, #tpu.memory_space<vmem>>, vector<1x1024x512xbf16>
    %281 = vector.shape_cast %280 : vector<1x1024x512xbf16> to vector<1024x512xbf16>
    %cst_364 = arith.constant dense<0.000000e+00> : vector<9x512xf32>
    %282 = tpu.matmul %279, %281, %cst_364 {dimension_numbers = #tpu.dot_dimension_numbers<[1], [0], [0], [1], [0, 0, 1, 1], [], []>} : vector<9x1024xbf16>, vector<1024x512xbf16>, vector<9x512xf32> -> vector<9x512xf32>
    %283 = arith.addf %276, %282 : vector<9x512xf32>
    %c3_365 = arith.constant 3 : index
    %c0_366 = arith.constant 0 : index
    %c0_367 = arith.constant 0 : index
    %284 = vector.load %arg16[%c3_365, %c0_366, %c0_367] : memref<4x9x1024xf32, #tpu.memory_space<vmem>>, vector<1x9x1024xf32>
    %285 = vector.shape_cast %284 : vector<1x9x1024xf32> to vector<9x1024xf32>
    %286 = arith.truncf %285 : vector<9x1024xf32> to vector<9x1024xbf16>
    %c3_368 = arith.constant 3 : index
    %c0_369 = arith.constant 0 : index
    %c0_370 = arith.constant 0 : index
    %287 = vector.load %arg6[%c3_368, %c0_369, %c0_370] : memref<4x1024x512xbf16, #tpu.memory_space<vmem>>, vector<1x1024x512xbf16>
    %288 = vector.shape_cast %287 : vector<1x1024x512xbf16> to vector<1024x512xbf16>
    %cst_371 = arith.constant dense<0.000000e+00> : vector<9x512xf32>
    %289 = tpu.matmul %286, %288, %cst_371 {dimension_numbers = #tpu.dot_dimension_numbers<[1], [0], [0], [1], [0, 0, 1, 1], [], []>} : vector<9x1024xbf16>, vector<1024x512xbf16>, vector<9x512xf32> -> vector<9x512xf32>
    %290 = arith.addf %283, %289 : vector<9x512xf32>
    %cst_372 = arith.constant dense<0.000000e+00> : vector<512xf32>
    %291 = vector.multi_reduction <add>, %290, %cst_372 [0] : vector<9x512xf32> to vector<512xf32>
    %292 = vector.shape_cast %291 : vector<512xf32> to vector<1x512xf32>
    %cst_373 = arith.constant 9.000000e+00 : f32
    %293 = vector.broadcast %cst_373 : f32 to vector<1x512xf32>
    %294 = arith.divf %292, %293 : vector<1x512xf32>
    %295 = vector.broadcast %294 : vector<1x512xf32> to vector<9x512xf32>
    %296 = arith.subf %290, %295 : vector<9x512xf32>
    %297 = arith.mulf %296, %296 : vector<9x512xf32>
    %cst_374 = arith.constant dense<0.000000e+00> : vector<512xf32>
    %298 = vector.multi_reduction <add>, %297, %cst_374 [0] : vector<9x512xf32> to vector<512xf32>
    %299 = vector.shape_cast %298 : vector<512xf32> to vector<1x512xf32>
    %cst_375 = arith.constant 9.000000e+00 : f32
    %300 = vector.broadcast %cst_375 : f32 to vector<1x512xf32>
    %301 = arith.divf %299, %300 : vector<1x512xf32>
    %302 = vector.broadcast %294 : vector<1x512xf32> to vector<9x512xf32>
    %303 = arith.subf %290, %302 : vector<9x512xf32>
    %cst_376 = arith.constant 9.99999974E-6 : f32
    %304 = vector.broadcast %cst_376 : f32 to vector<1x512xf32>
    %305 = arith.addf %301, %304 : vector<1x512xf32>
    %306 = math.rsqrt %305 : vector<1x512xf32>
    %307 = vector.broadcast %306 : vector<1x512xf32> to vector<9x512xf32>
    %308 = arith.mulf %303, %307 : vector<9x512xf32>
    %cst_377 = arith.constant 0.000000e+00 : f32
    %309 = vector.broadcast %cst_377 : f32 to vector<9x512xf32>
    %310 = arith.cmpf ogt, %308, %309 : vector<9x512xf32>
    %cst_378 = arith.constant 2.000000e-01 : f32
    %311 = vector.broadcast %cst_378 : f32 to vector<9x512xf32>
    %312 = arith.mulf %311, %308 : vector<9x512xf32>
    %313 = arith.select %310, %308, %312 : vector<9x512xi1>, vector<9x512xf32>
    %cst_379 = arith.constant 0.000000e+00 : f32
    %314 = vector.broadcast %cst_379 : f32 to vector<1x5x512xf32>
    %c0_380 = arith.constant 0 : index
    %c0_381 = arith.constant 0 : index
    %c0_382 = arith.constant 0 : index
    %315 = vector.load %arg13[%c0_380, %c0_381, %c0_382] : memref<5x5x512xf32, #tpu.memory_space<vmem>>, vector<1x5x512xf32>
    tpu.vector_store %arg13[%c0_380, %c0_381, %c0_382], %314 {strides = array<i32>} : memref<5x5x512xf32, #tpu.memory_space<vmem>>, vector<1x5x512xf32>,
    %cst_383 = arith.constant 0.000000e+00 : f32
    %316 = vector.broadcast %cst_383 : f32 to vector<1x5x512xf32>
    %c4_384 = arith.constant 4 : index
    %c0_385 = arith.constant 0 : index
    %c0_386 = arith.constant 0 : index
    %317 = vector.load %arg13[%c4_384, %c0_385, %c0_386] : memref<5x5x512xf32, #tpu.memory_space<vmem>>, vector<1x5x512xf32>
    tpu.vector_store %arg13[%c4_384, %c0_385, %c0_386], %316 {strides = array<i32>} : memref<5x5x512xf32, #tpu.memory_space<vmem>>, vector<1x5x512xf32>,
    %cst_387 = arith.constant 0.000000e+00 : f32
    %318 = vector.broadcast %cst_387 : f32 to vector<5x1x512xf32>
    %c0_388 = arith.constant 0 : index
    %c0_389 = arith.constant 0 : index
    %c0_390 = arith.constant 0 : index
    %319 = vector.load %arg13[%c0_388, %c0_389, %c0_390] : memref<5x5x512xf32, #tpu.memory_space<vmem>>, vector<5x1x512xf32>
    tpu.vector_store %arg13[%c0_388, %c0_389, %c0_390], %318 {strides = array<i32>} : memref<5x5x512xf32, #tpu.memory_space<vmem>>, vector<5x1x512xf32>,
    %cst_391 = arith.constant 0.000000e+00 : f32
    %320 = vector.broadcast %cst_391 : f32 to vector<5x1x512xf32>
    %c0_392 = arith.constant 0 : index
    %c4_393 = arith.constant 4 : index
    %c0_394 = arith.constant 0 : index
    %321 = vector.load %arg13[%c0_392, %c4_393, %c0_394] : memref<5x5x512xf32, #tpu.memory_space<vmem>>, vector<5x1x512xf32>
    tpu.vector_store %arg13[%c0_392, %c4_393, %c0_394], %320 {strides = array<i32>} : memref<5x5x512xf32, #tpu.memory_space<vmem>>, vector<5x1x512xf32>,
    %322 = vector.extract_strided_slice %313 {offsets = [0, 0], sizes = [3, 512], strides = [1, 1]} : vector<9x512xf32> to vector<3x512xf32>
    %c1_395 = arith.constant 1 : index
    %c1_396 = arith.constant 1 : index
    %c0_397 = arith.constant 0 : index
    %323 = vector.load %arg13[%c1_395, %c1_396, %c0_397] : memref<5x5x512xf32, #tpu.memory_space<vmem>>, vector<1x3x512xf32>
    %324 = vector.shape_cast %323 : vector<1x3x512xf32> to vector<3x512xf32>
    %325 = vector.shape_cast %322 : vector<3x512xf32> to vector<1x3x512xf32>
    tpu.vector_store %arg13[%c1_395, %c1_396, %c0_397], %325 {strides = array<i32>} : memref<5x5x512xf32, #tpu.memory_space<vmem>>, vector<1x3x512xf32>,
    %326 = vector.extract_strided_slice %313 {offsets = [3, 0], sizes = [3, 512], strides = [1, 1]} : vector<9x512xf32> to vector<3x512xf32>
    %c2_398 = arith.constant 2 : index
    %c1_399 = arith.constant 1 : index
    %c0_400 = arith.constant 0 : index
    %327 = vector.load %arg13[%c2_398, %c1_399, %c0_400] : memref<5x5x512xf32, #tpu.memory_space<vmem>>, vector<1x3x512xf32>
    %328 = vector.shape_cast %327 : vector<1x3x512xf32> to vector<3x512xf32>
    %329 = vector.shape_cast %326 : vector<3x512xf32> to vector<1x3x512xf32>
    tpu.vector_store %arg13[%c2_398, %c1_399, %c0_400], %329 {strides = array<i32>} : memref<5x5x512xf32, #tpu.memory_space<vmem>>, vector<1x3x512xf32>,
    %330 = vector.extract_strided_slice %313 {offsets = [6, 0], sizes = [3, 512], strides = [1, 1]} : vector<9x512xf32> to vector<3x512xf32>
    %c3_401 = arith.constant 3 : index
    %c1_402 = arith.constant 1 : index
    %c0_403 = arith.constant 0 : index
    %331 = vector.load %arg13[%c3_401, %c1_402, %c0_403] : memref<5x5x512xf32, #tpu.memory_space<vmem>>, vector<1x3x512xf32>
    %332 = vector.shape_cast %331 : vector<1x3x512xf32> to vector<3x512xf32>
    %333 = vector.shape_cast %330 : vector<3x512xf32> to vector<1x3x512xf32>
    tpu.vector_store %arg13[%c3_401, %c1_402, %c0_403], %333 {strides = array<i32>} : memref<5x5x512xf32, #tpu.memory_space<vmem>>, vector<1x3x512xf32>,
    %c0_404 = arith.constant 0 : index
    %c0_405 = arith.constant 0 : index
    %c0_406 = arith.constant 0 : index
    %334 = vector.load %arg13[%c0_404, %c0_405, %c0_406] : memref<5x5x512xf32, #tpu.memory_space<vmem>>, vector<4x4x512xf32>
    %c0_407 = arith.constant 0 : index
    %c1_408 = arith.constant 1 : index
    %c0_409 = arith.constant 0 : index
    %335 = vector.load %arg13[%c0_407, %c1_408, %c0_409] : memref<5x5x512xf32, #tpu.memory_space<vmem>>, vector<4x4x512xf32>
    %336 = arith.addf %334, %335 : vector<4x4x512xf32>
    %c1_410 = arith.constant 1 : index
    %c0_411 = arith.constant 0 : index
    %c0_412 = arith.constant 0 : index
    %337 = vector.load %arg13[%c1_410, %c0_411, %c0_412] : memref<5x5x512xf32, #tpu.memory_space<vmem>>, vector<4x4x512xf32>
    %338 = arith.addf %336, %337 : vector<4x4x512xf32>
    %c1_413 = arith.constant 1 : index
    %c1_414 = arith.constant 1 : index
    %c0_415 = arith.constant 0 : index
    %339 = vector.load %arg13[%c1_413, %c1_414, %c0_415] : memref<5x5x512xf32, #tpu.memory_space<vmem>>, vector<4x4x512xf32>
    %340 = arith.addf %338, %339 : vector<4x4x512xf32>
    %cst_416 = arith.constant 2.500000e-01 : f32
    %341 = vector.broadcast %cst_416 : f32 to vector<4x4x512xf32>
    %342 = arith.mulf %340, %341 : vector<4x4x512xf32>
    %c0_417 = arith.constant 0 : index
    %c0_418 = arith.constant 0 : index
    %c0_419 = arith.constant 0 : index
    %343 = vector.load %arg7[%c0_417, %c0_418, %c0_419] : memref<4x4x512xf32, #tpu.memory_space<vmem>>, vector<4x4x512xf32>
    %344 = arith.mulf %342, %343 : vector<4x4x512xf32>
    %cst_420 = arith.constant dense<0.000000e+00> : vector<4x512xf32>
    %345 = vector.multi_reduction <add>, %344, %cst_420 [0] : vector<4x4x512xf32> to vector<4x512xf32>
    %cst_421 = arith.constant dense<0.000000e+00> : vector<512xf32>
    %346 = vector.multi_reduction <add>, %345, %cst_421 [0] : vector<4x512xf32> to vector<512xf32>
    %347 = vector.shape_cast %346 : vector<512xf32> to vector<1x512xf32>
    %cst_422 = arith.constant dense<0.000000e+00> : vector<1xf32>
    %348 = vector.multi_reduction <add>, %347, %cst_422 [1] : vector<1x512xf32> to vector<1xf32>
    %349 = vector.shape_cast %348 : vector<1xf32> to vector<1x1xf32>
    %c0_423 = arith.constant 0 : index
    %c0_424 = arith.constant 0 : index
    %350 = vector.load %arg8[%c0_423, %c0_424] : memref<1x1xf32, #tpu.memory_space<vmem>>, vector<1x1xf32>
    %351 = arith.addf %349, %350 : vector<1x1xf32>
    %c0_425 = arith.constant 0 : index
    %c0_426 = arith.constant 0 : index
    %c0_427 = arith.constant 0 : index
    %352 = vector.load %arg9[%c0_425, %c0_426, %c0_427] : memref<1x1x1xf32, #tpu.memory_space<vmem>>, vector<1x1x1xf32>
    %353 = vector.shape_cast %352 : vector<1x1x1xf32> to vector<1x1xf32>
    %354 = vector.shape_cast %351 : vector<1x1xf32> to vector<1x1x1xf32>
    tpu.vector_store %arg9[%c0_425, %c0_426, %c0_427], %354 {strides = array<i32>} : memref<1x1x1xf32, #tpu.memory_space<vmem>>, vector<1x1x1xf32>,
    return
  }
  func.func @transform_0(%arg0: i32) -> (i32, i32, i32) {
    %c0_i32 = arith.constant 0 : i32
    %c0_i32_0 = arith.constant 0 : i32
    %c0_i32_1 = arith.constant 0 : i32
    return %arg0, %c0_i32, %c0_i32_0 : i32, i32, i32
  }
  func.func @transform_1(%arg0: i32) -> (i32, i32) {
    %c0_i32 = arith.constant 0 : i32
    %c0_i32_0 = arith.constant 0 : i32
    %c0_i32_1 = arith.constant 0 : i32
    return %c0_i32, %c0_i32_0 : i32, i32
  }
  func.func @transform_2(%arg0: i32) -> (i32, i32) {
    %c0_i32 = arith.constant 0 : i32
    %c0_i32_0 = arith.constant 0 : i32
    %c0_i32_1 = arith.constant 0 : i32
    return %c0_i32, %c0_i32_0 : i32, i32
  }
  func.func @transform_3(%arg0: i32) -> (i32, i32) {
    %c0_i32 = arith.constant 0 : i32
    %c0_i32_0 = arith.constant 0 : i32
    %c0_i32_1 = arith.constant 0 : i32
    return %c0_i32, %c0_i32_0 : i32, i32
  }
  func.func @transform_4(%arg0: i32) -> (i32, i32, i32) {
    %c0_i32 = arith.constant 0 : i32
    %c0_i32_0 = arith.constant 0 : i32
    %c0_i32_1 = arith.constant 0 : i32
    %c0_i32_2 = arith.constant 0 : i32
    return %c0_i32, %c0_i32_0, %c0_i32_1 : i32, i32, i32
  }
  func.func @transform_5(%arg0: i32) -> (i32, i32, i32) {
    %c0_i32 = arith.constant 0 : i32
    %c0_i32_0 = arith.constant 0 : i32
    %c0_i32_1 = arith.constant 0 : i32
    %c0_i32_2 = arith.constant 0 : i32
    return %c0_i32, %c0_i32_0, %c0_i32_1 : i32, i32, i32
  }
  func.func @transform_6(%arg0: i32) -> (i32, i32, i32) {
    %c0_i32 = arith.constant 0 : i32
    %c0_i32_0 = arith.constant 0 : i32
    %c0_i32_1 = arith.constant 0 : i32
    %c0_i32_2 = arith.constant 0 : i32
    return %c0_i32, %c0_i32_0, %c0_i32_1 : i32, i32, i32
  }
  func.func @transform_7(%arg0: i32) -> (i32, i32) {
    %c0_i32 = arith.constant 0 : i32
    %c0_i32_0 = arith.constant 0 : i32
    %c0_i32_1 = arith.constant 0 : i32
    return %c0_i32, %c0_i32_0 : i32, i32
  }
  func.func @transform_8(%arg0: i32) -> (i32, i32, i32) {
    %c0_i32 = arith.constant 0 : i32
    %c0_i32_0 = arith.constant 0 : i32
    %c0_i32_1 = arith.constant 0 : i32
    return %arg0, %c0_i32, %c0_i32_0 : i32, i32, i32
  }
}

</mosaic_0001>

<bundles_post_ra>
// kernel: discriminator_forward.1
= control target key start
LH: loop header
LB: loop body
LE: loop exit
PB: predicated region body
PF: predicated region fallthrough
CT: control target
= control target key end

     0   :  { %s20546_s29 = smov 0   ;;  %s25766_s0 = inlined_call_operand.vmem [shape: bf16[2,256,128], index: 0, kind: input, shape index: {}]   ;;  %s25767_s1 = inlined_call_operand.vmem [shape: bf16[128,128], index: 1, kind: input, shape index: {}]   ;;  %s25768_s2 = inlined_call_operand.vmem [shape: f32[1,128], index: 2, kind: input, shape index: {}]   ;;  %s25769_s3 = inlined_call_operand.vmem [shape: bf16[2048,128], index: 3, kind: input, shape index: {}]   ;;  %s25770_s4 = inlined_call_operand.vmem [shape: bf16[4,512,256], index: 4, kind: input, shape index: {}]   ;;  %s25771_s5 = inlined_call_operand.vmem [shape: bf16[4,1024,512], index: 5, kind: input, shape index: {}]   ;;  %s25772_s6 = inlined_call_operand.vmem [shape: f32[4,4,512], index: 6, kind: input, shape index: {}]   ;;  %s25773_s7 = inlined_call_operand.<no memory space> [shape: f32[1,1], index: 7, kind: input, shape index: {}]   ;;  %s25774_s8 = inlined_call_operand.vmem [shape: f32[2,1,1], index: 8, kind: output, shape index: {}]  }
   0x1   :  { %v13_v0 = vstv %s25773_s7 }
   0x2   :  { %14 = vst [vmem:[#allocation9] sm:$0x1] %v13_v0 }
   0x3 LB: > { %s15165_s30 = sadd.s32 4294967295, %s20495_s29   ;;  %p15169_p0 = scmp.ge.s32.totalorder %s20495_s29, 1  ;;  %s20495_s29 = sphi %s20546_s29, %s20_s29  }
   0x4   : > { %p264_p1 = scmp.lt.s32.totalorder %s20495_s29, 3 }
   0x6   : > { %p265_p2 = pnand %p15169_p0, %p264_p1 }
   0x8   : > { %268 = sbr.rel (%p265_p2) target bundleno = 2706 (0xa92), region = 52 }
   0xd   : > { %v18369_v1 = vld [vmem:[%s25767_s1 + $0x38] sm:$0xff]   ;;  %p296_p3 = scmp.lt.s32.totalorder %s15165_s30, 1  ;;  %v18370_v2 = vld [vmem:[%s25767_s1 + $0x30] sm:$0xff]   ;;  %v18371_v3 = vld [vmem:[%s25767_s1 + $0x28] sm:$0xff]   ;;  %v20497_v32 = vmov 0.0  }
   0xe   : > { %18312 = vmatprep.subr.bf16.mxu0 %v18369_v1  ;;  %v18372_v4 = vld [vmem:[%s25767_s1 + $0x20] sm:$0xff]   ;;  %v18373_v6 = vld [vmem:[%s25767_s1 + $0x18] sm:$0xff]   ;;  %v18374_v7 = vld [vmem:[%s25767_s1 + $0x10] sm:$0xff]   ;;  %770 = vst [vmem:[#allocation2 + $0x30] sm:$0x1] %v20497_v32 }
   0xf   : > { %s25790_s30 = smov (!%p296_p3, %s15165_s30), 1  ;;  %18313 = vmatpush3.bf16.msra.mxu0 %v18369_v1  ;;  %v18375_v8 = vld [vmem:[%s25767_s1 + $0x8] sm:$0xff]   ;;  %v18376_v9 = vld [vmem:[%s25767_s1] sm:$0xff]   ;;  %v18393_v10 = vld [vmem:[%s25769_s3 + $0x78] sm:$0xff]   ;;  %788 = vst [vmem:[#allocation2 + $0x41] sm:$0x1] %v20497_v32 }
  0x10   : > { %18314 = vmatprep.subr.bf16.mxu0 %v18370_v2  ;;  %s17807_s14 = sshll.u32 %s25790_s30, 7  ;;  %17992 = vmatprep.subr.bf16.mxu1 %v18393_v10  ;;  %v18394_v26 = vld [vmem:[%s25769_s3 + $0x38] sm:$0xff]   ;;  %v18395_v27 = vld [vmem:[%s25769_s3 + $0x70] sm:$0xff]   ;;  %v18397_v29 = vld [vmem:[%s25769_s3 + $0x68] sm:$0xff]   ;;  %761 = vst [vmem:[#allocation2] sm:$0xff] %v20497_v32  ;;  %s303_s9 = scalar_lea.vmem %s25774_s8, %s25790_s30 }
  0x11   : > { %s20569_s17 = scalar_lea.vmem %s25766_s0, %s17807_s14  ;;  %17993 = vmatpush3.bf16.msra.mxu1 %v18394_v26  ;;  %v18396_v28 = vld [vmem:[%s25769_s3 + $0x30] sm:$0xff]   ;;  %v20620_v30 = vld [vmem:[%s25769_s3 + $0x28] sm:$0xff]   ;;  %v20625_v31 = vld [vmem:[%s25769_s3 + $0x178] sm:$0xff]   ;;  %762 = vst [vmem:[#allocation2 + $0x8] sm:$0xff] %v20497_v32 }
  0x12   : > { %v18377_v5 = vld [vmem:[%s20569_s17] sm:$0xff]   ;;  %v18378_v11 = vld [vmem:[%s20569_s17 + $0x8] sm:$0xff]   ;;  %v18379_v12 = vld [vmem:[%s20569_s17 + $0x10] sm:$0xff]   ;;  %17994 = vmatprep.subr.bf16.mxu1 %v18395_v27  ;;  %763 = vst [vmem:[#allocation2 + $0x10] sm:$0x3] %v20497_v32 }
  0x13   : > { %18315 = vmatpush3.bf16.msra.mxu0 %v18370_v2  ;;  %18328 = vmatprep.mubr.bf16.mxu0 %v18377_v5  ;;  %v18380_v13 = vld [vmem:[%s20569_s17 + $0x18] sm:$0xff]   ;;  %v18381_v14 = vld [vmem:[%s20569_s17 + $0x20] sm:$0xff]   ;;  %v18382_v15 = vld [vmem:[%s20569_s17 + $0x28] sm:$0xff]   ;;  %765 = vst [vmem:[#allocation2 + $0x198] sm:$0xff] %v20497_v32 }
  0x14   : > { %18316 = vmatprep.subr.bf16.mxu0 %v18371_v3  ;;  %v18383_v16 = vld [vmem:[%s20569_s17 + $0x30] sm:$0xff]   ;;  %v18384_v17 = vld [vmem:[%s20569_s17 + $0x38] sm:$0xff]   ;;  %v18385_v18 = vld [vmem:[%s20569_s17 + $0x40] sm:$0xff]   ;;  %766 = vst [vmem:[#allocation2 + $0x1a0] sm:$0xff] %v20497_v32 }
  0x15   : > { %v18386_v19 = vld [vmem:[%s20569_s17 + $0x48] sm:$0xff]   ;;  %v18387_v20 = vld [vmem:[%s20569_s17 + $0x50] sm:$0xff]   ;;  %v18388_v21 = vld [vmem:[%s20569_s17 + $0x58] sm:$0xff]   ;;  %17995 = vmatpush3.bf16.msra.mxu1 %v18396_v28  ;;  %767 = vst [vmem:[#allocation2 + $0x1a8] sm:$0x3] %v20497_v32 }
  0x16   : > { %v18389_v22 = vld [vmem:[%s20569_s17 + $0x60] sm:$0xff]   ;;  %v18390_v23 = vld [vmem:[%s20569_s17 + $0x68] sm:$0xff]   ;;  %v18391_v24 = vld [vmem:[%s20569_s17 + $0x70] sm:$0xff]   ;;  %17996 = vmatprep.subr.bf16.mxu1 %v18397_v29  ;;  %769 = vst [vmem:[#allocation2 + $0x18] sm:$0x1] %v20497_v32 }
  0x17   : > { %18317 = vmatpush3.bf16.msra.mxu0 %v18371_v3  ;;  %v18392_v25 = vld [vmem:[%s20569_s17 + $0x78] sm:$0xff]   ;;  %771 = vst [vmem:[#allocation2 + $0x48] sm:$0x1] %v20497_v32  ;;  %772 = vst [vmem:[#allocation2 + $0x60] sm:$0x1] %v20497_v32  ;;  %v18401_v34 = vld [vmem:[%s25769_s3 + $0x60] sm:$0xff]  }
  0x18   : > { %18318 = vmatprep.subr.bf16.mxu0 %v18372_v4  ;;  %773 = vst [vmem:[#allocation2 + $0x78] sm:$0x1] %v20497_v32  ;;  %774 = vst [vmem:[#allocation2 + $0x90] sm:$0x1] %v20497_v32  ;;  %v18400_v33 = vld [vmem:[%s25769_s3 + $0x138] sm:$0xff]   ;;  %v18402_v35 = vld [vmem:[%s25769_s3 + $0x20] sm:$0xff]  }
  0x19   : > { %775 = vst [vmem:[#allocation2 + $0xa8] sm:$0x1] %v20497_v32  ;;  %776 = vst [vmem:[#allocation2 + $0xc0] sm:$0x1] %v20497_v32  ;;  %17997 = vmatpush3.bf16.msra.mxu1 %v20620_v30  ;;  %v18403_v36 = vld [vmem:[%s25769_s3 + $0x170] sm:$0xff]   ;;  %v18405_v38 = vld [vmem:[%s25769_s3 + $0x58] sm:$0xff]  }
  0x1a   : > { %777 = vst [vmem:[#allocation2 + $0xd8] sm:$0x1] %v20497_v32  ;;  %778 = vst [vmem:[#allocation2 + $0xf0] sm:$0x1] %v20497_v32  ;;  %17998 = vmatprep.subr.bf16.mxu1 %v18401_v34  ;;  %v18404_v37 = vld [vmem:[%s25769_s3 + $0x130] sm:$0xff]   ;;  %v18406_v39 = vld [vmem:[%s25769_s3 + $0x18] sm:$0xff]  }
  0x1b   : > { %18319 = vmatpush3.bf16.msra.mxu0 %v18372_v4  ;;  %779 = vst [vmem:[#allocation2 + $0x108] sm:$0x1] %v20497_v32  ;;  %780 = vst [vmem:[#allocation2 + $0x120] sm:$0x1] %v20497_v32  ;;  %v18407_v40 = vld [vmem:[%s25769_s3 + $0x168] sm:$0xff]   ;;  %v18409_v42 = vld [vmem:[%s25769_s3 + $0x50] sm:$0xff]  }
  0x1c   : > { %18320 = vmatprep.subr.bf16.mxu0 %v18373_v6  ;;  %781 = vst [vmem:[#allocation2 + $0x138] sm:$0x1] %v20497_v32  ;;  %782 = vst [vmem:[#allocation2 + $0x150] sm:$0x1] %v20497_v32  ;;  %v18408_v41 = vld [vmem:[%s25769_s3 + $0x128] sm:$0xff]   ;;  %v18410_v43 = vld [vmem:[%s25769_s3 + $0x10] sm:$0xff]  }
  0x1d   : > { %783 = vst [vmem:[#allocation2 + $0x168] sm:$0x1] %v20497_v32  ;;  %784 = vst [vmem:[#allocation2 + $0x180] sm:$0x1] %v20497_v32  ;;  %17999 = vmatpush3.bf16.msra.mxu1 %v18402_v35  ;;  %v893_v45 = vld [vmem:[#allocation2 + $0x1] ss:$2 sm:$0xff] }
  0x1e   : > { %787 = vst [vmem:[#allocation2 + $0x29] sm:$0x1] %v20497_v32  ;;  %789 = vst [vmem:[#allocation2 + $0x59] sm:$0x1] %v20497_v32  ;;  %18000 = vmatprep.subr.bf16.mxu1 %v18405_v38  ;;  %v18411_v46 = vld [vmem:[%s25769_s3 + $0x160] sm:$0xff]   ;;  %v17816_v48 = vpack.c.bf16 %v893_v45, %v893_v45  ;;  %v18413_v50 = vld [vmem:[%s25769_s3 + $0x48] sm:$0xff]  }
  0x1f   : > { %18321 = vmatpush3.bf16.msra.mxu0 %v18373_v6  ;;  %790 = vst [vmem:[#allocation2 + $0x71] sm:$0x1] %v20497_v32  ;;  %791 = vst [vmem:[#allocation2 + $0x89] sm:$0x1] %v20497_v32  ;;  %v18412_v49 = vld [vmem:[%s25769_s3 + $0x120] sm:$0xff]   ;;  %v18414_v53 = vld [vmem:[%s25769_s3 + $0x8] sm:$0xff]  }
  0x20   : > { %18322 = vmatprep.subr.bf16.mxu0 %v18374_v7  ;;  %792 = vst [vmem:[#allocation2 + $0xa1] sm:$0x1] %v20497_v32  ;;  %793 = vst [vmem:[#allocation2 + $0xb9] sm:$0x1] %v20497_v32  ;;  %v949_v51 = vld [vmem:[#allocation2 + $0x2] ss:$2 sm:$0xff] }
  0x21   : > { %794 = vst [vmem:[#allocation2 + $0xd1] sm:$0x1] %v20497_v32  ;;  %795 = vst [vmem:[#allocation2 + $0xe9] sm:$0x1] %v20497_v32  ;;  %18001 = vmatpush3.bf16.msra.mxu1 %v18406_v39  ;;  %v17824_v54 = vpack.c.bf16 %v949_v51, %v949_v51  ;;  %v18415_v56 = vld [vmem:[%s25769_s3 + $0x158] sm:$0xff]   ;;  %v18417_v58 = vld [vmem:[%s25769_s3 + $0x40] sm:$0xff]  }
  0x22   : > { %796 = vst [vmem:[#allocation2 + $0x101] sm:$0x1] %v20497_v32  ;;  %797 = vst [vmem:[#allocation2 + $0x119] sm:$0x1] %v20497_v32  ;;  %18002 = vmatprep.subr.bf16.mxu1 %v18409_v42  ;;  %v18416_v57 = vld [vmem:[%s25769_s3 + $0x118] sm:$0xff]   ;;  %v18418_v59 = vld [vmem:[%s25769_s3] sm:$0xff]  }
  0x23   : > { %18323 = vmatpush3.bf16.msra.mxu0 %v18374_v7  ;;  %798 = vst [vmem:[#allocation2 + $0x131] sm:$0x1] %v20497_v32  ;;  %799 = vst [vmem:[#allocation2 + $0x149] sm:$0x1] %v20497_v32  ;;  %v18419_v60 = vld [vmem:[%s25769_s3 + $0x150] sm:$0xff]   ;;  %v18421_v62 = vld [vmem:[%s25769_s3 + $0x148] sm:$0xff]  }
  0x24   : > { %18324 = vmatprep.subr.bf16.mxu0 %v18375_v8  ;;  %800 = vst [vmem:[#allocation2 + $0x161] sm:$0x1] %v20497_v32  ;;  %801 = vst [vmem:[#allocation2 + $0x179] sm:$0x1] %v20497_v32  ;;  %v18420_v61 = vld [vmem:[%s25769_s3 + $0x110] sm:$0xff]   ;;  %v18422_v63 = vld [vmem:[%s25769_s3 + $0x108] sm:$0xff]  }
  0x25   : > { %802 = vst [vmem:[#allocation2 + $0x191] sm:$0x1] %v20497_v32  ;;  %3738 = vst [vmem:[#allocation3] sm:$0xff] %v20497_v32  ;;  %18003 = vmatpush3.bf16.msra.mxu1 %v18410_v43  ;;  %v18423_v0 = vld [vmem:[%s25769_s3 + $0x140] sm:$0xff]   ;;  %v18425_v2 = vld [vmem:[%s25769_s3 + $0xf8] sm:$0xff]  }
  0x26   : > { %3739 = vst [vmem:[#allocation3 + $0x8] sm:$0x3] %v20497_v32  ;;  %3741 = vst [vmem:[#allocation3 + $0x90] sm:$0xff] %v20497_v32  ;;  %18004 = vmatprep.subr.bf16.mxu1 %v18413_v50  ;;  %v18424_v1 = vld [vmem:[%s25769_s3 + $0x100] sm:$0xff]   ;;  %v18431_v3 = vld [vmem:[%s25769_s3 + $0x278] sm:$0xff]  }
  0x27   : > { %18325 = vmatpush3.bf16.msra.mxu0 %v18375_v8  ;;  %3742 = vst [vmem:[#allocation3 + $0x98] sm:$0x3] %v20497_v32  ;;  %3744 = vst [vmem:[#allocation3 + $0x10] sm:$0x1] %v20497_v32  ;;  %v20791_v4 = vld [vmem:[%s25768_s2] ss:$0 sm:$0xff] }
  0x28   : > { %18326 = vmatprep.subr.bf16.mxu0 %v18376_v9  ;;  %3745 = vst [vmem:[#allocation3 + $0x20] sm:$0x1] %v20497_v32  ;;  %3746 = vst [vmem:[#allocation3 + $0x30] sm:$0x1] %v20497_v32 }
  0x29   : > { %3747 = vst [vmem:[#allocation3 + $0x40] sm:$0x1] %v20497_v32  ;;  %3748 = vst [vmem:[#allocation3 + $0x50] sm:$0x1] %v20497_v32  ;;  %18005 = vmatpush3.bf16.msra.mxu1 %v18414_v53 }
  0x2a   : > { %3749 = vst [vmem:[#allocation3 + $0x60] sm:$0x1] %v20497_v32  ;;  %3750 = vst [vmem:[#allocation3 + $0x70] sm:$0x1] %v20497_v32  ;;  %18006 = vmatprep.subr.bf16.mxu1 %v18417_v58 }
  0x2b   : > { %18327 = vmatpush3.bf16.msra.mxu0 %v18376_v9  ;;  %3751 = vst [vmem:[#allocation3 + $0x80] sm:$0x1] %v20497_v32  ;;  %3754 = vst [vmem:[#allocation3 + $0x19] sm:$0x1] %v20497_v32 }
  0x2c   : > { %3755 = vst [vmem:[#allocation3 + $0x29] sm:$0x1] %v20497_v32  ;;  %3756 = vst [vmem:[#allocation3 + $0x39] sm:$0x1] %v20497_v32  ;;  %18072 = vmatprep.subr.bf16.mxu0 %v20625_v31 }
  0x2d   : > { %3757 = vst [vmem:[#allocation3 + $0x49] sm:$0x1] %v20497_v32  ;;  %3758 = vst [vmem:[#allocation3 + $0x59] sm:$0x1] %v20497_v32  ;;  %18007 = vmatpush3.bf16.msra.mxu1 %v18418_v59 }
  0x2e   : > { %18329 = vmatmul.mubr.bf16.vlgmr.msra.gmra.mxu0 %v18378_v11  ;;  %3759 = vst [vmem:[#allocation3 + $0x69] sm:$0x1] %v20497_v32  ;;  %3760 = vst [vmem:[#allocation3 + $0x79] sm:$0x1] %v20497_v32  ;;  %18032 = vmatprep.subr.bf16.mxu1 %v18425_v2 }
  0x2f   : > { %18332 = vmatprep.mubr.bf16.mxu0 %v18379_v12  ;;  %3761 = vst [vmem:[#allocation3 + $0x89] sm:$0x1] %v20497_v32  ;;  %6238 = vst [vmem:[#allocation4] sm:$0x3f] %v20497_v32  ;;  %18073 = vmatpush3.bf16.msra.mxu0 %v18400_v33 }
  0x30   : > { %6239 = vst [vmem:[#allocation4 + $0x8] sm:$0x3f] %v20497_v32  ;;  %6241 = vst [vmem:[#allocation4 + $0x50] sm:$0x3f] %v20497_v32  ;;  %18074 = vmatprep.subr.bf16.mxu0 %v18403_v36 }
  0x31   : > { %6242 = vst [vmem:[#allocation4 + $0x58] sm:$0x3f] %v20497_v32  ;;  %14546 = vst [vmem:[#allocation5] sm:$0x1f] %v20497_v32 }
  0x32   : > { %14547 = vst [vmem:[#allocation5 + $0x8] sm:$0x1f] %v20497_v32  ;;  %14548 = vst [vmem:[#allocation5 + $0x10] sm:$0x1f] %v20497_v32 }
  0x33   : > { %14549 = vst [vmem:[#allocation5 + $0x18] sm:$0x1f] %v20497_v32  ;;  %14551 = vst [vmem:[#allocation5 + $0x80] sm:$0x1f] %v20497_v32  ;;  %18075 = vmatpush3.bf16.msra.mxu0 %v18404_v37 }
  0x34   : > { %14552 = vst [vmem:[#allocation5 + $0x88] sm:$0x1f] %v20497_v32  ;;  %14553 = vst [vmem:[#allocation5 + $0x90] sm:$0x1f] %v20497_v32  ;;  %18076 = vmatprep.subr.bf16.mxu0 %v18407_v40 }
  0x35   : > { %14554 = vst [vmem:[#allocation5 + $0x98] sm:$0x1f] %v20497_v32  ;;  %768 = vst [vmem:[#allocation2] sm:$0x1] %v20497_v32 }
  0x36   : > { %18333 = vmatmul.mubr.bf16.gmra.mxu0 %v18380_v13  ;;  %785 = vst [vmem:[#allocation2 + $0x198] sm:$0x1] %v20497_v32  ;;  %786 = vst [vmem:[#allocation2 + $0x11] sm:$0x1] %v20497_v32 }
  0x37   : > { %18336 = vmatprep.mubr.bf16.mxu0 %v18381_v14  ;;  %803 = vst [vmem:[#allocation2 + $0x1a9] sm:$0x1] %v20497_v32  ;;  %3743 = vst [vmem:[#allocation3] sm:$0x1] %v20497_v32  ;;  %18077 = vmatpush3.bf16.msra.mxu0 %v18408_v41 }
  0x38   : > { %3752 = vst [vmem:[#allocation3 + $0x90] sm:$0x1] %v20497_v32  ;;  %3753 = vst [vmem:[#allocation3 + $0x9] sm:$0x1] %v20497_v32  ;;  %18078 = vmatprep.subr.bf16.mxu0 %v18411_v46 }
  0x39   : > { %3762 = vst [vmem:[#allocation3 + $0x99] sm:$0x1] %v20497_v32  ;;  %940 = vst [vmem:[#allocation6 + $0x4] sm:$0xf] %v17816_v48 }
  0x3a   : > { %996 = vst [vmem:[#allocation6 + $0x8] sm:$0xf] %v17824_v54 }
  0x3b   : > { %18079 = vmatpush3.bf16.msra.mxu0 %v18412_v49 }
  0x3c   : > { %v837_v44 = vld [vmem:[#allocation2] ss:$2 sm:$0xff]  ;;  %18080 = vmatprep.subr.bf16.mxu0 %v18415_v56 }
  0x3d   : > { %v17808_v47 = vpack.c.bf16 %v837_v44, %v837_v44  ;;  %v1005_v52 = vld [vmem:[#allocation2 + $0x3] ss:$2 sm:$0xff] }
  0x3e   : > { %18337 = vmatmul.mubr.bf16.gmra.mxu0 %v18382_v15  ;;  %v17832_v55 = vpack.c.bf16 %v1005_v52, %v1005_v52 }
  0x3f   : > { %18340 = vmatprep.mubr.bf16.mxu0 %v18383_v16  ;;  %884 = vst [vmem:[#allocation6] sm:$0xf] %v17808_v47  ;;  %18081 = vmatpush3.bf16.msra.mxu0 %v18416_v57 }
  0x40   : > { %1052 = vst [vmem:[#allocation6 + $0xc] sm:$0xf] %v17832_v55  ;;  %18082 = vmatprep.subr.bf16.mxu0 %v18419_v60 }
  0x43   : > { %18083 = vmatpush3.bf16.msra.mxu0 %v18420_v61 }
  0x44   : > { %18084 = vmatprep.subr.bf16.mxu0 %v18421_v62 }
  0x46   : > { %18341 = vmatmul.mubr.bf16.gmra.mxu0 %v18384_v17 }
  0x47   : > { %18344 = vmatprep.mubr.bf16.mxu0 %v18385_v18  ;;  %18085 = vmatpush3.bf16.msra.mxu0 %v18422_v63 }
  0x48   : > { %18086 = vmatprep.subr.bf16.mxu0 %v18423_v0 }
  0x4b   : > { %18087 = vmatpush3.bf16.msra.mxu0 %v18424_v1 }
  0x4c   : > { %18152 = vmatprep.subr.bf16.mxu0 %v18431_v3 }
  0x4e   : > { %18345 = vmatmul.mubr.bf16.gmra.mxu0 %v18386_v19 }
  0x4f   : > { %18348 = vmatprep.mubr.bf16.mxu0 %v18387_v20 }
  0x56   : > { %18349 = vmatmul.mubr.bf16.gmra.mxu0 %v18388_v21 }
  0x57   : > { %18352 = vmatprep.mubr.bf16.mxu0 %v18389_v22 }
  0x5e   : > { %18353 = vmatmul.mubr.bf16.gmra.mxu0 %v18390_v23 }
  0x5f   : > { %18356 = vmatprep.mubr.bf16.mxu0 %v18391_v24 }
  0x66   : > { %18357 = vmatmul.mubr.bf16.gmra.mxu0 %v18392_v25 }
  0xee   : > { %v18330_v5 = vpop.f32.mrf.mxu0 }
  0xef   : > { %v547_v6 = vadd.f32 %v18330_v5, %v20791_v4  ;;  %v1522_v5 = vld [vmem:[#allocation2 + $0x198] ss:$2 sm:$0xff] }
  0xf0   : > { %v538_v7 = vpop.f32.mrf.mxu0 }
  0xf1   : > { %vm667_vm0 = vcmp.gt.f32.partialorder %v547_v6, 0.0  ;;  %v699_v8 = vmul.f32 0.2, %v547_v6  ;;  %v539_v9 = vadd.f32 %v20791_v4, %v538_v7 }
  0xf2   : > { %v18331_v10 = vpop.f32.mrf.mxu0 }
  0xf3   : > { %v731_v11 = vsel %vm667_vm0, %v547_v6, %v699_v8  ;;  %vm665_vm1 = vcmp.gt.f32.partialorder %v539_v9, 0.0  ;;  %v697_v12 = vmul.f32 0.2, %v539_v9  ;;  %v550_v13 = vadd.f32 %v18331_v10, %v20791_v4 }
  0xf4   : > { %807 = vst [vmem:[#allocation2 + $0x31] sm:$0xff] %v731_v11  ;;  %v541_v14 = vpop.f32.mrf.mxu0 }
  0xf5   : > { %v729_v15 = vsel %vm665_vm1, %v539_v9, %v697_v12  ;;  %vm668_vm2 = vcmp.gt.f32.partialorder %v550_v13, 0.0  ;;  %v700_v16 = vmul.f32 0.2, %v550_v13  ;;  %v542_v17 = vadd.f32 %v20791_v4, %v541_v14  ;;  %v1578_v9 = vld [vmem:[#allocation2 + $0x199] ss:$2 sm:$0xff] }
  0xf6   : > { %805 = vst [vmem:[#allocation2 + $0x19] sm:$0xff] %v729_v15  ;;  %v18334_v18 = vpop.f32.mrf.mxu0  ;;  %v17911_v14 = vpack.c.bf16 %v1522_v5, %v1522_v5 }
  0xf7   : > { %v732_v19 = vsel %vm668_vm2, %v550_v13, %v700_v16  ;;  %vm666_vm3 = vcmp.gt.f32.partialorder %v542_v17, 0.0  ;;  %v698_v20 = vmul.f32 0.2, %v542_v17  ;;  %v563_v21 = vadd.f32 %v18334_v18, %v20791_v4 }
  0xf8   : > { %808 = vst [vmem:[#allocation2 + $0x39] sm:$0xff] %v732_v19  ;;  %v554_v22 = vpop.f32.mrf.mxu0  ;;  %1562 = vst [vmem:[#allocation6 + $0x1f0] sm:$0xf] %v17911_v14 }
  0xf9   : > { %v730_v23 = vsel %vm666_vm3, %v542_v17, %v698_v20  ;;  %vm671_vm4 = vcmp.gt.f32.partialorder %v563_v21, 0.0  ;;  %v703_v24 = vmul.f32 0.2, %v563_v21  ;;  %v555_v25 = vadd.f32 %v20791_v4, %v554_v22 }
  0xfa   : > { %806 = vst [vmem:[#allocation2 + $0x21] sm:$0xff] %v730_v23  ;;  %v18335_v26 = vpop.f32.mrf.mxu0  ;;  %v17919_v20 = vpack.c.bf16 %v1578_v9, %v1578_v9 }
  0xfb   : > { %v735_v27 = vsel %vm671_vm4, %v563_v21, %v703_v24  ;;  %vm669_vm5 = vcmp.gt.f32.partialorder %v555_v25, 0.0  ;;  %v701_v28 = vmul.f32 0.2, %v555_v25  ;;  %v566_v29 = vadd.f32 %v18335_v26, %v20791_v4 }
  0xfc   : > { %811 = vst [vmem:[#allocation2 + $0x61] sm:$0xff] %v735_v27  ;;  %v557_v30 = vpop.f32.mrf.mxu0  ;;  %1618 = vst [vmem:[#allocation6 + $0x1f4] sm:$0xf] %v17919_v20 }
  0xfd   : > { %v733_v31 = vsel %vm669_vm5, %v555_v25, %v701_v28  ;;  %vm672_vm6 = vcmp.gt.f32.partialorder %v566_v29, 0.0  ;;  %v704_v32 = vmul.f32 0.2, %v566_v29  ;;  %v558_v33 = vadd.f32 %v20791_v4, %v557_v30 }
  0xfe   : > { %809 = vst [vmem:[#allocation2 + $0x49] sm:$0xff] %v733_v31  ;;  %v18338_v34 = vpop.f32.mrf.mxu0 }
  0xff   : > { %v951_v35 = vld [vmem:[#allocation2 + $0x32] ss:$2 sm:$0xff]  ;;  %v1007_v36 = vld [vmem:[#allocation2 + $0x33] ss:$2 sm:$0xff]  ;;  %v736_v38 = vsel %vm672_vm6, %v566_v29, %v704_v32  ;;  %v579_v39 = vadd.f32 %v18338_v34, %v20791_v4  ;;  %vm670_vm7 = vcmp.gt.f32.partialorder %v558_v33, 0.0 }
 0x100   : > { %v1284_v37 = vld [vmem:[#allocation2 + $0x30] ss:$2 sm:$0xff]  ;;  %v1340_v40 = vld [vmem:[#allocation2 + $0x31] ss:$2 sm:$0xff]  ;;  %812 = vst [vmem:[#allocation2 + $0x69] sm:$0xff] %v736_v38  ;;  %v570_v43 = vpop.f32.mrf.mxu0  ;;  %v17825_v44 = vpack.c.bf16 %v951_v35, %v951_v35  ;;  %v17833_v45 = vpack.c.bf16 %v1007_v36, %v1007_v36 }
 0x101   : > { %v1396_v41 = vld [vmem:[#allocation2 + $0x32] ss:$2 sm:$0xff]  ;;  %v1452_v42 = vld [vmem:[#allocation2 + $0x33] ss:$2 sm:$0xff]  ;;  %v17872_v46 = vpack.c.bf16 %v1284_v37, %v1284_v37  ;;  %v702_v47 = vmul.f32 0.2, %v558_v33  ;;  %v571_v49 = vadd.f32 %v20791_v4, %v570_v43  ;;  %v17880_v54 = vpack.c.bf16 %v1340_v40, %v1340_v40 }
 0x102   : > { %vm675_vm8 = vcmp.gt.f32.partialorder %v579_v39, 0.0  ;;  %v707_v48 = vmul.f32 0.2, %v579_v39  ;;  %v18339_v50 = vpop.f32.mrf.mxu0  ;;  %v839_v51 = vld [vmem:[#allocation2 + $0x30] ss:$2 sm:$0xff]  ;;  %v17888_v55 = vpack.c.bf16 %v1396_v41, %v1396_v41  ;;  %v17896_v56 = vpack.c.bf16 %v1452_v42, %v1452_v42 }
 0x103   : > { %v895_v52 = vld [vmem:[#allocation2 + $0x31] ss:$2 sm:$0xff]  ;;  %v1060_v53 = vld [vmem:[#allocation2 + $0x18] ss:$2 sm:$0xff]  ;;  %997 = vst [vmem:[#allocation6 + $0x48] sm:$0xf] %v17825_v44  ;;  %v734_v57 = vsel %vm670_vm7, %v558_v33, %v702_v47  ;;  %v582_v59 = vadd.f32 %v18339_v50, %v20791_v4  ;;  %v17809_v60 = vpack.c.bf16 %v839_v51, %v839_v51 }
 0x104   : > { %1053 = vst [vmem:[#allocation6 + $0x4c] sm:$0xf] %v17833_v45  ;;  %1331 = vst [vmem:[#allocation6 + $0x20] sm:$0xf] %v17872_v46  ;;  %v739_v58 = vsel %vm675_vm8, %v579_v39, %v707_v48  ;;  %v1116_v61 = vld [vmem:[#allocation2 + $0x19] ss:$2 sm:$0xff]  ;;  %v573_v1 = vpop.f32.mrf.mxu0  ;;  %v17817_v2 = vpack.c.bf16 %v895_v52, %v895_v52  ;;  %v17840_v3 = vpack.c.bf16 %v1060_v53, %v1060_v53 }
 0x105   : > { %v1172_v62 = vld [vmem:[#allocation2 + $0x1a] ss:$2 sm:$0xff]  ;;  %v1228_v63 = vld [vmem:[#allocation2 + $0x1b] ss:$2 sm:$0xff]  ;;  %810 = vst [vmem:[#allocation2 + $0x51] sm:$0xff] %v734_v57  ;;  %815 = vst [vmem:[#allocation2 + $0x91] sm:$0xff] %v739_v58  ;;  %v574_v7 = vadd.f32 %v20791_v4, %v573_v1  ;;  %v17848_v8 = vpack.c.bf16 %v1116_v61, %v1116_v61 }
 0x106   : > { %vm673_vm9 = vcmp.gt.f32.partialorder %v571_v49, 0.0  ;;  %v705_v0 = vmul.f32 0.2, %v571_v49  ;;  %1387 = vst [vmem:[#allocation6 + $0x24] sm:$0xf] %v17880_v54  ;;  %vm676_vm10 = vcmp.gt.f32.partialorder %v582_v59, 0.0  ;;  %v18342_v11 = vpop.f32.mrf.mxu0  ;;  %v17856_v12 = vpack.c.bf16 %v1172_v62, %v1172_v62 }
 0x107   : > { %1443 = vst [vmem:[#allocation6 + $0x28] sm:$0xf] %v17888_v55  ;;  %1499 = vst [vmem:[#allocation6 + $0x2c] sm:$0xf] %v17896_v56  ;;  %v708_v6 = vmul.f32 0.2, %v582_v59  ;;  %v17864_v13 = vpack.c.bf16 %v1228_v63, %v1228_v63  ;;  %v595_v19 = vadd.f32 %v18342_v11, %v20791_v4 }
 0x108   : > { %885 = vst [vmem:[#allocation6 + $0x40] sm:$0xf] %v17809_v60  ;;  %v737_v10 = vsel %vm673_vm9, %v571_v49, %v705_v0  ;;  %941 = vst [vmem:[#allocation6 + $0x44] sm:$0xf] %v17817_v2  ;;  %v841_v15 = vld [vmem:[#allocation2 + $0x60] ss:$2 sm:$0xff]  ;;  %v586_v24 = vpop.f32.mrf.mxu0 }
 0x109   : > { %1107 = vst [vmem:[#allocation6 + $0x10] sm:$0xf] %v17840_v3  ;;  %v897_v16 = vld [vmem:[#allocation2 + $0x61] ss:$2 sm:$0xff]  ;;  %v953_v17 = vld [vmem:[#allocation2 + $0x62] ss:$2 sm:$0xff]  ;;  %v740_v18 = vsel %vm676_vm10, %v582_v59, %v708_v6  ;;  %v17810_v25 = vpack.c.bf16 %v841_v15, %v841_v15  ;;  %v587_v28 = vadd.f32 %v20791_v4, %v586_v24 }
 0x10a   : > { %813 = vst [vmem:[#allocation2 + $0x79] sm:$0xff] %v737_v10  ;;  %1163 = vst [vmem:[#allocation6 + $0x14] sm:$0xf] %v17848_v8  ;;  %v1009_v21 = vld [vmem:[#allocation2 + $0x63] ss:$2 sm:$0xff]  ;;  %v17818_v26 = vpack.c.bf16 %v897_v16, %v897_v16  ;;  %v17826_v27 = vpack.c.bf16 %v953_v17, %v953_v17  ;;  %vm674_vm11 = vcmp.gt.f32.partialorder %v574_v7, 0.0  ;;  %v18343_v32 = vpop.f32.mrf.mxu0 }
 0x10b   : > { %v1286_v22 = vld [vmem:[#allocation2 + $0x60] ss:$2 sm:$0xff]  ;;  %v1342_v23 = vld [vmem:[#allocation2 + $0x61] ss:$2 sm:$0xff]  ;;  %816 = vst [vmem:[#allocation2 + $0x99] sm:$0xff] %v740_v18  ;;  %vm679_vm12 = vcmp.gt.f32.partialorder %v595_v19, 0.0  ;;  %v17834_v29 = vpack.c.bf16 %v1009_v21, %v1009_v21  ;;  %v598_v36 = vadd.f32 %v18343_v32, %v20791_v4 }
 0x10c   : > { %1219 = vst [vmem:[#allocation6 + $0x18] sm:$0xf] %v17856_v12  ;;  %1275 = vst [vmem:[#allocation6 + $0x1c] sm:$0xf] %v17864_v13  ;;  %v706_v30 = vmul.f32 0.2, %v574_v7  ;;  %v17873_v33 = vpack.c.bf16 %v1286_v22, %v1286_v22  ;;  %v17881_v34 = vpack.c.bf16 %v1342_v23, %v1342_v23  ;;  %v589_v41 = vpop.f32.mrf.mxu0 }
 0x10d   : > { %v711_v31 = vmul.f32 0.2, %v595_v19  ;;  %886 = vst [vmem:[#allocation6 + $0x80] sm:$0xf] %v17810_v25  ;;  %942 = vst [vmem:[#allocation6 + $0x84] sm:$0xf] %v17818_v26  ;;  %v590_v49 = vadd.f32 %v20791_v4, %v589_v41 }
 0x10e   : > { %998 = vst [vmem:[#allocation6 + $0x88] sm:$0xf] %v17826_v27  ;;  %vm677_vm13 = vcmp.gt.f32.partialorder %v587_v28, 0.0  ;;  %v709_v35 = vmul.f32 0.2, %v587_v28  ;;  %v1731_v37 = vld [vmem:[#allocation6] sm:$0xff]  ;;  %v738_v39 = vsel %vm674_vm11, %v574_v7, %v706_v30  ;;  %v18346_v55 = vpop.f32.mrf.mxu0 }
 0x10f   : > { %v1062_v38 = vld [vmem:[#allocation2 + $0x48] ss:$2 sm:$0xff]  ;;  %1054 = vst [vmem:[#allocation6 + $0x8c] sm:$0xf] %v17834_v29  ;;  %v743_v40 = vsel %vm679_vm12, %v595_v19, %v711_v31  ;;  %v1118_v43 = vld [vmem:[#allocation2 + $0x49] ss:$2 sm:$0xff]  ;;  %v611_v0 = vadd.f32 %v18346_v55, %v20791_v4 }
 0x110   : > { %v17841_v42 = vpack.c.bf16 %v1062_v38, %v1062_v38  ;;  %v18426_v44 = vld [vmem:[%s25769_s3 + $0xb8] sm:$0xff]   ;;  %1332 = vst [vmem:[#allocation6 + $0x60] sm:$0xf] %v17873_v33  ;;  %1388 = vst [vmem:[#allocation6 + $0x64] sm:$0xf] %v17881_v34  ;;  %v741_v47 = vsel %vm677_vm13, %v587_v28, %v709_v35  ;;  %vm680_vm14 = vcmp.gt.f32.partialorder %v598_v36, 0.0  ;;  %v17849_v56 = vpack.c.bf16 %v1118_v43, %v1118_v43  ;;  %v602_v7 = vpop.f32.mrf.mxu0 }
 0x111   : > { %v1174_v45 = vld [vmem:[#allocation2 + $0x4a] ss:$2 sm:$0xff]  ;;  %v1230_v46 = vld [vmem:[#allocation2 + $0x4b] ss:$2 sm:$0xff]  ;;  %814 = vst [vmem:[#allocation2 + $0x81] sm:$0xff] %v738_v39  ;;  %819 = vst [vmem:[#allocation2 + $0xc1] sm:$0xff] %v743_v40  ;;  %v603_v12 = vadd.f32 %v20791_v4, %v602_v7 }
 0x112   : > { %v712_v48 = vmul.f32 0.2, %v598_v36  ;;  %v1739_v50 = vld [vmem:[#allocation6 + $0x40] sm:$0xff]  ;;  %817 = vst [vmem:[#allocation2 + $0xa9] sm:$0xff] %v741_v47  ;;  %1108 = vst [vmem:[#allocation6 + $0x50] sm:$0xf] %v17841_v42  ;;  %v17857_v58 = vpack.c.bf16 %v1174_v45, %v1174_v45  ;;  %v17865_v1 = vpack.c.bf16 %v1230_v46, %v1230_v46  ;;  %v18347_v16 = vpop.f32.mrf.mxu0 }
 0x113   : > { %v1508_v51 = vld [vmem:[#allocation2 + $0x48] ss:$2 sm:$0xff]  ;;  %v15325_v53 = vcombine.low %v1731_v37, %v1739_v50  ;;  %v15326_v54 = vcombine.high %v1731_v37, %v1739_v50  ;;  %v1564_v59 = vld [vmem:[#allocation2 + $0x49] ss:$2 sm:$0xff]  ;;  %1164 = vst [vmem:[#allocation6 + $0x54] sm:$0xf] %v17849_v56  ;;  %v614_v22 = vadd.f32 %v18347_v16, %v20791_v4 }
 0x114   : > { %v20816_v52 = vld [vmem:[#allocation2 + $0x62] ss:$2 sm:$0xff]  ;;  %v899_v61 = vld [vmem:[#allocation2 + $0x91] ss:$2 sm:$0xff]  ;;  %v955_v62 = vld [vmem:[#allocation2 + $0x92] ss:$2 sm:$0xff]  ;;  %v744_v63 = vsel %vm680_vm14, %v598_v36, %v712_v48  ;;  %v17904_v2 = vpack.c.bf16 %v1508_v51, %v1508_v51  ;;  %v17912_v11 = vpack.c.bf16 %v1564_v59, %v1564_v59  ;;  %v605_v27 = vpop.f32.mrf.mxu0 }
 0x115   : > { %v18427_v57 = vld [vmem:[%s25769_s3 + $0xf0] sm:$0xff]   ;;  %820 = vst [vmem:[#allocation2 + $0xc9] sm:$0xff] %v744_v63  ;;  %3171 = vmatprep.mubr.bf16.mxu1 %v15326_v54  ;;  %v17819_v9 = vpack.c.bf16 %v899_v61, %v899_v61  ;;  %v17827_v10 = vpack.c.bf16 %v955_v62, %v955_v62  ;;  %1220 = vst [vmem:[#allocation6 + $0x58] sm:$0xf] %v17857_v58  ;;  %vm678_vm15 = vcmp.gt.f32.partialorder %v590_v49, 0.0  ;;  %vm683_vm0 = vcmp.gt.f32.partialorder %v611_v0, 0.0 }
 0x116   : > { %v843_v60 = vld [vmem:[#allocation2 + $0x90] ss:$2 sm:$0xff]  ;;  %v1011_v3 = vld [vmem:[#allocation2 + $0x93] ss:$2 sm:$0xff]  ;;  %3172 = vmatmul.mubr.bf16.vlgmr.msra.gmra.mxu1 %v15325_v53  ;;  %1276 = vst [vmem:[#allocation6 + $0x5c] sm:$0xf] %v17865_v1  ;;  %v17889_v24 = vpack.c.bf16 %v20816_v52, %v20816_v52  ;;  %v20839_v33 = vadd.f32 %v20791_v4, %v605_v27  ;;  %v18350_v36 = vpop.f32.mrf.mxu0 }
 0x117   : > { %v1288_v5 = vld [vmem:[#allocation2 + $0x90] ss:$2 sm:$0xff]  ;;  %v1344_v6 = vld [vmem:[#allocation2 + $0x91] ss:$2 sm:$0xff]  ;;  %v17811_v8 = vpack.c.bf16 %v843_v60, %v843_v60  ;;  %v17835_v13 = vpack.c.bf16 %v1011_v3, %v1011_v3  ;;  %1555 = vst [vmem:[#allocation6 + $0x30] sm:$0xf] %v17904_v2  ;;  %18033 = vmatpush3.bf16.msra.mxu1 %v18426_v44  ;;  %v627_v48 = vadd.f32 %v18350_v36, %v20791_v4 }
 0x118   : > { %v710_v14 = vmul.f32 0.2, %v590_v49  ;;  %v715_v15 = vmul.f32 0.2, %v611_v0  ;;  %943 = vst [vmem:[#allocation6 + $0xc4] sm:$0xf] %v17819_v9  ;;  %v17874_v18 = vpack.c.bf16 %v1288_v5, %v1288_v5  ;;  %v17882_v19 = vpack.c.bf16 %v1344_v6, %v1344_v6  ;;  %18034 = vmatprep.subr.bf16.mxu1 %v18427_v57  ;;  %v618_v54 = vpop.f32.mrf.mxu0 }
 0x119   : > { %887 = vst [vmem:[#allocation6 + $0xc0] sm:$0xf] %v17811_v8  ;;  %v18428_v17 = vld [vmem:[%s25769_s3 + $0xb0] sm:$0xff]   ;;  %999 = vst [vmem:[#allocation6 + $0xc8] sm:$0xf] %v17827_v10  ;;  %vm681_vm1 = vcmp.gt.f32.partialorder %v603_v12, 0.0  ;;  %v619_v60 = vadd.f32 %v20791_v4, %v618_v54 }
 0x11a   : > { %1611 = vst [vmem:[#allocation6 + $0x34] sm:$0xf] %v17912_v11  ;;  %v20827_v20 = vld [vmem:[#allocation2 + $0x63] ss:$2 sm:$0xff]  ;;  %v713_v21 = vmul.f32 0.2, %v603_v12  ;;  %v742_v25 = vsel %vm678_vm15, %v590_v49, %v710_v14  ;;  %v747_v26 = vsel %vm683_vm0, %v611_v0, %v715_v15  ;;  %v18351_v1 = vpop.f32.mrf.mxu0 }
 0x11b   : > { %v18429_v23 = vld [vmem:[%s25769_s3 + $0xe8] sm:$0xff]   ;;  %1055 = vst [vmem:[#allocation6 + $0xcc] sm:$0xf] %v17835_v13  ;;  %v1064_v28 = vld [vmem:[#allocation2 + $0x78] ss:$2 sm:$0xff]  ;;  %818 = vst [vmem:[#allocation2 + $0xb1] sm:$0xff] %v742_v25  ;;  %18035 = vmatpush3.bf16.msra.mxu1 %v18428_v17  ;;  %v17897_v58 = vpack.c.bf16 %v20827_v20, %v20827_v20  ;;  %v630_v14 = vadd.f32 %v18351_v1, %v20791_v4 }
 0x11c   : > { %v1120_v29 = vld [vmem:[#allocation2 + $0x79] ss:$2 sm:$0xff]  ;;  %1333 = vst [vmem:[#allocation6 + $0xa0] sm:$0xf] %v17874_v18  ;;  %1389 = vst [vmem:[#allocation6 + $0xa4] sm:$0xf] %v17882_v19  ;;  %v745_v31 = vsel %vm681_vm1, %v603_v12, %v713_v21  ;;  %v17842_v37 = vpack.c.bf16 %v1064_v28, %v1064_v28  ;;  %18036 = vmatprep.subr.bf16.mxu1 %v18429_v23  ;;  %v621_v15 = vpop.f32.mrf.mxu0 }
 0x11d   : > { %v1176_v30 = vld [vmem:[#allocation2 + $0x7a] ss:$2 sm:$0xff]  ;;  %823 = vst [vmem:[#allocation2 + $0xf1] sm:$0xff] %v747_v26  ;;  %vm684_vm2 = vcmp.gt.f32.partialorder %v614_v22, 0.0  ;;  %v716_v32 = vmul.f32 0.2, %v614_v22  ;;  %v17850_v38 = vpack.c.bf16 %v1120_v29, %v1120_v29  ;;  %v622_v21 = vadd.f32 %v20791_v4, %v621_v15 }
 0x11e   : > { %v18430_v34 = vld [vmem:[%s25769_s3 + $0xa8] sm:$0xff]   ;;  %1444 = vst [vmem:[#allocation6 + $0x68] sm:$0xf] %v17889_v24  ;;  %821 = vst [vmem:[#allocation2 + $0xd9] sm:$0xff] %v745_v31  ;;  %v18432_v39 = vld [vmem:[%s25769_s3 + $0xe0] sm:$0xff]   ;;  %v17858_v40 = vpack.c.bf16 %v1176_v30, %v1176_v30  ;;  %vm682_vm3 = vcmp.gt.f32.partialorder %v20839_v33, 0.0  ;;  %v18354_v26 = vpop.f32.mrf.mxu0 }
 0x11f   : > { %v1232_v35 = vld [vmem:[#allocation2 + $0x7b] ss:$2 sm:$0xff]  ;;  %v1510_v42 = vld [vmem:[#allocation2 + $0x78] ss:$2 sm:$0xff]  ;;  %v748_v47 = vsel %vm684_vm2, %v614_v22, %v716_v32  ;;  %1109 = vst [vmem:[#allocation6 + $0x90] sm:$0xf] %v17842_v37  ;;  %18037 = vmatpush3.bf16.msra.mxu1 %v18430_v34  ;;  %v643_v34 = vadd.f32 %v18354_v26, %v20791_v4 }
 0x120   : > { %v17866_v41 = vpack.c.bf16 %v1232_v35, %v1232_v35  ;;  %v1566_v43 = vld [vmem:[#allocation2 + $0x79] ss:$2 sm:$0xff]  ;;  %v845_v44 = vld [vmem:[#allocation2 + $0xc0] ss:$2 sm:$0xff]  ;;  %v17905_v49 = vpack.c.bf16 %v1510_v42, %v1510_v42  ;;  %824 = vst [vmem:[#allocation2 + $0xf9] sm:$0xff] %v748_v47  ;;  %vm687_vm4 = vcmp.gt.f32.partialorder %v627_v48, 0.0  ;;  %18038 = vmatprep.subr.bf16.mxu1 %v18432_v39  ;;  %v634_v39 = vpop.f32.mrf.mxu0 }
 0x121   : > { %v901_v45 = vld [vmem:[#allocation2 + $0xc1] ss:$2 sm:$0xff]  ;;  %v957_v46 = vld [vmem:[#allocation2 + $0xc2] ss:$2 sm:$0xff]  ;;  %v17913_v50 = vpack.c.bf16 %v1566_v43, %v1566_v43  ;;  %1165 = vst [vmem:[#allocation6 + $0x94] sm:$0xf] %v17850_v38  ;;  %v17812_v55 = vpack.c.bf16 %v845_v44, %v845_v44  ;;  %v635_v42 = vadd.f32 %v20791_v4, %v634_v39 }
 0x122   : > { %v1013_v51 = vld [vmem:[#allocation2 + $0xc3] ss:$2 sm:$0xff]  ;;  %v1290_v52 = vld [vmem:[#allocation2 + $0xc0] ss:$2 sm:$0xff]  ;;  %v17820_v56 = vpack.c.bf16 %v901_v45, %v901_v45  ;;  %v17828_v57 = vpack.c.bf16 %v957_v46, %v957_v46  ;;  %1221 = vst [vmem:[#allocation6 + $0x98] sm:$0xf] %v17858_v40  ;;  %v18355_v47 = vpop.f32.mrf.mxu0 }
 0x123   : > { %v1346_v53 = vld [vmem:[#allocation2 + $0xc1] ss:$2 sm:$0xff]  ;;  %1277 = vst [vmem:[#allocation6 + $0x9c] sm:$0xf] %v17866_v41  ;;  %v17836_v61 = vpack.c.bf16 %v1013_v51, %v1013_v51  ;;  %1556 = vst [vmem:[#allocation6 + $0x70] sm:$0xf] %v17905_v49  ;;  %v17875_v3 = vpack.c.bf16 %v1290_v52, %v1290_v52  ;;  %v646_v51 = vadd.f32 %v18355_v47, %v20791_v4 }
 0x124   : > { %v1733_v59 = vld [vmem:[#allocation6 + $0x10] sm:$0xff]  ;;  %1612 = vst [vmem:[#allocation6 + $0x74] sm:$0xf] %v17913_v50  ;;  %v714_v62 = vmul.f32 0.2, %v20839_v33  ;;  %v1755_v2 = vld [vmem:[#allocation6 + $0xc0] sm:$0xff]  ;;  %v17883_v5 = vpack.c.bf16 %v1346_v53, %v1346_v53 }
 0x125   : > { %v719_v63 = vmul.f32 0.2, %v627_v48  ;;  %v1741_v0 = vld [vmem:[#allocation6 + $0x50] sm:$0xff]  ;;  %888 = vst [vmem:[#allocation6 + $0x100] sm:$0xf] %v17812_v55  ;;  %vm685_vm5 = vcmp.gt.f32.partialorder %v619_v60, 0.0 }
 0x126   : > { %944 = vst [vmem:[#allocation6 + $0x104] sm:$0xf] %v17820_v56  ;;  %1000 = vst [vmem:[#allocation6 + $0x108] sm:$0xf] %v17828_v57  ;;  %v15329_v6 = vcombine.low %v1733_v59, %v1741_v0  ;;  %v15330_v7 = vcombine.high %v1733_v59, %v1741_v0  ;;  %v717_v8 = vmul.f32 0.2, %v619_v60  ;;  %v746_v12 = vsel %vm682_vm3, %v20839_v33, %v714_v62  ;;  %v637_v57 = vpop.f32.mrf.mxu0 }
 0x127   : > { %1500 = vst [vmem:[#allocation6 + $0x6c] sm:$0xf] %v17897_v58  ;;  %v1747_v9 = vld [vmem:[#allocation6 + $0x80] sm:$0xff]  ;;  %v18433_v10 = vld [vmem:[%s25769_s3 + $0x238] sm:$0xff]   ;;  %v18434_v11 = vld [vmem:[%s25769_s3 + $0xa0] sm:$0xff]   ;;  %v751_v13 = vsel %vm687_vm4, %v627_v48, %v719_v63  ;;  %vm688_vm6 = vcmp.gt.f32.partialorder %v630_v14, 0.0  ;;  %v638_v63 = vadd.f32 %v20791_v4, %v637_v57 }
 0x128   : > { %1056 = vst [vmem:[#allocation6 + $0x10c] sm:$0xf] %v17836_v61  ;;  %v15342_v16 = vcombine.high %v1747_v9, %v1755_v2  ;;  %v1066_v17 = vld [vmem:[#allocation2 + $0xa8] ss:$2 sm:$0xff]  ;;  %v1122_v18 = vld [vmem:[#allocation2 + $0xa9] ss:$2 sm:$0xff]  ;;  %3301 = vmatprep.mubr.bf16.mxu0 %v15330_v7  ;;  %v749_v20 = vsel %vm685_vm5, %v619_v60, %v717_v8  ;;  %v15341_v22 = vcombine.low %v1747_v9, %v1755_v2  ;;  %v18358_v2 = vpop.f32.mrf.mxu0 }
 0x129   : > { %v18435_v19 = vld [vmem:[%s25769_s3 + $0x270] sm:$0xff]   ;;  %1334 = vst [vmem:[#allocation6 + $0xe0] sm:$0xf] %v17875_v3  ;;  %1390 = vst [vmem:[#allocation6 + $0xe4] sm:$0xf] %v17883_v5  ;;  %v17843_v23 = vpack.c.bf16 %v1066_v17, %v1066_v17  ;;  %v18436_v24 = vld [vmem:[%s25769_s3 + $0xd8] sm:$0xff]   ;;  %3302 = vmatmul.mubr.bf16.vlgmr.msra.gmra.mxu0 %v15329_v6  ;;  %v17851_v27 = vpack.c.bf16 %v1122_v18, %v1122_v18  ;;  %18039 = vmatpush3.bf16.msra.mxu1 %v18434_v11 }
 0x12a   : > { %822 = vst [vmem:[#allocation2 + $0xe1] sm:$0xff] %v746_v12  ;;  %827 = vst [vmem:[#allocation2 + $0x121] sm:$0xff] %v751_v13  ;;  %v720_v25 = vmul.f32 0.2, %v630_v14  ;;  %3179 = vmatprep.mubr.bf16.mxu1 %v15342_v16  ;;  %v18437_v28 = vld [vmem:[%s25769_s3 + $0x230] sm:$0xff]   ;;  %v18438_v29 = vld [vmem:[%s25769_s3 + $0x98] sm:$0xff]   ;;  %18153 = vmatpush3.bf16.msra.mxu0 %v18433_v10  ;;  %v659_v10 = vadd.f32 %v18358_v2, %v20791_v4 }
 0x12b   : > { %825 = vst [vmem:[#allocation2 + $0x109] sm:$0xff] %v749_v20  ;;  %v18439_v30 = vld [vmem:[%s25769_s3 + $0x268] sm:$0xff]   ;;  %v847_v31 = vld [vmem:[#allocation2 + $0xf0] ss:$2 sm:$0xff]  ;;  %v903_v32 = vld [vmem:[#allocation2 + $0xf1] ss:$2 sm:$0xff]  ;;  %3180 = vmatmul.mubr.bf16.gmra.mxu1 %v15341_v22  ;;  %18154 = vmatprep.subr.bf16.mxu0 %v18435_v19  ;;  %v650_v19 = vpop.f32.mrf.mxu0 }
 0x12c   : > { %v959_v33 = vld [vmem:[#allocation2 + $0xf2] ss:$2 sm:$0xff]  ;;  %1110 = vst [vmem:[#allocation6 + $0xd0] sm:$0xf] %v17843_v23  ;;  %v1015_v35 = vld [vmem:[#allocation2 + $0xf3] ss:$2 sm:$0xff]  ;;  %v752_v38 = vsel %vm688_vm6, %v630_v14, %v720_v25  ;;  %v17813_v40 = vpack.c.bf16 %v847_v31, %v847_v31  ;;  %v17821_v41 = vpack.c.bf16 %v903_v32, %v903_v32  ;;  %18040 = vmatprep.subr.bf16.mxu1 %v18436_v24 }
 0x12d   : > { %v1292_v36 = vld [vmem:[#allocation2 + $0xf0] ss:$2 sm:$0xff]  ;;  %v1348_v37 = vld [vmem:[#allocation2 + $0xf1] ss:$2 sm:$0xff]  ;;  %1166 = vst [vmem:[#allocation6 + $0xd4] sm:$0xf] %v17851_v27  ;;  %v17829_v44 = vpack.c.bf16 %v959_v33, %v959_v33  ;;  %v17837_v48 = vpack.c.bf16 %v1015_v35, %v1015_v35  ;;  %18041 = vmatpush3.bf16.msra.mxu1 %v18438_v29  ;;  %v651_v24 = vadd.f32 %v20791_v4, %v650_v19 }
 0x12e   : > { %828 = vst [vmem:[#allocation2 + $0x129] sm:$0xff] %v752_v38  ;;  %vm686_vm7 = vcmp.gt.f32.partialorder %v622_v21, 0.0  ;;  %vm691_vm8 = vcmp.gt.f32.partialorder %v643_v34, 0.0  ;;  %v18440_v43 = vld [vmem:[%s25769_s3 + $0xd0] sm:$0xff]   ;;  %v718_v45 = vmul.f32 0.2, %v622_v21  ;;  %v17876_v49 = vpack.c.bf16 %v1292_v36, %v1292_v36  ;;  %18155 = vmatpush3.bf16.msra.mxu0 %v18437_v28  ;;  %v18359_v28 = vpop.f32.mrf.mxu0 }
 0x12f   : > { %v723_v46 = vmul.f32 0.2, %v643_v34  ;;  %889 = vst [vmem:[#allocation6 + $0x140] sm:$0xf] %v17813_v40  ;;  %945 = vst [vmem:[#allocation6 + $0x144] sm:$0xf] %v17821_v41  ;;  %v17884_v54 = vpack.c.bf16 %v1348_v37, %v1348_v37  ;;  %18156 = vmatprep.subr.bf16.mxu0 %v18439_v30  ;;  %18042 = vmatprep.subr.bf16.mxu1 %v18440_v43  ;;  %v662_v38 = vadd.f32 %v18359_v28, %v20791_v4 }
 0x130   : > { %vm689_vm9 = vcmp.gt.f32.partialorder %v635_v42, 0.0  ;;  %v721_v50 = vmul.f32 0.2, %v635_v42  ;;  %v18441_v52 = vld [vmem:[%s25769_s3 + $0x228] sm:$0xff]   ;;  %v18442_v53 = vld [vmem:[%s25769_s3 + $0x90] sm:$0xff]   ;;  %v750_v55 = vsel %vm686_vm7, %v622_v21, %v718_v45  ;;  %v18443_v60 = vld [vmem:[%s25769_s3 + $0x260] sm:$0xff]  }
 0x131   : > { %1001 = vst [vmem:[#allocation6 + $0x148] sm:$0xf] %v17829_v44  ;;  %v755_v56 = vsel %vm691_vm8, %v643_v34, %v723_v46  ;;  %v1068_v58 = vld [vmem:[#allocation2 + $0xd8] ss:$2 sm:$0xff]  ;;  %v1124_v59 = vld [vmem:[#allocation2 + $0xd9] ss:$2 sm:$0xff]  ;;  %18043 = vmatpush3.bf16.msra.mxu1 %v18442_v53 }
 0x132   : > { %1057 = vst [vmem:[#allocation6 + $0x14c] sm:$0xf] %v17837_v48  ;;  %1335 = vst [vmem:[#allocation6 + $0x120] sm:$0xf] %v17876_v49  ;;  %v753_v61 = vsel %vm689_vm9, %v635_v42, %v721_v50  ;;  %vm692_vm10 = vcmp.gt.f32.partialorder %v646_v51, 0.0  ;;  %v18444_v0 = vld [vmem:[%s25769_s3 + $0xc8] sm:$0xff]   ;;  %v17844_v3 = vpack.c.bf16 %v1068_v58, %v1068_v58  ;;  %v17852_v5 = vpack.c.bf16 %v1124_v59, %v1124_v59  ;;  %v653_v42 = vpop.f32.mrf.mxu0 }
 0x133   : > { %826 = vst [vmem:[#allocation2 + $0x111] sm:$0xff] %v750_v55  ;;  %831 = vst [vmem:[#allocation2 + $0x151] sm:$0xff] %v755_v56  ;;  %v724_v62 = vmul.f32 0.2, %v646_v51  ;;  %v1178_v1 = vld [vmem:[#allocation2 + $0xaa] ss:$2 sm:$0xff]  ;;  %18157 = vmatpush3.bf16.msra.mxu0 %v18441_v52  ;;  %18044 = vmatprep.subr.bf16.mxu1 %v18444_v0  ;;  %v654_v52 = vadd.f32 %v20791_v4, %v653_v42 }
 0x134   : > { %1391 = vst [vmem:[#allocation6 + $0x124] sm:$0xf] %v17884_v54  ;;  %829 = vst [vmem:[#allocation2 + $0x139] sm:$0xff] %v753_v61  ;;  %v18445_v6 = vld [vmem:[%s25769_s3 + $0x220] sm:$0xff]   ;;  %v18446_v7 = vld [vmem:[%s25769_s3 + $0x88] sm:$0xff]   ;;  %vm690_vm11 = vcmp.gt.f32.partialorder %v638_v63, 0.0  ;;  %18158 = vmatprep.subr.bf16.mxu0 %v18443_v60  ;;  %v17859_v20 = vpack.c.bf16 %v1178_v1, %v1178_v1 }
 0x135   : > { %v756_v8 = vsel %vm692_vm10, %v646_v51, %v724_v62  ;;  %v722_v9 = vmul.f32 0.2, %v638_v63  ;;  %v1749_v11 = vld [vmem:[#allocation6 + $0x90] sm:$0xff]  ;;  %v18447_v13 = vld [vmem:[%s25769_s3 + $0x258] sm:$0xff]   ;;  %1111 = vst [vmem:[#allocation6 + $0x110] sm:$0xf] %v17844_v3  ;;  %18045 = vmatpush3.bf16.msra.mxu1 %v18446_v7 }
 0x136   : > { %v1757_v12 = vld [vmem:[#allocation6 + $0xd0] sm:$0xff]  ;;  %832 = vst [vmem:[#allocation2 + $0x159] sm:$0xff] %v756_v8  ;;  %1167 = vst [vmem:[#allocation6 + $0x114] sm:$0xf] %v17852_v5  ;;  %vm695_vm12 = vcmp.gt.f32.partialorder %v659_v10, 0.0  ;;  %v1771_v29 = vld [vmem:[#allocation6 + $0x140] sm:$0xff] }
 0x137   : > { %v849_v14 = vld [vmem:[#allocation2 + $0x120] ss:$2 sm:$0xff]  ;;  %v905_v15 = vld [vmem:[#allocation2 + $0x121] ss:$2 sm:$0xff]  ;;  %v15346_v17 = vcombine.high %v1749_v11, %v1757_v12  ;;  %v15345_v18 = vcombine.low %v1749_v11, %v1757_v12  ;;  %v754_v23 = vsel %vm690_vm11, %v638_v63, %v722_v9  ;;  %v18449_v30 = vld [vmem:[%s25769_s3 + $0x218] sm:$0xff]   ;;  %vm693_vm13 = vcmp.gt.f32.partialorder %v651_v24, 0.0  ;;  %18159 = vmatpush3.bf16.msra.mxu0 %v18445_v6 }
 0x138   : > { %v961_v16 = vld [vmem:[#allocation2 + $0x122] ss:$2 sm:$0xff]  ;;  %v1017_v21 = vld [vmem:[#allocation2 + $0x123] ss:$2 sm:$0xff]  ;;  %v17814_v25 = vpack.c.bf16 %v849_v14, %v849_v14  ;;  %v17822_v26 = vpack.c.bf16 %v905_v15, %v905_v15  ;;  %830 = vst [vmem:[#allocation2 + $0x141] sm:$0xff] %v754_v23  ;;  %vm696_vm14 = vcmp.gt.f32.partialorder %v662_v38, 0.0  ;;  %18160 = vmatprep.subr.bf16.mxu0 %v18447_v13 }
 0x139   : > { %v1294_v22 = vld [vmem:[#allocation2 + $0x120] ss:$2 sm:$0xff]  ;;  %3309 = vmatprep.mubr.bf16.mxu0 %v15346_v17  ;;  %v17830_v32 = vpack.c.bf16 %v961_v16, %v961_v16  ;;  %v17838_v33 = vpack.c.bf16 %v1017_v21, %v1017_v21  ;;  %1222 = vst [vmem:[#allocation6 + $0xd8] sm:$0xf] %v17859_v20  ;;  %v20926_v35 = vld [vmem:[#allocation2 + $0xab] ss:$2 sm:$0xff] }
 0x13a   : > { %v18448_v27 = vld [vmem:[%s25769_s3 + $0xc0] sm:$0xff]   ;;  %v17877_v34 = vpack.c.bf16 %v1294_v22, %v1294_v22  ;;  %v727_v36 = vmul.f32 0.2, %v659_v10  ;;  %3310 = vmatmul.mubr.bf16.gmra.mxu0 %v15345_v18  ;;  %v725_v37 = vmul.f32 0.2, %v651_v24  ;;  %v1763_v39 = vld [vmem:[#allocation6 + $0x100] sm:$0xff]  ;;  %v17867_v0 = vpack.c.bf16 %v20926_v35, %v20926_v35 }
 0x13b   : > { %v18450_v31 = vld [vmem:[%s25769_s3 + $0x80] sm:$0xff]   ;;  %890 = vst [vmem:[#allocation6 + $0x180] sm:$0xf] %v17814_v25  ;;  %946 = vst [vmem:[#allocation6 + $0x184] sm:$0xf] %v17822_v26  ;;  %v18451_v40 = vld [vmem:[%s25769_s3 + $0x250] sm:$0xff]   ;;  %v15358_v43 = vcombine.high %v1763_v39, %v1771_v29  ;;  %v15357_v44 = vcombine.low %v1763_v39, %v1771_v29  ;;  %18046 = vmatprep.subr.bf16.mxu1 %v18448_v27  ;;  %18161 = vmatpush3.bf16.msra.mxu0 %v18449_v30 }
 0x13c   : > { %v1350_v41 = vld [vmem:[#allocation2 + $0x121] ss:$2 sm:$0xff]  ;;  %v1070_v45 = vld [vmem:[#allocation2 + $0x108] ss:$2 sm:$0xff]  ;;  %1002 = vst [vmem:[#allocation6 + $0x188] sm:$0xf] %v17830_v32  ;;  %v759_v47 = vsel %vm695_vm12, %v659_v10, %v727_v36  ;;  %v757_v48 = vsel %vm693_vm13, %v651_v24, %v725_v37  ;;  %18047 = vmatpush3.bf16.msra.mxu1 %v18450_v31  ;;  %18162 = vmatprep.subr.bf16.mxu0 %v18451_v40 }
 0x13d   : > { %v1126_v46 = vld [vmem:[#allocation2 + $0x109] ss:$2 sm:$0xff]  ;;  %1058 = vst [vmem:[#allocation6 + $0x18c] sm:$0xf] %v17838_v33  ;;  %1336 = vst [vmem:[#allocation6 + $0x160] sm:$0xf] %v17877_v34  ;;  %3187 = vmatprep.mubr.bf16.mxu1 %v15358_v43  ;;  %v17845_v53 = vpack.c.bf16 %v1070_v45, %v1070_v45  ;;  %v17885_v4 = vpack.c.bf16 %v1350_v41, %v1350_v41 }
 0x13e   : > { %v728_v49 = vmul.f32 0.2, %v662_v38  ;;  %v18452_v50 = vld [vmem:[%s25769_s3 + $0x1f8] sm:$0xff]   ;;  %835 = vst [vmem:[#allocation2 + $0x181] sm:$0xff] %v759_v47  ;;  %833 = vst [vmem:[#allocation2 + $0x169] sm:$0xff] %v757_v48  ;;  %v17853_v54 = vpack.c.bf16 %v1126_v46, %v1126_v46  ;;  %v18453_v55 = vld [vmem:[%s25769_s3 + $0x210] sm:$0xff]   ;;  %3188 = vmatmul.mubr.bf16.gmra.mxu1 %v15357_v44 }
 0x13f   : > { %v20937_v51 = vld [vmem:[#allocation2 + $0xda] ss:$2 sm:$0xff]  ;;  %v1182_v56 = vld [vmem:[#allocation2 + $0x10a] ss:$2 sm:$0xff]  ;;  %v20943_v57 = vld [vmem:[#allocation2 + $0xdb] ss:$2 sm:$0xff]  ;;  %18112 = vmatprep.subr.bf16.mxu1 %v18452_v50  ;;  %18163 = vmatpush3.bf16.msra.mxu0 %v18453_v55 }
 0x140   : > { %v20945_v58 = vld [vmem:[#allocation2 + $0x10b] ss:$2 sm:$0xff]  ;;  %v20947_v59 = vld [vmem:[#allocation2 + $0xa8] ss:$2 sm:$0xff]  ;;  %v760_v63 = vsel %vm696_vm14, %v662_v38, %v728_v49  ;;  %1112 = vst [vmem:[#allocation6 + $0x150] sm:$0xf] %v17845_v53  ;;  %v17860_v21 = vpack.c.bf16 %v20937_v51, %v20937_v51  ;;  %v17861_v22 = vpack.c.bf16 %v1182_v56, %v1182_v56  ;;  %v17868_v26 = vpack.c.bf16 %v20943_v57, %v20943_v57 }
 0x141   : > { %v851_v60 = vld [vmem:[#allocation2 + $0x150] ss:$2 sm:$0xff]  ;;  %v907_v61 = vld [vmem:[#allocation2 + $0x151] ss:$2 sm:$0xff]  ;;  %836 = vst [vmem:[#allocation2 + $0x189] sm:$0xff] %v760_v63  ;;  %vm694_vm15 = vcmp.gt.f32.partialorder %v654_v52, 0.0  ;;  %v17869_v27 = vpack.c.bf16 %v20945_v58, %v20945_v58  ;;  %v17906_v28 = vpack.c.bf16 %v20947_v59, %v20947_v59 }
 0x142   : > { %v963_v62 = vld [vmem:[#allocation2 + $0x152] ss:$2 sm:$0xff]  ;;  %v20952_v1 = vld [vmem:[#allocation2 + $0xa9] ss:$2 sm:$0xff]  ;;  %1168 = vst [vmem:[#allocation6 + $0x154] sm:$0xf] %v17853_v54  ;;  %v17815_v6 = vpack.c.bf16 %v851_v60, %v851_v60  ;;  %v17823_v7 = vpack.c.bf16 %v907_v61, %v907_v61 }
 0x143   : > { %v1019_v2 = vld [vmem:[#allocation2 + $0x153] ss:$2 sm:$0xff]  ;;  %v1296_v3 = vld [vmem:[#allocation2 + $0x150] ss:$2 sm:$0xff]  ;;  %v17831_v8 = vpack.c.bf16 %v963_v62, %v963_v62  ;;  %v18455_v9 = vld [vmem:[%s25769_s3 + $0x248] sm:$0xff]   ;;  %v17914_v34 = vpack.c.bf16 %v20952_v1, %v20952_v1  ;;  %vm14416_vm14 = vcmask 1040384  }
 0x144   : > { %v1352_v5 = vld [vmem:[#allocation2 + $0x151] ss:$2 sm:$0xff]  ;;  %v17839_v10 = vpack.c.bf16 %v1019_v2, %v1019_v2  ;;  %1392 = vst [vmem:[#allocation6 + $0x164] sm:$0xf] %v17885_v4  ;;  %v17878_v11 = vpack.c.bf16 %v1296_v3, %v1296_v3  ;;  %1278 = vst [vmem:[#allocation6 + $0xdc] sm:$0xf] %v17867_v0  ;;  %18164 = vmatprep.subr.bf16.mxu0 %v18455_v9 }
 0x145   : > { %v17886_v12 = vpack.c.bf16 %v1352_v5, %v1352_v5  ;;  %v1514_v13 = vld [vmem:[#allocation2 + $0xd8] ss:$2 sm:$0xff]  ;;  %v1570_v14 = vld [vmem:[#allocation2 + $0xd9] ss:$2 sm:$0xff]  ;;  %v726_v18 = vmul.f32 0.2, %v654_v52 }
 0x146   : > { %v20957_v15 = vld [vmem:[#allocation2 + $0x92] ss:$2 sm:$0xff]  ;;  %v20959_v16 = vld [vmem:[#allocation2 + $0x93] ss:$2 sm:$0xff]  ;;  %v20961_v17 = vld [vmem:[#allocation2 + $0xc2] ss:$2 sm:$0xff]  ;;  %v17907_v33 = vpack.c.bf16 %v1514_v13, %v1514_v13  ;;  %v17915_v41 = vpack.c.bf16 %v1570_v14, %v1570_v14 }
 0x147   : > { %891 = vst [vmem:[#allocation6 + $0x1c0] sm:$0xf] %v17815_v6  ;;  %947 = vst [vmem:[#allocation6 + $0x1c4] sm:$0xf] %v17823_v7  ;;  %v1072_v19 = vld [vmem:[#allocation2 + $0x138] ss:$2 sm:$0xff]  ;;  %v758_v31 = vsel %vm694_vm15, %v654_v52, %v726_v18  ;;  %v17890_v56 = vpack.c.bf16 %v20957_v15, %v20957_v15  ;;  %v17891_v57 = vpack.c.bf16 %v20961_v17, %v20961_v17 }
 0x148   : > { %v18457_v20 = vld [vmem:[%s25769_s3 + $0x208] sm:$0xff]   ;;  %1003 = vst [vmem:[#allocation6 + $0x1c8] sm:$0xf] %v17831_v8  ;;  %v17846_v24 = vpack.c.bf16 %v1072_v19, %v1072_v19  ;;  %v1128_v25 = vld [vmem:[#allocation2 + $0x139] ss:$2 sm:$0xff]  ;;  %834 = vst [vmem:[#allocation2 + $0x171] sm:$0xff] %v758_v31  ;;  %v17898_v58 = vpack.c.bf16 %v20959_v16, %v20959_v16 }
 0x149   : > { %v1516_v23 = vld [vmem:[#allocation2 + $0x108] ss:$2 sm:$0xff]  ;;  %1059 = vst [vmem:[#allocation6 + $0x1cc] sm:$0xf] %v17839_v10  ;;  %1337 = vst [vmem:[#allocation6 + $0x1a0] sm:$0xf] %v17878_v11  ;;  %v17854_v32 = vpack.c.bf16 %v1128_v25, %v1128_v25  ;;  %18165 = vmatpush3.bf16.msra.mxu0 %v18457_v20 }
 0x14a   : > { %1393 = vst [vmem:[#allocation6 + $0x1a4] sm:$0xf] %v17886_v12  ;;  %v1184_v29 = vld [vmem:[#allocation2 + $0x13a] ss:$2 sm:$0xff]  ;;  %v1572_v30 = vld [vmem:[#allocation2 + $0x109] ss:$2 sm:$0xff]  ;;  %v17908_v44 = vpack.c.bf16 %v1516_v23, %v1516_v23 }
 0x14b   : > { %1223 = vst [vmem:[#allocation6 + $0x118] sm:$0xf] %v17860_v21  ;;  %1224 = vst [vmem:[#allocation6 + $0x158] sm:$0xf] %v17861_v22  ;;  %v1240_v35 = vld [vmem:[#allocation2 + $0x13b] ss:$2 sm:$0xff]  ;;  %v17862_v42 = vpack.c.bf16 %v1184_v29, %v1184_v29  ;;  %v17916_v50 = vpack.c.bf16 %v1572_v30, %v1572_v30 }
 0x14c   : > { %v1518_v36 = vld [vmem:[#allocation2 + $0x138] ss:$2 sm:$0xff]  ;;  %v1574_v37 = vld [vmem:[#allocation2 + $0x139] ss:$2 sm:$0xff]  ;;  %1113 = vst [vmem:[#allocation6 + $0x190] sm:$0xf] %v17846_v24  ;;  %v17870_v43 = vpack.c.bf16 %v1240_v35, %v1240_v35 }
 0x14d   : > { %v1458_v38 = vld [vmem:[#allocation2 + $0xc3] ss:$2 sm:$0xff]  ;;  %v1404_v39 = vld [vmem:[#allocation2 + $0xf2] ss:$2 sm:$0xff]  ;;  %1279 = vst [vmem:[#allocation6 + $0x11c] sm:$0xf] %v17868_v26  ;;  %v17909_v49 = vpack.c.bf16 %v1518_v36, %v1518_v36  ;;  %v17917_v51 = vpack.c.bf16 %v1574_v37, %v1574_v37 }
 0x14e   : > { %v18459_v40 = vld [vmem:[%s25769_s3 + $0x240] sm:$0xff]   ;;  %1280 = vst [vmem:[#allocation6 + $0x15c] sm:$0xf] %v17869_v27  ;;  %1557 = vst [vmem:[#allocation6 + $0xb0] sm:$0xf] %v17906_v28  ;;  %v20984_v47 = vld [vmem:[#allocation6 + $0x8] sm:$0xff]  ;;  %v17899_v4 = vpack.c.bf16 %v1458_v38, %v1458_v38  ;;  %v17892_v0 = vpack.c.bf16 %v1404_v39, %v1404_v39 }
 0x14f   : > { %v20980_v45 = vld [vmem:[#allocation2 + $0xf3] ss:$2 sm:$0xff]  ;;  %v20982_v46 = vld [vmem:[#allocation2 + $0x122] ss:$2 sm:$0xff]  ;;  %1169 = vst [vmem:[#allocation6 + $0x194] sm:$0xf] %v17854_v32  ;;  %18166 = vmatprep.subr.bf16.mxu0 %v18459_v40 }
 0x150   : > { %v20986_v48 = vld [vmem:[#allocation6 + $0x48] sm:$0xff]  ;;  %1558 = vst [vmem:[#allocation6 + $0xf0] sm:$0xf] %v17907_v33  ;;  %1613 = vst [vmem:[#allocation6 + $0xb4] sm:$0xf] %v17914_v34  ;;  %v18461_v55 = vld [vmem:[%s25769_s3 + $0x200] sm:$0xff]   ;;  %v17893_v13 = vpack.c.bf16 %v20982_v46, %v20982_v46  ;;  %v17900_v14 = vpack.c.bf16 %v20980_v45, %v20980_v45 }
 0x151   : > { %v20988_v52 = vld [vmem:[#allocation2 + $0x123] ss:$2 sm:$0xff]  ;;  %v1298_v53 = vld [vmem:[#allocation2 + $0x180] ss:$2 sm:$0xff]  ;;  %1614 = vst [vmem:[#allocation6 + $0xf4] sm:$0xf] %v17915_v41  ;;  %v15328_v12 = vcombine.high %v20984_v47, %v20986_v48  ;;  %18167 = vmatpush3.bf16.msra.mxu0 %v18461_v55  ;;  %v15327_v46 = vcombine.low %v20984_v47, %v20986_v48 }
 0x152   : > { %v1354_v54 = vld [vmem:[#allocation2 + $0x181] ss:$2 sm:$0xff]  ;;  %1225 = vst [vmem:[#allocation6 + $0x198] sm:$0xf] %v17862_v42  ;;  %1281 = vst [vmem:[#allocation6 + $0x19c] sm:$0xf] %v17870_v43  ;;  %v17879_v62 = vpack.c.bf16 %v1298_v53, %v1298_v53  ;;  %v17901_v17 = vpack.c.bf16 %v20988_v52, %v20988_v52 }
 0x153   : > { %1559 = vst [vmem:[#allocation6 + $0x130] sm:$0xf] %v17908_v44  ;;  %v1408_v59 = vld [vmem:[#allocation2 + $0x152] ss:$2 sm:$0xff]  ;;  %v17887_v63 = vpack.c.bf16 %v1354_v54, %v1354_v54  ;;  %1560 = vst [vmem:[#allocation6 + $0x170] sm:$0xf] %v17909_v49 }
 0x154   : > { %v1765_v60 = vld [vmem:[#allocation6 + $0x110] sm:$0xff]  ;;  %1615 = vst [vmem:[#allocation6 + $0x134] sm:$0xf] %v17916_v50  ;;  %1616 = vst [vmem:[#allocation6 + $0x174] sm:$0xf] %v17917_v51  ;;  %v1779_v5 = vld [vmem:[#allocation6 + $0x180] sm:$0xff]  ;;  %v17894_v18 = vpack.c.bf16 %v1408_v59, %v1408_v59 }
 0x155   : > { %v1773_v61 = vld [vmem:[#allocation6 + $0x150] sm:$0xff]  ;;  %v1787_v6 = vld [vmem:[#allocation6 + $0x1c0] sm:$0xff]  ;;  %1445 = vst [vmem:[#allocation6 + $0xa8] sm:$0xf] %v17890_v56  ;;  %1446 = vst [vmem:[#allocation6 + $0xe8] sm:$0xf] %v17891_v57 }
 0x156   : > { %v1410_v1 = vld [vmem:[#allocation2 + $0x182] ss:$2 sm:$0xff]  ;;  %v15362_v2 = vcombine.high %v1765_v60, %v1773_v61  ;;  %v15361_v3 = vcombine.low %v1765_v60, %v1773_v61  ;;  %1501 = vst [vmem:[#allocation6 + $0xac] sm:$0xf] %v17898_v58  ;;  %v1464_v7 = vld [vmem:[#allocation2 + $0x153] ss:$2 sm:$0xff]  ;;  %v15374_v8 = vcombine.high %v1779_v5, %v1787_v6  ;;  %v15373_v9 = vcombine.low %v1779_v5, %v1787_v6 }
 0x157   : > { %v18463_v10 = vld [vmem:[%s25769_s3 + $0x378] sm:$0xff]   ;;  %1338 = vst [vmem:[#allocation6 + $0x1e0] sm:$0xf] %v17879_v62  ;;  %1394 = vst [vmem:[#allocation6 + $0x1e4] sm:$0xf] %v17887_v63  ;;  %v17895_v19 = vpack.c.bf16 %v1410_v1, %v1410_v1  ;;  %v17902_v22 = vpack.c.bf16 %v1464_v7, %v1464_v7  ;;  %v18456_v40 = vld [vmem:[%s25769_s3 + $0x1f0] sm:$0xff]  }
 0x158   : > { %1502 = vst [vmem:[#allocation6 + $0xec] sm:$0xf] %v17899_v4  ;;  %1447 = vst [vmem:[#allocation6 + $0x128] sm:$0xf] %v17892_v0  ;;  %v1466_v11 = vld [vmem:[#allocation2 + $0x183] ss:$2 sm:$0xff]  ;;  %3317 = vmatprep.mubr.bf16.mxu0 %v15362_v2  ;;  %3195 = vmatprep.mubr.bf16.mxu1 %v15374_v8 }
 0x159   : > { %3318 = vmatmul.mubr.bf16.gmra.mxu0 %v15361_v3  ;;  %v1074_v15 = vld [vmem:[#allocation2 + $0x168] ss:$2 sm:$0xff]  ;;  %v1130_v16 = vld [vmem:[#allocation2 + $0x169] ss:$2 sm:$0xff]  ;;  %3196 = vmatmul.mubr.bf16.gmra.mxu1 %v15373_v9  ;;  %1448 = vst [vmem:[#allocation6 + $0x168] sm:$0xf] %v17893_v13  ;;  %v17903_v28 = vpack.c.bf16 %v1466_v11, %v1466_v11 }
 0x15a   : > { %v17847_v20 = vpack.c.bf16 %v1074_v15, %v1074_v15  ;;  %v17855_v21 = vpack.c.bf16 %v1130_v16, %v1130_v16  ;;  %1503 = vst [vmem:[#allocation6 + $0x12c] sm:$0xf] %v17900_v14  ;;  %v1620_v23 = vld [vmem:[#allocation2 + $0x4a] ss:$2 sm:$0xff]  ;;  %v1622_v24 = vld [vmem:[#allocation2 + $0x7a] ss:$2 sm:$0xff]  ;;  %3236 = vmatprep.mubr.bf16.mxu1 %v15328_v12  ;;  %18232 = vmatprep.subr.bf16.mxu0 %v18463_v10 }
 0x15b   : > { %v1676_v25 = vld [vmem:[#allocation2 + $0x4b] ss:$2 sm:$0xff]  ;;  %v1186_v26 = vld [vmem:[#allocation2 + $0x16a] ss:$2 sm:$0xff]  ;;  %1504 = vst [vmem:[#allocation6 + $0x16c] sm:$0xf] %v17901_v17  ;;  %v17920_v36 = vpack.c.bf16 %v1620_v23, %v1620_v23  ;;  %v17921_v37 = vpack.c.bf16 %v1622_v24, %v1622_v24 }
 0x15c   : > { %v1242_v27 = vld [vmem:[#allocation2 + $0x16b] ss:$2 sm:$0xff]  ;;  %1449 = vst [vmem:[#allocation6 + $0x1a8] sm:$0xf] %v17894_v18  ;;  %1450 = vst [vmem:[#allocation6 + $0x1e8] sm:$0xf] %v17895_v19  ;;  %v17863_v31 = vpack.c.bf16 %v1186_v26, %v1186_v26  ;;  %v17928_v43 = vpack.c.bf16 %v1676_v25, %v1676_v25 }
 0x15d   : > { %v1678_v29 = vld [vmem:[#allocation2 + $0x7b] ss:$2 sm:$0xff]  ;;  %1114 = vst [vmem:[#allocation6 + $0x1d0] sm:$0xf] %v17847_v20  ;;  %1170 = vst [vmem:[#allocation6 + $0x1d4] sm:$0xf] %v17855_v21  ;;  %v17871_v32 = vpack.c.bf16 %v1242_v27, %v1242_v27 }
 0x15e   : > { %v21010_v30 = vld [vmem:[#allocation6 + $0xc8] sm:$0xff]  ;;  %1505 = vst [vmem:[#allocation6 + $0x1ac] sm:$0xf] %v17902_v22  ;;  %v1520_v34 = vld [vmem:[#allocation2 + $0x168] ss:$2 sm:$0xff]  ;;  %v17929_v44 = vpack.c.bf16 %v1678_v29, %v1678_v29  ;;  %v1781_v7 = vld [vmem:[#allocation6 + $0x190] sm:$0xff] }
 0x15f   : > { %v18454_v33 = vld [vmem:[%s25769_s3 + $0x1b8] sm:$0xff]   ;;  %v1576_v35 = vld [vmem:[#allocation2 + $0x169] ss:$2 sm:$0xff]  ;;  %1506 = vst [vmem:[#allocation6 + $0x1ec] sm:$0xf] %v17903_v28  ;;  %v17910_v41 = vpack.c.bf16 %v1520_v34, %v1520_v34  ;;  %v18464_v18 = vld [vmem:[%s25769_s3 + $0x1e0] sm:$0xff]  }
 0x160   : > { %v1624_v38 = vld [vmem:[#allocation2 + $0xaa] ss:$2 sm:$0xff]  ;;  %1226 = vst [vmem:[#allocation6 + $0x1d8] sm:$0xf] %v17863_v31  ;;  %1282 = vst [vmem:[#allocation6 + $0x1dc] sm:$0xf] %v17871_v32  ;;  %v17918_v42 = vpack.c.bf16 %v1576_v35, %v1576_v35 }
 0x161   : > { %v21015_v39 = vld [vmem:[#allocation6 + $0x88] sm:$0xff]  ;;  %1667 = vst [vmem:[#allocation6 + $0x38] sm:$0xf] %v17920_v36  ;;  %1668 = vst [vmem:[#allocation6 + $0x78] sm:$0xf] %v17921_v37  ;;  %v17922_v53 = vpack.c.bf16 %v1624_v38, %v1624_v38  ;;  %v18458_v47 = vld [vmem:[%s25769_s3 + $0x1b0] sm:$0xff]   ;;  %3237 = vmatmul.mubr.bf16.vlgmr.msra.gmra.mxu1 %v15327_v46 }
 0x162   : > { %v1626_v45 = vld [vmem:[#allocation2 + $0xda] ss:$2 sm:$0xff]  ;;  %v15344_v49 = vcombine.high %v21015_v39, %v21010_v30  ;;  %v1680_v50 = vld [vmem:[#allocation2 + $0xab] ss:$2 sm:$0xff]  ;;  %v1682_v51 = vld [vmem:[#allocation2 + $0xdb] ss:$2 sm:$0xff]  ;;  %18113 = vmatpush3.bf16.msra.mxu1 %v18454_v33  ;;  %v15343_v19 = vcombine.low %v21015_v39, %v21010_v30 }
 0x163   : > { %v1628_v52 = vld [vmem:[#allocation2 + $0x10a] ss:$2 sm:$0xff]  ;;  %1561 = vst [vmem:[#allocation6 + $0x1b0] sm:$0xf] %v17910_v41  ;;  %1617 = vst [vmem:[#allocation6 + $0x1b4] sm:$0xf] %v17918_v42  ;;  %v17923_v54 = vpack.c.bf16 %v1626_v45, %v1626_v45  ;;  %v17930_v55 = vpack.c.bf16 %v1680_v50, %v1680_v50  ;;  %v17931_v56 = vpack.c.bf16 %v1682_v51, %v1682_v51  ;;  %18114 = vmatprep.subr.bf16.mxu1 %v18456_v40 }
 0x164   : > { %1723 = vst [vmem:[#allocation6 + $0x3c] sm:$0xf] %v17928_v43  ;;  %1724 = vst [vmem:[#allocation6 + $0x7c] sm:$0xf] %v17929_v44  ;;  %v1630_v57 = vld [vmem:[#allocation2 + $0x13a] ss:$2 sm:$0xff]  ;;  %v17924_v48 = vpack.c.bf16 %v1628_v52, %v1628_v52  ;;  %3244 = vmatprep.mubr.bf16.mxu1 %v15344_v49 }
 0x165   : > { %v1684_v58 = vld [vmem:[#allocation2 + $0x10b] ss:$2 sm:$0xff]  ;;  %v1686_v59 = vld [vmem:[#allocation2 + $0x13b] ss:$2 sm:$0xff]  ;;  %v17925_v60 = vpack.c.bf16 %v1630_v57, %v1630_v57  ;;  %v1632_v63 = vld [vmem:[#allocation2 + $0x16a] ss:$2 sm:$0xff] }
 0x166   : > { %v17932_v61 = vpack.c.bf16 %v1684_v58, %v1684_v58  ;;  %v17933_v62 = vpack.c.bf16 %v1686_v59, %v1686_v59  ;;  %v1634_v4 = vld [vmem:[#allocation2 + $0x19a] ss:$2 sm:$0xff]  ;;  %v1743_v0 = vld [vmem:[#allocation6 + $0x60] sm:$0xff]  ;;  %1669 = vst [vmem:[#allocation6 + $0xb8] sm:$0xf] %v17922_v53  ;;  %v17926_v2 = vpack.c.bf16 %v1632_v63, %v1632_v63  ;;  %18115 = vmatpush3.bf16.msra.mxu1 %v18458_v47 }
 0x167   : > { %v18460_v1 = vld [vmem:[%s25769_s3 + $0x1e8] sm:$0xff]   ;;  %1670 = vst [vmem:[#allocation6 + $0xf8] sm:$0xf] %v17923_v54  ;;  %1725 = vst [vmem:[#allocation6 + $0xbc] sm:$0xf] %v17930_v55  ;;  %v17927_v3 = vpack.c.bf16 %v1634_v4, %v1634_v4  ;;  %v1789_v8 = vld [vmem:[#allocation6 + $0x1d0] sm:$0xff] }
 0x168   : > { %1726 = vst [vmem:[#allocation6 + $0xfc] sm:$0xf] %v17931_v56  ;;  %v1688_v5 = vld [vmem:[#allocation2 + $0x16b] ss:$2 sm:$0xff]  ;;  %v1690_v6 = vld [vmem:[#allocation2 + $0x19b] ss:$2 sm:$0xff]  ;;  %v15378_v10 = vcombine.high %v1781_v7, %v1789_v8  ;;  %v15377_v11 = vcombine.low %v1781_v7, %v1789_v8  ;;  %18116 = vmatprep.subr.bf16.mxu1 %v18460_v1 }
 0x169   : > { %1671 = vst [vmem:[#allocation6 + $0x138] sm:$0xf] %v17924_v48  ;;  %1672 = vst [vmem:[#allocation6 + $0x178] sm:$0xf] %v17925_v60  ;;  %v17934_v9 = vpack.c.bf16 %v1688_v5, %v1688_v5  ;;  %v1735_v12 = vld [vmem:[#allocation6 + $0x20] sm:$0xff]  ;;  %v17935_v13 = vpack.c.bf16 %v1690_v6, %v1690_v6  ;;  %v1772_v14 = vld [vmem:[#allocation6 + $0x148] sm:$0xff]  ;;  %3245 = vmatmul.mubr.bf16.gmra.mxu1 %v15343_v19 }
 0x16a   : > { %1727 = vst [vmem:[#allocation6 + $0x13c] sm:$0xf] %v17932_v61  ;;  %1728 = vst [vmem:[#allocation6 + $0x17c] sm:$0xf] %v17933_v62  ;;  %3325 = vmatprep.mubr.bf16.mxu0 %v15378_v10  ;;  %v15334_v15 = vcombine.high %v1735_v12, %v1743_v0  ;;  %v18462_v16 = vld [vmem:[%s25769_s3 + $0x1a8] sm:$0xff]   ;;  %v1764_v17 = vld [vmem:[#allocation6 + $0x108] sm:$0xff]  ;;  %v15333_v27 = vcombine.low %v1735_v12, %v1743_v0 }
 0x16b   : > { %1673 = vst [vmem:[#allocation6 + $0x1b8] sm:$0xf] %v17926_v2  ;;  %1674 = vst [vmem:[#allocation6 + $0x1f8] sm:$0xf] %v17927_v3  ;;  %3326 = vmatmul.mubr.bf16.gmra.mxu0 %v15377_v11  ;;  %v15360_v20 = vcombine.high %v1764_v17, %v1772_v14  ;;  %v1759_v21 = vld [vmem:[#allocation6 + $0xe0] sm:$0xff]  ;;  %v18465_v22 = vld [vmem:[%s25769_s3 + $0x338] sm:$0xff]   ;;  %18117 = vmatpush3.bf16.msra.mxu1 %v18462_v16  ;;  %v15359_v35 = vcombine.low %v1764_v17, %v1772_v14 }
 0x16c   : > { %1729 = vst [vmem:[#allocation6 + $0x1bc] sm:$0xf] %v17934_v9  ;;  %1730 = vst [vmem:[#allocation6 + $0x1fc] sm:$0xf] %v17935_v13  ;;  %3431 = vmatprep.mubr.bf16.mxu0 %v15334_v15  ;;  %v18466_v23 = vld [vmem:[%s25769_s3 + $0x1a0] sm:$0xff]   ;;  %v18467_v24 = vld [vmem:[%s25769_s3 + $0x370] sm:$0xff]   ;;  %18118 = vmatprep.subr.bf16.mxu1 %v18464_v18 }
 0x16d   : > { %3252 = vmatprep.mubr.bf16.mxu1 %v15360_v20  ;;  %v18468_v25 = vld [vmem:[%s25769_s3 + $0x1d8] sm:$0xff]   ;;  %v1751_v26 = vld [vmem:[#allocation6 + $0xa0] sm:$0xff]  ;;  %v18471_v34 = vld [vmem:[%s25769_s3 + $0x368] sm:$0xff]  }
 0x16e   : > { %v18470_v28 = vld [vmem:[%s25769_s3 + $0x198] sm:$0xff]   ;;  %v15350_v30 = vcombine.high %v1751_v26, %v1759_v21  ;;  %v18469_v31 = vld [vmem:[%s25769_s3 + $0x330] sm:$0xff]   ;;  %v18473_v39 = vld [vmem:[%s25769_s3 + $0x328] sm:$0xff]   ;;  %v15349_v44 = vcombine.low %v1751_v26, %v1759_v21 }
 0x16f   : > { %v1788_v29 = vld [vmem:[#allocation6 + $0x1c8] sm:$0xff]  ;;  %v18472_v33 = vld [vmem:[%s25769_s3 + $0x1d0] sm:$0xff]   ;;  %18119 = vmatpush3.bf16.msra.mxu1 %v18466_v23  ;;  %v18475_v41 = vld [vmem:[%s25769_s3 + $0x360] sm:$0xff]  }
 0x170   : > { %v1780_v32 = vld [vmem:[#allocation6 + $0x188] sm:$0xff]  ;;  %18120 = vmatprep.subr.bf16.mxu1 %v18468_v25  ;;  %v1775_v37 = vld [vmem:[#allocation6 + $0x160] sm:$0xff]  ;;  %v18476_v42 = vld [vmem:[%s25769_s3 + $0x1c8] sm:$0xff]  }
 0x171   : > { %v15376_v36 = vcombine.high %v1780_v32, %v1788_v29  ;;  %v18474_v38 = vld [vmem:[%s25769_s3 + $0x190] sm:$0xff]   ;;  %3253 = vmatmul.mubr.bf16.gmra.mxu1 %v15359_v35  ;;  %v1742_v43 = vld [vmem:[#allocation6 + $0x58] sm:$0xff]  ;;  %v18477_v49 = vld [vmem:[%s25769_s3 + $0x320] sm:$0xff]   ;;  %v15375_v53 = vcombine.low %v1780_v32, %v1788_v29 }
 0x172   : > { %v1767_v40 = vld [vmem:[#allocation6 + $0x120] sm:$0xff]  ;;  %v18478_v45 = vld [vmem:[%s25769_s3 + $0x188] sm:$0xff]   ;;  %v18480_v51 = vld [vmem:[%s25769_s3 + $0x1c0] sm:$0xff]  }
 0x173   : > { %3432 = vmatmul.mubr.bf16.vlgmr.msra.gmra.mxu0 %v15333_v27  ;;  %18121 = vmatpush3.bf16.msra.mxu1 %v18470_v28  ;;  %v15366_v46 = vcombine.high %v1767_v40, %v1775_v37  ;;  %v1734_v50 = vld [vmem:[#allocation6 + $0x18] sm:$0xff]  ;;  %v18479_v52 = vld [vmem:[%s25769_s3 + $0x358] sm:$0xff]   ;;  %v1791_v55 = vld [vmem:[#allocation6 + $0x1e0] sm:$0xff]  ;;  %v15365_v60 = vcombine.low %v1767_v40, %v1775_v37 }
 0x174   : > { %3439 = vmatprep.mubr.bf16.mxu0 %v15350_v30  ;;  %18233 = vmatpush3.bf16.msra.mxu0 %v18465_v22  ;;  %v15332_v54 = vcombine.high %v1734_v50, %v1742_v43  ;;  %v18482_v56 = vld [vmem:[%s25769_s3 + $0x180] sm:$0xff]   ;;  %v18481_v57 = vld [vmem:[%s25769_s3 + $0x318] sm:$0xff]   ;;  %v1783_v58 = vld [vmem:[#allocation6 + $0x1a0] sm:$0xff]  ;;  %v15331_v2 = vcombine.low %v1734_v50, %v1742_v43 }
 0x175   : > { %18234 = vmatprep.subr.bf16.mxu0 %v18467_v24  ;;  %3260 = vmatprep.mubr.bf16.mxu1 %v15376_v36  ;;  %v18483_v59 = vld [vmem:[%s25769_s3 + $0x350] sm:$0xff]   ;;  %v18484_v47 = vld [vmem:[%s25769_s3 + $0x2f8] sm:$0xff]   ;;  %v1758_v48 = vld [vmem:[#allocation6 + $0xd8] sm:$0xff]  ;;  %v15382_v62 = vcombine.high %v1783_v58, %v1791_v55  ;;  %v15381_v12 = vcombine.low %v1783_v58, %v1791_v55 }
 0x176   : > { %18122 = vmatprep.subr.bf16.mxu1 %v18472_v33  ;;  %v18486_v61 = vld [vmem:[%s25769_s3 + $0x2b8] sm:$0xff]   ;;  %v18485_v63 = vld [vmem:[%s25769_s3 + $0x310] sm:$0xff]   ;;  %v1750_v4 = vld [vmem:[#allocation6 + $0x98] sm:$0xff] }
 0x177   : > { %18123 = vmatpush3.bf16.msra.mxu1 %v18474_v38  ;;  %v18488_v0 = vld [vmem:[%s25769_s3 + $0x2f0] sm:$0xff]   ;;  %v18487_v1 = vld [vmem:[%s25769_s3 + $0x348] sm:$0xff]   ;;  %v15348_v3 = vcombine.high %v1750_v4, %v1758_v48  ;;  %v1745_v5 = vld [vmem:[#allocation6 + $0x70] sm:$0xff]  ;;  %v15347_v18 = vcombine.low %v1750_v4, %v1758_v48 }
 0x178   : > { %18235 = vmatpush3.bf16.msra.mxu0 %v18469_v31  ;;  %18124 = vmatprep.subr.bf16.mxu1 %v18476_v42  ;;  %v18490_v6 = vld [vmem:[%s25769_s3 + $0x2b0] sm:$0xff]   ;;  %v18489_v7 = vld [vmem:[%s25769_s3 + $0x308] sm:$0xff]   ;;  %v1737_v8 = vld [vmem:[#allocation6 + $0x30] sm:$0xff] }
 0x179   : > { %18236 = vmatprep.subr.bf16.mxu0 %v18471_v34  ;;  %3261 = vmatmul.mubr.bf16.gmra.mxu1 %v15375_v53  ;;  %v18491_v9 = vld [vmem:[%s25769_s3 + $0x340] sm:$0xff]   ;;  %v18492_v10 = vld [vmem:[%s25769_s3 + $0x2e8] sm:$0xff]   ;;  %v15338_v14 = vcombine.high %v1737_v8, %v1745_v5  ;;  %v18497_v22 = vld [vmem:[%s25769_s3 + $0x2d8] sm:$0xff]   ;;  %v15337_v25 = vcombine.low %v1737_v8, %v1745_v5 }
 0x17a   : > { %3366 = vmatprep.mubr.bf16.mxu1 %v15332_v54  ;;  %v1774_v11 = vld [vmem:[#allocation6 + $0x158] sm:$0xff]  ;;  %v18493_v15 = vld [vmem:[%s25769_s3 + $0x300] sm:$0xff]   ;;  %v18498_v26 = vld [vmem:[%s25769_s3 + $0x298] sm:$0xff]  }
 0x17b   : > { %3440 = vmatmul.mubr.bf16.gmra.mxu0 %v15349_v44  ;;  %18125 = vmatpush3.bf16.msra.mxu1 %v18478_v45  ;;  %v18494_v13 = vld [vmem:[%s25769_s3 + $0x2a8] sm:$0xff]   ;;  %v18495_v17 = vld [vmem:[%s25769_s3 + $0x2e0] sm:$0xff]   ;;  %v18499_v29 = vld [vmem:[%s25769_s3 + $0x2d0] sm:$0xff]  }
 0x17c   : > { %3447 = vmatprep.mubr.bf16.mxu0 %v15366_v46  ;;  %18237 = vmatpush3.bf16.msra.mxu0 %v18473_v39  ;;  %v1766_v16 = vld [vmem:[#allocation6 + $0x118] sm:$0xff]  ;;  %v1761_v20 = vld [vmem:[#allocation6 + $0xf0] sm:$0xff]  ;;  %v18500_v33 = vld [vmem:[%s25769_s3 + $0x290] sm:$0xff]  }
 0x17d   : > { %18238 = vmatprep.subr.bf16.mxu0 %v18475_v41  ;;  %18126 = vmatprep.subr.bf16.mxu1 %v18480_v51  ;;  %v15364_v19 = vcombine.high %v1766_v16, %v1774_v11  ;;  %v18496_v21 = vld [vmem:[%s25769_s3 + $0x2a0] sm:$0xff]   ;;  %v1790_v24 = vld [vmem:[#allocation6 + $0x1d8] sm:$0xff]  ;;  %v15363_v30 = vcombine.low %v1766_v16, %v1774_v11  ;;  %v1744_v36 = vld [vmem:[#allocation6 + $0x68] sm:$0xff] }
 0x17e   : > { %v1753_v23 = vld [vmem:[#allocation6 + $0xb0] sm:$0xff]  ;;  %v1782_v28 = vld [vmem:[#allocation6 + $0x198] sm:$0xff]  ;;  %v1736_v40 = vld [vmem:[#allocation6 + $0x28] sm:$0xff] }
 0x17f   : > { %18127 = vmatpush3.bf16.msra.mxu1 %v18482_v56  ;;  %v15354_v27 = vcombine.high %v1753_v23, %v1761_v20  ;;  %v15380_v31 = vcombine.high %v1782_v28, %v1790_v24  ;;  %v1777_v32 = vld [vmem:[#allocation6 + $0x170] sm:$0xff]  ;;  %v18501_v34 = vld [vmem:[%s25769_s3 + $0x2c8] sm:$0xff]   ;;  %v15353_v37 = vcombine.low %v1753_v23, %v1761_v20  ;;  %v15379_v42 = vcombine.low %v1782_v28, %v1790_v24  ;;  %v1760_v50 = vld [vmem:[#allocation6 + $0xe8] sm:$0xff] }
 0x180   : > { %18239 = vmatpush3.bf16.msra.mxu0 %v18477_v49  ;;  %18192 = vmatprep.subr.bf16.mxu1 %v18484_v47  ;;  %v1769_v35 = vld [vmem:[#allocation6 + $0x130] sm:$0xff]  ;;  %v18502_v38 = vld [vmem:[%s25769_s3 + $0x288] sm:$0xff]   ;;  %v15336_v43 = vcombine.high %v1736_v40, %v1744_v36  ;;  %v18505_v49 = vld [vmem:[%s25769_s3 + $0x3f8] sm:$0xff]   ;;  %v15335_v56 = vcombine.low %v1736_v40, %v1744_v36 }
 0x181   : > { %18240 = vmatprep.subr.bf16.mxu0 %v18479_v52  ;;  %v15370_v39 = vcombine.high %v1769_v35, %v1777_v32  ;;  %v18503_v41 = vld [vmem:[%s25769_s3 + $0x2c0] sm:$0xff]   ;;  %v15369_v51 = vcombine.low %v1769_v35, %v1777_v32  ;;  %v18506_v52 = vld [vmem:[%s25769_s3 + $0x3b8] sm:$0xff]   ;;  %v18507_v55 = vld [vmem:[%s25769_s3 + $0x3f0] sm:$0xff]  }
 0x182   : > { %3367 = vmatmul.mubr.bf16.vlgmr.msra.gmra.mxu1 %v15331_v2  ;;  %v1785_v44 = vld [vmem:[#allocation6 + $0x1b0] sm:$0xff]  ;;  %v1752_v54 = vld [vmem:[#allocation6 + $0xa8] sm:$0xff]  ;;  %v18508_v58 = vld [vmem:[%s25769_s3 + $0x3b0] sm:$0xff]  }
 0x183   : > { %3448 = vmatmul.mubr.bf16.gmra.mxu0 %v15365_v60  ;;  %18193 = vmatpush3.bf16.msra.mxu1 %v18486_v61  ;;  %v1793_v45 = vld [vmem:[#allocation6 + $0x1f0] sm:$0xff]  ;;  %v1776_v47 = vld [vmem:[#allocation6 + $0x168] sm:$0xff]  ;;  %v18510_v60 = vld [vmem:[%s25769_s3 + $0x3a8] sm:$0xff]  }
 0x184   : > { %3455 = vmatprep.mubr.bf16.mxu0 %v15382_v62  ;;  %18241 = vmatpush3.bf16.msra.mxu0 %v18481_v57  ;;  %v18504_v46 = vld [vmem:[%s25769_s3 + $0x280] sm:$0xff]   ;;  %v15386_v53 = vcombine.high %v1785_v44, %v1793_v45  ;;  %v15352_v57 = vcombine.high %v1752_v54, %v1760_v50  ;;  %v15385_v48 = vcombine.low %v1785_v44, %v1793_v45  ;;  %v1768_v61 = vld [vmem:[#allocation6 + $0x128] sm:$0xff]  ;;  %v1746_v11 = vld [vmem:[#allocation6 + $0x78] sm:$0xff] }
 0x185   : > { %18242 = vmatprep.subr.bf16.mxu0 %v18483_v59  ;;  %3374 = vmatprep.mubr.bf16.mxu1 %v15348_v3  ;;  %v18509_v59 = vld [vmem:[%s25769_s3 + $0x3e8] sm:$0xff]   ;;  %v18511_v62 = vld [vmem:[%s25769_s3 + $0x3e0] sm:$0xff]   ;;  %v15368_v4 = vcombine.high %v1768_v61, %v1776_v47  ;;  %v1792_v2 = vld [vmem:[#allocation6 + $0x1e8] sm:$0xff] }
 0x186   : > { %18194 = vmatprep.subr.bf16.mxu1 %v18488_v0  ;;  %v18512_v0 = vld [vmem:[%s25769_s3 + $0x3a0] sm:$0xff]   ;;  %v18514_v3 = vld [vmem:[%s25769_s3 + $0x398] sm:$0xff]   ;;  %v1770_v23 = vld [vmem:[#allocation6 + $0x138] sm:$0xff] }
 0x187   : > { %18195 = vmatpush3.bf16.msra.mxu1 %v18490_v6  ;;  %v1784_v5 = vld [vmem:[#allocation6 + $0x1a8] sm:$0xff]  ;;  %v18515_v6 = vld [vmem:[%s25769_s3 + $0x3d0] sm:$0xff]  }
 0x188   : > { %18243 = vmatpush3.bf16.msra.mxu0 %v18485_v63  ;;  %18196 = vmatprep.subr.bf16.mxu1 %v18492_v10  ;;  %v15351_v63 = vcombine.low %v1752_v54, %v1760_v50  ;;  %v15384_v8 = vcombine.high %v1784_v5, %v1792_v2  ;;  %v18517_v10 = vld [vmem:[%s25769_s3 + $0x3c8] sm:$0xff]  }
 0x189   : > { %18244 = vmatprep.subr.bf16.mxu0 %v18487_v1  ;;  %v18513_v1 = vld [vmem:[%s25769_s3 + $0x3d8] sm:$0xff]  }
 0x18a   : > { %3375 = vmatmul.mubr.bf16.gmra.mxu1 %v15347_v18  ;;  %v1762_v18 = vld [vmem:[#allocation6 + $0xf8] sm:$0xff] }
 0x18b   : > { %3456 = vmatmul.mubr.bf16.gmra.mxu0 %v15381_v12  ;;  %18197 = vmatpush3.bf16.msra.mxu1 %v18494_v13  ;;  %v18518_v12 = vld [vmem:[%s25769_s3 + $0x388] sm:$0xff]  }
 0x18c   : > { %18245 = vmatpush3.bf16.msra.mxu0 %v18489_v7  ;;  %3561 = vmatprep.mubr.bf16.mxu0 %v15338_v14  ;;  %v15367_v7 = vcombine.low %v1768_v61, %v1776_v47  ;;  %v1738_v13 = vld [vmem:[#allocation6 + $0x38] sm:$0xff]  ;;  %v18519_v14 = vld [vmem:[%s25769_s3 + $0x3c0] sm:$0xff]  }
 0x18d   : > { %18246 = vmatprep.subr.bf16.mxu0 %v18491_v9  ;;  %3382 = vmatprep.mubr.bf16.mxu1 %v15364_v19  ;;  %v18516_v9 = vld [vmem:[%s25769_s3 + $0x390] sm:$0xff]   ;;  %v15340_v16 = vcombine.high %v1738_v13, %v1746_v11  ;;  %v1754_v19 = vld [vmem:[#allocation6 + $0xb8] sm:$0xff]  ;;  %v15339_v20 = vcombine.low %v1738_v13, %v1746_v11 }
 0x18e   : > { %18198 = vmatprep.subr.bf16.mxu1 %v18495_v17  ;;  %v18520_v17 = vld [vmem:[%s25769_s3 + $0x380] sm:$0xff]   ;;  %v15355_v24 = vcombine.low %v1754_v19, %v1762_v18 }
 0x18f   : > { %18199 = vmatpush3.bf16.msra.mxu1 %v18496_v21  ;;  %v15356_v21 = vcombine.high %v1754_v19, %v1762_v18 }
 0x190   : > { %18247 = vmatpush3.bf16.msra.mxu0 %v18493_v15  ;;  %18200 = vmatprep.subr.bf16.mxu1 %v18497_v22  ;;  %v15383_v15 = vcombine.low %v1784_v5, %v1792_v2  ;;  %v1778_v22 = vld [vmem:[#allocation6 + $0x178] sm:$0xff] }
 0x191   : > { %v15371_v28 = vcombine.low %v1770_v23, %v1778_v22 }
 0x192   : > { %3383 = vmatmul.mubr.bf16.gmra.mxu1 %v15363_v30 }
 0x193   : > { %3562 = vmatmul.mubr.bf16.vlgmr.msra.gmra.mxu0 %v15337_v25  ;;  %18201 = vmatpush3.bf16.msra.mxu1 %v18498_v26  ;;  %v15372_v25 = vcombine.high %v1770_v23, %v1778_v22  ;;  %v1786_v26 = vld [vmem:[#allocation6 + $0x1b8] sm:$0xff] }
 0x194   : > { %3569 = vmatprep.mubr.bf16.mxu0 %v15354_v27  ;;  %3390 = vmatprep.mubr.bf16.mxu1 %v15380_v31  ;;  %v1794_v27 = vld [vmem:[#allocation6 + $0x1f8] sm:$0xff] }
 0x195   : > { %18202 = vmatprep.subr.bf16.mxu1 %v18499_v29  ;;  %v15388_v29 = vcombine.high %v1786_v26, %v1794_v27  ;;  %v15387_v30 = vcombine.low %v1786_v26, %v1794_v27 }
 0x197   : > { %18203 = vmatpush3.bf16.msra.mxu1 %v18500_v33 }
 0x198   : > { %18204 = vmatprep.subr.bf16.mxu1 %v18501_v34 }
 0x19a   : > { %3391 = vmatmul.mubr.bf16.gmra.mxu1 %v15379_v42 }
 0x19b   : > { %3570 = vmatmul.mubr.bf16.gmra.mxu0 %v15353_v37  ;;  %18205 = vmatpush3.bf16.msra.mxu1 %v18502_v38 }
 0x19c   : > { %3577 = vmatprep.mubr.bf16.mxu0 %v15370_v39  ;;  %3496 = vmatprep.mubr.bf16.mxu1 %v15336_v43 }
 0x19d   : > { %18206 = vmatprep.subr.bf16.mxu1 %v18503_v41 }
 0x19f   : > { %18207 = vmatpush3.bf16.msra.mxu1 %v18504_v46 }
 0x1a0   : > { %18272 = vmatprep.subr.bf16.mxu1 %v18505_v49 }
 0x1a2   : > { %3497 = vmatmul.mubr.bf16.vlgmr.msra.gmra.mxu1 %v15335_v56 }
 0x1a3   : > { %3578 = vmatmul.mubr.bf16.gmra.mxu0 %v15369_v51  ;;  %18273 = vmatpush3.bf16.msra.mxu1 %v18506_v52 }
 0x1a4   : > { %3585 = vmatprep.mubr.bf16.mxu0 %v15386_v53  ;;  %3504 = vmatprep.mubr.bf16.mxu1 %v15352_v57 }
 0x1a5   : > { %18274 = vmatprep.subr.bf16.mxu1 %v18507_v55 }
 0x1a7   : > { %18275 = vmatpush3.bf16.msra.mxu1 %v18508_v58 }
 0x1a8   : > { %18276 = vmatprep.subr.bf16.mxu1 %v18509_v59 }
 0x1aa   : > { %3505 = vmatmul.mubr.bf16.gmra.mxu1 %v15351_v63 }
 0x1ab   : > { %3586 = vmatmul.mubr.bf16.gmra.mxu0 %v15385_v48  ;;  %18277 = vmatpush3.bf16.msra.mxu1 %v18510_v60 }
 0x1ac   : > { %3512 = vmatprep.mubr.bf16.mxu1 %v15368_v4  ;;  %18278 = vmatprep.subr.bf16.mxu1 %v18511_v62 }
 0x1af   : > { %18279 = vmatpush3.bf16.msra.mxu1 %v18512_v0 }
 0x1b0   : > { %18280 = vmatprep.subr.bf16.mxu1 %v18513_v1 }
 0x1b2   : > { %3513 = vmatmul.mubr.bf16.gmra.mxu1 %v15367_v7 }
 0x1b3   : > { %18281 = vmatpush3.bf16.msra.mxu1 %v18514_v3  ;;  %3520 = vmatprep.mubr.bf16.mxu1 %v15384_v8 }
 0x1b4   : > { %18282 = vmatprep.subr.bf16.mxu1 %v18515_v6 }
 0x1b7   : > { %18283 = vmatpush3.bf16.msra.mxu1 %v18516_v9 }
 0x1b8   : > { %18284 = vmatprep.subr.bf16.mxu1 %v18517_v10 }
 0x1ba   : > { %3521 = vmatmul.mubr.bf16.gmra.mxu1 %v15383_v15 }
 0x1bb   : > { %18285 = vmatpush3.bf16.msra.mxu1 %v18518_v12  ;;  %3626 = vmatprep.mubr.bf16.mxu1 %v15340_v16 }
 0x1bc   : > { %18286 = vmatprep.subr.bf16.mxu1 %v18519_v14 }
 0x1bf   : > { %18287 = vmatpush3.bf16.msra.mxu1 %v18520_v17 }
 0x1c2   : > { %3627 = vmatmul.mubr.bf16.vlgmr.msra.gmra.mxu1 %v15339_v20 }
 0x1c3   : > { %3634 = vmatprep.mubr.bf16.mxu1 %v15356_v21 }
 0x1ca   : > { %3635 = vmatmul.mubr.bf16.gmra.mxu1 %v15355_v24 }
 0x1cb   : > { %3642 = vmatprep.mubr.bf16.mxu1 %v15372_v25 }
 0x1d2   : > { %3643 = vmatmul.mubr.bf16.gmra.mxu1 %v15371_v28 }
 0x1d3   : > { %3650 = vmatprep.mubr.bf16.mxu1 %v15388_v29 }
 0x1d6   : > { %v18008_v31 = vpop.f32.mrf.mxu1 }
 0x1d8   : > { %v18009_v32 = vpop.f32.mrf.mxu1 }
 0x1d9   : > { %v18010_v33 = vadd.f32 %v18009_v32, %v18008_v31 }
 0x1da   : > { %3651 = vmatmul.mubr.bf16.gmra.mxu1 %v15387_v30  ;;  %v18011_v34 = vpop.f32.mrf.mxu1 }
 0x1dc   : > { %v18012_v35 = vpop.f32.mrf.mxu1 }
 0x1dd   : > { %v18013_v8 = vadd.f32 %v18012_v35, %v18011_v34 }
 0x1e9   : > { %v18088_v36 = vpop.f32.mrf.mxu0 }
 0x1eb   : > { %v18014_v37 = vpop.f32.mrf.mxu1  ;;  %v18089_v38 = vpop.f32.mrf.mxu0 }
 0x1ec   : > { %v18090_v39 = vadd.f32 %v18089_v38, %v18088_v36 }
 0x1ed   : > { %v18015_v40 = vpop.f32.mrf.mxu1  ;;  %v18091_v42 = vpop.f32.mrf.mxu0 }
 0x1ee   : > { %v18016_v41 = vadd.f32 %v18015_v40, %v18014_v37 }
 0x1ef   : > { %v18092_v43 = vpop.f32.mrf.mxu0  ;;  %v18017_v44 = vpop.f32.mrf.mxu1 }
 0x1f0   : > { %v18093_v13 = vadd.f32 %v18092_v43, %v18091_v42 }
 0x1f1   : > { %v18018_v46 = vpop.f32.mrf.mxu1 }
 0x1f2   : > { %v18019_v24 = vadd.f32 %v18018_v46, %v18017_v44 }
 0x1fa   : > { %v18094_v45 = vpop.f32.mrf.mxu0 }
 0x1fc   : > { %v18095_v49 = vpop.f32.mrf.mxu0 }
 0x1fd   : > { %v18096_v50 = vadd.f32 %v18095_v49, %v18094_v45 }
 0x1fe   : > { %v18020_v51 = vpop.f32.mrf.mxu1  ;;  %v18097_v54 = vpop.f32.mrf.mxu0 }
 0x200   : > { %v18021_v52 = vpop.f32.mrf.mxu1  ;;  %v18098_v56 = vpop.f32.mrf.mxu0 }
 0x201   : > { %v18022_v53 = vadd.f32 %v18021_v52, %v18020_v51  ;;  %v18099_v29 = vadd.f32 %v18098_v56, %v18097_v54 }
 0x202   : > { %v18023_v55 = vpop.f32.mrf.mxu1 }
 0x204   : > { %v18024_v57 = vpop.f32.mrf.mxu1 }
 0x219   : > { %v18100_v58 = vpop.f32.mrf.mxu0  ;;  %v18026_v59 = vpop.f32.mrf.mxu1 }
 0x21b   : > { %v18027_v47 = vpop.f32.mrf.mxu1  ;;  %v18101_v48 = vpop.f32.mrf.mxu0 }
 0x21c   : > { %v18028_v60 = vadd.f32 %v18027_v47, %v18026_v59  ;;  %v18102_v37 = vadd.f32 %v18101_v48, %v18100_v58 }
 0x21d   : > { %v18029_v61 = vpop.f32.mrf.mxu1  ;;  %v21206_v63 = vpop.f32.mrf.mxu0 }
 0x21f   : > { %v18030_v62 = vpop.f32.mrf.mxu1  ;;  %v21208_v1 = vpop.f32.mrf.mxu0 }
 0x221   : > { %v18048_v4 = vpop.f32.mrf.mxu1 }
 0x223   : > { %v18049_v0 = vpop.f32.mrf.mxu1 }
 0x224   : > { %v18050_v2 = vadd.f32 %v18049_v0, %v18048_v4 }
 0x225   : > { %v18051_v3 = vpop.f32.mrf.mxu1 }
 0x226   : > { %v3239_v5 = vadd.f32 %v18050_v2, %v18010_v33 }
 0x227   : > { %v18052_v7 = vpop.f32.mrf.mxu1 }
 0x228   : > { %v18053_v10 = vadd.f32 %v18052_v7, %v18051_v3  ;;  %v3304_v11 = vadd.f32 %v18090_v39, %v3239_v5 }
 0x229   : > { %v18054_v12 = vpop.f32.mrf.mxu1 }
 0x22a   : > { %v3242_v14 = vadd.f32 %v18053_v10, %v18013_v8 }
 0x22b   : > { %v21210_v6 = vpop.f32.mrf.mxu0  ;;  %v18055_v16 = vpop.f32.mrf.mxu1 }
 0x22c   : > { %v18056_v18 = vadd.f32 %v18055_v16, %v18054_v12  ;;  %v3307_v19 = vadd.f32 %v18093_v13, %v3242_v14 }
 0x22d   : > { %v21212_v9 = vpop.f32.mrf.mxu0  ;;  %v18057_v20 = vpop.f32.mrf.mxu1 }
 0x22e   : > { %v3247_v21 = vadd.f32 %v18056_v18, %v18016_v41  ;;  %v18025_v41 = vadd.f32 %v18024_v57, %v18023_v55  ;;  %v18031_v55 = vadd.f32 %v18030_v62, %v18029_v61 }
 0x22f   : > { %v21214_v15 = vpop.f32.mrf.mxu0  ;;  %v18058_v23 = vpop.f32.mrf.mxu1 }
 0x230   : > { %v18059_v26 = vadd.f32 %v18058_v23, %v18057_v20  ;;  %v3312_v27 = vadd.f32 %v18096_v50, %v3247_v21 }
 0x231   : > { %v21216_v17 = vpop.f32.mrf.mxu0  ;;  %v18060_v28 = vpop.f32.mrf.mxu1 }
 0x232   : > { %v3250_v30 = vadd.f32 %v18059_v26, %v18019_v24 }
 0x233   : > { %v21218_v22 = vpop.f32.mrf.mxu0  ;;  %v18061_v32 = vpop.f32.mrf.mxu1 }
 0x234   : > { %v18062_v34 = vadd.f32 %v18061_v32, %v18060_v28  ;;  %v3315_v35 = vadd.f32 %v18099_v29, %v3250_v30 }
 0x235   : > { %v21220_v25 = vpop.f32.mrf.mxu0  ;;  %v18063_v36 = vpop.f32.mrf.mxu1 }
 0x236   : > { %v3255_v38 = vadd.f32 %v18062_v34, %v18022_v53 }
 0x237   : > { %v21222_v31 = vpop.f32.mrf.mxu0  ;;  %v18064_v40 = vpop.f32.mrf.mxu1 }
 0x238   : > { %v18065_v43 = vadd.f32 %v18064_v40, %v18063_v36  ;;  %v3320_v44 = vadd.f32 %v18102_v37, %v3255_v38 }
 0x239   : > { %v21224_v33 = vpop.f32.mrf.mxu0  ;;  %v18066_v45 = vpop.f32.mrf.mxu1 }
 0x23a   : > { %v21230_v46 = vadd.f32 %v18065_v43, %v18025_v41 }
 0x23b   : > { %v21226_v39 = vpop.f32.mrf.mxu0  ;;  %v18067_v50 = vpop.f32.mrf.mxu1 }
 0x23c   : > { %v18068_v52 = vadd.f32 %v18067_v50, %v18066_v45 }
 0x23d   : > { %v21228_v42 = vpop.f32.mrf.mxu0  ;;  %v18069_v54 = vpop.f32.mrf.mxu1 }
 0x23e   : > { %v21236_v56 = vadd.f32 %v18068_v52, %v18028_v60 }
 0x23f   : > { %v21232_v49 = vpop.f32.mrf.mxu0  ;;  %v18070_v58 = vpop.f32.mrf.mxu1 }
 0x240   : > { %v18071_v57 = vadd.f32 %v18070_v58, %v18069_v54 }
 0x241   : > { %v21234_v51 = vpop.f32.mrf.mxu0 }
 0x242   : > { %v18128_v59 = vpop.f32.mrf.mxu1  ;;  %v21240_v47 = vadd.f32 %v18071_v57, %v18031_v55  ;;  %v18521_v55 = vld [vmem:[%s25770_s4 + $0x270] ss:$8 sps:$4 sm:$0xff]   ;;  %v18523_v57 = vld [vmem:[%s25770_s4 + $0x274] ss:$8 sps:$4 sm:$0xff]  }
 0x243   : > { %v21238_v53 = vpop.f32.mrf.mxu0  ;;  %4665 = vmatprep.subr.bf16.mxu0 %v18523_v57  ;;  %v18541_v57 = vld [vmem:[%s25770_s4 + $0x244] ss:$8 sps:$4 sm:$0xff]  }
 0x244   : > { %25775 = vst [vmem:[#allocation10_spill] sm:$0xff] %v21240_v47  ;;  %v18129_v4 = vpop.f32.mrf.mxu1  ;;  %4666 = vmatpush1.bf16.msra.mxu0 %v18521_v55  ;;  %v18536_v55 = vld [vmem:[%s25770_s4 + $0x350] ss:$8 sps:$4 sm:$0xff]  }
 0x245   : > { %v21242_v48 = vpop.f32.mrf.mxu0  ;;  %v18130_v0 = vadd.f32 %v18129_v4, %v18128_v59  ;;  %v18524_v59 = vld [vmem:[%s25770_s4 + $0x370] ss:$8 sps:$4 sm:$0xff]   ;;  %v18526_v4 = vld [vmem:[%s25770_s4 + $0x374] ss:$8 sps:$4 sm:$0xff]  }
 0x246   : > { %v18131_v2 = vpop.f32.mrf.mxu1  ;;  %4708 = vmatprep.subr.bf16.mxu1 %v18526_v4 }
 0x247   : > { %v21244_v3 = vadd.f32 %v18130_v0, %v3304_v11  ;;  %v21246_v5 = vpop.f32.mrf.mxu0  ;;  %v18529_v0 = vld [vmem:[%s25770_s4 + $0x264] ss:$8 sps:$4 sm:$0xff]   ;;  %4709 = vmatpush1.bf16.msra.mxu1 %v18524_v59 }
 0x248   : > { %v18132_v7 = vpop.f32.mrf.mxu1  ;;  %4667 = vmatprep.subr.bf16.mxu0 %v18529_v0  ;;  %v18544_v59 = vld [vmem:[%s25770_s4 + $0x344] ss:$8 sps:$4 sm:$0xff]  }
 0x249   : > { %v18133_v60 = vadd.f32 %v18132_v7, %v18131_v2  ;;  %v21250_v12 = vpop.f32.mrf.mxu0 }
 0x24a   : > { %v18134_v8 = vpop.f32.mrf.mxu1 }
 0x24b   : > { %v21248_v10 = vadd.f32 %v18133_v60, %v3307_v19  ;;  %v21254_v16 = vpop.f32.mrf.mxu0  ;;  %v18532_v60 = vld [vmem:[%s25770_s4 + $0x364] ss:$8 sps:$4 sm:$0xff]  }
 0x24c   : > { %v18135_v61 = vpop.f32.mrf.mxu1  ;;  %4710 = vmatprep.subr.bf16.mxu1 %v18532_v60  ;;  %v18539_v60 = vld [vmem:[%s25770_s4 + $0x240] ss:$8 sps:$4 sm:$0xff]  }
 0x24d   : > { %v18136_v62 = vadd.f32 %v18135_v61, %v18134_v8  ;;  %v21258_v23 = vpop.f32.mrf.mxu0  ;;  %v18527_v8 = vld [vmem:[%s25770_s4 + $0x260] ss:$8 sps:$4 sm:$0xff]  }
 0x24e   : > { %v18137_v13 = vpop.f32.mrf.mxu1  ;;  %25776 = vst [vmem:[#allocation11_spill] sm:$0xff] %v21258_v23  ;;  %4668 = vmatpush1.bf16.msra.mxu0 %v18527_v8 }
 0x24f   : > { %v21252_v14 = vadd.f32 %v18136_v62, %v3312_v27  ;;  %v21264_v29 = vpop.f32.mrf.mxu0  ;;  %v18530_v62 = vld [vmem:[%s25770_s4 + $0x360] ss:$8 sps:$4 sm:$0xff]  }
 0x250   : > { %v18138_v18 = vpop.f32.mrf.mxu1  ;;  %25777 = vst [vmem:[#allocation12_spill] sm:$0xff] %v21264_v29  ;;  %4711 = vmatpush1.bf16.msra.mxu1 %v18530_v62  ;;  %v18542_v62 = vld [vmem:[%s25770_s4 + $0x340] ss:$8 sps:$4 sm:$0xff]   ;;  %v18553_v29 = vld [vmem:[%s25770_s4 + $0x224] ss:$8 sps:$4 sm:$0xff]  }
 0x251   : > { %v18139_v20 = vadd.f32 %v18138_v18, %v18137_v13  ;;  %v21270_v32 = vpop.f32.mrf.mxu0  ;;  %v18535_v13 = vld [vmem:[%s25770_s4 + $0x254] ss:$8 sps:$4 sm:$0xff]  }
 0x252   : > { %v18140_v11 = vpop.f32.mrf.mxu1  ;;  %25778 = vst [vmem:[#allocation13_spill] sm:$0xff] %v21270_v32  ;;  %v18538_v18 = vld [vmem:[%s25770_s4 + $0x354] ss:$8 sps:$4 sm:$0xff]   ;;  %4669 = vmatprep.subr.bf16.mxu0 %v18535_v13 }
 0x253   : > { %v21256_v21 = vadd.f32 %v18139_v20, %v3315_v35  ;;  %v21276_v36 = vpop.f32.mrf.mxu0  ;;  %4712 = vmatprep.subr.bf16.mxu1 %v18538_v18  ;;  %v18547_v13 = vld [vmem:[%s25770_s4 + $0x234] ss:$8 sps:$4 sm:$0xff]  }
 0x254   : > { %v18141_v24 = vpop.f32.mrf.mxu1  ;;  %4713 = vmatpush1.bf16.msra.mxu1 %v18536_v55  ;;  %v18550_v18 = vld [vmem:[%s25770_s4 + $0x334] ss:$8 sps:$4 sm:$0xff]   ;;  %v18545_v55 = vld [vmem:[%s25770_s4 + $0x230] ss:$8 sps:$4 sm:$0xff]  }
 0x255   : > { %v18142_v26 = vadd.f32 %v18141_v24, %v18140_v11  ;;  %v21282_v40 = vpop.f32.mrf.mxu0  ;;  %v18533_v24 = vld [vmem:[%s25770_s4 + $0x250] ss:$8 sps:$4 sm:$0xff]   ;;  %4714 = vmatprep.subr.bf16.mxu1 %v18544_v59 }
 0x256   : > { %v21260_v19 = vpop.f32.mrf.mxu1  ;;  %4670 = vmatpush1.bf16.msra.mxu0 %v18533_v24  ;;  %v18548_v59 = vld [vmem:[%s25770_s4 + $0x330] ss:$8 sps:$4 sm:$0xff]  }
 0x257   : > { %v21262_v28 = vadd.f32 %v18142_v26, %v3320_v44  ;;  %v21288_v44 = vpop.f32.mrf.mxu0  ;;  %4671 = vmatprep.subr.bf16.mxu0 %v18541_v57 }
 0x258   : > { %v21266_v30 = vpop.f32.mrf.mxu1  ;;  %4715 = vmatpush1.bf16.msra.mxu1 %v18542_v62  ;;  %v18170_v62 = vadd.f32 %v21220_v25, %v21218_v22  ;;  %v18554_v22 = vld [vmem:[%s25770_s4 + $0x320] ss:$8 sps:$4 sm:$0xff]   ;;  %v18559_v25 = vld [vmem:[%s25770_s4 + $0x214] ss:$8 sps:$4 sm:$0xff]  }
 0x259   : > { %v21292_v52 = vpop.f32.mrf.mxu0  ;;  %4716 = vmatprep.subr.bf16.mxu1 %v18550_v18  ;;  %v18551_v18 = vld [vmem:[%s25770_s4 + $0x220] ss:$8 sps:$4 sm:$0xff]  }
 0x25a   : > { %v21268_v27 = vpop.f32.mrf.mxu1  ;;  %4672 = vmatpush1.bf16.msra.mxu0 %v18539_v60  ;;  %v18556_v60 = vld [vmem:[%s25770_s4 + $0x324] ss:$8 sps:$4 sm:$0xff]  }
 0x25b   : > { %v21313_v2 = vpop.f32.mrf.mxu0  ;;  %4673 = vmatprep.subr.bf16.mxu0 %v18547_v13  ;;  %v18173_v13 = vadd.f32 %v21224_v33, %v21222_v31  ;;  %v3434_v31 = vadd.f32 %v18170_v62, %v21244_v3 }
 0x25c   : > { %v21272_v34 = vpop.f32.mrf.mxu1  ;;  %4717 = vmatpush1.bf16.msra.mxu1 %v18548_v59 }
 0x25d   : > { %v21334_v20 = vpop.f32.mrf.mxu0  ;;  %v3437_v33 = vadd.f32 %v18173_v13, %v21248_v10  ;;  %4718 = vmatprep.subr.bf16.mxu1 %v18556_v60  ;;  %v18560_v10 = vld [vmem:[%s25770_s4 + $0x310] ss:$8 sps:$4 sm:$0xff]  }
 0x25e   : > { %v21274_v35 = vpop.f32.mrf.mxu1  ;;  %4674 = vmatpush1.bf16.msra.mxu0 %v18545_v55  ;;  %v18565_v55 = vld [vmem:[%s25770_s4 + $0x204] ss:$8 sps:$4 sm:$0xff]  }
 0x25f   : > { %v21352_v4 = vpop.f32.mrf.mxu0  ;;  %4675 = vmatprep.subr.bf16.mxu0 %v18553_v29  ;;  %v18562_v29 = vld [vmem:[%s25770_s4 + $0x314] ss:$8 sps:$4 sm:$0xff]  }
 0x260   : > { %v21278_v37 = vpop.f32.mrf.mxu1  ;;  %4719 = vmatpush1.bf16.msra.mxu1 %v18554_v22 }
 0x261   : > { %v21370_v24 = vpop.f32.mrf.mxu0  ;;  %4720 = vmatprep.subr.bf16.mxu1 %v18562_v29  ;;  %v18572_v29 = vld [vmem:[%s25770_s4 + $0x3f0] ss:$8 sps:$4 sm:$0xff]  }
 0x262   : > { %v21280_v38 = vpop.f32.mrf.mxu1  ;;  %4676 = vmatpush1.bf16.msra.mxu0 %v18551_v18 }
 0x263   : > { %4677 = vmatprep.subr.bf16.mxu0 %v18559_v25 }
 0x264   : > { %v21284_v41 = vpop.f32.mrf.mxu1  ;;  %4721 = vmatpush1.bf16.msra.mxu1 %v18560_v10 }
 0x266   : > { %v21286_v43 = vpop.f32.mrf.mxu1 }
 0x268   : > { %v18212_v45 = vpop.f32.mrf.mxu1 }
 0x269   : > { %v18213_v47 = vadd.f32 %v18212_v45, %v21286_v43 }
 0x26a   : > { %v21290_v50 = vpop.f32.mrf.mxu1 }
 0x26b   : > { %v3502_v60 = vadd.f32 %v18213_v47, %v3437_v33  ;;  %v18563_v47 = vld [vmem:[%s25770_s4 + $0x200] ss:$8 sps:$4 sm:$0xff]  }
 0x26c   : > { %v21294_v54 = vpop.f32.mrf.mxu1 }
 0x26d   : > { %v18216_v45 = vadd.f32 %v21294_v54, %v21290_v50  ;;  %v18250_v50 = vadd.f32 %v21282_v40, %v21276_v36  ;;  %v18253_v54 = vadd.f32 %v21292_v52, %v21288_v44  ;;  %v18105_v36 = vadd.f32 %v21208_v1, %v21206_v63  ;;  %v18571_v63 = vld [vmem:[%s25770_s4 + $0x2f4] ss:$8 sps:$4 sm:$0xff]  }
 0x26e   : > { %v21296_v58 = vpop.f32.mrf.mxu1  ;;  %v18256_v52 = vadd.f32 %v21334_v20, %v21313_v2  ;;  %v18108_v1 = vadd.f32 %v21212_v9, %v21210_v6  ;;  %v18182_v20 = vadd.f32 %v21242_v48, %v21238_v53 }
 0x26f   : > { %v3323_v2 = vadd.f32 %v18105_v36, %v21230_v46 }
 0x270   : > { %v21315_v7 = vpop.f32.mrf.mxu1 }
 0x271   : > { %v18219_v22 = vadd.f32 %v21315_v7, %v21296_v58  ;;  %v18566_v58 = vld [vmem:[%s25770_s4 + $0x300] ss:$8 sps:$4 sm:$0xff]  }
 0x272   : > { %v21323_v61 = vpop.f32.mrf.mxu1 }
 0x274   : > { %v21336_v11 = vpop.f32.mrf.mxu1 }
 0x275   : > { %v18222_v9 = vadd.f32 %v21336_v11, %v21323_v61  ;;  %v18580_v61 = vld [vmem:[%s25770_s4 + $0x3e4] ss:$8 sps:$4 sm:$0xff]  }
 0x276   : > { %v21341_v26 = vpop.f32.mrf.mxu1 }
 0x278   : > { %v21354_v0 = vpop.f32.mrf.mxu1 }
 0x27a   : > { %v21359_v8 = vpop.f32.mrf.mxu1 }
 0x27b   : > { %25779 = vst [vmem:[#allocation14_spill] sm:$0xff] %v21359_v8 }
 0x27c   : > { %v21372_v32 = vpop.f32.mrf.mxu1 }
 0x27d   : > { %25780 = vst [vmem:[#allocation15_spill] sm:$0xff] %v21372_v32  ;;  %v21388_v32 = vpop.f32.mrf.mxu0 }
 0x27e   : > { %v21377_v57 = vpop.f32.mrf.mxu1 }
 0x27f   : > { %25781 = vst [vmem:[#allocation16_spill] sm:$0xff] %v21377_v57  ;;  %v18210_v57 = vadd.f32 %v21284_v41, %v21280_v38  ;;  %v18557_v38 = vld [vmem:[%s25770_s4 + $0x210] ss:$8 sps:$4 sm:$0xff]   ;;  %v18176_v41 = vadd.f32 %v21228_v42, %v21226_v39  ;;  %v21418_v43 = vpop.f32.mrf.mxu0  ;;  %v18568_v39 = vld [vmem:[%s25770_s4 + $0x304] ss:$8 sps:$4 sm:$0xff]  }
 0x280   : > { %v21390_v8 = vpop.f32.mrf.mxu1  ;;  %4678 = vmatpush1.bf16.msra.mxu0 %v18557_v38  ;;  %4722 = vmatprep.subr.bf16.mxu1 %v18568_v39  ;;  %v18259_v39 = vadd.f32 %v21370_v24, %v21352_v4  ;;  %v18583_v24 = vld [vmem:[%s25770_s4 + $0x2d4] ss:$8 sps:$4 sm:$0xff]  }
 0x281   : > { %v3499_v59 = vadd.f32 %v18210_v57, %v3434_v31  ;;  %v3442_v42 = vadd.f32 %v18176_v41, %v21252_v14  ;;  %v18179_v57 = vadd.f32 %v21234_v51, %v21232_v49  ;;  %v21441_v18 = vpop.f32.mrf.mxu0  ;;  %v18145_v49 = vadd.f32 %v21266_v30, %v21260_v19  ;;  %4679 = vmatprep.subr.bf16.mxu0 %v18565_v55  ;;  %v18574_v30 = vld [vmem:[%s25770_s4 + $0x3f4] ss:$8 sps:$4 sm:$0xff]   ;;  %v18577_v41 = vld [vmem:[%s25770_s4 + $0x2e4] ss:$8 sps:$4 sm:$0xff]  }
 0x282   : > { %v18288_v23 = vpop.f32.mrf.mxu1  ;;  %4723 = vmatpush1.bf16.msra.mxu1 %v18566_v58 }
 0x283   : > { %v3507_v14 = vadd.f32 %v18216_v45, %v3442_v42  ;;  %v3564_v40 = vadd.f32 %v18250_v50, %v3499_v59  ;;  %v3445_v51 = vadd.f32 %v18179_v57, %v21256_v21  ;;  %v18569_v21 = vld [vmem:[%s25770_s4 + $0x2f0] ss:$8 sps:$4 sm:$0xff]   ;;  %v21473_v33 = vpop.f32.mrf.mxu0  ;;  %v3388_v55 = vadd.f32 %v18145_v49, %v3323_v2  ;;  %4724 = vmatprep.subr.bf16.mxu1 %v18574_v30 }
 0x284   : > { %v18289_v3 = vpop.f32.mrf.mxu1  ;;  %v3772_v45 = vld [vmem:[#allocation3] ss:$2 sm:$0xf]  ;;  %4680 = vmatpush1.bf16.msra.mxu0 %v18563_v47  ;;  %v3328_v59 = vadd.f32 %v18108_v1, %v21236_v56  ;;  %v18148_v42 = vadd.f32 %v21272_v34, %v21268_v27  ;;  %v18185_v47 = vadd.f32 %v21250_v12, %v21246_v5  ;;  %v18225_v27 = vadd.f32 %v21354_v0, %v21341_v26  ;;  %v18578_v34 = vld [vmem:[%s25770_s4 + $0x3e0] ss:$8 sps:$4 sm:$0xff]  }
 0x285   : > { %v18290_v13 = vadd.f32 %v18289_v3, %v18288_v23  ;;  %v3567_v23 = vadd.f32 %v18253_v54, %v3502_v60  ;;  %v3510_v6 = vadd.f32 %v18219_v22, %v3445_v51  ;;  %v3572_v46 = vadd.f32 %v18256_v52, %v3507_v14  ;;  %v3788_v3 = vld [vmem:[#allocation3 + $0x1] ss:$2 sm:$0xf]  ;;  %4681 = vmatprep.subr.bf16.mxu0 %v18571_v63  ;;  %v18575_v54 = vld [vmem:[%s25770_s4 + $0x2e0] ss:$8 sps:$4 sm:$0xff]   ;;  %v21501_v4 = vpop.f32.mrf.mxu0 }
 0x286   : > { %v18291_v62 = vpop.f32.mrf.mxu1  ;;  %v3779_v11 = vpack.c.bf16 %v3772_v45, %v3772_v45  ;;  %v3795_v10 = vpack.c.bf16 %v3788_v3, %v3788_v3  ;;  %v3804_v56 = vld [vmem:[#allocation3 + $0x2] ss:$2 sm:$0xf]  ;;  %v18111_v0 = vadd.f32 %v21216_v17, %v21214_v15  ;;  %v3453_v36 = vadd.f32 %v18185_v47, %v3388_v55  ;;  %4725 = vmatpush2.bf16.msra.mxu1 %v18572_v29  ;;  %v25782_v51 = vld [vmem:[#allocation11_spill] sm:$0xff] }
 0x287   : > { %v21461_v7 = vadd.f32 %v18290_v13, %v3564_v40  ;;  %v3820_v13 = vld [vmem:[#allocation3 + $0x3] ss:$2 sm:$0xf]  ;;  %v3811_v57 = vpack.c.bf16 %v3804_v56, %v3804_v56  ;;  %v3575_v5 = vadd.f32 %v18259_v39, %v3510_v6  ;;  %v18151_v52 = vadd.f32 %v21278_v37, %v21274_v35  ;;  %4726 = vmatprep.subr.bf16.mxu1 %v18580_v61  ;;  %v18267_v58 = vpop.f32.mrf.mxu0  ;;  %v18590_v39 = vld [vmem:[%s25770_s4 + $0x3c0] ss:$8 sps:$4 sm:$0xff]  }
 0x288   : > { %v18292_v25 = vpop.f32.mrf.mxu1  ;;  %3783 = vst [vmem:[#allocation7] sm:$0x3] %v3779_v11  ;;  %3799 = vst [vmem:[#allocation7 + $0x4] sm:$0x3] %v3795_v10  ;;  %v3827_v14 = vpack.c.bf16 %v3820_v13, %v3820_v13  ;;  %4682 = vmatpush2.bf16.msra.mxu0 %v18569_v21  ;;  %v18586_v26 = vld [vmem:[%s25770_s4 + $0x3d4] ss:$8 sps:$4 sm:$0xff]   ;;  %v3518_v63 = vadd.f32 %v18225_v27, %v3453_v36 }
 0x289   : > { %v18293_v44 = vadd.f32 %v18292_v25, %v18291_v62  ;;  %v3450_v62 = vadd.f32 %v18182_v20, %v21262_v28  ;;  %4683 = vmatprep.subr.bf16.mxu0 %v18577_v41  ;;  %3815 = vst [vmem:[#allocation7 + $0x8] sm:$0x3] %v3811_v57  ;;  %v25783_v15 = vld [vmem:[#allocation10_spill] sm:$0xff]  ;;  %v25785_v21 = vld [vmem:[#allocation15_spill] sm:$0xff]  ;;  %v25787_v41 = vld [vmem:[#allocation13_spill] sm:$0xff]  ;;  %v18269_v3 = vpop.f32.mrf.mxu0 }
 0x28a   : > { %v18294_v31 = vpop.f32.mrf.mxu1  ;;  %3831 = vst [vmem:[#allocation7 + $0xc] sm:$0x3] %v3827_v14  ;;  %v3331_v17 = vadd.f32 %v18111_v0, %v25783_v15  ;;  %v25784_v2 = vld [vmem:[#allocation14_spill] sm:$0xff]  ;;  %4727 = vmatpush2.bf16.msra.mxu1 %v18578_v34  ;;  %v25788_v11 = vld [vmem:[#allocation16_spill] sm:$0xff] }
 0x28b   : > { %v21463_v19 = vadd.f32 %v18293_v44, %v3567_v23  ;;  %v3515_v22 = vadd.f32 %v18222_v9, %v3450_v62  ;;  %v3393_v23 = vadd.f32 %v18148_v42, %v3328_v59  ;;  %v18262_v44 = vadd.f32 %v21418_v43, %v21388_v32  ;;  %v18581_v35 = vld [vmem:[%s25770_s4 + $0x2d0] ss:$8 sps:$4 sm:$0xff]   ;;  %v18589_v9 = vld [vmem:[%s25770_s4 + $0x2c4] ss:$8 sps:$4 sm:$0xff]   ;;  %4728 = vmatprep.subr.bf16.mxu1 %v18586_v26  ;;  %v18595_v42 = vld [vmem:[%s25770_s4 + $0x2b4] ss:$8 sps:$4 sm:$0xff]   ;;  %v18270_v47 = vpop.f32.mrf.mxu0 }
 0x28c   : > { %v18295_v38 = vpop.f32.mrf.mxu1  ;;  %v18228_v30 = vadd.f32 %v25785_v21, %v25784_v2  ;;  %4684 = vmatpush2.bf16.msra.mxu0 %v18575_v54  ;;  %v18584_v6 = vld [vmem:[%s25770_s4 + $0x3d0] ss:$8 sps:$4 sm:$0xff]   ;;  %v18231_v10 = vadd.f32 %v21390_v8, %v25788_v11  ;;  %v18598_v8 = vld [vmem:[%s25770_s4 + $0x3b4] ss:$8 sps:$4 sm:$0xff]   ;;  %v18268_v54 = vadd.f32 %v18267_v58, %v21501_v4  ;;  %v18599_v36 = vld [vmem:[%s25770_s4 + $0x2a0] ss:$8 sps:$4 sm:$0xff]  }
 0x28d   : > { %v3659_v53 = vadd.f32 %v21463_v19, %v21461_v7  ;;  %v18296_v48 = vadd.f32 %v18295_v38, %v18294_v31  ;;  %v18188_v31 = vadd.f32 %v25782_v51, %v21254_v16  ;;  %v3580_v32 = vadd.f32 %v18262_v44, %v3515_v22  ;;  %4685 = vmatprep.subr.bf16.mxu0 %v18583_v24  ;;  %v18596_v34 = vld [vmem:[%s25770_s4 + $0x3b0] ss:$8 sps:$4 sm:$0xff]   ;;  %v18601_v24 = vld [vmem:[%s25770_s4 + $0x2a4] ss:$8 sps:$4 sm:$0xff]  }
 0x28e   : > { %v18297_v60 = vpop.f32.mrf.mxu1  ;;  %v18265_v16 = vadd.f32 %v21473_v33, %v21441_v18  ;;  %v18592_v18 = vld [vmem:[%s25770_s4 + $0x3c4] ss:$8 sps:$4 sm:$0xff]   ;;  %4729 = vmatpush2.bf16.msra.mxu1 %v18584_v6  ;;  %v18608_v58 = vld [vmem:[%s25770_s4 + $0x390] ss:$8 sps:$4 sm:$0xff]   ;;  %v18625_v6 = vld [vmem:[%s25770_s4 + $0x74] ss:$8 sps:$4 sm:$0xff]  }
 0x28f   : > { %v21494_v50 = vadd.f32 %v18296_v48, %v3572_v46  ;;  %v3396_v46 = vadd.f32 %v18151_v52, %v3331_v17  ;;  %v3458_v38 = vadd.f32 %v18188_v31, %v3393_v23  ;;  %v25786_v33 = vld [vmem:[#allocation12_spill] sm:$0xff]  ;;  %4730 = vmatprep.subr.bf16.mxu1 %v18592_v18  ;;  %v18607_v23 = vld [vmem:[%s25770_s4 + $0x294] ss:$8 sps:$4 sm:$0xff]   ;;  %v18605_v17 = vld [vmem:[%s25770_s4 + $0x290] ss:$8 sps:$4 sm:$0xff]  }
 0x290   : > { %v18298_v28 = vpop.f32.mrf.mxu1  ;;  %v18191_v45 = vadd.f32 %v25787_v41, %v25786_v33  ;;  %4686 = vmatpush2.bf16.msra.mxu0 %v18581_v35  ;;  %v18610_v31 = vld [vmem:[%s25770_s4 + $0x394] ss:$8 sps:$4 sm:$0xff]   ;;  %v18616_v2 = vld [vmem:[%s25770_s4 + $0x384] ss:$8 sps:$4 sm:$0xff]  }
 0x291   : > { %v3660_v25 = vadd.f32 %v3659_v53, %v21494_v50  ;;  %v18299_v12 = vadd.f32 %v18298_v28, %v18297_v60  ;;  %v3583_v53 = vadd.f32 %v18265_v16, %v3518_v63  ;;  %v3523_v61 = vadd.f32 %v18228_v30, %v3458_v38  ;;  %v18587_v60 = vld [vmem:[%s25770_s4 + $0x2c0] ss:$8 sps:$4 sm:$0xff]   ;;  %4687 = vmatprep.subr.bf16.mxu0 %v18589_v9  ;;  %v18593_v28 = vld [vmem:[%s25770_s4 + $0x2b0] ss:$8 sps:$4 sm:$0xff]   ;;  %v18613_v63 = vld [vmem:[%s25770_s4 + $0x284] ss:$8 sps:$4 sm:$0xff]  }
 0x292   : > { %v18300_v40 = vpop.f32.mrf.mxu1  ;;  %v3461_v56 = vadd.f32 %v18191_v45, %v3396_v46  ;;  %4731 = vmatpush2.bf16.msra.mxu1 %v18590_v39  ;;  %v4050_v21 = vld [vmem:[#allocation3 + $0x90] ss:$2 sm:$0xf]  ;;  %v4086_v30 = vld [vmem:[#allocation3 + $0x91] ss:$2 sm:$0xf] }
 0x293   : > { %v21521_v49 = vadd.f32 %v18299_v12, %v3575_v5  ;;  %v3588_v14 = vadd.f32 %v18268_v54, %v3523_v61  ;;  %v18271_v12 = vadd.f32 %v18270_v47, %v18269_v3  ;;  %4732 = vmatprep.subr.bf16.mxu1 %v18598_v8  ;;  %v4122_v35 = vld [vmem:[#allocation3 + $0x92] ss:$2 sm:$0xf]  ;;  %v18628_v38 = vld [vmem:[%s25770_s4 + $0x174] ss:$8 sps:$4 sm:$0xff]  }
 0x294   : > { %v18301_v1 = vpop.f32.mrf.mxu1  ;;  %v3526_v57 = vadd.f32 %v18231_v10, %v3461_v56  ;;  %4688 = vmatpush2.bf16.msra.mxu0 %v18587_v60  ;;  %v18611_v16 = vld [vmem:[%s25770_s4 + $0x280] ss:$8 sps:$4 sm:$0xff]   ;;  %v17963_v9 = vpack.c.bf16 %v4122_v35, %v4122_v35 }
 0x295   : > { %v3661_v20 = vadd.f32 %v3660_v25, %v21521_v49  ;;  %v18302_v43 = vadd.f32 %v18301_v1, %v18300_v40  ;;  %v18604_v25 = vld [vmem:[%s25770_s4 + $0x3a4] ss:$8 sps:$4 sm:$0xff]   ;;  %4689 = vmatprep.subr.bf16.mxu0 %v18595_v42  ;;  %v18602_v40 = vld [vmem:[%s25770_s4 + $0x3a0] ss:$8 sps:$4 sm:$0xff]  }
 0x296   : > { %v18303_v37 = vpop.f32.mrf.mxu1  ;;  %v3591_v52 = vadd.f32 %v18271_v12, %v3526_v57  ;;  %4733 = vmatpush2.bf16.msra.mxu1 %v18596_v34  ;;  %v4142_v41 = vrot.slane %v17963_v9, 6  ;;  %v4158_v45 = vld [vmem:[#allocation3 + $0x93] ss:$2 sm:$0xf] }
 0x297   : > { %v21540_v29 = vadd.f32 %v18302_v43, %v3580_v32  ;;  %4734 = vmatprep.subr.bf16.mxu1 %v18604_v25  ;;  %v17955_v32 = vpack.c.bf16 %v4050_v21, %v4050_v21  ;;  %v17959_v43 = vpack.c.bf16 %v4086_v30, %v4086_v30 }
 0x298   : > { %v18304_v48 = vpop.f32.mrf.mxu1  ;;  %4690 = vmatpush2.bf16.msra.mxu0 %v18593_v28  ;;  %4150 = vst [vmem:[#allocation7 + $0x78] sm:$0xc] %v4142_v41 }
 0x299   : > { %v3662_v55 = vadd.f32 %v3661_v20, %v21540_v29  ;;  %v18305_v59 = vadd.f32 %v18304_v48, %v18303_v37  ;;  %4691 = vmatprep.subr.bf16.mxu0 %v18601_v24  ;;  %v18614_v37 = vld [vmem:[%s25770_s4 + $0x380] ss:$8 sps:$4 sm:$0xff]   ;;  %v4070_v18 = vrot.slane %v17955_v32, 6  ;;  %v4106_v33 = vrot.slane %v17959_v43, 6 }
 0x29a   : > { %v18306_v62 = vpop.f32.mrf.mxu1  ;;  %4735 = vmatpush2.bf16.msra.mxu1 %v18602_v40 }
 0x29b   : > { %v21563_v13 = vadd.f32 %v18305_v59, %v3583_v53  ;;  %4736 = vmatprep.subr.bf16.mxu1 %v18610_v31  ;;  %4078 = vst [vmem:[#allocation7 + $0x70] sm:$0xc] %v4070_v18  ;;  %4114 = vst [vmem:[#allocation7 + $0x74] sm:$0xc] %v4106_v33  ;;  %v17967_v53 = vpack.c.bf16 %v4158_v45, %v4158_v45 }
 0x29c   : > { %v18307_v27 = vpop.f32.mrf.mxu1  ;;  %4692 = vmatpush2.bf16.msra.mxu0 %v18599_v36 }
 0x29d   : > { %v3663_v4 = vadd.f32 %v3662_v55, %v21563_v13  ;;  %v18308_v22 = vadd.f32 %v18307_v27, %v18306_v62  ;;  %4693 = vmatprep.subr.bf16.mxu0 %v18607_v23  ;;  %v4178_v61 = vrot.slane %v17967_v53, 6 }
 0x29e   : > { %v18309_v5 = vpop.f32.mrf.mxu1  ;;  %4737 = vmatpush2.bf16.msra.mxu1 %v18608_v58 }
 0x29f   : > { %v21578_v26 = vadd.f32 %v18308_v22, %v3588_v14  ;;  %4738 = vmatprep.subr.bf16.mxu1 %v18616_v2  ;;  %4186 = vst [vmem:[#allocation7 + $0x7c] sm:$0xc] %v4178_v61 }
 0x2a0   : > { %v18310_v0 = vpop.f32.mrf.mxu1  ;;  %4694 = vmatpush2.bf16.msra.mxu0 %v18605_v17 }
 0x2a1   : > { %v3664_v44 = vadd.f32 %v3663_v4, %v21578_v26  ;;  %v18311_v51 = vadd.f32 %v18310_v0, %v18309_v5  ;;  %4695 = vmatprep.subr.bf16.mxu0 %v18613_v63 }
 0x2a2   : > { %4739 = vmatpush2.bf16.msra.mxu1 %v18614_v37 }
 0x2a3   : > { %v3656_v15 = vadd.f32 %v18311_v51, %v3591_v52  ;;  %5134 = vmatprep.subr.bf16.mxu1 %v18628_v38 }
 0x2a4   : > { %4696 = vmatpush2.bf16.msra.mxu0 %v18611_v16 }
 0x2a5   : > { %v3665_v1 = vadd.f32 %v3664_v44, %v3656_v15  ;;  %5091 = vmatprep.subr.bf16.mxu0 %v18625_v6 }
 0x2a7   : > { %v3666_v20 = vrot.slane %v3665_v1, 4 }
 0x2a9   : > { %v3667_v46 = vadd.f32 %v3666_v20, %v3665_v1 }
 0x2ab   : > { %v3668_v3 = vrot.slane %v3667_v46, 2 }
 0x2ad   : > { %v3669_v48 = vadd.f32 %v3668_v3, %v3667_v46 }
 0x2af   : > { %v3670_v11 = vrot.slane %v3669_v48, 1 }
 0x2b1   : > { %v3671_v10 = vadd.f32 %v3670_v11, %v3669_v48 }
 0x2b3   : > { %v3673_v55 = vmul.f32 0.015625, %v3671_v10 }
 0x2b5   : > { %v3674_v59 = vsub.f32 %v21461_v7, %v3673_v55  ;;  %v3675_v60 = vsub.f32 %v21463_v19, %v3673_v55  ;;  %v3676_v39 = vsub.f32 %v21494_v50, %v3673_v55  ;;  %v3677_v42 = vsub.f32 %v21521_v49, %v3673_v55 }
 0x2b6   : > { %v3678_v62 = vsub.f32 %v21540_v29, %v3673_v55  ;;  %v3679_v8 = vsub.f32 %v21563_v13, %v3673_v55  ;;  %v3680_v54 = vsub.f32 %v21578_v26, %v3673_v55  ;;  %v3681_v56 = vsub.f32 %v3656_v15, %v3673_v55 }
 0x2b7   : > { %v3682_v47 = vmul.f32 %v3674_v59, %v3674_v59  ;;  %v3683_v27 = vmul.f32 %v3675_v60, %v3675_v60  ;;  %v3684_v28 = vmul.f32 %v3676_v39, %v3676_v39  ;;  %v3685_v24 = vmul.f32 %v3677_v42, %v3677_v42 }
 0x2b8   : > { %v3686_v7 = vmul.f32 %v3678_v62, %v3678_v62  ;;  %v3687_v19 = vmul.f32 %v3679_v8, %v3679_v8  ;;  %v3688_v50 = vmul.f32 %v3680_v54, %v3680_v54  ;;  %v3689_v49 = vmul.f32 %v3681_v56, %v3681_v56 }
 0x2b9   : > { %v3690_v34 = vadd.f32 %v3683_v27, %v3682_v47 }
 0x2bb   : > { %v3691_v57 = vadd.f32 %v3690_v34, %v3684_v28 }
 0x2bd   : > { %v3692_v4 = vadd.f32 %v3691_v57, %v3685_v24 }
 0x2bf   : > { %v3693_v14 = vadd.f32 %v3692_v4, %v3686_v7 }
 0x2c1   : > { %v3694_v22 = vadd.f32 %v3693_v14, %v3687_v19 }
 0x2c3   : > { %v3695_v25 = vadd.f32 %v3694_v22, %v3688_v50 }
 0x2c5   : > { %v3696_v29 = vadd.f32 %v3695_v25, %v3689_v49 }
 0x2c7   : > { %v3697_v5 = vrot.slane %v3696_v29, 4 }
 0x2c9   : > { %v3698_v13 = vadd.f32 %v3697_v5, %v3696_v29 }
 0x2cb   : > { %v3699_v12 = vrot.slane %v3698_v13, 2 }
 0x2cd   : > { %v3700_v26 = vadd.f32 %v3699_v12, %v3698_v13 }
 0x2cf   : > { %v3701_v0 = vrot.slane %v3700_v26, 1 }
 0x2d1   : > { %v3702_v36 = vadd.f32 %v3701_v0, %v3700_v26 }
 0x2d3   : > { %v3703_v40 = vmul.f32 0.015625, %v3702_v36 }
 0x2d5   : > { %v3704_v23 = vadd.f32 1e-05, %v3703_v40 }
 0x2d7   : > { %20473 = vrsqrt.f32 %v3704_v23 }
 0x2e4   : > { %v20474_v44 = vpop.eup %20473 }
 0x2e5   : > { %v3706_v52 = vmul.f32 %v20474_v44, %v3674_v59  ;;  %v3707_v51 = vmul.f32 %v20474_v44, %v3675_v60  ;;  %v3708_v31 = vmul.f32 %v20474_v44, %v3676_v39  ;;  %v3709_v15 = vmul.f32 %v20474_v44, %v3677_v42 }
 0x2e6   : > { %v3710_v17 = vmul.f32 %v20474_v44, %v3678_v62  ;;  %v3711_v58 = vmul.f32 %v20474_v44, %v3679_v8  ;;  %v3712_v63 = vmul.f32 %v20474_v44, %v3680_v54  ;;  %v3713_v1 = vmul.f32 %v20474_v44, %v3681_v56 }
 0x2e7   : > { %vm3714_vm0 = vcmp.gt.f32.partialorder %v3706_v52, 0.0  ;;  %vm3715_vm1 = vcmp.gt.f32.partialorder %v3707_v51, 0.0  ;;  %vm3716_vm2 = vcmp.gt.f32.partialorder %v3708_v31, 0.0  ;;  %vm3717_vm3 = vcmp.gt.f32.partialorder %v3709_v15, 0.0 }
 0x2e8   : > { %vm3718_vm4 = vcmp.gt.f32.partialorder %v3710_v17, 0.0  ;;  %vm3719_vm5 = vcmp.gt.f32.partialorder %v3711_v58, 0.0  ;;  %vm3720_vm6 = vcmp.gt.f32.partialorder %v3712_v63, 0.0  ;;  %vm3721_vm7 = vcmp.gt.f32.partialorder %v3713_v1, 0.0 }
 0x2e9   : > { %v3722_v2 = vmul.f32 0.2, %v3706_v52  ;;  %v3723_v21 = vmul.f32 0.2, %v3707_v51  ;;  %v3724_v30 = vmul.f32 0.2, %v3708_v31 }
 0x2ea   : > { %v3725_v20 = vmul.f32 0.2, %v3709_v15  ;;  %v3726_v32 = vmul.f32 0.2, %v3710_v17  ;;  %v3727_v43 = vmul.f32 0.2, %v3711_v58 }
 0x2eb   : > { %v3728_v35 = vmul.f32 0.2, %v3712_v63  ;;  %v3729_v16 = vmul.f32 0.2, %v3713_v1  ;;  %v3730_v37 = vsel %vm3714_vm0, %v3706_v52, %v3722_v2  ;;  %v3731_v6 = vsel %vm3715_vm1, %v3707_v51, %v3723_v21 }
 0x2ec   : > { %v3732_v9 = vsel %vm3716_vm2, %v3708_v31, %v3724_v30  ;;  %v3733_v46 = vsel %vm3717_vm3, %v3709_v15, %v3725_v20  ;;  %v3734_v38 = vsel %vm3718_vm4, %v3710_v17, %v3726_v32  ;;  %v3735_v18 = vsel %vm3719_vm5, %v3711_v58, %v3727_v43  ;;  %3764 = vst [vmem:[#allocation3 + $0x11] sm:$0xff] %v3730_v37 }
 0x2ed   : > { %3765 = vst [vmem:[#allocation3 + $0x21] sm:$0xff] %v3731_v6  ;;  %v3736_v33 = vsel %vm3720_vm6, %v3712_v63, %v3728_v35  ;;  %v3737_v41 = vsel %vm3721_vm7, %v3713_v1, %v3729_v16  ;;  %3766 = vst [vmem:[#allocation3 + $0x31] sm:$0xff] %v3732_v9  ;;  %v18623_v1 = vld [vmem:[%s25770_s4 + $0x70] ss:$8 sps:$4 sm:$0xff]   ;;  %vm14620_vm1 = vcmask 1042432   ;;  %vm14914_vm4 = vcmask 1043456  }
 0x2ee   : > { %3767 = vst [vmem:[#allocation3 + $0x41] sm:$0xff] %v3733_v46  ;;  %3768 = vst [vmem:[#allocation3 + $0x51] sm:$0xff] %v3734_v38 }
 0x2ef   : > { %3769 = vst [vmem:[#allocation3 + $0x61] sm:$0xff] %v3735_v18  ;;  %3770 = vst [vmem:[#allocation3 + $0x71] sm:$0xff] %v3736_v33  ;;  %v18637_v18 = vld [vmem:[%s25770_s4 + $0x64] ss:$8 sps:$4 sm:$0xff]  }
 0x2f0   : > { %3771 = vst [vmem:[#allocation3 + $0x81] sm:$0xff] %v3737_v41 }
 0x2f3   : > { %v3774_v45 = vld [vmem:[#allocation3 + $0x10] ss:$2 sm:$0xf]  ;;  %v3790_v3 = vld [vmem:[#allocation3 + $0x11] ss:$2 sm:$0xf] }
 0x2f4   : > { %v3780_v53 = vpack.c.bf16 %v3774_v45, %v3774_v45  ;;  %v3796_v48 = vpack.c.bf16 %v3790_v3, %v3790_v3  ;;  %v3838_v61 = vld [vmem:[#allocation3 + $0x30] ss:$2 sm:$0xf]  ;;  %v3874_v11 = vld [vmem:[#allocation3 + $0x31] ss:$2 sm:$0xf] }
 0x2f5   : > { %v17937_v10 = vpack.c.bf16 %v3838_v61, %v3838_v61  ;;  %v17941_v55 = vpack.c.bf16 %v3874_v11, %v3874_v11  ;;  %v3982_v59 = vld [vmem:[#allocation3 + $0x50] ss:$2 sm:$0xf]  ;;  %v3998_v60 = vld [vmem:[#allocation3 + $0x51] ss:$2 sm:$0xf] }
 0x2f6   : > { %3784 = vst [vmem:[#allocation7 + $0x20] sm:$0x3] %v3780_v53  ;;  %3800 = vst [vmem:[#allocation7 + $0x24] sm:$0x3] %v3796_v48  ;;  %v3988_v39 = vpack.c.bf16 %v3982_v59, %v3982_v59  ;;  %v4004_v42 = vpack.c.bf16 %v3998_v60, %v3998_v60  ;;  %v18635_v61 = vld [vmem:[%s25770_s4 + $0x60] ss:$8 sps:$4 sm:$0xff]  }
 0x2f7   : > { %v4046_v62 = vld [vmem:[#allocation3 + $0x70] ss:$2 sm:$0xf]  ;;  %v4082_v8 = vld [vmem:[#allocation3 + $0x71] ss:$2 sm:$0xf] }
 0x2f8   : > { %v3860_v54 = vrot.slane %v17937_v10, 6  ;;  %v3896_v56 = vrot.slane %v17941_v55, 6  ;;  %v17953_v47 = vpack.c.bf16 %v4046_v62, %v4046_v62  ;;  %v17957_v27 = vpack.c.bf16 %v4082_v8, %v4082_v8  ;;  %v3806_v28 = vld [vmem:[#allocation3 + $0x12] ss:$2 sm:$0xf] }
 0x2f9   : > { %3992 = vst [vmem:[#allocation7 + $0x30] sm:$0x3] %v3988_v39  ;;  %4008 = vst [vmem:[#allocation7 + $0x34] sm:$0x3] %v4004_v42  ;;  %v3812_v34 = vpack.c.bf16 %v3806_v28, %v3806_v28  ;;  %v18626_v11 = vld [vmem:[%s25770_s4 + $0x170] ss:$8 sps:$4 sm:$0xff]  }
 0x2fa   : > { %v3822_v24 = vld [vmem:[#allocation3 + $0x13] ss:$2 sm:$0xf]  ;;  %v3910_v57 = vld [vmem:[#allocation3 + $0x32] ss:$2 sm:$0xf] }
 0x2fb   : > { %3868 = vst [vmem:[#allocation7 + $0x20] sm:$0xc] %v3860_v54  ;;  %3904 = vst [vmem:[#allocation7 + $0x24] sm:$0xc] %v3896_v56  ;;  %v4068_v7 = vrot.slane %v17953_v47, 6  ;;  %v4104_v4 = vrot.slane %v17957_v27, 6  ;;  %v3828_v19 = vpack.c.bf16 %v3822_v24, %v3822_v24  ;;  %v17945_v14 = vpack.c.bf16 %v3910_v57, %v3910_v57 }
 0x2fc   : > { %v3946_v50 = vld [vmem:[#allocation3 + $0x33] ss:$2 sm:$0xf]  ;;  %3816 = vst [vmem:[#allocation7 + $0x28] sm:$0x3] %v3812_v34 }
 0x2fd   : > { %v17949_v22 = vpack.c.bf16 %v3946_v50, %v3946_v50  ;;  %v4014_v49 = vld [vmem:[#allocation3 + $0x52] ss:$2 sm:$0xf]  ;;  %v4030_v25 = vld [vmem:[#allocation3 + $0x53] ss:$2 sm:$0xf] }
 0x2fe   : > { %4076 = vst [vmem:[#allocation7 + $0x30] sm:$0xc] %v4068_v7  ;;  %4112 = vst [vmem:[#allocation7 + $0x34] sm:$0xc] %v4104_v4  ;;  %v3932_v29 = vrot.slane %v17945_v14, 6  ;;  %v4020_v5 = vpack.c.bf16 %v4014_v49, %v4014_v49  ;;  %v4036_v13 = vpack.c.bf16 %v4030_v25, %v4030_v25 }
 0x2ff   : > { %3832 = vst [vmem:[#allocation7 + $0x2c] sm:$0x3] %v3828_v19  ;;  %v4118_v12 = vld [vmem:[#allocation3 + $0x72] ss:$2 sm:$0xf]  ;;  %v3968_v26 = vrot.slane %v17949_v22, 6 }
 0x300   : > { %v17961_v0 = vpack.c.bf16 %v4118_v12, %v4118_v12  ;;  %v4154_v36 = vld [vmem:[#allocation3 + $0x73] ss:$2 sm:$0xf]  ;;  %3940 = vst [vmem:[#allocation7 + $0x28] sm:$0xc] %v3932_v29 }
 0x301   : > { %4024 = vst [vmem:[#allocation7 + $0x38] sm:$0x3] %v4020_v5  ;;  %4040 = vst [vmem:[#allocation7 + $0x3c] sm:$0x3] %v4036_v13  ;;  %v17965_v40 = vpack.c.bf16 %v4154_v36, %v4154_v36  ;;  %v18643_v60 = vld [vmem:[%s25770_s4 + $0x54] ss:$8 sps:$4 sm:$0xff]  }
 0x302   : > { %v3836_v23 = vld [vmem:[#allocation3 + $0x20] ss:$2 sm:$0xf]  ;;  %v3872_v44 = vld [vmem:[#allocation3 + $0x21] ss:$2 sm:$0xf] }
 0x303   : > { %3976 = vst [vmem:[#allocation7 + $0x2c] sm:$0xc] %v3968_v26  ;;  %v4140_v52 = vrot.slane %v17961_v0, 6  ;;  %v17936_v51 = vpack.c.bf16 %v3836_v23, %v3836_v23  ;;  %v17940_v31 = vpack.c.bf16 %v3872_v44, %v3872_v44  ;;  %v3980_v15 = vld [vmem:[#allocation3 + $0x40] ss:$2 sm:$0xf] }
 0x304   : > { %v4176_v17 = vrot.slane %v17965_v40, 6  ;;  %v3987_v58 = vpack.c.bf16 %v3980_v15, %v3980_v15  ;;  %v3996_v63 = vld [vmem:[#allocation3 + $0x41] ss:$2 sm:$0xf]  ;;  %v18640_v62 = vld [vmem:[%s25770_s4 + $0x164] ss:$8 sps:$4 sm:$0xff]  }
 0x305   : > { %4148 = vst [vmem:[#allocation7 + $0x38] sm:$0xc] %v4140_v52  ;;  %v3859_v2 = vrot.slane %v17936_v51, 6  ;;  %v3895_v21 = vrot.slane %v17940_v31, 6  ;;  %v4003_v30 = vpack.c.bf16 %v3996_v63, %v3996_v63  ;;  %v18617_v16 = vld [vmem:[#allocation7 + $0x20] ss:$16 sps:$4 sm:$0xff]  }
 0x306   : > { %v4044_v20 = vld [vmem:[#allocation3 + $0x60] ss:$2 sm:$0xf]  ;;  %4184 = vst [vmem:[#allocation7 + $0x3c] sm:$0xc] %v4176_v17 }
 0x307   : > { %3991 = vst [vmem:[#allocation7 + $0x10] sm:$0x3] %v3987_v58  ;;  %v17952_v32 = vpack.c.bf16 %v4044_v20, %v4044_v20  ;;  %v4080_v43 = vld [vmem:[#allocation3 + $0x61] ss:$2 sm:$0xf] }
 0x308   : > { %v3908_v35 = vld [vmem:[#allocation3 + $0x22] ss:$2 sm:$0xf]  ;;  %3867 = vst [vmem:[#allocation7] sm:$0xc] %v3859_v2  ;;  %v17956_v6 = vpack.c.bf16 %v4080_v43, %v4080_v43 }
 0x309   : > { %v18619_v37 = vld [vmem:[#allocation7 + $0x24] ss:$16 sps:$4 sm:$0xff]   ;;  %3903 = vst [vmem:[#allocation7 + $0x4] sm:$0xc] %v3895_v21  ;;  %4007 = vst [vmem:[#allocation7 + $0x14] sm:$0x3] %v4003_v30  ;;  %v17944_v9 = vpack.c.bf16 %v3908_v35, %v3908_v35 }
 0x30a   : > { %v4067_v46 = vrot.slane %v17952_v32, 6  ;;  %v3944_v38 = vld [vmem:[#allocation3 + $0x23] ss:$2 sm:$0xf]  ;;  %4697 = vmatprep.mubr.bf16.mxu0 %v18619_v37  ;;  %v4103_v33 = vrot.slane %v17956_v6, 6 }
 0x30b   : > { %v3931_v41 = vrot.slane %v17944_v9, 6  ;;  %v17948_v45 = vpack.c.bf16 %v3944_v38, %v3944_v38  ;;  %v4012_v3 = vld [vmem:[#allocation3 + $0x42] ss:$2 sm:$0xf]  ;;  %4698 = vmatmul.mubr.bf16.vlgmr.msra.gmra.mxu0 %v18617_v16  ;;  %v18638_v7 = vld [vmem:[%s25770_s4 + $0x160] ss:$8 sps:$4 sm:$0xff]  }
 0x30c   : > { %4075 = vst [vmem:[#allocation7 + $0x10] sm:$0xc] %v4067_v46  ;;  %v4019_v53 = vpack.c.bf16 %v4012_v3, %v4012_v3  ;;  %v4028_v48 = vld [vmem:[#allocation3 + $0x43] ss:$2 sm:$0xf]  ;;  %5092 = vmatpush1.bf16.msra.mxu0 %v18623_v1 }
 0x30d   : > { %4111 = vst [vmem:[#allocation7 + $0x14] sm:$0xc] %v4103_v33  ;;  %3939 = vst [vmem:[#allocation7 + $0x8] sm:$0xc] %v3931_v41  ;;  %v3967_v10 = vrot.slane %v17948_v45, 6  ;;  %v4035_v55 = vpack.c.bf16 %v4028_v48, %v4028_v48  ;;  %5093 = vmatprep.subr.bf16.mxu0 %v18637_v18 }
 0x30e   : > { %v4116_v59 = vld [vmem:[#allocation3 + $0x62] ss:$2 sm:$0xf]  ;;  %4023 = vst [vmem:[#allocation7 + $0x18] sm:$0x3] %v4019_v53 }
 0x30f   : > { %v17960_v39 = vpack.c.bf16 %v4116_v59, %v4116_v59  ;;  %v4152_v42 = vld [vmem:[#allocation3 + $0x63] ss:$2 sm:$0xf]  ;;  %v3776_v8 = vld [vmem:[#allocation3 + $0x20] ss:$2 sm:$0xf] }
 0x310   : > { %v18620_v54 = vld [vmem:[#allocation7 + $0x28] ss:$16 sps:$4 sm:$0xff]   ;;  %v18622_v56 = vld [vmem:[#allocation7 + $0x2c] ss:$16 sps:$4 sm:$0xff]   ;;  %3975 = vst [vmem:[#allocation7 + $0xc] sm:$0xc] %v3967_v10  ;;  %v17964_v47 = vpack.c.bf16 %v4152_v42, %v4152_v42  ;;  %v3781_v28 = vpack.c.bf16 %v3776_v8, %v3776_v8  ;;  %5094 = vmatpush1.bf16.msra.mxu0 %v18635_v61 }
 0x311   : > { %4039 = vst [vmem:[#allocation7 + $0x1c] sm:$0x3] %v4035_v55  ;;  %v18641_v27 = vld [vmem:[%s25770_s4 + $0x50] ss:$8 sps:$4 sm:$0xff]   ;;  %v4139_v34 = vrot.slane %v17960_v39, 6  ;;  %4740 = vmatprep.mubr.bf16.mxu1 %v18622_v56  ;;  %5095 = vmatprep.subr.bf16.mxu0 %v18643_v60 }
 0x312   : > { %v3792_v24 = vld [vmem:[#allocation3 + $0x21] ss:$2 sm:$0xf]  ;;  %v4175_v57 = vrot.slane %v17964_v47, 6  ;;  %v18649_v4 = vld [vmem:[%s25770_s4 + $0x44] ss:$8 sps:$4 sm:$0xff]   ;;  %4741 = vmatmul.mubr.bf16.vlgmr.msra.gmra.mxu1 %v18620_v54 }
 0x313   : > { %3785 = vst [vmem:[#allocation7 + $0x40] sm:$0x3] %v3781_v28  ;;  %v3797_v19 = vpack.c.bf16 %v3792_v24, %v3792_v24  ;;  %v3840_v14 = vld [vmem:[#allocation3 + $0x40] ss:$2 sm:$0xf]  ;;  %5135 = vmatpush1.bf16.msra.mxu1 %v18626_v11 }
 0x314   : > { %4147 = vst [vmem:[#allocation7 + $0x18] sm:$0xc] %v4139_v34  ;;  %v18646_v50 = vld [vmem:[%s25770_s4 + $0x154] ss:$8 sps:$4 sm:$0xff]   ;;  %v17938_v22 = vpack.c.bf16 %v3840_v14, %v3840_v14  ;;  %4183 = vst [vmem:[#allocation7 + $0x1c] sm:$0xc] %v4175_v57  ;;  %5136 = vmatprep.subr.bf16.mxu1 %v18640_v62  ;;  %5096 = vmatpush1.bf16.msra.mxu0 %v18641_v27 }
 0x315   : > { %v3876_v49 = vld [vmem:[#allocation3 + $0x41] ss:$2 sm:$0xf]  ;;  %v3984_v25 = vld [vmem:[#allocation3 + $0x60] ss:$2 sm:$0xf]  ;;  %5097 = vmatprep.subr.bf16.mxu0 %v18649_v4 }
 0x316   : > { %3801 = vst [vmem:[#allocation7 + $0x44] sm:$0x3] %v3797_v19  ;;  %v17942_v29 = vpack.c.bf16 %v3876_v49, %v3876_v49  ;;  %v3989_v5 = vpack.c.bf16 %v3984_v25, %v3984_v25  ;;  %v4000_v13 = vld [vmem:[#allocation3 + $0x61] ss:$2 sm:$0xf]  ;;  %v3861_v36 = vrot.slane %v17938_v22, 6 }
 0x317   : > { %v4048_v12 = vld [vmem:[#allocation3 + $0x80] ss:$2 sm:$0xf]  ;;  %v18647_v0 = vld [vmem:[%s25770_s4 + $0x40] ss:$8 sps:$4 sm:$0xff]   ;;  %v4005_v40 = vpack.c.bf16 %v4000_v13, %v4000_v13  ;;  %5137 = vmatpush1.bf16.msra.mxu1 %v18638_v7 }
 0x318   : > { %v18631_v26 = vld [vmem:[#allocation7 + $0x4] ss:$16 sps:$4 sm:$0xff]   ;;  %v17954_v23 = vpack.c.bf16 %v4048_v12, %v4048_v12  ;;  %v18644_v44 = vld [vmem:[%s25770_s4 + $0x150] ss:$8 sps:$4 sm:$0xff]   ;;  %v3897_v51 = vrot.slane %v17942_v29, 6  ;;  %5138 = vmatprep.subr.bf16.mxu1 %v18646_v50  ;;  %5098 = vmatpush1.bf16.msra.mxu0 %v18647_v0 }
 0x319   : > { %v18655_v52 = vld [vmem:[%s25770_s4 + $0x34] ss:$8 sps:$4 sm:$0xff]   ;;  %3993 = vst [vmem:[#allocation7 + $0x50] sm:$0x3] %v3989_v5  ;;  %5123 = vmatprep.mubr.bf16.mxu0 %v18631_v26  ;;  %v18652_v15 = vld [vmem:[%s25770_s4 + $0x144] ss:$8 sps:$4 sm:$0xff]  }
 0x31a   : > { %v4084_v31 = vld [vmem:[#allocation3 + $0x81] ss:$2 sm:$0xf]  ;;  %3869 = vst [vmem:[#allocation7 + $0x40] sm:$0xc] %v3861_v36  ;;  %v4069_v17 = vrot.slane %v17954_v23, 6  ;;  %5099 = vmatprep.subr.bf16.mxu0 %v18655_v52 }
 0x31b   : > { %4009 = vst [vmem:[#allocation7 + $0x54] sm:$0x3] %v4005_v40  ;;  %v17958_v58 = vpack.c.bf16 %v4084_v31, %v4084_v31  ;;  %v3808_v63 = vld [vmem:[#allocation3 + $0x22] ss:$2 sm:$0xf]  ;;  %5139 = vmatpush1.bf16.msra.mxu1 %v18644_v44 }
 0x31c   : > { %3905 = vst [vmem:[#allocation7 + $0x44] sm:$0xc] %v3897_v51  ;;  %v3813_v1 = vpack.c.bf16 %v3808_v63, %v3808_v63  ;;  %v3824_v2 = vld [vmem:[#allocation3 + $0x23] ss:$2 sm:$0xf]  ;;  %5140 = vmatprep.subr.bf16.mxu1 %v18652_v15 }
 0x31d   : > { %v3912_v21 = vld [vmem:[#allocation3 + $0x42] ss:$2 sm:$0xf]  ;;  %4077 = vst [vmem:[#allocation7 + $0x50] sm:$0xc] %v4069_v17  ;;  %v4105_v20 = vrot.slane %v17958_v58, 6  ;;  %v3829_v32 = vpack.c.bf16 %v3824_v2, %v3824_v2 }
 0x31e   : > { %v18653_v30 = vld [vmem:[%s25770_s4 + $0x30] ss:$8 sps:$4 sm:$0xff]   ;;  %v17946_v43 = vpack.c.bf16 %v3912_v21, %v3912_v21  ;;  %3817 = vst [vmem:[#allocation7 + $0x48] sm:$0x3] %v3813_v1  ;;  %v18634_v9 = vld [vmem:[#allocation7 + $0xc] ss:$16 sps:$4 sm:$0xff]  }
 0x31f   : > { %v3948_v35 = vld [vmem:[#allocation3 + $0x43] ss:$2 sm:$0xf]  ;;  %v4016_v37 = vld [vmem:[#allocation3 + $0x62] ss:$2 sm:$0xf]  ;;  %5166 = vmatprep.mubr.bf16.mxu1 %v18634_v9  ;;  %5100 = vmatpush1.bf16.msra.mxu0 %v18653_v30 }
 0x320   : > { %v17950_v16 = vpack.c.bf16 %v3948_v35, %v3948_v35  ;;  %v4032_v6 = vld [vmem:[#allocation3 + $0x63] ss:$2 sm:$0xf]  ;;  %v18661_v46 = vld [vmem:[%s25770_s4 + $0x24] ss:$8 sps:$4 sm:$0xff]   ;;  %v3933_v38 = vrot.slane %v17946_v43, 6  ;;  %v4021_v18 = vpack.c.bf16 %v4016_v37, %v4016_v37 }
 0x321   : > { %4113 = vst [vmem:[#allocation7 + $0x54] sm:$0xc] %v4105_v20  ;;  %3833 = vst [vmem:[#allocation7 + $0x4c] sm:$0x3] %v3829_v32  ;;  %v4037_v33 = vpack.c.bf16 %v4032_v6, %v4032_v6  ;;  %v18650_v41 = vld [vmem:[%s25770_s4 + $0x140] ss:$8 sps:$4 sm:$0xff]   ;;  %5101 = vmatprep.subr.bf16.mxu0 %v18661_v46 }
 0x322   : > { %v3969_v45 = vrot.slane %v17950_v16, 6  ;;  %v4120_v3 = vld [vmem:[#allocation3 + $0x82] ss:$2 sm:$0xf]  ;;  %3941 = vst [vmem:[#allocation7 + $0x48] sm:$0xc] %v3933_v38  ;;  %5141 = vmatpush1.bf16.msra.mxu1 %v18650_v41 }
 0x323   : > { %v18658_v53 = vld [vmem:[%s25770_s4 + $0x134] ss:$8 sps:$4 sm:$0xff]   ;;  %4025 = vst [vmem:[#allocation7 + $0x58] sm:$0x3] %v4021_v18  ;;  %4041 = vst [vmem:[#allocation7 + $0x5c] sm:$0x3] %v4037_v33  ;;  %v17962_v48 = vpack.c.bf16 %v4120_v3, %v4120_v3 }
 0x324   : > { %v4156_v61 = vld [vmem:[#allocation3 + $0x83] ss:$2 sm:$0xf]  ;;  %v18659_v11 = vld [vmem:[%s25770_s4 + $0x20] ss:$8 sps:$4 sm:$0xff]   ;;  %5142 = vmatprep.subr.bf16.mxu1 %v18658_v53 }
 0x325   : > { %3977 = vst [vmem:[#allocation7 + $0x4c] sm:$0xc] %v3969_v45  ;;  %v17966_v10 = vpack.c.bf16 %v4156_v61, %v4156_v61  ;;  %v18667_v55 = vld [vmem:[%s25770_s4 + $0x14] ss:$8 sps:$4 sm:$0xff]   ;;  %v4141_v59 = vrot.slane %v17962_v48, 6  ;;  %5102 = vmatpush1.bf16.msra.mxu0 %v18659_v11 }
 0x326   : > { %v18656_v60 = vld [vmem:[%s25770_s4 + $0x130] ss:$8 sps:$4 sm:$0xff]   ;;  %v18664_v42 = vld [vmem:[%s25770_s4 + $0x124] ss:$8 sps:$4 sm:$0xff]   ;;  %v18662_v8 = vld [vmem:[%s25770_s4 + $0x120] ss:$8 sps:$4 sm:$0xff]   ;;  %5103 = vmatprep.subr.bf16.mxu0 %v18667_v55 }
 0x327   : > { %v4177_v39 = vrot.slane %v17966_v10, 6  ;;  %4149 = vst [vmem:[#allocation7 + $0x58] sm:$0xc] %v4141_v59  ;;  %v18665_v62 = vld [vmem:[%s25770_s4 + $0x10] ss:$8 sps:$4 sm:$0xff]   ;;  %5143 = vmatpush1.bf16.msra.mxu1 %v18656_v60 }
 0x328   : > { %v18670_v54 = vld [vmem:[%s25770_s4 + $0x114] ss:$8 sps:$4 sm:$0xff]   ;;  %v18673_v56 = vld [vmem:[%s25770_s4 + $0x4] ss:$8 sps:$4 sm:$0xff]   ;;  %v18671_v47 = vld [vmem:[%s25770_s4] ss:$8 sps:$4 sm:$0xff]   ;;  %5144 = vmatprep.subr.bf16.mxu1 %v18664_v42 }
 0x329   : > { %4185 = vst [vmem:[#allocation7 + $0x5c] sm:$0xc] %v4177_v39  ;;  %v3778_v27 = vld [vmem:[#allocation3 + $0x30] ss:$2 sm:$0xf]  ;;  %5104 = vmatpush1.bf16.msra.mxu0 %v18665_v62 }
 0x32a   : > { %v3794_v28 = vld [vmem:[#allocation3 + $0x31] ss:$2 sm:$0xf]  ;;  %v18679_v34 = vld [vmem:[%s25770_s4 + $0xf4] ss:$8 sps:$4 sm:$0xff]   ;;  %v3782_v24 = vpack.c.bf16 %v3778_v27, %v3778_v27  ;;  %5105 = vmatprep.subr.bf16.mxu0 %v18673_v56 }
 0x32b   : > { %v3798_v57 = vpack.c.bf16 %v3794_v28, %v3794_v28  ;;  %v3842_v7 = vld [vmem:[#allocation3 + $0x50] ss:$2 sm:$0xf]  ;;  %v18668_v4 = vld [vmem:[%s25770_s4 + $0x110] ss:$8 sps:$4 sm:$0xff]   ;;  %5145 = vmatpush1.bf16.msra.mxu1 %v18662_v8 }
 0x32c   : > { %v17939_v19 = vpack.c.bf16 %v3842_v7, %v3842_v7  ;;  %v3878_v14 = vld [vmem:[#allocation3 + $0x51] ss:$2 sm:$0xf]  ;;  %v3986_v50 = vld [vmem:[#allocation3 + $0x70] ss:$2 sm:$0xf]  ;;  %5146 = vmatprep.subr.bf16.mxu1 %v18670_v54 }
 0x32d   : > { %3786 = vst [vmem:[#allocation7 + $0x60] sm:$0x3] %v3782_v24  ;;  %3802 = vst [vmem:[#allocation7 + $0x64] sm:$0x3] %v3798_v57  ;;  %v17943_v22 = vpack.c.bf16 %v3878_v14, %v3878_v14  ;;  %v3990_v49 = vpack.c.bf16 %v3986_v50, %v3986_v50  ;;  %v18676_v5 = vld [vmem:[%s25770_s4 + $0x104] ss:$8 sps:$4 sm:$0xff]   ;;  %5106 = vmatpush1.bf16.msra.mxu0 %v18671_v47 }
 0x32e   : > { %v4002_v25 = vld [vmem:[#allocation3 + $0x71] ss:$2 sm:$0xf]  ;;  %v3810_v29 = vld [vmem:[#allocation3 + $0x32] ss:$2 sm:$0xf]  ;;  %5107 = vmatprep.subr.bf16.mxu0 %v18679_v34 }
 0x32f   : > { %v3862_v13 = vrot.slane %v17939_v19, 6  ;;  %v4006_v12 = vpack.c.bf16 %v4002_v25, %v4002_v25  ;;  %v3814_v26 = vpack.c.bf16 %v3810_v29, %v3810_v29  ;;  %v3826_v0 = vld [vmem:[#allocation3 + $0x33] ss:$2 sm:$0xf]  ;;  %v18677_v36 = vld [vmem:[%s25770_s4 + $0xf0] ss:$8 sps:$4 sm:$0xff]   ;;  %5147 = vmatpush1.bf16.msra.mxu1 %v18668_v4 }
 0x330   : > { %v18685_v40 = vld [vmem:[%s25770_s4 + $0xe4] ss:$8 sps:$4 sm:$0xff]   ;;  %v3898_v23 = vrot.slane %v17943_v22, 6  ;;  %3994 = vst [vmem:[#allocation7 + $0x70] sm:$0x3] %v3990_v49  ;;  %v3830_v44 = vpack.c.bf16 %v3826_v0, %v3826_v0  ;;  %5148 = vmatprep.subr.bf16.mxu1 %v18676_v5 }
 0x331   : > { %3870 = vst [vmem:[#allocation7 + $0x60] sm:$0xc] %v3862_v13  ;;  %4010 = vst [vmem:[#allocation7 + $0x74] sm:$0x3] %v4006_v12  ;;  %v18674_v63 = vld [vmem:[%s25770_s4 + $0x100] ss:$8 sps:$4 sm:$0xff]   ;;  %5108 = vmatpush2.bf16.msra.mxu0 %v18677_v36 }
 0x332   : > { %3818 = vst [vmem:[#allocation7 + $0x68] sm:$0x3] %v3814_v26  ;;  %v3914_v52 = vld [vmem:[#allocation3 + $0x52] ss:$2 sm:$0xf]  ;;  %5109 = vmatprep.subr.bf16.mxu0 %v18685_v40 }
 0x333   : > { %v3950_v51 = vld [vmem:[#allocation3 + $0x53] ss:$2 sm:$0xf]  ;;  %3906 = vst [vmem:[#allocation7 + $0x64] sm:$0xc] %v3898_v23  ;;  %v17947_v31 = vpack.c.bf16 %v3914_v52, %v3914_v52  ;;  %5149 = vmatpush1.bf16.msra.mxu1 %v18674_v63 }
 0x334   : > { %3834 = vst [vmem:[#allocation7 + $0x6c] sm:$0x3] %v3830_v44  ;;  %v17951_v15 = vpack.c.bf16 %v3950_v51, %v3950_v51  ;;  %v4018_v17 = vld [vmem:[#allocation3 + $0x72] ss:$2 sm:$0xf] }
 0x335   : > { %v4034_v58 = vld [vmem:[#allocation3 + $0x73] ss:$2 sm:$0xf]  ;;  %v4022_v1 = vpack.c.bf16 %v4018_v17, %v4018_v17  ;;  %v18682_v21 = vld [vmem:[%s25770_s4 + $0x1f4] ss:$8 sps:$4 sm:$0xff]   ;;  %v3934_v30 = vrot.slane %v17947_v31, 6 }
 0x336   : > { %v4038_v2 = vpack.c.bf16 %v4034_v58, %v4034_v58  ;;  %v3970_v20 = vrot.slane %v17951_v15, 6  ;;  %v18683_v32 = vld [vmem:[%s25770_s4 + $0xe0] ss:$8 sps:$4 sm:$0xff]   ;;  %v18691_v43 = vld [vmem:[%s25770_s4 + $0xd4] ss:$8 sps:$4 sm:$0xff]   ;;  %5150 = vmatprep.subr.bf16.mxu1 %v18682_v21 }
 0x337   : > { %4026 = vst [vmem:[#allocation7 + $0x78] sm:$0x3] %v4022_v1  ;;  %3942 = vst [vmem:[#allocation7 + $0x68] sm:$0xc] %v3934_v30  ;;  %v18680_v35 = vld [vmem:[%s25770_s4 + $0x1f0] ss:$8 sps:$4 sm:$0xff]   ;;  %5110 = vmatpush2.bf16.msra.mxu0 %v18683_v32 }
 0x338   : > { %4042 = vst [vmem:[#allocation7 + $0x7c] sm:$0x3] %v4038_v2  ;;  %3978 = vst [vmem:[#allocation7 + $0x6c] sm:$0xc] %v3970_v20  ;;  %v18688_v16 = vld [vmem:[%s25770_s4 + $0x1e4] ss:$8 sps:$4 sm:$0xff]   ;;  %5111 = vmatprep.subr.bf16.mxu0 %v18691_v43  ;;  %5151 = vmatpush2.bf16.msra.mxu1 %v18680_v35 }
 0x339   : > { %v18689_v37 = vld [vmem:[%s25770_s4 + $0xd0] ss:$8 sps:$4 sm:$0xff]   ;;  %v18697_v6 = vld [vmem:[%s25770_s4 + $0xc4] ss:$8 sps:$4 sm:$0xff]   ;;  %v18686_v9 = vld [vmem:[%s25770_s4 + $0x1e0] ss:$8 sps:$4 sm:$0xff]   ;;  %5152 = vmatprep.subr.bf16.mxu1 %v18688_v16 }
 0x33a   : > { %v18694_v46 = vld [vmem:[%s25770_s4 + $0x1d4] ss:$8 sps:$4 sm:$0xff]   ;;  %v18695_v38 = vld [vmem:[%s25770_s4 + $0xc0] ss:$8 sps:$4 sm:$0xff]   ;;  %v18692_v33 = vld [vmem:[%s25770_s4 + $0x1d0] ss:$8 sps:$4 sm:$0xff]  }
 0x33b   : > { %5112 = vmatpush2.bf16.msra.mxu0 %v18689_v37  ;;  %v18703_v18 = vld [vmem:[%s25770_s4 + $0xb4] ss:$8 sps:$4 sm:$0xff]   ;;  %v18700_v41 = vld [vmem:[%s25770_s4 + $0x1c4] ss:$8 sps:$4 sm:$0xff]   ;;  %v18701_v45 = vld [vmem:[%s25770_s4 + $0xb0] ss:$8 sps:$4 sm:$0xff]  }
 0x33c   : > { %5113 = vmatprep.subr.bf16.mxu0 %v18697_v6  ;;  %5153 = vmatpush2.bf16.msra.mxu1 %v18686_v9  ;;  %v18709_v3 = vld [vmem:[%s25770_s4 + $0xa4] ss:$8 sps:$4 sm:$0xff]   ;;  %v18698_v53 = vld [vmem:[%s25770_s4 + $0x1c0] ss:$8 sps:$4 sm:$0xff]   ;;  %v18706_v48 = vld [vmem:[%s25770_s4 + $0x1b4] ss:$8 sps:$4 sm:$0xff]  }
 0x33d   : > { %5154 = vmatprep.subr.bf16.mxu1 %v18694_v46  ;;  %v18707_v61 = vld [vmem:[%s25770_s4 + $0xa0] ss:$8 sps:$4 sm:$0xff]   ;;  %v18715_v11 = vld [vmem:[%s25770_s4 + $0x94] ss:$8 sps:$4 sm:$0xff]   ;;  %v18704_v10 = vld [vmem:[%s25770_s4 + $0x1b0] ss:$8 sps:$4 sm:$0xff]  }
 0x33e   : > { %v18712_v55 = vld [vmem:[%s25770_s4 + $0x1a4] ss:$8 sps:$4 sm:$0xff]   ;;  %v18713_v59 = vld [vmem:[%s25770_s4 + $0x90] ss:$8 sps:$4 sm:$0xff]   ;;  %v18710_v39 = vld [vmem:[%s25770_s4 + $0x1a0] ss:$8 sps:$4 sm:$0xff]  }
 0x33f   : > { %5114 = vmatpush2.bf16.msra.mxu0 %v18695_v38  ;;  %v18721_v60 = vld [vmem:[%s25770_s4 + $0x84] ss:$8 sps:$4 sm:$0xff]   ;;  %v18718_v42 = vld [vmem:[%s25770_s4 + $0x194] ss:$8 sps:$4 sm:$0xff]   ;;  %v18719_v62 = vld [vmem:[%s25770_s4 + $0x80] ss:$8 sps:$4 sm:$0xff]  }
 0x340   : > { %5115 = vmatprep.subr.bf16.mxu0 %v18703_v18  ;;  %5155 = vmatpush2.bf16.msra.mxu1 %v18692_v33  ;;  %v18727_v8 = vld [vmem:[%s25770_s4 + $0x474] ss:$8 sps:$4 sm:$0xff]   ;;  %v18716_v54 = vld [vmem:[%s25770_s4 + $0x190] ss:$8 sps:$4 sm:$0xff]   ;;  %v18724_v56 = vld [vmem:[%s25770_s4 + $0x184] ss:$8 sps:$4 sm:$0xff]  }
 0x341   : > { %5156 = vmatprep.subr.bf16.mxu1 %v18700_v41  ;;  %v18725_v47 = vld [vmem:[%s25770_s4 + $0x470] ss:$8 sps:$4 sm:$0xff]   ;;  %v18739_v28 = vld [vmem:[%s25770_s4 + $0x464] ss:$8 sps:$4 sm:$0xff]   ;;  %v18722_v34 = vld [vmem:[%s25770_s4 + $0x180] ss:$8 sps:$4 sm:$0xff]  }
 0x342   : > { %v18629_v27 = vld [vmem:[#allocation7] ss:$16 sps:$4 sm:$0xff]   ;;  %v18733_v24 = vld [vmem:[#allocation7 + $0x44] ss:$16 sps:$4 sm:$0xff]   ;;  %v18632_v14 = vld [vmem:[#allocation7 + $0x8] ss:$16 sps:$4 sm:$0xff]  }
 0x343   : > { %5116 = vmatpush2.bf16.msra.mxu0 %v18701_v45  ;;  %v18730_v57 = vld [vmem:[%s25770_s4 + $0x574] ss:$8 sps:$4 sm:$0xff]   ;;  %v18737_v7 = vld [vmem:[%s25770_s4 + $0x460] ss:$8 sps:$4 sm:$0xff]   ;;  %v18728_v19 = vld [vmem:[%s25770_s4 + $0x570] ss:$8 sps:$4 sm:$0xff]  }
 0x344   : > { %5117 = vmatprep.subr.bf16.mxu0 %v18709_v3  ;;  %5157 = vmatpush2.bf16.msra.mxu1 %v18698_v53  ;;  %v18745_v4 = vld [vmem:[%s25770_s4 + $0x454] ss:$8 sps:$4 sm:$0xff]   ;;  %v18742_v50 = vld [vmem:[%s25770_s4 + $0x564] ss:$8 sps:$4 sm:$0xff]   ;;  %v18743_v49 = vld [vmem:[%s25770_s4 + $0x450] ss:$8 sps:$4 sm:$0xff]  }
 0x345   : > { %5158 = vmatprep.subr.bf16.mxu1 %v18706_v48  ;;  %v18736_v22 = vld [vmem:[#allocation7 + $0x4c] ss:$16 sps:$4 sm:$0xff]   ;;  %v18740_v29 = vld [vmem:[%s25770_s4 + $0x560] ss:$8 sps:$4 sm:$0xff]   ;;  %v18746_v26 = vld [vmem:[%s25770_s4 + $0x550] ss:$8 sps:$4 sm:$0xff]  }
 0x346   : > { %v18751_v25 = vld [vmem:[%s25770_s4 + $0x444] ss:$8 sps:$4 sm:$0xff]   ;;  %v18748_v5 = vld [vmem:[%s25770_s4 + $0x554] ss:$8 sps:$4 sm:$0xff]   ;;  %v18749_v13 = vld [vmem:[%s25770_s4 + $0x440] ss:$8 sps:$4 sm:$0xff]  }
 0x347   : > { %5118 = vmatpush2.bf16.msra.mxu0 %v18707_v61  ;;  %v18757_v12 = vld [vmem:[%s25770_s4 + $0x434] ss:$8 sps:$4 sm:$0xff]   ;;  %v18754_v0 = vld [vmem:[%s25770_s4 + $0x544] ss:$8 sps:$4 sm:$0xff]   ;;  %v18755_v36 = vld [vmem:[%s25770_s4 + $0x430] ss:$8 sps:$4 sm:$0xff]  }
 0x348   : > { %5119 = vmatprep.subr.bf16.mxu0 %v18715_v11  ;;  %5159 = vmatpush2.bf16.msra.mxu1 %v18704_v10  ;;  %v18763_v40 = vld [vmem:[%s25770_s4 + $0x424] ss:$8 sps:$4 sm:$0xff]   ;;  %v18752_v23 = vld [vmem:[%s25770_s4 + $0x540] ss:$8 sps:$4 sm:$0xff]   ;;  %v18760_v44 = vld [vmem:[%s25770_s4 + $0x534] ss:$8 sps:$4 sm:$0xff]  }
 0x349   : > { %5160 = vmatprep.subr.bf16.mxu1 %v18712_v55  ;;  %v18761_v52 = vld [vmem:[%s25770_s4 + $0x420] ss:$8 sps:$4 sm:$0xff]   ;;  %v18769_v51 = vld [vmem:[%s25770_s4 + $0x414] ss:$8 sps:$4 sm:$0xff]   ;;  %v18758_v31 = vld [vmem:[%s25770_s4 + $0x530] ss:$8 sps:$4 sm:$0xff]  }
 0x34a   : > { %v18766_v15 = vld [vmem:[%s25770_s4 + $0x524] ss:$8 sps:$4 sm:$0xff]   ;;  %v18767_v17 = vld [vmem:[%s25770_s4 + $0x410] ss:$8 sps:$4 sm:$0xff]   ;;  %v18764_v63 = vld [vmem:[%s25770_s4 + $0x520] ss:$8 sps:$4 sm:$0xff]  }
 0x34b   : > { %5120 = vmatpush2.bf16.msra.mxu0 %v18713_v59  ;;  %v18775_v58 = vld [vmem:[%s25770_s4 + $0x404] ss:$8 sps:$4 sm:$0xff]   ;;  %v18772_v1 = vld [vmem:[%s25770_s4 + $0x514] ss:$8 sps:$4 sm:$0xff]   ;;  %v18773_v2 = vld [vmem:[%s25770_s4 + $0x400] ss:$8 sps:$4 sm:$0xff]  }
 0x34c   : > { %5121 = vmatprep.subr.bf16.mxu0 %v18721_v60  ;;  %5161 = vmatpush2.bf16.msra.mxu1 %v18710_v39  ;;  %v18781_v21 = vld [vmem:[%s25770_s4 + $0x4f4] ss:$8 sps:$4 sm:$0xff]   ;;  %v18770_v30 = vld [vmem:[%s25770_s4 + $0x510] ss:$8 sps:$4 sm:$0xff]   ;;  %v18778_v20 = vld [vmem:[%s25770_s4 + $0x504] ss:$8 sps:$4 sm:$0xff]  }
 0x34d   : > { %5162 = vmatprep.subr.bf16.mxu1 %v18718_v42  ;;  %v18779_v32 = vld [vmem:[%s25770_s4 + $0x4f0] ss:$8 sps:$4 sm:$0xff]   ;;  %v18787_v43 = vld [vmem:[%s25770_s4 + $0x4e4] ss:$8 sps:$4 sm:$0xff]   ;;  %v18776_v35 = vld [vmem:[%s25770_s4 + $0x500] ss:$8 sps:$4 sm:$0xff]  }
 0x34e   : > { %v18784_v16 = vld [vmem:[%s25770_s4 + $0x5f4] ss:$8 sps:$4 sm:$0xff]   ;;  %v18785_v37 = vld [vmem:[%s25770_s4 + $0x4e0] ss:$8 sps:$4 sm:$0xff]   ;;  %v18782_v9 = vld [vmem:[%s25770_s4 + $0x5f0] ss:$8 sps:$4 sm:$0xff]  }
 0x34f   : > { %5122 = vmatpush2.bf16.msra.mxu0 %v18719_v62  ;;  %v18793_v6 = vld [vmem:[%s25770_s4 + $0x4d4] ss:$8 sps:$4 sm:$0xff]   ;;  %v18790_v46 = vld [vmem:[%s25770_s4 + $0x5e4] ss:$8 sps:$4 sm:$0xff]   ;;  %v18791_v38 = vld [vmem:[%s25770_s4 + $0x4d0] ss:$8 sps:$4 sm:$0xff]  }
 0x350   : > { %5587 = vmatprep.subr.bf16.mxu0 %v18727_v8  ;;  %5163 = vmatpush2.bf16.msra.mxu1 %v18716_v54  ;;  %v18799_v18 = vld [vmem:[%s25770_s4 + $0x4c4] ss:$8 sps:$4 sm:$0xff]   ;;  %v18788_v33 = vld [vmem:[%s25770_s4 + $0x5e0] ss:$8 sps:$4 sm:$0xff]   ;;  %v18796_v41 = vld [vmem:[%s25770_s4 + $0x5d4] ss:$8 sps:$4 sm:$0xff]  }
 0x351   : > { %5164 = vmatprep.subr.bf16.mxu1 %v18724_v56  ;;  %v18797_v45 = vld [vmem:[%s25770_s4 + $0x4c0] ss:$8 sps:$4 sm:$0xff]   ;;  %v18805_v3 = vld [vmem:[%s25770_s4 + $0x4b4] ss:$8 sps:$4 sm:$0xff]   ;;  %v18794_v53 = vld [vmem:[%s25770_s4 + $0x5d0] ss:$8 sps:$4 sm:$0xff]  }
 0x352   : > { %5124 = vmatmul.mubr.bf16.vlgmr.msra.gmra.mxu0 %v18629_v27  ;;  %v18802_v48 = vld [vmem:[%s25770_s4 + $0x5c4] ss:$8 sps:$4 sm:$0xff]   ;;  %v18803_v61 = vld [vmem:[%s25770_s4 + $0x4b0] ss:$8 sps:$4 sm:$0xff]   ;;  %v18800_v10 = vld [vmem:[%s25770_s4 + $0x5c0] ss:$8 sps:$4 sm:$0xff]  }
 0x353   : > { %5588 = vmatpush1.bf16.msra.mxu0 %v18725_v47  ;;  %5619 = vmatprep.mubr.bf16.mxu0 %v18733_v24  ;;  %v18811_v11 = vld [vmem:[%s25770_s4 + $0x4a4] ss:$8 sps:$4 sm:$0xff]   ;;  %v18808_v55 = vld [vmem:[%s25770_s4 + $0x5b4] ss:$8 sps:$4 sm:$0xff]   ;;  %v18809_v59 = vld [vmem:[%s25770_s4 + $0x4a0] ss:$8 sps:$4 sm:$0xff]  }
 0x354   : > { %5589 = vmatprep.subr.bf16.mxu0 %v18739_v28  ;;  %5165 = vmatpush2.bf16.msra.mxu1 %v18722_v34  ;;  %v18817_v60 = vld [vmem:[%s25770_s4 + $0x494] ss:$8 sps:$4 sm:$0xff]   ;;  %v18806_v39 = vld [vmem:[%s25770_s4 + $0x5b0] ss:$8 sps:$4 sm:$0xff]   ;;  %v18814_v42 = vld [vmem:[%s25770_s4 + $0x5a4] ss:$8 sps:$4 sm:$0xff]  }
 0x355   : > { %5630 = vmatprep.subr.bf16.mxu1 %v18730_v57  ;;  %v18815_v62 = vld [vmem:[%s25770_s4 + $0x490] ss:$8 sps:$4 sm:$0xff]   ;;  %v18823_v8 = vld [vmem:[%s25770_s4 + $0x484] ss:$8 sps:$4 sm:$0xff]   ;;  %v18812_v54 = vld [vmem:[%s25770_s4 + $0x5a0] ss:$8 sps:$4 sm:$0xff]  }
 0x356   : > { %v18820_v56 = vld [vmem:[%s25770_s4 + $0x594] ss:$8 sps:$4 sm:$0xff]   ;;  %v18821_v47 = vld [vmem:[%s25770_s4 + $0x480] ss:$8 sps:$4 sm:$0xff]   ;;  %v18818_v28 = vld [vmem:[%s25770_s4 + $0x590] ss:$8 sps:$4 sm:$0xff]  }
 0x357   : > { %5590 = vmatpush1.bf16.msra.mxu0 %v18737_v7  ;;  %5167 = vmatmul.mubr.bf16.vlgmr.msra.gmra.mxu1 %v18632_v14  ;;  %v18829_v27 = vld [vmem:[%s25770_s4 + $0x674] ss:$8 sps:$4 sm:$0xff]   ;;  %v18826_v34 = vld [vmem:[%s25770_s4 + $0x584] ss:$8 sps:$4 sm:$0xff]   ;;  %v18827_v24 = vld [vmem:[%s25770_s4 + $0x670] ss:$8 sps:$4 sm:$0xff]  }
 0x358   : > { %5591 = vmatprep.subr.bf16.mxu0 %v18745_v4  ;;  %5631 = vmatpush1.bf16.msra.mxu1 %v18728_v19  ;;  %v18731_v57 = vld [vmem:[#allocation7 + $0x40] ss:$16 sps:$4 sm:$0xff]   ;;  %v18841_v7 = vld [vmem:[%s25770_s4 + $0x664] ss:$8 sps:$4 sm:$0xff]   ;;  %v18832_v14 = vld [vmem:[%s25770_s4 + $0x774] ss:$8 sps:$4 sm:$0xff]  }
 0x359   : > { %5662 = vmatprep.mubr.bf16.mxu1 %v18736_v22  ;;  %5632 = vmatprep.subr.bf16.mxu1 %v18742_v50  ;;  %v18824_v4 = vld [vmem:[%s25770_s4 + $0x580] ss:$8 sps:$4 sm:$0xff]   ;;  %v18835_v19 = vld [vmem:[#allocation7 + $0x64] ss:$16 sps:$4 sm:$0xff]  }
 0x35a   : > { %v18839_v50 = vld [vmem:[%s25770_s4 + $0x660] ss:$8 sps:$4 sm:$0xff]   ;;  %v18847_v22 = vld [vmem:[%s25770_s4 + $0x654] ss:$8 sps:$4 sm:$0xff]  }
 0x35b   : > { %5592 = vmatpush1.bf16.msra.mxu0 %v18743_v49  ;;  %v18830_v49 = vld [vmem:[%s25770_s4 + $0x770] ss:$8 sps:$4 sm:$0xff]  }
 0x35c   : > { %5593 = vmatprep.subr.bf16.mxu0 %v18751_v25  ;;  %5633 = vmatpush1.bf16.msra.mxu1 %v18740_v29  ;;  %v18734_v25 = vld [vmem:[#allocation7 + $0x48] ss:$16 sps:$4 sm:$0xff]   ;;  %v18844_v29 = vld [vmem:[%s25770_s4 + $0x764] ss:$8 sps:$4 sm:$0xff]  }
 0x35d   : > { %5634 = vmatprep.subr.bf16.mxu1 %v18748_v5  ;;  %v18838_v5 = vld [vmem:[#allocation7 + $0x6c] ss:$16 sps:$4 sm:$0xff]  }
 0x35f   : > { %5594 = vmatpush1.bf16.msra.mxu0 %v18749_v13  ;;  %v18845_v13 = vld [vmem:[%s25770_s4 + $0x650] ss:$8 sps:$4 sm:$0xff]  }
 0x360   : > { %5595 = vmatprep.subr.bf16.mxu0 %v18757_v12  ;;  %5635 = vmatpush1.bf16.msra.mxu1 %v18746_v26  ;;  %v18853_v12 = vld [vmem:[%s25770_s4 + $0x644] ss:$8 sps:$4 sm:$0xff]   ;;  %v18842_v26 = vld [vmem:[%s25770_s4 + $0x760] ss:$8 sps:$4 sm:$0xff]  }
 0x361   : > { %5636 = vmatprep.subr.bf16.mxu1 %v18754_v0  ;;  %v18850_v0 = vld [vmem:[%s25770_s4 + $0x754] ss:$8 sps:$4 sm:$0xff]  }
 0x363   : > { %5596 = vmatpush1.bf16.msra.mxu0 %v18755_v36  ;;  %v18851_v36 = vld [vmem:[%s25770_s4 + $0x640] ss:$8 sps:$4 sm:$0xff]  }
 0x364   : > { %5597 = vmatprep.subr.bf16.mxu0 %v18763_v40  ;;  %5637 = vmatpush1.bf16.msra.mxu1 %v18752_v23  ;;  %v18859_v40 = vld [vmem:[%s25770_s4 + $0x634] ss:$8 sps:$4 sm:$0xff]   ;;  %v18848_v23 = vld [vmem:[%s25770_s4 + $0x750] ss:$8 sps:$4 sm:$0xff]  }
 0x365   : > { %5638 = vmatprep.subr.bf16.mxu1 %v18760_v44  ;;  %v18856_v44 = vld [vmem:[%s25770_s4 + $0x744] ss:$8 sps:$4 sm:$0xff]  }
 0x367   : > { %5598 = vmatpush1.bf16.msra.mxu0 %v18761_v52  ;;  %v18857_v52 = vld [vmem:[%s25770_s4 + $0x630] ss:$8 sps:$4 sm:$0xff]  }
 0x368   : > { %5599 = vmatprep.subr.bf16.mxu0 %v18769_v51  ;;  %5639 = vmatpush1.bf16.msra.mxu1 %v18758_v31  ;;  %v18865_v51 = vld [vmem:[%s25770_s4 + $0x624] ss:$8 sps:$4 sm:$0xff]   ;;  %v18854_v31 = vld [vmem:[%s25770_s4 + $0x740] ss:$8 sps:$4 sm:$0xff]  }
 0x369   : > { %5640 = vmatprep.subr.bf16.mxu1 %v18766_v15  ;;  %v18862_v15 = vld [vmem:[%s25770_s4 + $0x734] ss:$8 sps:$4 sm:$0xff]  }
 0x36b   : > { %5600 = vmatpush1.bf16.msra.mxu0 %v18767_v17  ;;  %v18863_v17 = vld [vmem:[%s25770_s4 + $0x620] ss:$8 sps:$4 sm:$0xff]  }
 0x36c   : > { %5601 = vmatprep.subr.bf16.mxu0 %v18775_v58  ;;  %5641 = vmatpush1.bf16.msra.mxu1 %v18764_v63  ;;  %v18871_v58 = vld [vmem:[%s25770_s4 + $0x614] ss:$8 sps:$4 sm:$0xff]   ;;  %v18860_v63 = vld [vmem:[%s25770_s4 + $0x730] ss:$8 sps:$4 sm:$0xff]  }
 0x36d   : > { %5642 = vmatprep.subr.bf16.mxu1 %v18772_v1  ;;  %v18868_v1 = vld [vmem:[%s25770_s4 + $0x724] ss:$8 sps:$4 sm:$0xff]  }
 0x36f   : > { %5602 = vmatpush1.bf16.msra.mxu0 %v18773_v2  ;;  %v18869_v2 = vld [vmem:[%s25770_s4 + $0x610] ss:$8 sps:$4 sm:$0xff]  }
 0x370   : > { %5603 = vmatprep.subr.bf16.mxu0 %v18781_v21  ;;  %5643 = vmatpush1.bf16.msra.mxu1 %v18770_v30  ;;  %v18877_v21 = vld [vmem:[%s25770_s4 + $0x604] ss:$8 sps:$4 sm:$0xff]   ;;  %v18866_v30 = vld [vmem:[%s25770_s4 + $0x720] ss:$8 sps:$4 sm:$0xff]  }
 0x371   : > { %5644 = vmatprep.subr.bf16.mxu1 %v18778_v20  ;;  %v18874_v20 = vld [vmem:[%s25770_s4 + $0x714] ss:$8 sps:$4 sm:$0xff]  }
 0x373   : > { %5604 = vmatpush2.bf16.msra.mxu0 %v18779_v32  ;;  %v18875_v32 = vld [vmem:[%s25770_s4 + $0x600] ss:$8 sps:$4 sm:$0xff]  }
 0x374   : > { %5605 = vmatprep.subr.bf16.mxu0 %v18787_v43  ;;  %5645 = vmatpush1.bf16.msra.mxu1 %v18776_v35  ;;  %v18883_v43 = vld [vmem:[%s25770_s4 + $0x6f4] ss:$8 sps:$4 sm:$0xff]   ;;  %v18872_v35 = vld [vmem:[%s25770_s4 + $0x710] ss:$8 sps:$4 sm:$0xff]  }
 0x375   : > { %5646 = vmatprep.subr.bf16.mxu1 %v18784_v16  ;;  %v18880_v16 = vld [vmem:[%s25770_s4 + $0x704] ss:$8 sps:$4 sm:$0xff]  }
 0x377   : > { %5606 = vmatpush2.bf16.msra.mxu0 %v18785_v37  ;;  %v18881_v37 = vld [vmem:[%s25770_s4 + $0x6f0] ss:$8 sps:$4 sm:$0xff]  }
 0x378   : > { %5607 = vmatprep.subr.bf16.mxu0 %v18793_v6  ;;  %5647 = vmatpush2.bf16.msra.mxu1 %v18782_v9  ;;  %v18889_v6 = vld [vmem:[%s25770_s4 + $0x6e4] ss:$8 sps:$4 sm:$0xff]   ;;  %v18878_v9 = vld [vmem:[%s25770_s4 + $0x700] ss:$8 sps:$4 sm:$0xff]  }
 0x379   : > { %5648 = vmatprep.subr.bf16.mxu1 %v18790_v46  ;;  %v18886_v46 = vld [vmem:[%s25770_s4 + $0x7f4] ss:$8 sps:$4 sm:$0xff]  }
 0x37b   : > { %5608 = vmatpush2.bf16.msra.mxu0 %v18791_v38  ;;  %v18887_v38 = vld [vmem:[%s25770_s4 + $0x6e0] ss:$8 sps:$4 sm:$0xff]  }
 0x37c   : > { %5609 = vmatprep.subr.bf16.mxu0 %v18799_v18  ;;  %5649 = vmatpush2.bf16.msra.mxu1 %v18788_v33  ;;  %v18895_v18 = vld [vmem:[%s25770_s4 + $0x6d4] ss:$8 sps:$4 sm:$0xff]   ;;  %v18884_v33 = vld [vmem:[%s25770_s4 + $0x7f0] ss:$8 sps:$4 sm:$0xff]  }
 0x37d   : > { %5650 = vmatprep.subr.bf16.mxu1 %v18796_v41  ;;  %v18892_v41 = vld [vmem:[%s25770_s4 + $0x7e4] ss:$8 sps:$4 sm:$0xff]  }
 0x37f   : > { %5610 = vmatpush2.bf16.msra.mxu0 %v18797_v45  ;;  %v18893_v45 = vld [vmem:[%s25770_s4 + $0x6d0] ss:$8 sps:$4 sm:$0xff]  }
 0x380   : > { %5611 = vmatprep.subr.bf16.mxu0 %v18805_v3  ;;  %5651 = vmatpush2.bf16.msra.mxu1 %v18794_v53  ;;  %v18901_v3 = vld [vmem:[%s25770_s4 + $0x6c4] ss:$8 sps:$4 sm:$0xff]   ;;  %v18890_v53 = vld [vmem:[%s25770_s4 + $0x7e0] ss:$8 sps:$4 sm:$0xff]  }
 0x381   : > { %5652 = vmatprep.subr.bf16.mxu1 %v18802_v48  ;;  %v18898_v48 = vld [vmem:[%s25770_s4 + $0x7d4] ss:$8 sps:$4 sm:$0xff]  }
 0x383   : > { %5612 = vmatpush2.bf16.msra.mxu0 %v18803_v61  ;;  %v18899_v61 = vld [vmem:[%s25770_s4 + $0x6c0] ss:$8 sps:$4 sm:$0xff]  }
 0x384   : > { %5613 = vmatprep.subr.bf16.mxu0 %v18811_v11  ;;  %5653 = vmatpush2.bf16.msra.mxu1 %v18800_v10  ;;  %v18907_v11 = vld [vmem:[%s25770_s4 + $0x6b4] ss:$8 sps:$4 sm:$0xff]   ;;  %v18896_v10 = vld [vmem:[%s25770_s4 + $0x7d0] ss:$8 sps:$4 sm:$0xff]  }
 0x385   : > { %5654 = vmatprep.subr.bf16.mxu1 %v18808_v55  ;;  %v18904_v55 = vld [vmem:[%s25770_s4 + $0x7c4] ss:$8 sps:$4 sm:$0xff]  }
 0x387   : > { %5614 = vmatpush2.bf16.msra.mxu0 %v18809_v59  ;;  %v18905_v59 = vld [vmem:[%s25770_s4 + $0x6b0] ss:$8 sps:$4 sm:$0xff]  }
 0x388   : > { %5615 = vmatprep.subr.bf16.mxu0 %v18817_v60  ;;  %5655 = vmatpush2.bf16.msra.mxu1 %v18806_v39  ;;  %v18913_v60 = vld [vmem:[%s25770_s4 + $0x6a4] ss:$8 sps:$4 sm:$0xff]   ;;  %v18902_v39 = vld [vmem:[%s25770_s4 + $0x7c0] ss:$8 sps:$4 sm:$0xff]  }
 0x389   : > { %5656 = vmatprep.subr.bf16.mxu1 %v18814_v42  ;;  %v18910_v42 = vld [vmem:[%s25770_s4 + $0x7b4] ss:$8 sps:$4 sm:$0xff]  }
 0x38b   : > { %5616 = vmatpush2.bf16.msra.mxu0 %v18815_v62  ;;  %v18911_v62 = vld [vmem:[%s25770_s4 + $0x6a0] ss:$8 sps:$4 sm:$0xff]  }
 0x38c   : > { %5617 = vmatprep.subr.bf16.mxu0 %v18823_v8  ;;  %5657 = vmatpush2.bf16.msra.mxu1 %v18812_v54  ;;  %v18919_v8 = vld [vmem:[%s25770_s4 + $0x694] ss:$8 sps:$4 sm:$0xff]   ;;  %v18908_v54 = vld [vmem:[%s25770_s4 + $0x7b0] ss:$8 sps:$4 sm:$0xff]  }
 0x38d   : > { %5658 = vmatprep.subr.bf16.mxu1 %v18820_v56  ;;  %v18916_v56 = vld [vmem:[%s25770_s4 + $0x7a4] ss:$8 sps:$4 sm:$0xff]  }
 0x38f   : > { %5618 = vmatpush2.bf16.msra.mxu0 %v18821_v47  ;;  %v18917_v47 = vld [vmem:[%s25770_s4 + $0x690] ss:$8 sps:$4 sm:$0xff]  }
 0x390   : > { %6087 = vmatprep.subr.bf16.mxu0 %v18829_v27  ;;  %5659 = vmatpush2.bf16.msra.mxu1 %v18818_v28  ;;  %v18925_v27 = vld [vmem:[%s25770_s4 + $0x684] ss:$8 sps:$4 sm:$0xff]   ;;  %v18914_v28 = vld [vmem:[%s25770_s4 + $0x7a0] ss:$8 sps:$4 sm:$0xff]  }
 0x391   : > { %5660 = vmatprep.subr.bf16.mxu1 %v18826_v34  ;;  %v18922_v34 = vld [vmem:[%s25770_s4 + $0x794] ss:$8 sps:$4 sm:$0xff]  }
 0x392   : > { %5620 = vmatmul.mubr.bf16.vlgmr.msra.gmra.mxu0 %v18731_v57  ;;  %v18920_v57 = vld [vmem:[%s25770_s4 + $0x790] ss:$8 sps:$4 sm:$0xff]  }
 0x393   : > { %6088 = vmatpush1.bf16.msra.mxu0 %v18827_v24  ;;  %6119 = vmatprep.mubr.bf16.mxu0 %v18835_v19  ;;  %v18923_v24 = vld [vmem:[%s25770_s4 + $0x680] ss:$8 sps:$4 sm:$0xff]  }
 0x394   : > { %6089 = vmatprep.subr.bf16.mxu0 %v18841_v7  ;;  %5661 = vmatpush2.bf16.msra.mxu1 %v18824_v4  ;;  %v18928_v7 = vld [vmem:[%s25770_s4 + $0x784] ss:$8 sps:$4 sm:$0xff]   ;;  %v18833_v4 = vld [vmem:[#allocation7 + $0x60] ss:$16 sps:$4 sm:$0xff]  }
 0x395   : > { %6130 = vmatprep.subr.bf16.mxu1 %v18832_v14  ;;  %v18926_v19 = vld [vmem:[%s25770_s4 + $0x780] ss:$8 sps:$4 sm:$0xff]  }
 0x396   : > { %v18836_v14 = vld [vmem:[#allocation7 + $0x68] ss:$16 sps:$4 sm:$0xff]  }
 0x397   : > { %6090 = vmatpush1.bf16.msra.mxu0 %v18839_v50  ;;  %5663 = vmatmul.mubr.bf16.vlgmr.msra.gmra.mxu1 %v18734_v25  ;;  %v6243_v50 = vlaneseq  ;;  %v20487_v25 = vld [vmem:[#allocation2 + $0x8] sm:$0xff] }
 0x398   : > { %6091 = vmatprep.subr.bf16.mxu0 %v18847_v22  ;;  %6131 = vmatpush1.bf16.msra.mxu1 %v18830_v49  ;;  %v18931_v22 = vld [vmem:[%s25771_s5 + $0x8e4] ss:$16 sps:$4 sm:$0xff]  }
 0x399   : > { %6162 = vmatprep.mubr.bf16.mxu1 %v18838_v5  ;;  %6132 = vmatprep.subr.bf16.mxu1 %v18844_v29  ;;  %vm6245_vm8 = vcmp.lt.s32.totalorder %v6243_v50, 256  ;;  %v18934_v49 = vld [vmem:[%s25771_s5 + $0xae4] ss:$16 sps:$4 sm:$0xff]   ;;  %v18929_v29 = vld [vmem:[%s25771_s5 + $0x8e0] ss:$16 sps:$4 sm:$0xff]   ;;  %vm14555_vm13 = vcmp.lt.s32.totalorder %v6243_v50, 512 }
 0x39a   : > { %6256 = vst.msk [vmem:[#allocation4 + $0x30] ss:$8 sm:$0x3] %vm6245_vm8, %v20487_v25  ;;  %6259 = vst.msk [vmem:[#allocation4 + $0x40] ss:$8 sm:$0x3] %vm6245_vm8, %v20487_v25 }
 0x39b   : > { %6092 = vmatpush1.bf16.msra.mxu0 %v18845_v13  ;;  %6274 = vst.msk [vmem:[#allocation4 + $0x35] ss:$8 sm:$0x3] %vm6245_vm8, %v20487_v25  ;;  %6277 = vst.msk [vmem:[#allocation4 + $0x45] ss:$8 sm:$0x3] %vm6245_vm8, %v20487_v25 }
 0x39c   : > { %6093 = vmatprep.subr.bf16.mxu0 %v18853_v12  ;;  %6133 = vmatpush1.bf16.msra.mxu1 %v18842_v26  ;;  %6247 = vst.msk [vmem:[#allocation4] ss:$8 sm:$0x3] %vm6245_vm8, %v20487_v25  ;;  %6250 = vst.msk [vmem:[#allocation4 + $0x10] ss:$8 sm:$0x3] %vm6245_vm8, %v20487_v25 }
 0x39d   : > { %6134 = vmatprep.subr.bf16.mxu1 %v18850_v0  ;;  %6253 = vst.msk [vmem:[#allocation4 + $0x20] ss:$8 sm:$0x3] %vm6245_vm8, %v20487_v25  ;;  %6262 = vst.msk [vmem:[#allocation4 + $0x50] ss:$8 sm:$0x3] %vm6245_vm8, %v20487_v25 }
 0x39e   : > { %6265 = vst.msk [vmem:[#allocation4 + $0x5] ss:$8 sm:$0x3] %vm6245_vm8, %v20487_v25  ;;  %6268 = vst.msk [vmem:[#allocation4 + $0x15] ss:$8 sm:$0x3] %vm6245_vm8, %v20487_v25 }
 0x39f   : > { %6094 = vmatpush1.bf16.msra.mxu0 %v18851_v36  ;;  %6271 = vst.msk [vmem:[#allocation4 + $0x25] ss:$8 sm:$0x3] %vm6245_vm8, %v20487_v25  ;;  %6280 = vst.msk [vmem:[#allocation4 + $0x55] ss:$8 sm:$0x3] %vm6245_vm8, %v20487_v25 }
 0x3a0   : > { %6095 = vmatprep.subr.bf16.mxu0 %v18859_v40  ;;  %6135 = vmatpush1.bf16.msra.mxu1 %v18848_v23  ;;  %v18932_v5 = vld [vmem:[%s25771_s5 + $0xae0] ss:$16 sps:$4 sm:$0xff]   ;;  %v18937_v13 = vld [vmem:[%s25771_s5 + $0x8c4] ss:$16 sps:$4 sm:$0xff]  }
 0x3a1   : > { %6136 = vmatprep.subr.bf16.mxu1 %v18856_v44  ;;  %v18940_v12 = vld [vmem:[%s25771_s5 + $0xac4] ss:$16 sps:$4 sm:$0xff]   ;;  %v18935_v26 = vld [vmem:[%s25771_s5 + $0x8c0] ss:$16 sps:$4 sm:$0xff]  }
 0x3a2   : > { %v18938_v0 = vld [vmem:[%s25771_s5 + $0xac0] ss:$16 sps:$4 sm:$0xff]   ;;  %v18943_v36 = vld [vmem:[%s25771_s5 + $0x8a4] ss:$16 sps:$4 sm:$0xff]  }
 0x3a3   : > { %6096 = vmatpush1.bf16.msra.mxu0 %v18857_v52  ;;  %v18946_v40 = vld [vmem:[%s25771_s5 + $0xaa4] ss:$16 sps:$4 sm:$0xff]   ;;  %v18941_v23 = vld [vmem:[%s25771_s5 + $0x8a0] ss:$16 sps:$4 sm:$0xff]  }
 0x3a4   : > { %6097 = vmatprep.subr.bf16.mxu0 %v18865_v51  ;;  %6137 = vmatpush1.bf16.msra.mxu1 %v18854_v31  ;;  %v18944_v44 = vld [vmem:[%s25771_s5 + $0xaa0] ss:$16 sps:$4 sm:$0xff]   ;;  %v18949_v52 = vld [vmem:[%s25771_s5 + $0x884] ss:$16 sps:$4 sm:$0xff]  }
 0x3a5   : > { %6138 = vmatprep.subr.bf16.mxu1 %v18862_v15  ;;  %v18952_v51 = vld [vmem:[%s25771_s5 + $0xa84] ss:$16 sps:$4 sm:$0xff]   ;;  %v18947_v15 = vld [vmem:[%s25771_s5 + $0x880] ss:$16 sps:$4 sm:$0xff]  }
 0x3a6   : > { %v19003_v25 = vld [vmem:[%s25771_s5 + $0x964] ss:$16 sps:$4 sm:$0xff]  }
 0x3a7   : > { %6098 = vmatpush1.bf16.msra.mxu0 %v18863_v17  ;;  %v18950_v17 = vld [vmem:[%s25771_s5 + $0xa80] ss:$16 sps:$4 sm:$0xff]  }
 0x3a8   : > { %6099 = vmatprep.subr.bf16.mxu0 %v18871_v58  ;;  %6139 = vmatpush1.bf16.msra.mxu1 %v18860_v63  ;;  %v18955_v58 = vld [vmem:[%s25771_s5 + $0x864] ss:$16 sps:$4 sm:$0xff]  }
 0x3a9   : > { %6140 = vmatprep.subr.bf16.mxu1 %v18868_v1  ;;  %v18958_v63 = vld [vmem:[%s25771_s5 + $0xa64] ss:$16 sps:$4 sm:$0xff]  }
 0x3ab   : > { %6100 = vmatpush1.bf16.msra.mxu0 %v18869_v2  ;;  %v18953_v2 = vld [vmem:[%s25771_s5 + $0x860] ss:$16 sps:$4 sm:$0xff]  }
 0x3ac   : > { %6101 = vmatprep.subr.bf16.mxu0 %v18877_v21  ;;  %6141 = vmatpush1.bf16.msra.mxu1 %v18866_v30  ;;  %v18956_v21 = vld [vmem:[%s25771_s5 + $0xa60] ss:$16 sps:$4 sm:$0xff]   ;;  %v18961_v30 = vld [vmem:[%s25771_s5 + $0x844] ss:$16 sps:$4 sm:$0xff]  }
 0x3ad   : > { %6142 = vmatprep.subr.bf16.mxu1 %v18874_v20 }
 0x3af   : > { %6102 = vmatpush1.bf16.msra.mxu0 %v18875_v32  ;;  %v18959_v32 = vld [vmem:[%s25771_s5 + $0x840] ss:$16 sps:$4 sm:$0xff]  }
 0x3b0   : > { %6103 = vmatprep.subr.bf16.mxu0 %v18883_v43  ;;  %6143 = vmatpush1.bf16.msra.mxu1 %v18872_v35  ;;  %v18962_v43 = vld [vmem:[%s25771_s5 + $0xa40] ss:$16 sps:$4 sm:$0xff]   ;;  %v18964_v35 = vld [vmem:[%s25771_s5 + $0xa44] ss:$16 sps:$4 sm:$0xff]  }
 0x3b1   : > { %6144 = vmatprep.subr.bf16.mxu1 %v18880_v16  ;;  %v18967_v16 = vld [vmem:[%s25771_s5 + $0x824] ss:$16 sps:$4 sm:$0xff]  }
 0x3b3   : > { %6104 = vmatpush2.bf16.msra.mxu0 %v18881_v37  ;;  %v18970_v37 = vld [vmem:[%s25771_s5 + $0xa24] ss:$16 sps:$4 sm:$0xff]  }
 0x3b4   : > { %6105 = vmatprep.subr.bf16.mxu0 %v18889_v6  ;;  %6145 = vmatpush1.bf16.msra.mxu1 %v18878_v9 }
 0x3b5   : > { %6146 = vmatprep.subr.bf16.mxu1 %v18886_v46  ;;  %v18965_v46 = vld [vmem:[%s25771_s5 + $0x820] ss:$16 sps:$4 sm:$0xff]  }
 0x3b7   : > { %6106 = vmatpush2.bf16.msra.mxu0 %v18887_v38  ;;  %v18968_v38 = vld [vmem:[%s25771_s5 + $0xa20] ss:$16 sps:$4 sm:$0xff]  }
 0x3b8   : > { %6107 = vmatprep.subr.bf16.mxu0 %v18895_v18  ;;  %6147 = vmatpush2.bf16.msra.mxu1 %v18884_v33  ;;  %v18973_v18 = vld [vmem:[%s25771_s5 + $0x804] ss:$16 sps:$4 sm:$0xff]  }
 0x3b9   : > { %6148 = vmatprep.subr.bf16.mxu1 %v18892_v41  ;;  %v18976_v33 = vld [vmem:[%s25771_s5 + $0xa04] ss:$16 sps:$4 sm:$0xff]  }
 0x3bb   : > { %6108 = vmatpush2.bf16.msra.mxu0 %v18893_v45 }
 0x3bc   : > { %6109 = vmatprep.subr.bf16.mxu0 %v18901_v3  ;;  %6149 = vmatpush2.bf16.msra.mxu1 %v18890_v53  ;;  %v18971_v53 = vld [vmem:[%s25771_s5 + $0x800] ss:$16 sps:$4 sm:$0xff]  }
 0x3bd   : > { %6150 = vmatprep.subr.bf16.mxu1 %v18898_v48  ;;  %v18974_v48 = vld [vmem:[%s25771_s5 + $0xa00] ss:$16 sps:$4 sm:$0xff]  }
 0x3bf   : > { %6110 = vmatpush2.bf16.msra.mxu0 %v18899_v61  ;;  %v18979_v61 = vld [vmem:[%s25771_s5 + $0x9e4] ss:$16 sps:$4 sm:$0xff]  }
 0x3c0   : > { %6111 = vmatprep.subr.bf16.mxu0 %v18907_v11  ;;  %6151 = vmatpush2.bf16.msra.mxu1 %v18896_v10  ;;  %v18982_v11 = vld [vmem:[%s25771_s5 + $0xbe4] ss:$16 sps:$4 sm:$0xff]  }
 0x3c1   : > { %6152 = vmatprep.subr.bf16.mxu1 %v18904_v55 }
 0x3c3   : > { %6112 = vmatpush2.bf16.msra.mxu0 %v18905_v59  ;;  %v18977_v59 = vld [vmem:[%s25771_s5 + $0x9e0] ss:$16 sps:$4 sm:$0xff]  }
 0x3c4   : > { %6113 = vmatprep.subr.bf16.mxu0 %v18913_v60  ;;  %6153 = vmatpush2.bf16.msra.mxu1 %v18902_v39  ;;  %v18980_v60 = vld [vmem:[%s25771_s5 + $0xbe0] ss:$16 sps:$4 sm:$0xff]   ;;  %v18985_v39 = vld [vmem:[%s25771_s5 + $0x9c4] ss:$16 sps:$4 sm:$0xff]  }
 0x3c5   : > { %6154 = vmatprep.subr.bf16.mxu1 %v18910_v42  ;;  %v18988_v42 = vld [vmem:[%s25771_s5 + $0xbc4] ss:$16 sps:$4 sm:$0xff]  }
 0x3c7   : > { %6114 = vmatpush2.bf16.msra.mxu0 %v18911_v62 }
 0x3c8   : > { %6115 = vmatprep.subr.bf16.mxu0 %v18919_v8  ;;  %6155 = vmatpush2.bf16.msra.mxu1 %v18908_v54  ;;  %v18983_v54 = vld [vmem:[%s25771_s5 + $0x9c0] ss:$16 sps:$4 sm:$0xff]  }
 0x3c9   : > { %6156 = vmatprep.subr.bf16.mxu1 %v18916_v56  ;;  %v18986_v56 = vld [vmem:[%s25771_s5 + $0xbc0] ss:$16 sps:$4 sm:$0xff]  }
 0x3cb   : > { %6116 = vmatpush2.bf16.msra.mxu0 %v18917_v47  ;;  %v22245_v31 = vpop.f32.mrf.mxu0  ;;  %v18991_v47 = vld [vmem:[%s25771_s5 + $0x9a4] ss:$16 sps:$4 sm:$0xff]  }
 0x3cc   : > { %6117 = vmatprep.subr.bf16.mxu0 %v18925_v27  ;;  %6157 = vmatpush2.bf16.msra.mxu1 %v18914_v28  ;;  %v18994_v27 = vld [vmem:[%s25771_s5 + $0xba4] ss:$16 sps:$4 sm:$0xff]  }
 0x3cd   : > { %6158 = vmatprep.subr.bf16.mxu1 %v18922_v34  ;;  %v22259_v1 = vpop.f32.mrf.mxu0 }
 0x3cf   : > { %6118 = vmatpush2.bf16.msra.mxu0 %v18923_v24  ;;  %v22287_v6 = vpop.f32.mrf.mxu0  ;;  %v18989_v24 = vld [vmem:[%s25771_s5 + $0x9a0] ss:$16 sps:$4 sm:$0xff]  }
 0x3d0   : > { %6159 = vmatpush2.bf16.msra.mxu1 %v18920_v57  ;;  %8620 = vmatprep.subr.bf16.mxu0 %v18931_v22  ;;  %v18992_v57 = vld [vmem:[%s25771_s5 + $0xba0] ss:$16 sps:$4 sm:$0xff]  }
 0x3d1   : > { %6160 = vmatprep.subr.bf16.mxu1 %v18928_v7  ;;  %v22303_v41 = vpop.f32.mrf.mxu0  ;;  %v18997_v7 = vld [vmem:[%s25771_s5 + $0x984] ss:$16 sps:$4 sm:$0xff]   ;;  %v18995_v22 = vld [vmem:[%s25771_s5 + $0x980] ss:$16 sps:$4 sm:$0xff]  }
 0x3d2   : > { %6120 = vmatmul.mubr.bf16.vlgmr.msra.gmra.mxu0 %v18833_v4  ;;  %v22270_v20 = vpop.f32.mrf.mxu1  ;;  %v19000_v4 = vld [vmem:[%s25771_s5 + $0xb84] ss:$16 sps:$4 sm:$0xff]  }
 0x3d3   : > { %8621 = vmatpush1.bf16.msra.mxu0 %v18929_v29  ;;  %v19006_v29 = vld [vmem:[%s25771_s5 + $0xb64] ss:$16 sps:$4 sm:$0xff]  }
 0x3d4   : > { %6161 = vmatpush2.bf16.msra.mxu1 %v18926_v19  ;;  %8622 = vmatprep.subr.bf16.mxu0 %v18937_v13  ;;  %v22289_v9 = vpop.f32.mrf.mxu1 }
 0x3d5   : > { %8663 = vmatprep.subr.bf16.mxu1 %v18934_v49  ;;  %v18998_v49 = vld [vmem:[%s25771_s5 + $0xb80] ss:$16 sps:$4 sm:$0xff]  }
 0x3d6   : > { %v22305_v45 = vpop.f32.mrf.mxu1 }
 0x3d7   : > { %6163 = vmatmul.mubr.bf16.vlgmr.msra.gmra.mxu1 %v18836_v14  ;;  %8623 = vmatpush1.bf16.msra.mxu0 %v18935_v26  ;;  %v19001_v26 = vld [vmem:[%s25771_s5 + $0x960] ss:$16 sps:$4 sm:$0xff]  }
 0x3d8   : > { %8664 = vmatpush1.bf16.msra.mxu1 %v18932_v5  ;;  %8624 = vmatprep.subr.bf16.mxu0 %v18943_v36  ;;  %v22321_v10 = vpop.f32.mrf.mxu1  ;;  %v19009_v36 = vld [vmem:[%s25771_s5 + $0x944] ss:$16 sps:$4 sm:$0xff]  }
 0x3d9   : > { %8665 = vmatprep.subr.bf16.mxu1 %v18940_v12 }
 0x3db   : > { %8625 = vmatpush1.bf16.msra.mxu0 %v18941_v23 }
 0x3dc   : > { %8666 = vmatpush1.bf16.msra.mxu1 %v18938_v0  ;;  %8626 = vmatprep.subr.bf16.mxu0 %v18949_v52  ;;  %v19004_v0 = vld [vmem:[%s25771_s5 + $0xb60] ss:$16 sps:$4 sm:$0xff]  }
 0x3dd   : > { %8667 = vmatprep.subr.bf16.mxu1 %v18946_v40  ;;  %v19012_v40 = vld [vmem:[%s25771_s5 + $0xb44] ss:$16 sps:$4 sm:$0xff]   ;;  %v19007_v52 = vld [vmem:[%s25771_s5 + $0x940] ss:$16 sps:$4 sm:$0xff]  }
 0x3df   : > { %8627 = vmatpush1.bf16.msra.mxu0 %v18947_v15  ;;  %v19015_v15 = vld [vmem:[%s25771_s5 + $0x924] ss:$16 sps:$4 sm:$0xff]  }
 0x3e0   : > { %8668 = vmatpush1.bf16.msra.mxu1 %v18944_v44  ;;  %8628 = vmatprep.subr.bf16.mxu0 %v18955_v58  ;;  %v6330_v58 = vld [vmem:[#allocation4] sm:$0xe] }
 0x3e1   : > { %8669 = vmatprep.subr.bf16.mxu1 %v18952_v51  ;;  %v19010_v51 = vld [vmem:[%s25771_s5 + $0xb40] ss:$16 sps:$4 sm:$0xff]  }
 0x3e3   : > { %8629 = vmatpush1.bf16.msra.mxu0 %v18953_v2 }
 0x3e4   : > { %8670 = vmatpush1.bf16.msra.mxu1 %v18950_v17  ;;  %8630 = vmatprep.subr.bf16.mxu0 %v18961_v30  ;;  %v19018_v17 = vld [vmem:[%s25771_s5 + $0xb24] ss:$16 sps:$4 sm:$0xff]   ;;  %v6314_v30 = vld [vmem:[#allocation4] sm:$0x7] }
 0x3e5   : > { %8671 = vmatprep.subr.bf16.mxu1 %v18958_v63  ;;  %v6370_v63 = vld [vmem:[#allocation4] sm:$0x1c]  ;;  %6322 = vst [vmem:[#allocation8 + $0x1a0] sm:$0x7] %v6314_v30 }
 0x3e7   : > { %8631 = vmatpush1.bf16.msra.mxu0 %v18959_v32  ;;  %v6346_v32 = vrot.slane %v6330_v58, 1 }
 0x3e8   : > { %8672 = vmatpush1.bf16.msra.mxu1 %v18956_v21  ;;  %8632 = vmatprep.subr.bf16.mxu0 %v18967_v16  ;;  %v6331_v21 = vld [vmem:[#allocation4 + $0x8] sm:$0xe] }
 0x3e9   : > { %8673 = vmatprep.subr.bf16.mxu1 %v18964_v35  ;;  %v6347_v35 = vrot.slane %v6331_v21, 1  ;;  %v6371_v16 = vld [vmem:[#allocation4 + $0x8] sm:$0x1c]  ;;  %6362 = vst [vmem:[#allocation8 + $0x60] sm:$0x7] %v6346_v32 }
 0x3eb   : > { %8633 = vmatpush1.bf16.msra.mxu0 %v18965_v46  ;;  %6363 = vst [vmem:[#allocation8 + $0xc0] sm:$0x7] %v6347_v35 }
 0x3ec   : > { %8674 = vmatpush1.bf16.msra.mxu1 %v18962_v43  ;;  %8634 = vmatprep.subr.bf16.mxu0 %v18973_v18  ;;  %v6386_v43 = vrot.slane %v6370_v63, 2  ;;  %v19013_v18 = vld [vmem:[%s25771_s5 + $0x920] ss:$16 sps:$4 sm:$0xff]  }
 0x3ed   : > { %8675 = vmatprep.subr.bf16.mxu1 %v18970_v37  ;;  %v6411_v37 = vld [vmem:[#allocation4 + $0x8] sm:$0x38] }
 0x3ee   : > { %6402 = vst [vmem:[#allocation8 + $0x130] sm:$0x7] %v6386_v43 }
 0x3ef   : > { %8635 = vmatpush1.bf16.msra.mxu0 %v18971_v53  ;;  %v19021_v53 = vld [vmem:[%s25771_s5 + $0x904] ss:$16 sps:$4 sm:$0xff]  }
 0x3f0   : > { %8676 = vmatpush1.bf16.msra.mxu1 %v18968_v38  ;;  %8636 = vmatprep.subr.bf16.mxu0 %v18979_v61  ;;  %v6315_v61 = vld [vmem:[#allocation4 + $0x8] sm:$0x7] }
 0x3f1   : > { %8677 = vmatprep.subr.bf16.mxu1 %v18976_v33  ;;  %v19016_v33 = vld [vmem:[%s25771_s5 + $0xb20] ss:$16 sps:$4 sm:$0xff]   ;;  %6323 = vst [vmem:[#allocation8 + $0x1e0] sm:$0x7] %v6315_v61 }
 0x3f3   : > { %8637 = vmatpush2.bf16.msra.mxu0 %v18977_v59  ;;  %v6427_v59 = vrot.slane %v6411_v37, 3  ;;  %v6593_v37 = vld [vmem:[#allocation4 + $0x58] sm:$0x7] }
 0x3f4   : > { %8678 = vmatpush1.bf16.msra.mxu1 %v18974_v48  ;;  %8638 = vmatprep.subr.bf16.mxu0 %v18985_v39  ;;  %v19024_v48 = vld [vmem:[%s25771_s5 + $0xb04] ss:$16 sps:$4 sm:$0xff]  }
 0x3f5   : > { %8679 = vmatprep.subr.bf16.mxu1 %v18982_v11  ;;  %v6387_v11 = vrot.slane %v6371_v16, 2  ;;  %6443 = vst [vmem:[#allocation8 + $0x1b8] sm:$0x7] %v6427_v59 }
 0x3f7   : > { %8639 = vmatpush2.bf16.msra.mxu0 %v18983_v54  ;;  %v4747_v54 = vadd.f32 %v22305_v45, %v22287_v6  ;;  %6403 = vst [vmem:[#allocation8 + $0x68] sm:$0x7] %v6387_v11  ;;  %v6640_v11 = vld [vmem:[#allocation4 + $0x50] sm:$0xe] }
 0x3f8   : > { %8680 = vmatpush2.bf16.msra.mxu1 %v18980_v60  ;;  %8640 = vmatprep.subr.bf16.mxu0 %v18991_v47  ;;  %v4743_v60 = vadd.f32 %v22270_v20, %v22245_v31  ;;  %v4745_v47 = vadd.f32 %v22289_v9, %v22259_v1  ;;  %v19019_v31 = vld [vmem:[%s25771_s5 + $0x900] ss:$16 sps:$4 sm:$0xff]   ;;  %v19027_v1 = vld [vmem:[%s25771_s5 + $0xce4] ss:$16 sps:$4 sm:$0xff]  }
 0x3f9   : > { %8681 = vmatprep.subr.bf16.mxu1 %v18988_v42  ;;  %v6410_v42 = vld [vmem:[#allocation4] sm:$0x38] }
 0x3fa   : > { %v19022_v20 = vld [vmem:[%s25771_s5 + $0xb00] ss:$16 sps:$4 sm:$0xff]   ;;  %v19030_v9 = vld [vmem:[%s25771_s5 + $0xee4] ss:$16 sps:$4 sm:$0xff]  }
 0x3fb   : > { %8641 = vmatpush2.bf16.msra.mxu0 %v18989_v24 }
 0x3fc   : > { %8682 = vmatpush2.bf16.msra.mxu1 %v18986_v56  ;;  %8642 = vmatprep.subr.bf16.mxu0 %v18997_v7  ;;  %v6426_v56 = vrot.slane %v6410_v42, 3  ;;  %v6689_v42 = vld [vmem:[#allocation4 + $0x58] sm:$0x1c] }
 0x3fd   : > { %8683 = vmatprep.subr.bf16.mxu1 %v18994_v27  ;;  %v4749_v27 = vadd.f32 %v22321_v10, %v22303_v41 }
 0x3fe   : > { %6442 = vst [vmem:[#allocation8 + $0x178] sm:$0x7] %v6426_v56  ;;  %v6688_v56 = vld [vmem:[#allocation4 + $0x50] sm:$0x1c] }
 0x3ff   : > { %8643 = vmatpush2.bf16.msra.mxu0 %v18995_v22 }
 0x400   : > { %8684 = vmatpush2.bf16.msra.mxu1 %v18992_v57  ;;  %8644 = vmatprep.subr.bf16.mxu0 %v19003_v25 }
 0x401   : > { %8685 = vmatprep.subr.bf16.mxu1 %v19000_v4 }
 0x403   : > { %8645 = vmatpush2.bf16.msra.mxu0 %v19001_v26 }
 0x404   : > { %8686 = vmatpush2.bf16.msra.mxu1 %v18998_v49  ;;  %8646 = vmatprep.subr.bf16.mxu0 %v19009_v36 }
 0x405   : > { %8687 = vmatprep.subr.bf16.mxu1 %v19006_v29 }
 0x407   : > { %8647 = vmatpush2.bf16.msra.mxu0 %v19007_v52 }
 0x408   : > { %8688 = vmatpush2.bf16.msra.mxu1 %v19004_v0  ;;  %8648 = vmatprep.subr.bf16.mxu0 %v19015_v15 }
 0x409   : > { %8689 = vmatprep.subr.bf16.mxu1 %v19012_v40 }
 0x40b   : > { %8649 = vmatpush2.bf16.msra.mxu0 %v19013_v18  ;;  %v6592_v18 = vld [vmem:[#allocation4 + $0x50] sm:$0x7] }
 0x40c   : > { %8690 = vmatpush2.bf16.msra.mxu1 %v19010_v51  ;;  %8650 = vmatprep.subr.bf16.mxu0 %v19021_v53  ;;  %v6608_v61 = vrot.slane %v6592_v18, 2 }
 0x40d   : > { %8691 = vmatprep.subr.bf16.mxu1 %v19018_v17 }
 0x40e   : > { %6630 = vst [vmem:[#allocation8 + $0x100] ss:$196 sps:$4 sm:$0xc1] %v6608_v61  }
 0x40f   : > { %8651 = vmatpush2.bf16.msra.mxu0 %v19019_v31  ;;  %v6736_v31 = vld [vmem:[#allocation4 + $0x50] sm:$0x38] }
 0x410   : > { %8692 = vmatpush2.bf16.msra.mxu1 %v19016_v33  ;;  %8706 = vmatprep.subr.bf16.mxu0 %v19027_v1 }
 0x411   : > { %8693 = vmatprep.subr.bf16.mxu1 %v19024_v48 }
 0x412   : > { %v22307_v3 = vpop.f32.mrf.mxu0 }
 0x413   : > { %v5126_v24 = vadd.f32 %v22307_v3, %v4743_v60 }
 0x414   : > { %v22323_v55 = vpop.f32.mrf.mxu0  ;;  %8694 = vmatpush2.bf16.msra.mxu1 %v19022_v20 }
 0x415   : > { %v5128_v41 = vadd.f32 %v22323_v55, %v4745_v47  ;;  %8749 = vmatprep.subr.bf16.mxu1 %v19030_v9 }
 0x416   : > { %v22339_v8 = vpop.f32.mrf.mxu0 }
 0x417   : > { %v22337_v62 = vpop.f32.mrf.mxu1  ;;  %v5130_v6 = vadd.f32 %v22339_v8, %v4747_v54  ;;  %v6705_v54 = vrot.slane %v6689_v42, 4 }
 0x418   : > { %v22355_v34 = vpop.f32.mrf.mxu0  ;;  %v5169_v4 = vadd.f32 %v22337_v62, %v5126_v24 }
 0x419   : > { %v22353_v28 = vpop.f32.mrf.mxu1  ;;  %v5132_v45 = vadd.f32 %v22355_v34, %v4749_v27  ;;  %6727 = vst [vmem:[#allocation8 + $0xe0] ss:$44 sps:$4 sm:$0xc1] %v6705_v54  }
 0x41a   : > { %v5171_v34 = vadd.f32 %v22353_v28, %v5128_v41  ;;  %v6737_v41 = vld [vmem:[#allocation4 + $0x58] sm:$0x38] }
 0x41b   : > { %v22369_v19 = vpop.f32.mrf.mxu1 }
 0x41c   : > { %v5173_v25 = vadd.f32 %v22369_v19, %v5130_v6 }
 0x41d   : > { %v22385_v5 = vpop.f32.mrf.mxu1 }
 0x452   : > { %v22371_v14 = vpop.f32.mrf.mxu0 }
 0x454   : > { %v22387_v13 = vpop.f32.mrf.mxu0 }
 0x456   : > { %v22403_v23 = vpop.f32.mrf.mxu0 }
 0x457   : > { %v22389_v12 = vpop.f32.mrf.mxu1 }
 0x458   : > { %v5627_v2 = vpop.f32.mrf.mxu0  ;;  %v5665_v8 = vadd.f32 %v22389_v12, %v22371_v14  ;;  %v5175_v14 = vadd.f32 %v22385_v5, %v5132_v45  ;;  %v6753_v45 = vrot.slane %v6737_v41, 5 }
 0x459   : > { %v22405_v44 = vpop.f32.mrf.mxu1 }
 0x45a   : > { %v5667_v22 = vadd.f32 %v22405_v44, %v22387_v13  ;;  %v5673_v0 = vadd.f32 %v5665_v8, %v5169_v4  ;;  %6775 = vst [vmem:[#allocation8 + $0x120] ss:$-276 sps:$4 sm:$0xc1] %v6753_v45  }
 0x45b   : > { %v5668_v46 = vpop.f32.mrf.mxu1 }
 0x45c   : > { %v5669_v7 = vadd.f32 %v5668_v46, %v22403_v23  ;;  %v5674_v13 = vadd.f32 %v5667_v22, %v5171_v34  ;;  %v6609_v46 = vrot.slane %v6593_v37, 2 }
 0x45d   : > { %v5670_v57 = vpop.f32.mrf.mxu1 }
 0x45e   : > { %v5671_v55 = vadd.f32 %v5670_v57, %v5627_v2  ;;  %v5675_v62 = vadd.f32 %v5669_v7, %v5173_v25  ;;  %6631 = vst [vmem:[#allocation8 + $0x148] ss:$-300 sps:$4 sm:$0xc1] %v6609_v46   ;;  %v6704_v57 = vrot.slane %v6688_v56, 4 }
 0x460   : > { %v5676_v44 = vadd.f32 %v5671_v55, %v5175_v14  ;;  %6726 = vst [vmem:[#allocation8 + $0x118] ss:$212 sps:$4 sm:$0xc1] %v6704_v57  }
 0x492   : > { %v6121_v38 = vpop.f32.mrf.mxu0 }
 0x494   : > { %v6123_v39 = vpop.f32.mrf.mxu0 }
 0x496   : > { %v6125_v10 = vpop.f32.mrf.mxu0 }
 0x497   : > { %v6164_v3 = vpop.f32.mrf.mxu1 }
 0x498   : > { %v6165_v29 = vadd.f32 %v6164_v3, %v6121_v38  ;;  %v6127_v26 = vpop.f32.mrf.mxu0  ;;  %v6641_v38 = vld [vmem:[#allocation4 + $0x58] sm:$0xe]  ;;  %v6752_v3 = vrot.slane %v6736_v31, 5 }
 0x499   : > { %v6166_v49 = vpop.f32.mrf.mxu1  ;;  %v6657_v48 = vrot.slane %v6641_v38, 3 }
 0x49a   : > { %v6167_v36 = vadd.f32 %v6166_v49, %v6123_v39  ;;  %v6173_v52 = vadd.f32 %v6165_v29, %v5673_v0  ;;  %v6656_v39 = vrot.slane %v6640_v11, 3  ;;  %6774 = vst [vmem:[#allocation8 + $0x98] ss:$284 sps:$4 sm:$0xc1] %v6752_v3  }
 0x49b   : > { %v6168_v12 = vpop.f32.mrf.mxu1  ;;  %6679 = vst [vmem:[#allocation8 + $0xb0] ss:$100 sps:$4 sm:$0xc1] %v6657_v48  }
 0x49c   : > { %v6169_v40 = vadd.f32 %v6168_v12, %v6125_v10  ;;  %v6174_v15 = vadd.f32 %v6167_v36, %v5674_v13  ;;  %6678 = vst [vmem:[#allocation8 + $0xf8] ss:$-172 sps:$4 sm:$0xc1] %v6656_v39  }
 0x49d   : > { %v6170_v23 = vpop.f32.mrf.mxu1 }
 0x49e   : > { %v6175_v51 = vadd.f32 %v6169_v40, %v5675_v62  ;;  %v6171_v19 = vadd.f32 %v6170_v23, %v6127_v26 }
 0x4a0   : > { %v6177_v17 = vadd.f32 %v6175_v51, %v6173_v52  ;;  %v6176_v58 = vadd.f32 %v6171_v19, %v5676_v44 }
 0x4a2   : > { %v6178_v63 = vrot.slane %v6177_v17, 4  ;;  %v6184_v2 = vadd.f32 %v6176_v58, %v6174_v15 }
 0x4a4   : > { %v6179_v28 = vadd.f32 %v6178_v63, %v6177_v17  ;;  %v6185_v21 = vrot.slane %v6184_v2, 4 }
 0x4a6   : > { %v6180_v5 = vrot.slane %v6179_v28, 2  ;;  %v6186_v30 = vadd.f32 %v6185_v21, %v6184_v2 }
 0x4a8   : > { %v6181_v32 = vadd.f32 %v6180_v5, %v6179_v28  ;;  %v6187_v43 = vrot.slane %v6186_v30, 2 }
 0x4aa   : > { %v6182_v35 = vrot.slane %v6181_v32, 1  ;;  %v6188_v16 = vadd.f32 %v6187_v43, %v6186_v30 }
 0x4ac   : > { %v6183_v33 = vadd.f32 %v6182_v35, %v6181_v32  ;;  %v6189_v53 = vrot.slane %v6188_v16, 1 }
 0x4ae   : > { %v6192_v59 = vmul.f32 0.0625, %v6183_v33  ;;  %v6190_v60 = vadd.f32 %v6189_v53, %v6188_v16 }
 0x4b0   : > { %v6194_v47 = vsub.f32 %v6173_v52, %v6192_v59  ;;  %v6196_v27 = vsub.f32 %v6175_v51, %v6192_v59  ;;  %v6193_v24 = vmul.f32 0.0625, %v6190_v60 }
 0x4b2   : > { %v6198_v20 = vmul.f32 %v6194_v47, %v6194_v47  ;;  %v6200_v6 = vmul.f32 %v6196_v27, %v6196_v27  ;;  %v6195_v1 = vsub.f32 %v6174_v15, %v6193_v24  ;;  %v6197_v9 = vsub.f32 %v6176_v58, %v6193_v24 }
 0x4b4   : > { %v6202_v10 = vadd.f32 %v6200_v6, %v6198_v20  ;;  %v6199_v8 = vmul.f32 %v6195_v1, %v6195_v1  ;;  %v6201_v7 = vmul.f32 %v6197_v9, %v6197_v9 }
 0x4b6   : > { %v6203_v4 = vrot.slane %v6202_v10, 4  ;;  %v6209_v22 = vadd.f32 %v6201_v7, %v6199_v8 }
 0x4b8   : > { %v6204_v49 = vadd.f32 %v6203_v4, %v6202_v10  ;;  %v6210_v25 = vrot.slane %v6209_v22, 4 }
 0x4ba   : > { %v6205_v55 = vrot.slane %v6204_v49, 2  ;;  %v6211_v29 = vadd.f32 %v6210_v25, %v6209_v22 }
 0x4bc   : > { %v6206_v34 = vadd.f32 %v6205_v55, %v6204_v49  ;;  %v6212_v14 = vrot.slane %v6211_v29, 2 }
 0x4be   : > { %v6207_v12 = vrot.slane %v6206_v34, 1  ;;  %v6213_v26 = vadd.f32 %v6212_v14, %v6211_v29 }
 0x4c0   : > { %v6208_v0 = vadd.f32 %v6207_v12, %v6206_v34  ;;  %v6214_v62 = vrot.slane %v6213_v26, 1 }
 0x4c2   : > { %v6216_v36 = vmul.f32 0.0625, %v6208_v0  ;;  %v6215_v40 = vadd.f32 %v6214_v62, %v6213_v26 }
 0x4c4   : > { %v6218_v13 = vadd.f32 1e-05, %v6216_v36  ;;  %v6217_v23 = vmul.f32 0.0625, %v6215_v40 }
 0x4c6   : > { %20475 = vrsqrt.f32 %v6218_v13  ;;  %v6219_v44 = vadd.f32 1e-05, %v6217_v23 }
 0x4c8   : > { %20477 = vrsqrt.f32 %v6219_v44 }
 0x4d3   : > { %v20476_v52 = vpop.eup %20475 }
 0x4d4   : > { %v6222_v51 = vmul.f32 %v20476_v52, %v6194_v47  ;;  %v6224_v19 = vmul.f32 %v20476_v52, %v6196_v27 }
 0x4d5   : > { %v20478_v15 = vpop.eup %20477 }
 0x4d6   : > { %vm6226_vm9 = vcmp.gt.f32.partialorder %v6222_v51, 0.0  ;;  %vm6228_vm10 = vcmp.gt.f32.partialorder %v6224_v19, 0.0  ;;  %v6230_v17 = vmul.f32 0.2, %v6222_v51  ;;  %v6232_v58 = vmul.f32 0.2, %v6224_v19 }
 0x4d7   : > { %v6223_v63 = vmul.f32 %v20478_v15, %v6195_v1  ;;  %v6225_v2 = vmul.f32 %v20478_v15, %v6197_v9 }
 0x4d8   : > { %v6234_v28 = vsel %vm6226_vm9, %v6222_v51, %v6230_v17  ;;  %v6236_v21 = vsel %vm6228_vm10, %v6224_v19, %v6232_v58  ;;  %vm14978_vm9 = vcmask 0  }
 0x4d9   : > { %v6284_v5 = vrot.slane %v6234_v28, 7  ;;  %v6291_v30 = vrot.slane %v6234_v28, 3  ;;  %v6300_v32 = vrot.slane %v6236_v21, 7  ;;  %v6307_v43 = vrot.slane %v6236_v21, 3 }
 0x4da   : > { %vm6227_vm11 = vcmp.gt.f32.partialorder %v6223_v63, 0.0  ;;  %vm6229_vm12 = vcmp.gt.f32.partialorder %v6225_v2, 0.0  ;;  %v6231_v35 = vmul.f32 0.2, %v6223_v63  ;;  %v6233_v16 = vmul.f32 0.2, %v6225_v2 }
 0x4db   : > { %6289 = vst [vmem:[#allocation4 + $0x10] sm:$0x1e] %v6284_v5  ;;  %6296 = vst [vmem:[#allocation4 + $0x20] sm:$0x1e] %v6291_v30 }
 0x4dc   : > { %6305 = vst [vmem:[#allocation4 + $0x30] sm:$0x1e] %v6300_v32  ;;  %6312 = vst [vmem:[#allocation4 + $0x40] sm:$0x1e] %v6307_v43  ;;  %v6235_v37 = vsel %vm6227_vm11, %v6223_v63, %v6231_v35  ;;  %v6237_v46 = vsel %vm6229_vm12, %v6225_v2, %v6233_v16 }
 0x4dd   : > { %v6285_v38 = vrot.slane %v6235_v37, 7  ;;  %v6292_v18 = vrot.slane %v6235_v37, 3  ;;  %v6301_v33 = vrot.slane %v6237_v46, 7  ;;  %v6308_v53 = vrot.slane %v6237_v46, 3 }
 0x4df   : > { %6290 = vst [vmem:[#allocation4 + $0x18] sm:$0x1e] %v6285_v38  ;;  %6297 = vst [vmem:[#allocation4 + $0x28] sm:$0x1e] %v6292_v18 }
 0x4e0   : > { %6306 = vst [vmem:[#allocation4 + $0x38] sm:$0x1e] %v6301_v33  ;;  %6313 = vst [vmem:[#allocation4 + $0x48] sm:$0x1e] %v6308_v53 }
 0x4e2   : > { %v6316_v23 = vld [vmem:[#allocation4 + $0x10] sm:$0x7]  ;;  %v6452_v52 = vld [vmem:[#allocation4 + $0x20] sm:$0x7] }
 0x4e3   : > { %v6320_v48 = vld [vmem:[#allocation4 + $0x30] sm:$0x7]  ;;  %v6416_v39 = vld [vmem:[#allocation4 + $0x30] sm:$0x38]  ;;  %v6456_v56 = vld [vmem:[#allocation4 + $0x40] sm:$0x7] }
 0x4e4   : > { %v6336_v61 = vld [vmem:[#allocation4 + $0x30] sm:$0xe]  ;;  %6328 = vst [vmem:[#allocation8 + $0x1c0] sm:$0x7] %v6320_v48  ;;  %v6432_v54 = vrot.slane %v6416_v39, 3  ;;  %v6472_v24 = vrot.slane %v6456_v56, 5 }
 0x4e5   : > { %v6376_v11 = vld [vmem:[#allocation4 + $0x30] sm:$0x1c]  ;;  %v6352_v59 = vrot.slane %v6336_v61, 1  ;;  %v6496_v57 = vld [vmem:[#allocation4 + $0x40] sm:$0xe]  ;;  %v6468_v19 = vrot.slane %v6452_v52, 5 }
 0x4e6   : > { %v6392_v60 = vrot.slane %v6376_v11, 2  ;;  %v6454_v42 = vld [vmem:[#allocation4 + $0x30] sm:$0x7]  ;;  %v6512_v6 = vrot.slane %v6496_v57, 6  ;;  %v6536_v1 = vld [vmem:[#allocation4 + $0x40] sm:$0x1c] }
 0x4e7   : > { %v6470_v47 = vrot.slane %v6454_v42, 5  ;;  %v6494_v27 = vld [vmem:[#allocation4 + $0x30] sm:$0xe]  ;;  %6368 = vst [vmem:[#allocation8 + $0x48] sm:$0x7] %v6352_v59  ;;  %v6552_v45 = vrot.slane %v6536_v1, 7 }
 0x4e8   : > { %v6510_v31 = vrot.slane %v6494_v27, 6  ;;  %v6534_v20 = vld [vmem:[#allocation4 + $0x30] sm:$0x1c]  ;;  %6408 = vst [vmem:[#allocation8 + $0x1e8] sm:$0x7] %v6392_v60 }
 0x4e9   : > { %v6550_v9 = vrot.slane %v6534_v20, 7  ;;  %v6574_v41 = vld [vmem:[#allocation4 + $0x30] sm:$0x38]  ;;  %6448 = vst [vmem:[#allocation8 + $0x1b0] sm:$0x7] %v6432_v54 }
 0x4ea   : > { %6486 = vst [vmem:[#allocation8 + $0x90] sm:$0x38] %v6470_v47  ;;  %v6576_v3 = vld [vmem:[#allocation4 + $0x40] sm:$0x38]  ;;  %6582 = vst [vmem:[#allocation8 + $0x170] sm:$0x38] %v6574_v41 }
 0x4eb   : > { %v6590_v10 = vld [vmem:[#allocation4 + $0x40] sm:$0x7]  ;;  %6488 = vst [vmem:[#allocation8 + $0x1c0] sm:$0x38] %v6472_v24  ;;  %6526 = vst [vmem:[#allocation8 + $0x140] sm:$0x38] %v6510_v31 }
 0x4ec   : > { %6584 = vst [vmem:[#allocation8 + $0x1b0] sm:$0x38] %v6576_v3  ;;  %v6606_v8 = vrot.slane %v6590_v10, 2  ;;  %v6638_v7 = vld [vmem:[#allocation4 + $0x40] sm:$0xe] }
 0x4ed   : > { %v6686_v4 = vld [vmem:[#allocation4 + $0x40] sm:$0x1c]  ;;  %6528 = vst [vmem:[#allocation8 + $0x48] sm:$0x38] %v6512_v6  ;;  %6566 = vst [vmem:[#allocation8 + $0x20] sm:$0x38] %v6550_v9 }
 0x4ee   : > { %v6654_v22 = vrot.slane %v6638_v7, 3  ;;  %v6702_v49 = vrot.slane %v6686_v4, 4  ;;  %v6734_v25 = vld [vmem:[#allocation4 + $0x40] sm:$0x38]  ;;  %6568 = vst [vmem:[#allocation8 + $0x1e8] sm:$0x38] %v6552_v45 }
 0x4ef   : > { %v6317_v55 = vld [vmem:[#allocation4 + $0x18] sm:$0x7]  ;;  %v6750_v29 = vrot.slane %v6734_v25, 5  ;;  %6626 = vst [vmem:[#allocation8 + $0x10] ss:$132 sps:$4 sm:$0xc1] %v6606_v8  }
 0x4f0   : > { %6325 = vst [vmem:[#allocation8 + $0x88] sm:$0x7] %v6317_v55  ;;  %v6453_v34 = vld [vmem:[#allocation4 + $0x28] sm:$0x7]  ;;  %v6589_v14 = vld [vmem:[#allocation4 + $0x38] sm:$0x7] }
 0x4f1   : > { %6674 = vst [vmem:[#allocation8 + $0x190] ss:$-76 sps:$4 sm:$0xc1] %v6654_v22   ;;  %6722 = vst [vmem:[#allocation8 + $0x1d0] ss:$-428 sps:$4 sm:$0xc1] %v6702_v49  }
 0x4f2   : > { %v6469_v12 = vrot.slane %v6453_v34, 5  ;;  %v6605_v26 = vrot.slane %v6589_v14, 2  ;;  %v6333_v0 = vld [vmem:[#allocation4 + $0x18] sm:$0xe]  ;;  %v6493_v62 = vld [vmem:[#allocation4 + $0x28] sm:$0xe] }
 0x4f3   : > { %6770 = vst [vmem:[#allocation8 + $0xd8] ss:$156 sps:$4 sm:$0xc1] %v6750_v29   ;;  %v6349_v36 = vrot.slane %v6333_v0, 1  ;;  %v6509_v40 = vrot.slane %v6493_v62, 6 }
 0x4f4   : > { %v6637_v13 = vld [vmem:[#allocation4 + $0x38] sm:$0xe]  ;;  %6485 = vst [vmem:[#allocation8 + $0x88] sm:$0x38] %v6469_v12  ;;  %6324 = vst [vmem:[#allocation8 + $0xb8] sm:$0x7] %v6316_v23 }
 0x4f5   : > { %6623 = vst [vmem:[#allocation8 + $0x38] ss:$84 sps:$4 sm:$0xc1] %v6605_v26   ;;  %v6653_v44 = vrot.slane %v6637_v13, 3  ;;  %v6588_v51 = vld [vmem:[#allocation4 + $0x30] sm:$0x7] }
 0x4f6   : > { %6365 = vst [vmem:[#allocation8 + $0xa8] sm:$0x7] %v6349_v36  ;;  %6525 = vst [vmem:[#allocation8 + $0xa8] sm:$0x38] %v6509_v40  ;;  %v6604_v15 = vrot.slane %v6588_v51, 2 }
 0x4f7   : > { %v6332_v17 = vld [vmem:[#allocation4 + $0x10] sm:$0xe]  ;;  %v6492_v58 = vld [vmem:[#allocation4 + $0x20] sm:$0xe]  ;;  %v6373_v21 = vld [vmem:[#allocation4 + $0x18] sm:$0x1c] }
 0x4f8   : > { %6671 = vst [vmem:[#allocation8 + $0x198] ss:$-236 sps:$4 sm:$0xc1] %v6653_v44   ;;  %v6348_v63 = vrot.slane %v6332_v17, 1  ;;  %v6508_v2 = vrot.slane %v6492_v58, 6  ;;  %v6389_v30 = vrot.slane %v6373_v21, 2 }
 0x4f9   : > { %v6636_v28 = vld [vmem:[#allocation4 + $0x30] sm:$0xe]  ;;  %6484 = vst [vmem:[#allocation8 + $0xb8] sm:$0x38] %v6468_v19  ;;  %v6533_v32 = vld [vmem:[#allocation4 + $0x28] sm:$0x1c] }
 0x4fa   : > { %6622 = vst [vmem:[#allocation8 + $0x40] ss:$124 sps:$4 sm:$0xc1] %v6604_v15   ;;  %v6652_v5 = vrot.slane %v6636_v28, 3  ;;  %v6685_v43 = vld [vmem:[#allocation4 + $0x38] sm:$0x1c] }
 0x4fb   : > { %6364 = vst [vmem:[#allocation8 + $0xc8] sm:$0x7] %v6348_v63  ;;  %6524 = vst [vmem:[#allocation8 + $0xc8] sm:$0x38] %v6508_v2  ;;  %v6549_v35 = vrot.slane %v6533_v32, 7  ;;  %v6701_v16 = vrot.slane %v6685_v43, 4 }
 0x4fc   : > { %v6413_v37 = vld [vmem:[#allocation4 + $0x18] sm:$0x38]  ;;  %v6573_v46 = vld [vmem:[#allocation4 + $0x28] sm:$0x38]  ;;  %6405 = vst [vmem:[#allocation8 + $0x50] sm:$0x7] %v6389_v30 }
 0x4fd   : > { %6670 = vst [vmem:[#allocation8 + $0x138] ss:$-108 sps:$4 sm:$0xc1] %v6652_v5   ;;  %v6429_v38 = vrot.slane %v6413_v37, 3  ;;  %6581 = vst [vmem:[#allocation8 + $0x180] sm:$0x38] %v6573_v46 }
 0x4fe   : > { %v6733_v18 = vld [vmem:[#allocation4 + $0x38] sm:$0x38]  ;;  %v6372_v33 = vld [vmem:[#allocation4 + $0x10] sm:$0x1c]  ;;  %6565 = vst [vmem:[#allocation8 + $0x50] sm:$0x38] %v6549_v35 }
 0x4ff   : > { %6719 = vst [vmem:[#allocation8 + $0x78] ss:$-36 sps:$4 sm:$0xc1] %v6701_v16   ;;  %v6749_v53 = vrot.slane %v6733_v18, 5  ;;  %v6388_v48 = vrot.slane %v6372_v33, 2  ;;  %v7060_v59 = vld [vmem:[#allocation8 + $0x88] sm:$0xff] }
 0x500   : > { %v6532_v61 = vld [vmem:[#allocation4 + $0x20] sm:$0x1c]  ;;  %v6684_v11 = vld [vmem:[#allocation4 + $0x30] sm:$0x1c]  ;;  %v7068_v60 = vld [vmem:[#allocation8 + $0x38] sm:$0x1] }
 0x501   : > { %6445 = vst [vmem:[#allocation8 + $0x180] sm:$0x7] %v6429_v38  ;;  %v6548_v39 = vrot.slane %v6532_v61, 7  ;;  %v6700_v42 = vrot.slane %v6684_v11, 4  ;;  %v22464_v54 = vpack.c.bf16 %v7068_v60, %v7060_v59  ;;  %6404 = vst [vmem:[#allocation8 + $0x1c8] sm:$0x7] %v6388_v48 }
 0x502   : > { %6767 = vst [vmem:[#allocation8 + $0x70] ss:$276 sps:$4 sm:$0xc1] %v6749_v53   ;;  %v6412_v56 = vld [vmem:[#allocation4 + $0x10] sm:$0x38]  ;;  %v7062_v24 = vld [vmem:[#allocation8 + $0xa8] sm:$0xff] }
 0x503   : > { %v6572_v47 = vld [vmem:[#allocation4 + $0x20] sm:$0x38]  ;;  %v6732_v27 = vld [vmem:[#allocation4 + $0x30] sm:$0x38]  ;;  %v7070_v57 = vld [vmem:[#allocation8 + $0x198] sm:$0x1]  ;;  %8652 = vmatprep.mubr.bf16.mxu0 %v22464_v54 }
 0x504   : > { %6564 = vst [vmem:[#allocation8 + $0x1c8] sm:$0x38] %v6548_v39  ;;  %6718 = vst [vmem:[#allocation8 + $0x128] ss:$164 sps:$4 sm:$0xc1] %v6700_v42   ;;  %v6428_v31 = vrot.slane %v6412_v56, 3  ;;  %v22467_v6 = vpack.c.bf16 %v7070_v57, %v7062_v24 }
 0x505   : > { %6580 = vst [vmem:[#allocation8 + $0x150] sm:$0x38] %v6572_v47  ;;  %v6748_v20 = vrot.slane %v6732_v27, 5  ;;  %v19025_v1 = vld [vmem:[%s25771_s5 + $0xce0] ss:$16 sps:$4 sm:$0xff]   ;;  %v7059_v9 = vld [vmem:[#allocation8 + $0xb8] sm:$0xff] }
 0x506   : > { %v7067_v41 = vld [vmem:[#allocation8 + $0x40] sm:$0x1]  ;;  %v19033_v3 = vld [vmem:[%s25771_s5 + $0xcc4] ss:$16 sps:$4 sm:$0xff]   ;;  %6444 = vst [vmem:[#allocation8 + $0x150] sm:$0x7] %v6428_v31  ;;  %8695 = vmatprep.mubr.bf16.mxu1 %v22467_v6 }
 0x507   : > { %v22472_v45 = vpack.c.bf16 %v7067_v41, %v7059_v9  ;;  %6766 = vst [vmem:[#allocation8 + $0x30] ss:$292 sps:$4 sm:$0xc1] %v6748_v20   ;;  %v19028_v10 = vld [vmem:[%s25771_s5 + $0xee0] ss:$16 sps:$4 sm:$0xff]   ;;  %v7061_v8 = vld [vmem:[#allocation8 + $0xc8] sm:$0xff] }
 0x508   : > { %v7069_v7 = vld [vmem:[#allocation8 + $0x138] sm:$0x1]  ;;  %v7064_v22 = vld [vmem:[#allocation8 + $0x50] sm:$0xff]  ;;  %v6587_v63 = vld [vmem:[#allocation4 + $0x28] sm:$0x7] }
 0x509   : > { %8653 = vmatmul.mubr.bf16.vlgmr.msra.gmra.mxu0 %v22472_v45  ;;  %v22482_v4 = vpack.c.bf16 %v7069_v7, %v7061_v8  ;;  %v7072_v49 = vld [vmem:[#allocation8 + $0x78] sm:$0x1]  ;;  %v19036_v25 = vld [vmem:[%s25771_s5 + $0xec4] ss:$16 sps:$4 sm:$0xff]   ;;  %v19031_v29 = vld [vmem:[%s25771_s5 + $0xcc0] ss:$16 sps:$4 sm:$0xff]  }
 0x50a   : > { %8707 = vmatpush1.bf16.msra.mxu0 %v19025_v1  ;;  %v22487_v55 = vpack.c.bf16 %v7072_v49, %v7064_v22  ;;  %v7066_v34 = vld [vmem:[#allocation8 + $0x180] sm:$0xff]  ;;  %v7074_v14 = vld [vmem:[#allocation8 + $0x70] sm:$0x1]  ;;  %v6451_v58 = vld [vmem:[#allocation4 + $0x18] sm:$0x7]  ;;  %v6603_v28 = vrot.slane %v6587_v63, 2 }
 0x50b   : > { %8696 = vmatmul.mubr.bf16.vlgmr.msra.gmra.mxu1 %v22482_v4  ;;  %8708 = vmatprep.subr.bf16.mxu0 %v19033_v3  ;;  %v19039_v12 = vld [vmem:[%s25771_s5 + $0xca4] ss:$16 sps:$4 sm:$0xff]   ;;  %v22497_v26 = vpack.c.bf16 %v7074_v14, %v7066_v34  ;;  %v19034_v0 = vld [vmem:[%s25771_s5 + $0xec0] ss:$16 sps:$4 sm:$0xff]   ;;  %v6467_v2 = vrot.slane %v6451_v58, 5 }
 0x50c   : > { %8750 = vmatpush1.bf16.msra.mxu1 %v19028_v10  ;;  %8738 = vmatprep.mubr.bf16.mxu0 %v22487_v55  ;;  %v19042_v62 = vld [vmem:[%s25771_s5 + $0xea4] ss:$16 sps:$4 sm:$0xff]   ;;  %v19037_v36 = vld [vmem:[%s25771_s5 + $0xca0] ss:$16 sps:$4 sm:$0xff]   ;;  %v6491_v21 = vld [vmem:[#allocation4 + $0x18] sm:$0xe] }
 0x50d   : > { %8751 = vmatprep.subr.bf16.mxu1 %v19036_v25  ;;  %8781 = vmatprep.mubr.bf16.mxu1 %v22497_v26  ;;  %v19045_v40 = vld [vmem:[%s25771_s5 + $0xc84] ss:$16 sps:$4 sm:$0xff]   ;;  %v19040_v13 = vld [vmem:[%s25771_s5 + $0xea0] ss:$16 sps:$4 sm:$0xff]   ;;  %v6635_v5 = vld [vmem:[#allocation4 + $0x28] sm:$0xe] }
 0x50e   : > { %8709 = vmatpush1.bf16.msra.mxu0 %v19031_v29  ;;  %v19048_v23 = vld [vmem:[%s25771_s5 + $0xe84] ss:$16 sps:$4 sm:$0xff]   ;;  %v19043_v44 = vld [vmem:[%s25771_s5 + $0xc80] ss:$16 sps:$4 sm:$0xff]   ;;  %6483 = vst [vmem:[#allocation8 + $0x1e0] sm:$0x38] %v6467_v2 }
 0x50f   : > { %8710 = vmatprep.subr.bf16.mxu0 %v19039_v12  ;;  %v19051_v52 = vld [vmem:[%s25771_s5 + $0xc64] ss:$16 sps:$4 sm:$0xff]   ;;  %v19046_v51 = vld [vmem:[%s25771_s5 + $0xe80] ss:$16 sps:$4 sm:$0xff]   ;;  %v6507_v16 = vrot.slane %v6491_v21, 6  ;;  %v6651_v37 = vrot.slane %v6635_v5, 3 }
 0x510   : > { %8752 = vmatpush1.bf16.msra.mxu1 %v19034_v0  ;;  %v19049_v19 = vld [vmem:[%s25771_s5 + $0xc60] ss:$16 sps:$4 sm:$0xff]   ;;  %v19054_v15 = vld [vmem:[%s25771_s5 + $0xe64] ss:$16 sps:$4 sm:$0xff]   ;;  %v6531_v11 = vld [vmem:[#allocation4 + $0x18] sm:$0x1c] }
 0x511   : > { %8753 = vmatprep.subr.bf16.mxu1 %v19042_v62  ;;  %v19057_v17 = vld [vmem:[%s25771_s5 + $0xc44] ss:$16 sps:$4 sm:$0xff]   ;;  %v19052_v30 = vld [vmem:[%s25771_s5 + $0xe60] ss:$16 sps:$4 sm:$0xff]   ;;  %6523 = vst [vmem:[#allocation8 + $0xc0] sm:$0x38] %v6507_v16 }
 0x512   : > { %8711 = vmatpush1.bf16.msra.mxu0 %v19037_v36  ;;  %v19055_v32 = vld [vmem:[%s25771_s5 + $0xc40] ss:$16 sps:$4 sm:$0xff]   ;;  %v19060_v43 = vld [vmem:[%s25771_s5 + $0xe44] ss:$16 sps:$4 sm:$0xff]   ;;  %v6547_v47 = vrot.slane %v6531_v11, 7 }
 0x513   : > { %8712 = vmatprep.subr.bf16.mxu0 %v19045_v40  ;;  %v19063_v35 = vld [vmem:[%s25771_s5 + $0xc24] ss:$16 sps:$4 sm:$0xff]   ;;  %6619 = vst [vmem:[#allocation8 + $0xf0] ss:$244 sps:$4 sm:$0xc1] %v6603_v28  }
 0x514   : > { %8754 = vmatpush1.bf16.msra.mxu1 %v19040_v13  ;;  %v6450_v46 = vld [vmem:[#allocation4 + $0x10] sm:$0x7]  ;;  %v6586_v18 = vld [vmem:[#allocation4 + $0x20] sm:$0x7]  ;;  %v19066_v39 = vld [vmem:[%s25771_s5 + $0xe24] ss:$16 sps:$4 sm:$0xff]  }
 0x515   : > { %8755 = vmatprep.subr.bf16.mxu1 %v19048_v23  ;;  %v6466_v38 = vrot.slane %v6450_v46, 5  ;;  %v6490_v33 = vld [vmem:[#allocation4 + $0x10] sm:$0xe]  ;;  %6667 = vst [vmem:[#allocation8 + $0x1f0] ss:$-300 sps:$4 sm:$0xc1] %v6651_v37  }
 0x516   : > { %8713 = vmatpush1.bf16.msra.mxu0 %v19043_v44  ;;  %v6602_v53 = vrot.slane %v6586_v18, 2  ;;  %v6506_v48 = vrot.slane %v6490_v33, 6  ;;  %v6634_v61 = vld [vmem:[#allocation4 + $0x20] sm:$0xe]  ;;  %v19069_v42 = vld [vmem:[%s25771_s5 + $0xc04] ss:$16 sps:$4 sm:$0xff]  }
 0x517   : > { %8714 = vmatprep.subr.bf16.mxu0 %v19051_v52  ;;  %v19058_v59 = vld [vmem:[%s25771_s5 + $0xe40] ss:$16 sps:$4 sm:$0xff]   ;;  %6482 = vst [vmem:[#allocation8 + $0x1a0] sm:$0x38] %v6466_v38  ;;  %v6650_v56 = vrot.slane %v6634_v61, 3 }
 0x518   : > { %8756 = vmatpush1.bf16.msra.mxu1 %v19046_v51  ;;  %v19061_v60 = vld [vmem:[%s25771_s5 + $0xc20] ss:$16 sps:$4 sm:$0xff]   ;;  %6618 = vst [vmem:[#allocation8 + $0x58] ss:$332 sps:$4 sm:$0xc1] %v6602_v53  }
 0x519   : > { %8757 = vmatprep.subr.bf16.mxu1 %v19054_v15  ;;  %6522 = vst [vmem:[#allocation8 + $0x60] sm:$0x38] %v6506_v48  ;;  %v6683_v27 = vld [vmem:[#allocation4 + $0x28] sm:$0x1c]  ;;  %v6571_v57 = vld [vmem:[#allocation4 + $0x18] sm:$0x38] }
 0x51a   : > { %8715 = vmatpush1.bf16.msra.mxu0 %v19049_v19  ;;  %v6699_v24 = vrot.slane %v6683_v27, 4  ;;  %v6731_v31 = vld [vmem:[#allocation4 + $0x28] sm:$0x38]  ;;  %6666 = vst [vmem:[#allocation8 + $0x160] ss:$-252 sps:$4 sm:$0xc1] %v6650_v56  }
 0x51b   : > { %8716 = vmatprep.subr.bf16.mxu0 %v19057_v17  ;;  %6563 = vst [vmem:[#allocation8 + $0x68] sm:$0x38] %v6547_v47  ;;  %6579 = vst [vmem:[#allocation8 + $0x1b8] sm:$0x38] %v6571_v57  ;;  %v6747_v20 = vrot.slane %v6731_v31, 5 }
 0x51c   : > { %8758 = vmatpush1.bf16.msra.mxu1 %v19052_v30  ;;  %v6530_v1 = vld [vmem:[#allocation4 + $0x10] sm:$0x1c]  ;;  %v6682_v9 = vld [vmem:[#allocation4 + $0x20] sm:$0x1c]  ;;  %v6319_v29 = vld [vmem:[#allocation4 + $0x28] sm:$0x7] }
 0x51d   : > { %8759 = vmatprep.subr.bf16.mxu1 %v19060_v43  ;;  %v19064_v41 = vld [vmem:[%s25771_s5 + $0xe20] ss:$16 sps:$4 sm:$0xff]   ;;  %6715 = vst [vmem:[#allocation8 + $0x28] ss:$68 sps:$4 sm:$0xc1] %v6699_v24   ;;  %v6546_v8 = vrot.slane %v6530_v1, 7 }
 0x51e   : > { %8717 = vmatpush1.bf16.msra.mxu0 %v19055_v32  ;;  %v19067_v3 = vld [vmem:[%s25771_s5 + $0xc00] ss:$16 sps:$4 sm:$0xff]   ;;  %v19072_v10 = vld [vmem:[%s25771_s5 + $0xe04] ss:$16 sps:$4 sm:$0xff]   ;;  %v6698_v22 = vrot.slane %v6682_v9, 4 }
 0x51f   : > { %8718 = vmatprep.subr.bf16.mxu0 %v19063_v35  ;;  %6763 = vst [vmem:[#allocation8 + $0x188] ss:$52 sps:$4 sm:$0xc1] %v6747_v20   ;;  %v19075_v7 = vld [vmem:[%s25771_s5 + $0xde4] ss:$16 sps:$4 sm:$0xff]  }
 0x520   : > { %8760 = vmatpush1.bf16.msra.mxu1 %v19058_v59  ;;  %v6570_v49 = vld [vmem:[#allocation4 + $0x10] sm:$0x38]  ;;  %6562 = vst [vmem:[#allocation8 + $0x130] sm:$0x38] %v6546_v8  ;;  %v6730_v25 = vld [vmem:[#allocation4 + $0x20] sm:$0x38] }
 0x521   : > { %8761 = vmatprep.subr.bf16.mxu1 %v19066_v39  ;;  %6578 = vst [vmem:[#allocation8 + $0x178] sm:$0x38] %v6570_v49  ;;  %v6455_v34 = vld [vmem:[#allocation4 + $0x38] sm:$0x7]  ;;  %v19070_v14 = vld [vmem:[%s25771_s5 + $0xe00] ss:$16 sps:$4 sm:$0xff]  }
 0x522   : > { %8719 = vmatpush1.bf16.msra.mxu0 %v19061_v60  ;;  %6714 = vst [vmem:[#allocation8 + $0x1a8] ss:$-116 sps:$4 sm:$0xc1] %v6698_v22   ;;  %6327 = vst [vmem:[#allocation8 + $0x158] sm:$0x7] %v6319_v29  ;;  %v6746_v0 = vrot.slane %v6730_v25, 5 }
 0x523   : > { %8720 = vmatprep.subr.bf16.mxu0 %v19069_v42  ;;  %v19078_v12 = vld [vmem:[%s25771_s5 + $0xfe4] ss:$16 sps:$4 sm:$0xff]   ;;  %v19073_v62 = vld [vmem:[%s25771_s5 + $0xde0] ss:$16 sps:$4 sm:$0xff]   ;;  %v6471_v36 = vrot.slane %v6455_v34, 5 }
 0x524   : > { %8762 = vmatpush1.bf16.msra.mxu1 %v19064_v41  ;;  %v6591_v40 = vld [vmem:[#allocation4 + $0x48] sm:$0x7]  ;;  %v19081_v13 = vld [vmem:[%s25771_s5 + $0xdc4] ss:$16 sps:$4 sm:$0xff]   ;;  %v19076_v52 = vld [vmem:[%s25771_s5 + $0xfe0] ss:$16 sps:$4 sm:$0xff]  }
 0x525   : > { %8763 = vmatprep.subr.bf16.mxu1 %v19072_v10  ;;  %6762 = vst [vmem:[#allocation8 + $0xe8] ss:$148 sps:$4 sm:$0xc1] %v6746_v0   ;;  %v6607_v23 = vrot.slane %v6591_v40, 2  ;;  %v6335_v44 = vld [vmem:[#allocation4 + $0x28] sm:$0xe] }
 0x526   : > { %8721 = vmatpush1.bf16.msra.mxu0 %v19067_v3  ;;  %6487 = vst [vmem:[#allocation8 + $0x158] sm:$0x38] %v6471_v36  ;;  %v19079_v51 = vld [vmem:[%s25771_s5 + $0xdc0] ss:$16 sps:$4 sm:$0xff]   ;;  %v19084_v19 = vld [vmem:[%s25771_s5 + $0xfc4] ss:$16 sps:$4 sm:$0xff]  }
 0x527   : > { %8722 = vmatprep.subr.bf16.mxu0 %v19075_v7  ;;  %6627 = vst [vmem:[#allocation8 + $0x1f8] ss:$-156 sps:$4 sm:$0xc1] %v6607_v23   ;;  %v6351_v15 = vrot.slane %v6335_v44, 1  ;;  %v6495_v17 = vld [vmem:[#allocation4 + $0x38] sm:$0xe] }
 0x528   : > { %8764 = vmatpush1.bf16.msra.mxu1 %v19070_v14  ;;  %v6639_v58 = vld [vmem:[#allocation4 + $0x48] sm:$0xe]  ;;  %v6318_v63 = vld [vmem:[#allocation4 + $0x20] sm:$0x7]  ;;  %v19087_v2 = vld [vmem:[%s25771_s5 + $0xda4] ss:$16 sps:$4 sm:$0xff]  }
 0x529   : > { %8765 = vmatprep.subr.bf16.mxu1 %v19078_v12  ;;  %6367 = vst [vmem:[#allocation8 + $0xd0] sm:$0x7] %v6351_v15  ;;  %v6511_v28 = vrot.slane %v6495_v17, 6  ;;  %v6655_v21 = vrot.slane %v6639_v58, 3  ;;  %6326 = vst [vmem:[#allocation8 + $0x90] sm:$0x7] %v6318_v63 }
 0x52a   : > { %8723 = vmatpush2.bf16.msra.mxu0 %v19073_v62  ;;  %v19082_v5 = vld [vmem:[%s25771_s5 + $0xfc0] ss:$16 sps:$4 sm:$0xff]   ;;  %v19090_v30 = vld [vmem:[%s25771_s5 + $0xfa4] ss:$16 sps:$4 sm:$0xff]   ;;  %v6375_v37 = vld [vmem:[#allocation4 + $0x28] sm:$0x1c] }
 0x52b   : > { %8724 = vmatprep.subr.bf16.mxu0 %v19081_v13  ;;  %6527 = vst [vmem:[#allocation8 + $0xd0] sm:$0x38] %v6511_v28  ;;  %6675 = vst [vmem:[#allocation8 + $0xa0] ss:$52 sps:$4 sm:$0xc1] %v6655_v21   ;;  %v6391_v48 = vrot.slane %v6375_v37, 2 }
 0x52c   : > { %8766 = vmatpush2.bf16.msra.mxu1 %v19076_v52  ;;  %v6334_v32 = vld [vmem:[#allocation4 + $0x20] sm:$0xe]  ;;  %v19093_v35 = vld [vmem:[%s25771_s5 + $0xd84] ss:$16 sps:$4 sm:$0xff]   ;;  %v6535_v46 = vld [vmem:[#allocation4 + $0x38] sm:$0x1c] }
 0x52d   : > { %8767 = vmatprep.subr.bf16.mxu1 %v19084_v19  ;;  %v19085_v43 = vld [vmem:[%s25771_s5 + $0xda0] ss:$16 sps:$4 sm:$0xff]   ;;  %v6350_v16 = vrot.slane %v6334_v32, 1  ;;  %v6687_v38 = vld [vmem:[#allocation4 + $0x48] sm:$0x1c]  ;;  %v6551_v11 = vrot.slane %v6535_v46, 7 }
 0x52e   : > { %8725 = vmatpush2.bf16.msra.mxu0 %v19079_v51  ;;  %v19088_v18 = vld [vmem:[%s25771_s5 + $0xfa0] ss:$16 sps:$4 sm:$0xff]   ;;  %v19096_v53 = vld [vmem:[%s25771_s5 + $0xf84] ss:$16 sps:$4 sm:$0xff]   ;;  %v6703_v59 = vrot.slane %v6687_v38, 4  ;;  %v7063_v21 = vld [vmem:[#allocation8 + $0x1c8] sm:$0xff] }
 0x52f   : > { %8726 = vmatprep.subr.bf16.mxu0 %v19087_v2  ;;  %6366 = vst [vmem:[#allocation8 + $0x140] sm:$0x7] %v6350_v16  ;;  %v19091_v33 = vld [vmem:[%s25771_s5 + $0xd80] ss:$16 sps:$4 sm:$0xff]   ;;  %v19099_v61 = vld [vmem:[%s25771_s5 + $0xd64] ss:$16 sps:$4 sm:$0xff]  }
 0x530   : > { %8768 = vmatpush2.bf16.msra.mxu1 %v19082_v5  ;;  %v6415_v60 = vld [vmem:[#allocation4 + $0x28] sm:$0x38]  ;;  %6407 = vst [vmem:[#allocation8 + $0x168] sm:$0x7] %v6391_v48  ;;  %v6575_v42 = vld [vmem:[#allocation4 + $0x38] sm:$0x38] }
 0x531   : > { %8769 = vmatprep.subr.bf16.mxu1 %v19090_v30  ;;  %v6431_v39 = vrot.slane %v6415_v60, 3  ;;  %v6735_v56 = vld [vmem:[#allocation4 + $0x48] sm:$0x38]  ;;  %v19094_v47 = vld [vmem:[%s25771_s5 + $0xf80] ss:$16 sps:$4 sm:$0xff]  }
 0x532   : > { %8727 = vmatpush2.bf16.msra.mxu0 %v19085_v43  ;;  %6567 = vst [vmem:[#allocation8 + $0x168] sm:$0x38] %v6551_v11  ;;  %6723 = vst [vmem:[#allocation8 + $0x1d8] ss:$-108 sps:$4 sm:$0xc1] %v6703_v59   ;;  %v6751_v24 = vrot.slane %v6735_v56, 5 }
 0x533   : > { %8728 = vmatprep.subr.bf16.mxu0 %v19093_v35  ;;  %6583 = vst [vmem:[#allocation8] sm:$0x38] %v6575_v42  ;;  %v19102_v27 = vld [vmem:[%s25771_s5 + $0xf64] ss:$16 sps:$4 sm:$0xff]   ;;  %6447 = vst [vmem:[#allocation8] sm:$0x7] %v6431_v39 }
 0x534   : > { %8770 = vmatpush2.bf16.msra.mxu1 %v19088_v18  ;;  %v19097_v57 = vld [vmem:[%s25771_s5 + $0xd60] ss:$16 sps:$4 sm:$0xff]   ;;  %v19105_v1 = vld [vmem:[%s25771_s5 + $0xd44] ss:$16 sps:$4 sm:$0xff]   ;;  %v6321_v7 = vld [vmem:[#allocation4 + $0x38] sm:$0x7] }
 0x535   : > { %8771 = vmatprep.subr.bf16.mxu1 %v19096_v53  ;;  %v6374_v31 = vld [vmem:[#allocation4 + $0x20] sm:$0x1c]  ;;  %6771 = vst [vmem:[#allocation8 + $0x80] ss:$-124 sps:$4 sm:$0xc1] %v6751_v24   ;;  %v7065_v32 = vld [vmem:[#allocation8 + $0x150] sm:$0xff] }
 0x536   : > { %8729 = vmatpush2.bf16.msra.mxu0 %v19091_v33  ;;  %v6414_v20 = vld [vmem:[#allocation4 + $0x20] sm:$0x38]  ;;  %v6390_v9 = vrot.slane %v6374_v31, 2  ;;  %v6457_v22 = vld [vmem:[#allocation4 + $0x48] sm:$0x7] }
 0x537   : > { %8730 = vmatprep.subr.bf16.mxu0 %v19099_v61  ;;  %v6430_v41 = vrot.slane %v6414_v20, 3  ;;  %v19100_v3 = vld [vmem:[%s25771_s5 + $0xf60] ss:$16 sps:$4 sm:$0xff]   ;;  %v19108_v8 = vld [vmem:[%s25771_s5 + $0xf44] ss:$16 sps:$4 sm:$0xff]   ;;  %v6473_v49 = vrot.slane %v6457_v22, 5 }
 0x538   : > { %8772 = vmatpush2.bf16.msra.mxu1 %v19094_v47  ;;  %v19103_v10 = vld [vmem:[%s25771_s5 + $0xd40] ss:$16 sps:$4 sm:$0xff]   ;;  %6406 = vst [vmem:[#allocation8 + $0x20] sm:$0x7] %v6390_v9  ;;  %6329 = vst [vmem:[#allocation8 + $0x18] sm:$0x7] %v6321_v7 }
 0x539   : > { %8773 = vmatprep.subr.bf16.mxu1 %v19102_v27  ;;  %6446 = vst [vmem:[#allocation8 + $0x170] sm:$0x7] %v6430_v41  ;;  %v6337_v25 = vld [vmem:[#allocation4 + $0x38] sm:$0xe]  ;;  %v6497_v29 = vld [vmem:[#allocation4 + $0x48] sm:$0xe] }
 0x53a   : > { %8731 = vmatpush2.bf16.msra.mxu0 %v19097_v57  ;;  %v19111_v34 = vld [vmem:[%s25771_s5 + $0xd24] ss:$16 sps:$4 sm:$0xff]   ;;  %v6353_v14 = vrot.slane %v6337_v25, 1  ;;  %v6513_v12 = vrot.slane %v6497_v29, 6  ;;  %v19106_v0 = vld [vmem:[%s25771_s5 + $0xf40] ss:$16 sps:$4 sm:$0xff]  }
 0x53b   : > { %8732 = vmatprep.subr.bf16.mxu0 %v19105_v1  ;;  %6489 = vst [vmem:[#allocation8 + $0x18] sm:$0x38] %v6473_v49  ;;  %v19114_v62 = vld [vmem:[%s25771_s5 + $0xf24] ss:$16 sps:$4 sm:$0xff]   ;;  %v6377_v36 = vld [vmem:[#allocation4 + $0x38] sm:$0x1c] }
 0x53c   : > { %8774 = vmatpush2.bf16.msra.mxu1 %v19100_v3  ;;  %6369 = vst [vmem:[#allocation8 + $0x110] sm:$0x7] %v6353_v14  ;;  %6529 = vst [vmem:[#allocation8 + $0x110] sm:$0x38] %v6513_v12  ;;  %v6537_v40 = vld [vmem:[#allocation4 + $0x48] sm:$0x1c] }
 0x53d   : > { %8775 = vmatprep.subr.bf16.mxu1 %v19108_v8  ;;  %v19109_v13 = vld [vmem:[%s25771_s5 + $0xd20] ss:$16 sps:$4 sm:$0xff]   ;;  %v6393_v23 = vrot.slane %v6377_v36, 2  ;;  %v6553_v44 = vrot.slane %v6537_v40, 7  ;;  %v19117_v52 = vld [vmem:[%s25771_s5 + $0xd04] ss:$16 sps:$4 sm:$0xff]  }
 0x53e   : > { %8733 = vmatpush2.bf16.msra.mxu0 %v19103_v10  ;;  %v6417_v51 = vld [vmem:[#allocation4 + $0x38] sm:$0x38]  ;;  %v6577_v19 = vld [vmem:[#allocation4 + $0x48] sm:$0x38]  ;;  %v19112_v15 = vld [vmem:[%s25771_s5 + $0xf20] ss:$16 sps:$4 sm:$0xff]  }
 0x53f   : > { %8734 = vmatprep.subr.bf16.mxu0 %v19111_v34  ;;  %6409 = vst [vmem:[#allocation8 + $0x108] sm:$0x7] %v6393_v23  ;;  %6569 = vst [vmem:[#allocation8 + $0x108] sm:$0x38] %v6553_v44  ;;  %v19120_v17 = vld [vmem:[%s25771_s5 + $0xf04] ss:$16 sps:$4 sm:$0xff]  }
 0x540   : > { %8776 = vmatpush2.bf16.msra.mxu1 %v19106_v0  ;;  %6585 = vst [vmem:[#allocation8 + $0x8] sm:$0x38] %v6577_v19  ;;  %v6433_v58 = vrot.slane %v6417_v51, 3  ;;  %v19115_v63 = vld [vmem:[%s25771_s5 + $0xd00] ss:$16 sps:$4 sm:$0xff]  }
 0x541   : > { %8777 = vmatprep.subr.bf16.mxu1 %v19114_v62  ;;  %v19123_v2 = vld [vmem:[%s25771_s5 + $0x8ec] ss:$16 sps:$4 sm:$0xff]   ;;  %v19118_v28 = vld [vmem:[%s25771_s5 + $0xf00] ss:$16 sps:$4 sm:$0xff]   ;;  %v7071_v5 = vld [vmem:[#allocation8 + $0x128] sm:$0x1] }
 0x542   : > { %8735 = vmatpush2.bf16.msra.mxu0 %v19109_v13  ;;  %6449 = vst [vmem:[#allocation8 + $0x8] sm:$0x7] %v6433_v58  ;;  %v19126_v30 = vld [vmem:[%s25771_s5 + $0xaec] ss:$16 sps:$4 sm:$0xff]   ;;  %v7073_v43 = vld [vmem:[#allocation8 + $0x30] sm:$0x1]  ;;  %v22677_v16 = vpack.c.bf16 %v7071_v5, %v7063_v21 }
 0x543   : > { %8736 = vmatprep.subr.bf16.mxu0 %v19117_v52  ;;  %v19121_v35 = vld [vmem:[%s25771_s5 + $0x8e8] ss:$16 sps:$4 sm:$0xff]   ;;  %v19129_v37 = vld [vmem:[%s25771_s5 + $0x8cc] ss:$16 sps:$4 sm:$0xff]   ;;  %v22686_v38 = vpack.c.bf16 %v7073_v43, %v7065_v32 }
 0x544   : > { %8778 = vmatpush2.bf16.msra.mxu1 %v19112_v15  ;;  %v19124_v46 = vld [vmem:[%s25771_s5 + $0xae8] ss:$16 sps:$4 sm:$0xff]   ;;  %v19132_v18 = vld [vmem:[%s25771_s5 + $0xacc] ss:$16 sps:$4 sm:$0xff]  }
 0x545   : > { %8779 = vmatprep.subr.bf16.mxu1 %v19120_v17  ;;  %v19127_v33 = vld [vmem:[%s25771_s5 + $0x8c8] ss:$16 sps:$4 sm:$0xff]   ;;  %v19135_v53 = vld [vmem:[%s25771_s5 + $0x8ac] ss:$16 sps:$4 sm:$0xff]  }
 0x546   : > { %8737 = vmatpush2.bf16.msra.mxu0 %v19115_v63  ;;  %v19130_v48 = vld [vmem:[%s25771_s5 + $0xac8] ss:$16 sps:$4 sm:$0xff]   ;;  %v19141_v11 = vld [vmem:[%s25771_s5 + $0x88c] ss:$16 sps:$4 sm:$0xff]  }
 0x547   : > { %8792 = vmatprep.subr.bf16.mxu0 %v19123_v2  ;;  %v19133_v61 = vld [vmem:[%s25771_s5 + $0x8a8] ss:$16 sps:$4 sm:$0xff]   ;;  %v19144_v59 = vld [vmem:[%s25771_s5 + $0xa8c] ss:$16 sps:$4 sm:$0xff]  }
 0x548   : > { %8780 = vmatpush2.bf16.msra.mxu1 %v19118_v28  ;;  %v19139_v60 = vld [vmem:[%s25771_s5 + $0x888] ss:$16 sps:$4 sm:$0xff]   ;;  %v19147_v39 = vld [vmem:[%s25771_s5 + $0x86c] ss:$16 sps:$4 sm:$0xff]  }
 0x549   : > { %8739 = vmatmul.mubr.bf16.vlgmr.msra.gmra.mxu0 %v22677_v16  ;;  %8835 = vmatprep.subr.bf16.mxu1 %v19126_v30  ;;  %v19142_v42 = vld [vmem:[%s25771_s5 + $0xa88] ss:$16 sps:$4 sm:$0xff]   ;;  %v19150_v56 = vld [vmem:[%s25771_s5 + $0xa6c] ss:$16 sps:$4 sm:$0xff]  }
 0x54a   : > { %8793 = vmatpush1.bf16.msra.mxu0 %v19121_v35  ;;  %8824 = vmatprep.mubr.bf16.mxu0 %v22464_v54  ;;  %v19138_v54 = vld [vmem:[%s25771_s5 + $0xaac] ss:$16 sps:$4 sm:$0xff]   ;;  %v19145_v47 = vld [vmem:[%s25771_s5 + $0x868] ss:$16 sps:$4 sm:$0xff]  }
 0x54b   : > { %8782 = vmatmul.mubr.bf16.vlgmr.msra.gmra.mxu1 %v22686_v38  ;;  %8794 = vmatprep.subr.bf16.mxu0 %v19129_v37  ;;  %v19153_v27 = vld [vmem:[%s25771_s5 + $0x84c] ss:$16 sps:$4 sm:$0xff]   ;;  %v19148_v24 = vld [vmem:[%s25771_s5 + $0xa68] ss:$16 sps:$4 sm:$0xff]  }
 0x54c   : > { %8836 = vmatpush1.bf16.msra.mxu1 %v19124_v46  ;;  %8867 = vmatprep.mubr.bf16.mxu1 %v22467_v6  ;;  %v19136_v6 = vld [vmem:[%s25771_s5 + $0xaa8] ss:$16 sps:$4 sm:$0xff]   ;;  %v19156_v57 = vld [vmem:[%s25771_s5 + $0xa4c] ss:$16 sps:$4 sm:$0xff]  }
 0x54d   : > { %8837 = vmatprep.subr.bf16.mxu1 %v19132_v18  ;;  %v19151_v31 = vld [vmem:[%s25771_s5 + $0x848] ss:$16 sps:$4 sm:$0xff]   ;;  %v19159_v20 = vld [vmem:[%s25771_s5 + $0x82c] ss:$16 sps:$4 sm:$0xff]  }
 0x54e   : > { %8795 = vmatpush1.bf16.msra.mxu0 %v19127_v33  ;;  %v19154_v1 = vld [vmem:[%s25771_s5 + $0xa48] ss:$16 sps:$4 sm:$0xff]   ;;  %v19162_v9 = vld [vmem:[%s25771_s5 + $0xa2c] ss:$16 sps:$4 sm:$0xff]  }
 0x54f   : > { %8796 = vmatprep.subr.bf16.mxu0 %v19135_v53  ;;  %v19157_v41 = vld [vmem:[%s25771_s5 + $0x828] ss:$16 sps:$4 sm:$0xff]   ;;  %v19165_v3 = vld [vmem:[%s25771_s5 + $0x80c] ss:$16 sps:$4 sm:$0xff]  }
 0x550   : > { %8838 = vmatpush1.bf16.msra.mxu1 %v19130_v48  ;;  %v19160_v10 = vld [vmem:[%s25771_s5 + $0xa28] ss:$16 sps:$4 sm:$0xff]   ;;  %v19168_v8 = vld [vmem:[%s25771_s5 + $0xa0c] ss:$16 sps:$4 sm:$0xff]  }
 0x551   : > { %8839 = vmatprep.subr.bf16.mxu1 %v19138_v54  ;;  %v19163_v7 = vld [vmem:[%s25771_s5 + $0x808] ss:$16 sps:$4 sm:$0xff]   ;;  %v19171_v22 = vld [vmem:[%s25771_s5 + $0x9ec] ss:$16 sps:$4 sm:$0xff]  }
 0x552   : > { %8797 = vmatpush1.bf16.msra.mxu0 %v19133_v61  ;;  %v19166_v49 = vld [vmem:[%s25771_s5 + $0xa08] ss:$16 sps:$4 sm:$0xff]   ;;  %v19174_v25 = vld [vmem:[%s25771_s5 + $0xbec] ss:$16 sps:$4 sm:$0xff]  }
 0x553   : > { %8798 = vmatprep.subr.bf16.mxu0 %v19141_v11  ;;  %v19169_v29 = vld [vmem:[%s25771_s5 + $0x9e8] ss:$16 sps:$4 sm:$0xff]   ;;  %v19177_v34 = vld [vmem:[%s25771_s5 + $0x9cc] ss:$16 sps:$4 sm:$0xff]  }
 0x554   : > { %8840 = vmatpush1.bf16.msra.mxu1 %v19136_v6  ;;  %v19172_v14 = vld [vmem:[%s25771_s5 + $0xbe8] ss:$16 sps:$4 sm:$0xff]   ;;  %v19180_v12 = vld [vmem:[%s25771_s5 + $0xbcc] ss:$16 sps:$4 sm:$0xff]  }
 0x555   : > { %8841 = vmatprep.subr.bf16.mxu1 %v19144_v59  ;;  %v19175_v0 = vld [vmem:[%s25771_s5 + $0x9c8] ss:$16 sps:$4 sm:$0xff]   ;;  %v19183_v62 = vld [vmem:[%s25771_s5 + $0x9ac] ss:$16 sps:$4 sm:$0xff]  }
 0x556   : > { %8799 = vmatpush1.bf16.msra.mxu0 %v19139_v60  ;;  %v19178_v36 = vld [vmem:[%s25771_s5 + $0xbc8] ss:$16 sps:$4 sm:$0xff]   ;;  %v19186_v40 = vld [vmem:[%s25771_s5 + $0xbac] ss:$16 sps:$4 sm:$0xff]  }
 0x557   : > { %8800 = vmatprep.subr.bf16.mxu0 %v19147_v39  ;;  %v19181_v13 = vld [vmem:[%s25771_s5 + $0x9a8] ss:$16 sps:$4 sm:$0xff]   ;;  %v19189_v23 = vld [vmem:[%s25771_s5 + $0x98c] ss:$16 sps:$4 sm:$0xff]  }
 0x558   : > { %8842 = vmatpush1.bf16.msra.mxu1 %v19142_v42  ;;  %v19184_v44 = vld [vmem:[%s25771_s5 + $0xba8] ss:$16 sps:$4 sm:$0xff]   ;;  %v19192_v52 = vld [vmem:[%s25771_s5 + $0xb8c] ss:$16 sps:$4 sm:$0xff]  }
 0x559   : > { %8843 = vmatprep.subr.bf16.mxu1 %v19150_v56  ;;  %v19187_v51 = vld [vmem:[%s25771_s5 + $0x988] ss:$16 sps:$4 sm:$0xff]   ;;  %v19195_v19 = vld [vmem:[%s25771_s5 + $0x96c] ss:$16 sps:$4 sm:$0xff]  }
 0x55a   : > { %8801 = vmatpush1.bf16.msra.mxu0 %v19145_v47  ;;  %v19190_v15 = vld [vmem:[%s25771_s5 + $0xb88] ss:$16 sps:$4 sm:$0xff]   ;;  %v19198_v17 = vld [vmem:[%s25771_s5 + $0xb6c] ss:$16 sps:$4 sm:$0xff]  }
 0x55b   : > { %8802 = vmatprep.subr.bf16.mxu0 %v19153_v27  ;;  %v19193_v58 = vld [vmem:[%s25771_s5 + $0x968] ss:$16 sps:$4 sm:$0xff]   ;;  %v19201_v63 = vld [vmem:[%s25771_s5 + $0x94c] ss:$16 sps:$4 sm:$0xff]  }
 0x55c   : > { %8844 = vmatpush1.bf16.msra.mxu1 %v19148_v24  ;;  %v19196_v2 = vld [vmem:[%s25771_s5 + $0xb68] ss:$16 sps:$4 sm:$0xff]   ;;  %v19204_v28 = vld [vmem:[%s25771_s5 + $0xb4c] ss:$16 sps:$4 sm:$0xff]  }
 0x55d   : > { %8845 = vmatprep.subr.bf16.mxu1 %v19156_v57  ;;  %v19199_v21 = vld [vmem:[%s25771_s5 + $0x948] ss:$16 sps:$4 sm:$0xff]   ;;  %v19207_v5 = vld [vmem:[%s25771_s5 + $0x92c] ss:$16 sps:$4 sm:$0xff]  }
 0x55e   : > { %8803 = vmatpush1.bf16.msra.mxu0 %v19151_v31  ;;  %v19202_v30 = vld [vmem:[%s25771_s5 + $0xb48] ss:$16 sps:$4 sm:$0xff]   ;;  %v19210_v32 = vld [vmem:[%s25771_s5 + $0xb2c] ss:$16 sps:$4 sm:$0xff]  }
 0x55f   : > { %8804 = vmatprep.subr.bf16.mxu0 %v19159_v20  ;;  %v19205_v43 = vld [vmem:[%s25771_s5 + $0x928] ss:$16 sps:$4 sm:$0xff]   ;;  %v19213_v35 = vld [vmem:[%s25771_s5 + $0x90c] ss:$16 sps:$4 sm:$0xff]  }
 0x560   : > { %8846 = vmatpush1.bf16.msra.mxu1 %v19154_v1  ;;  %v19208_v37 = vld [vmem:[%s25771_s5 + $0xb28] ss:$16 sps:$4 sm:$0xff]   ;;  %v19216_v46 = vld [vmem:[%s25771_s5 + $0xb0c] ss:$16 sps:$4 sm:$0xff]  }
 0x561   : > { %8847 = vmatprep.subr.bf16.mxu1 %v19162_v9  ;;  %v19211_v18 = vld [vmem:[%s25771_s5 + $0x908] ss:$16 sps:$4 sm:$0xff]   ;;  %v19219_v33 = vld [vmem:[%s25771_s5 + $0xcec] ss:$16 sps:$4 sm:$0xff]  }
 0x562   : > { %8805 = vmatpush1.bf16.msra.mxu0 %v19157_v41  ;;  %v19214_v53 = vld [vmem:[%s25771_s5 + $0xb08] ss:$16 sps:$4 sm:$0xff]   ;;  %v19222_v48 = vld [vmem:[%s25771_s5 + $0xeec] ss:$16 sps:$4 sm:$0xff]  }
 0x563   : > { %8806 = vmatprep.subr.bf16.mxu0 %v19165_v3  ;;  %v19217_v54 = vld [vmem:[%s25771_s5 + $0xce8] ss:$16 sps:$4 sm:$0xff]   ;;  %v19225_v61 = vld [vmem:[%s25771_s5 + $0xccc] ss:$16 sps:$4 sm:$0xff]  }
 0x564   : > { %8848 = vmatpush1.bf16.msra.mxu1 %v19160_v10  ;;  %v19220_v11 = vld [vmem:[%s25771_s5 + $0xee8] ss:$16 sps:$4 sm:$0xff]   ;;  %v19228_v6 = vld [vmem:[%s25771_s5 + $0xecc] ss:$16 sps:$4 sm:$0xff]  }
 0x565   : > { %8849 = vmatprep.subr.bf16.mxu1 %v19168_v8  ;;  %v19223_v59 = vld [vmem:[%s25771_s5 + $0xcc8] ss:$16 sps:$4 sm:$0xff]   ;;  %v19231_v60 = vld [vmem:[%s25771_s5 + $0xcac] ss:$16 sps:$4 sm:$0xff]  }
 0x566   : > { %8807 = vmatpush1.bf16.msra.mxu0 %v19163_v7  ;;  %v19237_v39 = vld [vmem:[%s25771_s5 + $0xc8c] ss:$16 sps:$4 sm:$0xff]   ;;  %v19235_v56 = vld [vmem:[%s25771_s5 + $0xc88] ss:$16 sps:$4 sm:$0xff]  }
 0x567   : > { %8808 = vmatprep.subr.bf16.mxu0 %v19171_v22  ;;  %v19240_v42 = vld [vmem:[%s25771_s5 + $0xe8c] ss:$16 sps:$4 sm:$0xff]   ;;  %v19238_v27 = vld [vmem:[%s25771_s5 + $0xe88] ss:$16 sps:$4 sm:$0xff]  }
 0x568   : > { %8850 = vmatpush1.bf16.msra.mxu1 %v19166_v49  ;;  %v19243_v47 = vld [vmem:[%s25771_s5 + $0xc6c] ss:$16 sps:$4 sm:$0xff]   ;;  %v19241_v57 = vld [vmem:[%s25771_s5 + $0xc68] ss:$16 sps:$4 sm:$0xff]  }
 0x569   : > { %8851 = vmatprep.subr.bf16.mxu1 %v19174_v25  ;;  %v19246_v24 = vld [vmem:[%s25771_s5 + $0xe6c] ss:$16 sps:$4 sm:$0xff]   ;;  %v19244_v20 = vld [vmem:[%s25771_s5 + $0xe68] ss:$16 sps:$4 sm:$0xff]  }
 0x56a   : > { %8809 = vmatpush2.bf16.msra.mxu0 %v19169_v29  ;;  %v19249_v31 = vld [vmem:[%s25771_s5 + $0xc4c] ss:$16 sps:$4 sm:$0xff]   ;;  %v19247_v9 = vld [vmem:[%s25771_s5 + $0xc48] ss:$16 sps:$4 sm:$0xff]  }
 0x56b   : > { %8810 = vmatprep.subr.bf16.mxu0 %v19177_v34  ;;  %v19252_v1 = vld [vmem:[%s25771_s5 + $0xe4c] ss:$16 sps:$4 sm:$0xff]   ;;  %v19250_v3 = vld [vmem:[%s25771_s5 + $0xe48] ss:$16 sps:$4 sm:$0xff]  }
 0x56c   : > { %8852 = vmatpush2.bf16.msra.mxu1 %v19172_v14  ;;  %v19255_v41 = vld [vmem:[%s25771_s5 + $0xc2c] ss:$16 sps:$4 sm:$0xff]   ;;  %v19253_v8 = vld [vmem:[%s25771_s5 + $0xc28] ss:$16 sps:$4 sm:$0xff]  }
 0x56d   : > { %8853 = vmatprep.subr.bf16.mxu1 %v19180_v12  ;;  %v19258_v10 = vld [vmem:[%s25771_s5 + $0xe2c] ss:$16 sps:$4 sm:$0xff]   ;;  %v19256_v22 = vld [vmem:[%s25771_s5 + $0xe28] ss:$16 sps:$4 sm:$0xff]  }
 0x56e   : > { %8811 = vmatpush2.bf16.msra.mxu0 %v19175_v0  ;;  %v19261_v7 = vld [vmem:[%s25771_s5 + $0xc0c] ss:$16 sps:$4 sm:$0xff]   ;;  %v19259_v25 = vld [vmem:[%s25771_s5 + $0xc08] ss:$16 sps:$4 sm:$0xff]  }
 0x56f   : > { %8812 = vmatprep.subr.bf16.mxu0 %v19183_v62  ;;  %v19264_v49 = vld [vmem:[%s25771_s5 + $0xe0c] ss:$16 sps:$4 sm:$0xff]   ;;  %v19262_v34 = vld [vmem:[%s25771_s5 + $0xe08] ss:$16 sps:$4 sm:$0xff]  }
 0x570   : > { %8854 = vmatpush2.bf16.msra.mxu1 %v19178_v36  ;;  %v19267_v29 = vld [vmem:[%s25771_s5 + $0xdec] ss:$16 sps:$4 sm:$0xff]   ;;  %v19265_v12 = vld [vmem:[%s25771_s5 + $0xde8] ss:$16 sps:$4 sm:$0xff]  }
 0x571   : > { %8855 = vmatprep.subr.bf16.mxu1 %v19186_v40  ;;  %v19270_v14 = vld [vmem:[%s25771_s5 + $0xfec] ss:$16 sps:$4 sm:$0xff]   ;;  %v19268_v62 = vld [vmem:[%s25771_s5 + $0xfe8] ss:$16 sps:$4 sm:$0xff]  }
 0x572   : > { %8813 = vmatpush2.bf16.msra.mxu0 %v19181_v13  ;;  %v19273_v0 = vld [vmem:[%s25771_s5 + $0xdcc] ss:$16 sps:$4 sm:$0xff]   ;;  %v19271_v40 = vld [vmem:[%s25771_s5 + $0xdc8] ss:$16 sps:$4 sm:$0xff]  }
 0x573   : > { %8814 = vmatprep.subr.bf16.mxu0 %v19189_v23  ;;  %v19276_v36 = vld [vmem:[%s25771_s5 + $0xfcc] ss:$16 sps:$4 sm:$0xff]   ;;  %v19274_v23 = vld [vmem:[%s25771_s5 + $0xfc8] ss:$16 sps:$4 sm:$0xff]  }
 0x574   : > { %8856 = vmatpush2.bf16.msra.mxu1 %v19184_v44  ;;  %v19279_v13 = vld [vmem:[%s25771_s5 + $0xdac] ss:$16 sps:$4 sm:$0xff]  }
 0x575   : > { %8857 = vmatprep.subr.bf16.mxu1 %v19192_v52  ;;  %v19282_v44 = vld [vmem:[%s25771_s5 + $0xfac] ss:$16 sps:$4 sm:$0xff]   ;;  %v19277_v52 = vld [vmem:[%s25771_s5 + $0xda8] ss:$16 sps:$4 sm:$0xff]  }
 0x576   : > { %8815 = vmatpush2.bf16.msra.mxu0 %v19187_v51  ;;  %v19285_v51 = vld [vmem:[%s25771_s5 + $0xd8c] ss:$16 sps:$4 sm:$0xff]  }
 0x577   : > { %8816 = vmatprep.subr.bf16.mxu0 %v19195_v19  ;;  %v19280_v19 = vld [vmem:[%s25771_s5 + $0xfa8] ss:$16 sps:$4 sm:$0xff]  }
 0x578   : > { %8858 = vmatpush2.bf16.msra.mxu1 %v19190_v15  ;;  %v19288_v15 = vld [vmem:[%s25771_s5 + $0xf8c] ss:$16 sps:$4 sm:$0xff]  }
 0x579   : > { %8859 = vmatprep.subr.bf16.mxu1 %v19198_v17  ;;  %v19283_v17 = vld [vmem:[%s25771_s5 + $0xd88] ss:$16 sps:$4 sm:$0xff]  }
 0x57a   : > { %8817 = vmatpush2.bf16.msra.mxu0 %v19193_v58  ;;  %v19291_v58 = vld [vmem:[%s25771_s5 + $0xd6c] ss:$16 sps:$4 sm:$0xff]  }
 0x57b   : > { %8818 = vmatprep.subr.bf16.mxu0 %v19201_v63  ;;  %v19286_v63 = vld [vmem:[%s25771_s5 + $0xf88] ss:$16 sps:$4 sm:$0xff]  }
 0x57c   : > { %8860 = vmatpush2.bf16.msra.mxu1 %v19196_v2  ;;  %v19294_v2 = vld [vmem:[%s25771_s5 + $0xf6c] ss:$16 sps:$4 sm:$0xff]  }
 0x57d   : > { %8861 = vmatprep.subr.bf16.mxu1 %v19204_v28  ;;  %v19289_v28 = vld [vmem:[%s25771_s5 + $0xd68] ss:$16 sps:$4 sm:$0xff]  }
 0x57e   : > { %8819 = vmatpush2.bf16.msra.mxu0 %v19199_v21  ;;  %v19297_v21 = vld [vmem:[%s25771_s5 + $0xd4c] ss:$16 sps:$4 sm:$0xff]  }
 0x57f   : > { %8820 = vmatprep.subr.bf16.mxu0 %v19207_v5  ;;  %v19292_v5 = vld [vmem:[%s25771_s5 + $0xf68] ss:$16 sps:$4 sm:$0xff]  }
 0x580   : > { %8862 = vmatpush2.bf16.msra.mxu1 %v19202_v30  ;;  %v19300_v30 = vld [vmem:[%s25771_s5 + $0xf4c] ss:$16 sps:$4 sm:$0xff]  }
 0x581   : > { %8863 = vmatprep.subr.bf16.mxu1 %v19210_v32  ;;  %v19295_v32 = vld [vmem:[%s25771_s5 + $0xd48] ss:$16 sps:$4 sm:$0xff]  }
 0x582   : > { %8821 = vmatpush2.bf16.msra.mxu0 %v19205_v43  ;;  %v19303_v43 = vld [vmem:[%s25771_s5 + $0xd2c] ss:$16 sps:$4 sm:$0xff]  }
 0x583   : > { %8822 = vmatprep.subr.bf16.mxu0 %v19213_v35  ;;  %v19298_v35 = vld [vmem:[%s25771_s5 + $0xf48] ss:$16 sps:$4 sm:$0xff]  }
 0x584   : > { %8864 = vmatpush2.bf16.msra.mxu1 %v19208_v37  ;;  %v19306_v37 = vld [vmem:[%s25771_s5 + $0xf2c] ss:$16 sps:$4 sm:$0xff]  }
 0x585   : > { %8865 = vmatprep.subr.bf16.mxu1 %v19216_v46  ;;  %v19301_v46 = vld [vmem:[%s25771_s5 + $0xd28] ss:$16 sps:$4 sm:$0xff]  }
 0x586   : > { %8823 = vmatpush2.bf16.msra.mxu0 %v19211_v18  ;;  %v19309_v18 = vld [vmem:[%s25771_s5 + $0xd0c] ss:$16 sps:$4 sm:$0xff]  }
 0x587   : > { %8878 = vmatprep.subr.bf16.mxu0 %v19219_v33  ;;  %v19304_v33 = vld [vmem:[%s25771_s5 + $0xf28] ss:$16 sps:$4 sm:$0xff]  }
 0x588   : > { %8866 = vmatpush2.bf16.msra.mxu1 %v19214_v53  ;;  %v19312_v53 = vld [vmem:[%s25771_s5 + $0xf0c] ss:$16 sps:$4 sm:$0xff]  }
 0x589   : > { %8825 = vmatmul.mubr.bf16.vlgmr.msra.gmra.mxu0 %v22472_v45  ;;  %8921 = vmatprep.subr.bf16.mxu1 %v19222_v48  ;;  %v19226_v45 = vld [vmem:[%s25771_s5 + $0xec8] ss:$16 sps:$4 sm:$0xff]  }
 0x58a   : > { %8879 = vmatpush1.bf16.msra.mxu0 %v19217_v54  ;;  %8910 = vmatprep.mubr.bf16.mxu0 %v22487_v55  ;;  %v19234_v55 = vld [vmem:[%s25771_s5 + $0xeac] ss:$16 sps:$4 sm:$0xff]   ;;  %v19307_v48 = vld [vmem:[%s25771_s5 + $0xd08] ss:$16 sps:$4 sm:$0xff]   ;;  %v19315_v54 = vld [vmem:[%s25771_s5 + $0xe4] ss:$16 sps:$4 sm:$0xff]  }
 0x58b   : > { %8868 = vmatmul.mubr.bf16.vlgmr.msra.gmra.mxu1 %v22482_v4  ;;  %8880 = vmatprep.subr.bf16.mxu0 %v19225_v61  ;;  %v19229_v4 = vld [vmem:[%s25771_s5 + $0xca8] ss:$16 sps:$4 sm:$0xff]  }
 0x58c   : > { %8922 = vmatpush1.bf16.msra.mxu1 %v19220_v11  ;;  %8953 = vmatprep.mubr.bf16.mxu1 %v22497_v26  ;;  %v19232_v26 = vld [vmem:[%s25771_s5 + $0xea8] ss:$16 sps:$4 sm:$0xff]   ;;  %v19318_v11 = vld [vmem:[%s25771_s5 + $0x2e4] ss:$16 sps:$4 sm:$0xff]  }
 0x58d   : > { %8923 = vmatprep.subr.bf16.mxu1 %v19228_v6  ;;  %v19310_v61 = vld [vmem:[%s25771_s5 + $0xf08] ss:$16 sps:$4 sm:$0xff]   ;;  %v6779_v6 = vld [vmem:[#allocation8 + $0x1e0] sm:$0xff] }
 0x58e   : > { %8881 = vmatpush1.bf16.msra.mxu0 %v19223_v59  ;;  %v6787_v59 = vld [vmem:[#allocation8 + $0xf0] sm:$0x1] }
 0x58f   : > { %8882 = vmatprep.subr.bf16.mxu0 %v19231_v60  ;;  %v19313_v60 = vld [vmem:[%s25771_s5 + $0xe0] ss:$16 sps:$4 sm:$0xff]  }
 0x590   : > { %8924 = vmatpush1.bf16.msra.mxu1 %v19226_v45  ;;  %v6781_v45 = vld [vmem:[#allocation8 + $0xc0] sm:$0xff] }
 0x591   : > { %8925 = vmatprep.subr.bf16.mxu1 %v19234_v55  ;;  %v6789_v55 = vld [vmem:[#allocation8 + $0x1f0] sm:$0x1] }
 0x592   : > { %8883 = vmatpush1.bf16.msra.mxu0 %v19229_v4  ;;  %v19321_v4 = vld [vmem:[%s25771_s5 + $0xc4] ss:$16 sps:$4 sm:$0xff]  }
 0x593   : > { %8884 = vmatprep.subr.bf16.mxu0 %v19237_v39  ;;  %v19316_v39 = vld [vmem:[%s25771_s5 + $0x2e0] ss:$16 sps:$4 sm:$0xff]  }
 0x594   : > { %8926 = vmatpush1.bf16.msra.mxu1 %v19232_v26  ;;  %v23079_v26 = vpack.c.bf16 %v6787_v59, %v6779_v6  ;;  %v19387_v6 = vld [vmem:[%s25771_s5 + $0x164] ss:$16 sps:$4 sm:$0xff]   ;;  %v19382_v59 = vld [vmem:[%s25771_s5 + $0x380] ss:$16 sps:$4 sm:$0xff]  }
 0x595   : > { %8927 = vmatprep.subr.bf16.mxu1 %v19240_v42 }
 0x596   : > { %8885 = vmatpush1.bf16.msra.mxu0 %v19235_v56  ;;  %v19324_v56 = vld [vmem:[%s25771_s5 + $0x2c4] ss:$16 sps:$4 sm:$0xff]  }
 0x597   : > { %8886 = vmatprep.subr.bf16.mxu0 %v19243_v47  ;;  %v23086_v47 = vpack.c.bf16 %v6789_v55, %v6781_v45  ;;  %v19385_v45 = vld [vmem:[%s25771_s5 + $0x160] ss:$16 sps:$4 sm:$0xff]   ;;  %v19393_v55 = vld [vmem:[%s25771_s5 + $0x144] ss:$16 sps:$4 sm:$0xff]  }
 0x598   : > { %8928 = vmatpush1.bf16.msra.mxu1 %v19238_v27  ;;  %v19319_v27 = vld [vmem:[%s25771_s5 + $0xc0] ss:$16 sps:$4 sm:$0xff]  }
 0x599   : > { %8929 = vmatprep.subr.bf16.mxu1 %v19246_v24 }
 0x59a   : > { %8887 = vmatpush1.bf16.msra.mxu0 %v19241_v57 }
 0x59b   : > { %8888 = vmatprep.subr.bf16.mxu0 %v19249_v31 }
 0x59c   : > { %8930 = vmatpush1.bf16.msra.mxu1 %v19244_v20  ;;  %v19322_v20 = vld [vmem:[%s25771_s5 + $0x2c0] ss:$16 sps:$4 sm:$0xff]  }
 0x59d   : > { %8931 = vmatprep.subr.bf16.mxu1 %v19252_v1 }
 0x59e   : > { %8889 = vmatpush1.bf16.msra.mxu0 %v19247_v9 }
 0x59f   : > { %8890 = vmatprep.subr.bf16.mxu0 %v19255_v41 }
 0x5a0   : > { %8932 = vmatpush1.bf16.msra.mxu1 %v19250_v3  ;;  %v19325_v3 = vld [vmem:[%s25771_s5 + $0xa0] ss:$16 sps:$4 sm:$0xff]  }
 0x5a1   : > { %8933 = vmatprep.subr.bf16.mxu1 %v19258_v10 }
 0x5a2   : > { %8891 = vmatpush1.bf16.msra.mxu0 %v19253_v8 }
 0x5a3   : > { %8892 = vmatprep.subr.bf16.mxu0 %v19261_v7  ;;  %v19333_v7 = vld [vmem:[%s25771_s5 + $0x84] ss:$16 sps:$4 sm:$0xff]  }
 0x5a4   : > { %8934 = vmatpush1.bf16.msra.mxu1 %v19256_v22 }
 0x5a5   : > { %8935 = vmatprep.subr.bf16.mxu1 %v19264_v49  ;;  %v19328_v49 = vld [vmem:[%s25771_s5 + $0x2a0] ss:$16 sps:$4 sm:$0xff]  }
 0x5a6   : > { %8893 = vmatpush1.bf16.msra.mxu0 %v19259_v25 }
 0x5a7   : > { %8894 = vmatprep.subr.bf16.mxu0 %v19267_v29  ;;  %v19336_v29 = vld [vmem:[%s25771_s5 + $0x284] ss:$16 sps:$4 sm:$0xff]  }
 0x5a8   : > { %8936 = vmatpush1.bf16.msra.mxu1 %v19262_v34 }
 0x5a9   : > { %8937 = vmatprep.subr.bf16.mxu1 %v19270_v14  ;;  %v19331_v14 = vld [vmem:[%s25771_s5 + $0x80] ss:$16 sps:$4 sm:$0xff]  }
 0x5aa   : > { %8895 = vmatpush2.bf16.msra.mxu0 %v19265_v12  ;;  %v19339_v12 = vld [vmem:[%s25771_s5 + $0x64] ss:$16 sps:$4 sm:$0xff]  }
 0x5ab   : > { %8896 = vmatprep.subr.bf16.mxu0 %v19273_v0  ;;  %v19334_v0 = vld [vmem:[%s25771_s5 + $0x280] ss:$16 sps:$4 sm:$0xff]  }
 0x5ac   : > { %8938 = vmatpush2.bf16.msra.mxu1 %v19268_v62  ;;  %v19342_v62 = vld [vmem:[%s25771_s5 + $0x264] ss:$16 sps:$4 sm:$0xff]  }
 0x5ad   : > { %8939 = vmatprep.subr.bf16.mxu1 %v19276_v36  ;;  %v19337_v36 = vld [vmem:[%s25771_s5 + $0x60] ss:$16 sps:$4 sm:$0xff]  }
 0x5ae   : > { %8897 = vmatpush2.bf16.msra.mxu0 %v19271_v40  ;;  %v19345_v40 = vld [vmem:[%s25771_s5 + $0x44] ss:$16 sps:$4 sm:$0xff]  }
 0x5af   : > { %8898 = vmatprep.subr.bf16.mxu0 %v19279_v13  ;;  %v19340_v13 = vld [vmem:[%s25771_s5 + $0x260] ss:$16 sps:$4 sm:$0xff]  }
 0x5b0   : > { %8940 = vmatpush2.bf16.msra.mxu1 %v19274_v23  ;;  %v19348_v23 = vld [vmem:[%s25771_s5 + $0x244] ss:$16 sps:$4 sm:$0xff]  }
 0x5b1   : > { %8941 = vmatprep.subr.bf16.mxu1 %v19282_v44  ;;  %v19343_v44 = vld [vmem:[%s25771_s5 + $0x40] ss:$16 sps:$4 sm:$0xff]  }
 0x5b2   : > { %8899 = vmatpush2.bf16.msra.mxu0 %v19277_v52  ;;  %v19351_v52 = vld [vmem:[%s25771_s5 + $0x24] ss:$16 sps:$4 sm:$0xff]  }
 0x5b3   : > { %8900 = vmatprep.subr.bf16.mxu0 %v19285_v51  ;;  %v19346_v51 = vld [vmem:[%s25771_s5 + $0x240] ss:$16 sps:$4 sm:$0xff]  }
 0x5b4   : > { %8942 = vmatpush2.bf16.msra.mxu1 %v19280_v19  ;;  %v19354_v19 = vld [vmem:[%s25771_s5 + $0x224] ss:$16 sps:$4 sm:$0xff]  }
 0x5b5   : > { %8943 = vmatprep.subr.bf16.mxu1 %v19288_v15  ;;  %v19349_v15 = vld [vmem:[%s25771_s5 + $0x20] ss:$16 sps:$4 sm:$0xff]  }
 0x5b6   : > { %8901 = vmatpush2.bf16.msra.mxu0 %v19283_v17  ;;  %v19357_v17 = vld [vmem:[%s25771_s5 + $0x4] ss:$16 sps:$4 sm:$0xff]  }
 0x5b7   : > { %8902 = vmatprep.subr.bf16.mxu0 %v19291_v58  ;;  %v19352_v58 = vld [vmem:[%s25771_s5 + $0x220] ss:$16 sps:$4 sm:$0xff]  }
 0x5b8   : > { %8944 = vmatpush2.bf16.msra.mxu1 %v19286_v63  ;;  %v19360_v63 = vld [vmem:[%s25771_s5 + $0x204] ss:$16 sps:$4 sm:$0xff]  }
 0x5b9   : > { %8945 = vmatprep.subr.bf16.mxu1 %v19294_v2  ;;  %v19355_v2 = vld [vmem:[%s25771_s5] ss:$16 sps:$4 sm:$0xff]  }
 0x5ba   : > { %8903 = vmatpush2.bf16.msra.mxu0 %v19289_v28  ;;  %v19363_v28 = vld [vmem:[%s25771_s5 + $0x1e4] ss:$16 sps:$4 sm:$0xff]  }
 0x5bb   : > { %8904 = vmatprep.subr.bf16.mxu0 %v19297_v21  ;;  %v19358_v21 = vld [vmem:[%s25771_s5 + $0x200] ss:$16 sps:$4 sm:$0xff]  }
 0x5bc   : > { %8946 = vmatpush2.bf16.msra.mxu1 %v19292_v5  ;;  %v19366_v5 = vld [vmem:[%s25771_s5 + $0x3e4] ss:$16 sps:$4 sm:$0xff]  }
 0x5bd   : > { %8947 = vmatprep.subr.bf16.mxu1 %v19300_v30  ;;  %v19361_v30 = vld [vmem:[%s25771_s5 + $0x1e0] ss:$16 sps:$4 sm:$0xff]  }
 0x5be   : > { %8905 = vmatpush2.bf16.msra.mxu0 %v19295_v32  ;;  %v19369_v32 = vld [vmem:[%s25771_s5 + $0x1c4] ss:$16 sps:$4 sm:$0xff]  }
 0x5bf   : > { %8906 = vmatprep.subr.bf16.mxu0 %v19303_v43  ;;  %v19364_v43 = vld [vmem:[%s25771_s5 + $0x3e0] ss:$16 sps:$4 sm:$0xff]  }
 0x5c0   : > { %8948 = vmatpush2.bf16.msra.mxu1 %v19298_v35  ;;  %v19372_v35 = vld [vmem:[%s25771_s5 + $0x3c4] ss:$16 sps:$4 sm:$0xff]  }
 0x5c1   : > { %8949 = vmatprep.subr.bf16.mxu1 %v19306_v37  ;;  %v19367_v37 = vld [vmem:[%s25771_s5 + $0x1c0] ss:$16 sps:$4 sm:$0xff]  }
 0x5c2   : > { %8907 = vmatpush2.bf16.msra.mxu0 %v19301_v46  ;;  %v19375_v46 = vld [vmem:[%s25771_s5 + $0x1a4] ss:$16 sps:$4 sm:$0xff]  }
 0x5c3   : > { %8908 = vmatprep.subr.bf16.mxu0 %v19309_v18  ;;  %v19370_v18 = vld [vmem:[%s25771_s5 + $0x3c0] ss:$16 sps:$4 sm:$0xff]  }
 0x5c4   : > { %8950 = vmatpush2.bf16.msra.mxu1 %v19304_v33  ;;  %v19378_v33 = vld [vmem:[%s25771_s5 + $0x3a4] ss:$16 sps:$4 sm:$0xff]  }
 0x5c5   : > { %8951 = vmatprep.subr.bf16.mxu1 %v19312_v53  ;;  %v19373_v53 = vld [vmem:[%s25771_s5 + $0x1a0] ss:$16 sps:$4 sm:$0xff]  }
 0x5c6   : > { %8909 = vmatpush2.bf16.msra.mxu0 %v19307_v48  ;;  %v19381_v48 = vld [vmem:[%s25771_s5 + $0x184] ss:$16 sps:$4 sm:$0xff]  }
 0x5c7   : > { %10244 = vmatprep.subr.bf16.mxu0 %v19315_v54  ;;  %v19376_v54 = vld [vmem:[%s25771_s5 + $0x3a0] ss:$16 sps:$4 sm:$0xff]  }
 0x5c8   : > { %8952 = vmatpush2.bf16.msra.mxu1 %v19310_v61  ;;  %v19384_v61 = vld [vmem:[%s25771_s5 + $0x384] ss:$16 sps:$4 sm:$0xff]  }
 0x5c9   : > { %8911 = vmatmul.mubr.bf16.vlgmr.msra.gmra.mxu0 %v22677_v16  ;;  %10287 = vmatprep.subr.bf16.mxu1 %v19318_v11  ;;  %v8654_v42 = vpop.f32.mrf.mxu0  ;;  %v19327_v16 = vld [vmem:[%s25771_s5 + $0xa4] ss:$16 sps:$4 sm:$0xff]   ;;  %v19379_v11 = vld [vmem:[%s25771_s5 + $0x180] ss:$16 sps:$4 sm:$0xff]  }
 0x5ca   : > { %10245 = vmatpush1.bf16.msra.mxu0 %v19313_v60  ;;  %10276 = vmatprep.mubr.bf16.mxu0 %v23079_v26  ;;  %v19390_v60 = vld [vmem:[%s25771_s5 + $0x364] ss:$16 sps:$4 sm:$0xff]  }
 0x5cb   : > { %8954 = vmatmul.mubr.bf16.vlgmr.msra.gmra.mxu1 %v22686_v38  ;;  %v8697_v24 = vpop.f32.mrf.mxu1  ;;  %v8656_v57 = vpop.f32.mrf.mxu0  ;;  %10246 = vmatprep.subr.bf16.mxu0 %v19321_v4  ;;  %v19330_v38 = vld [vmem:[%s25771_s5 + $0x2a4] ss:$16 sps:$4 sm:$0xff]   ;;  %v19388_v4 = vld [vmem:[%s25771_s5 + $0x360] ss:$16 sps:$4 sm:$0xff]  }
 0x5cc   : > { %v23095_v31 = vadd.f32 %v8697_v24, %v8654_v42  ;;  %10288 = vmatpush1.bf16.msra.mxu1 %v19316_v39  ;;  %10319 = vmatprep.mubr.bf16.mxu1 %v23086_v47  ;;  %v19396_v39 = vld [vmem:[%s25771_s5 + $0x344] ss:$16 sps:$4 sm:$0xff]   ;;  %v19391_v42 = vld [vmem:[%s25771_s5 + $0x140] ss:$16 sps:$4 sm:$0xff]  }
 0x5cd   : > { %v8699_v1 = vpop.f32.mrf.mxu1  ;;  %10289 = vmatprep.subr.bf16.mxu1 %v19324_v56  ;;  %v8658_v9 = vpop.f32.mrf.mxu0  ;;  %v19399_v56 = vld [vmem:[%s25771_s5 + $0x124] ss:$16 sps:$4 sm:$0xff]  }
 0x5ce   : > { %v23104_v41 = vadd.f32 %v8699_v1, %v8656_v57  ;;  %10247 = vmatpush1.bf16.msra.mxu0 %v19319_v27  ;;  %v19394_v27 = vld [vmem:[%s25771_s5 + $0x340] ss:$16 sps:$4 sm:$0xff]   ;;  %v19402_v24 = vld [vmem:[%s25771_s5 + $0x324] ss:$16 sps:$4 sm:$0xff]  }
 0x5cf   : > { %v8701_v10 = vpop.f32.mrf.mxu1  ;;  %v8660_v8 = vpop.f32.mrf.mxu0  ;;  %10248 = vmatprep.subr.bf16.mxu0 %v19327_v16  ;;  %v19397_v57 = vld [vmem:[%s25771_s5 + $0x120] ss:$16 sps:$4 sm:$0xff]   ;;  %v19405_v16 = vld [vmem:[%s25771_s5 + $0x104] ss:$16 sps:$4 sm:$0xff]  }
 0x5d0   : > { %v23112_v22 = vadd.f32 %v8701_v10, %v8658_v9  ;;  %10290 = vmatpush1.bf16.msra.mxu1 %v19322_v20  ;;  %v19400_v20 = vld [vmem:[%s25771_s5 + $0x320] ss:$16 sps:$4 sm:$0xff]   ;;  %v19408_v1 = vld [vmem:[%s25771_s5 + $0x304] ss:$16 sps:$4 sm:$0xff]  }
 0x5d1   : > { %v8703_v25 = vpop.f32.mrf.mxu1  ;;  %10291 = vmatprep.subr.bf16.mxu1 %v19330_v38  ;;  %v19403_v9 = vld [vmem:[%s25771_s5 + $0x100] ss:$16 sps:$4 sm:$0xff]   ;;  %v19411_v38 = vld [vmem:[%s25771_s5 + $0x4e4] ss:$16 sps:$4 sm:$0xff]  }
 0x5d2   : > { %v23120_v34 = vadd.f32 %v8703_v25, %v8660_v8  ;;  %10249 = vmatpush1.bf16.msra.mxu0 %v19325_v3  ;;  %v19406_v3 = vld [vmem:[%s25771_s5 + $0x300] ss:$16 sps:$4 sm:$0xff]   ;;  %v6786_v8 = vld [vmem:[#allocation8 + $0x58] sm:$0x1]  ;;  %v6791_v25 = vld [vmem:[#allocation8 + $0x28] sm:$0x1] }
 0x5d3   : > { %10250 = vmatprep.subr.bf16.mxu0 %v19333_v7  ;;  %v6778_v10 = vld [vmem:[#allocation8 + $0x1a0] sm:$0xff] }
 0x5d4   : > { %10292 = vmatpush1.bf16.msra.mxu1 %v19328_v49  ;;  %v19414_v7 = vld [vmem:[%s25771_s5 + $0x6e4] ss:$16 sps:$4 sm:$0xff]   ;;  %v6783_v49 = vld [vmem:[#allocation8 + $0x68] sm:$0xff] }
 0x5d5   : > { %10293 = vmatprep.subr.bf16.mxu1 %v19336_v29  ;;  %v6780_v29 = vld [vmem:[#allocation8 + $0x60] sm:$0xff] }
 0x5d6   : > { %10251 = vmatpush1.bf16.msra.mxu0 %v19331_v14  ;;  %v6788_v14 = vld [vmem:[#allocation8 + $0x160] sm:$0x1] }
 0x5d7   : > { %10252 = vmatprep.subr.bf16.mxu0 %v19339_v12  ;;  %v19409_v12 = vld [vmem:[%s25771_s5 + $0x4e0] ss:$16 sps:$4 sm:$0xff]  }
 0x5d8   : > { %10294 = vmatpush1.bf16.msra.mxu1 %v19334_v0  ;;  %v23281_v0 = vpack.c.bf16 %v6786_v8, %v6778_v10  ;;  %v19457_v10 = vld [vmem:[%s25771_s5 + $0x5e0] ss:$16 sps:$4 sm:$0xff]   ;;  %v19465_v8 = vld [vmem:[%s25771_s5 + $0x5c4] ss:$16 sps:$4 sm:$0xff]  }
 0x5d9   : > { %10295 = vmatprep.subr.bf16.mxu1 %v19342_v62  ;;  %v6785_v62 = vld [vmem:[#allocation8 + $0x1b8] sm:$0xff] }
 0x5da   : > { %10253 = vmatpush1.bf16.msra.mxu0 %v19337_v36  ;;  %v6793_v36 = vld [vmem:[#allocation8 + $0x188] sm:$0x1] }
 0x5db   : > { %10254 = vmatprep.subr.bf16.mxu0 %v19345_v40  ;;  %v19417_v40 = vld [vmem:[%s25771_s5 + $0x4c4] ss:$16 sps:$4 sm:$0xff]  }
 0x5dc   : > { %10296 = vmatpush1.bf16.msra.mxu1 %v19340_v13  ;;  %v19412_v13 = vld [vmem:[%s25771_s5 + $0x6e0] ss:$16 sps:$4 sm:$0xff]  }
 0x5dd   : > { %10297 = vmatprep.subr.bf16.mxu1 %v19348_v23  ;;  %v23289_v23 = vpack.c.bf16 %v6791_v25, %v6783_v49  ;;  %v19468_v49 = vld [vmem:[%s25771_s5 + $0x7c4] ss:$16 sps:$4 sm:$0xff]   ;;  %v19463_v25 = vld [vmem:[%s25771_s5 + $0x5c0] ss:$16 sps:$4 sm:$0xff]  }
 0x5de   : > { %10255 = vmatpush1.bf16.msra.mxu0 %v19343_v44 }
 0x5df   : > { %10256 = vmatprep.subr.bf16.mxu0 %v19351_v52  ;;  %v23292_v52 = vpack.c.bf16 %v6788_v14, %v6780_v29  ;;  %v19471_v29 = vld [vmem:[%s25771_s5 + $0x5a4] ss:$16 sps:$4 sm:$0xff]   ;;  %v19466_v14 = vld [vmem:[%s25771_s5 + $0x7c0] ss:$16 sps:$4 sm:$0xff]  }
 0x5e0   : > { %10298 = vmatpush1.bf16.msra.mxu1 %v19346_v51  ;;  %v19420_v51 = vld [vmem:[%s25771_s5 + $0x6c4] ss:$16 sps:$4 sm:$0xff]  }
 0x5e1   : > { %10299 = vmatprep.subr.bf16.mxu1 %v19354_v19 }
 0x5e2   : > { %10257 = vmatpush1.bf16.msra.mxu0 %v19349_v15  ;;  %v23299_v15 = vpack.c.bf16 %v6793_v36, %v6785_v62  ;;  %v19469_v62 = vld [vmem:[%s25771_s5 + $0x5a0] ss:$16 sps:$4 sm:$0xff]   ;;  %v19477_v36 = vld [vmem:[%s25771_s5 + $0x584] ss:$16 sps:$4 sm:$0xff]  }
 0x5e3   : > { %10258 = vmatprep.subr.bf16.mxu0 %v19357_v17  ;;  %v19415_v17 = vld [vmem:[%s25771_s5 + $0x4c0] ss:$16 sps:$4 sm:$0xff]  }
 0x5e4   : > { %10300 = vmatpush1.bf16.msra.mxu1 %v19352_v58 }
 0x5e5   : > { %10301 = vmatprep.subr.bf16.mxu1 %v19360_v63 }
 0x5e6   : > { %10259 = vmatpush1.bf16.msra.mxu0 %v19355_v2  ;;  %v19423_v2 = vld [vmem:[%s25771_s5 + $0x4a4] ss:$16 sps:$4 sm:$0xff]  }
 0x5e7   : > { %10260 = vmatprep.subr.bf16.mxu0 %v19363_v28 }
 0x5e8   : > { %10302 = vmatpush1.bf16.msra.mxu1 %v19358_v21  ;;  %v19418_v21 = vld [vmem:[%s25771_s5 + $0x6c0] ss:$16 sps:$4 sm:$0xff]  }
 0x5e9   : > { %10303 = vmatprep.subr.bf16.mxu1 %v19366_v5 }
 0x5ea   : > { %10261 = vmatpush2.bf16.msra.mxu0 %v19361_v30 }
 0x5eb   : > { %10262 = vmatprep.subr.bf16.mxu0 %v19369_v32  ;;  %v19426_v32 = vld [vmem:[%s25771_s5 + $0x6a4] ss:$16 sps:$4 sm:$0xff]  }
 0x5ec   : > { %10304 = vmatpush2.bf16.msra.mxu1 %v19364_v43 }
 0x5ed   : > { %10305 = vmatprep.subr.bf16.mxu1 %v19372_v35 }
 0x5ee   : > { %10263 = vmatpush2.bf16.msra.mxu0 %v19367_v37 }
 0x5ef   : > { %10264 = vmatprep.subr.bf16.mxu0 %v19375_v46 }
 0x5f0   : > { %10306 = vmatpush2.bf16.msra.mxu1 %v19370_v18  ;;  %v19429_v18 = vld [vmem:[%s25771_s5 + $0x484] ss:$16 sps:$4 sm:$0xff]  }
 0x5f1   : > { %10307 = vmatprep.subr.bf16.mxu1 %v19378_v33 }
 0x5f2   : > { %10265 = vmatpush2.bf16.msra.mxu0 %v19373_v53 }
 0x5f3   : > { %10266 = vmatprep.subr.bf16.mxu0 %v19381_v48 }
 0x5f4   : > { %10308 = vmatpush2.bf16.msra.mxu1 %v19376_v54  ;;  %v19432_v54 = vld [vmem:[%s25771_s5 + $0x684] ss:$16 sps:$4 sm:$0xff]  }
 0x5f5   : > { %10309 = vmatprep.subr.bf16.mxu1 %v19384_v61 }
 0x5f6   : > { %10267 = vmatpush2.bf16.msra.mxu0 %v19379_v11  ;;  %v19427_v11 = vld [vmem:[%s25771_s5 + $0x480] ss:$16 sps:$4 sm:$0xff]  }
 0x5f7   : > { %10268 = vmatprep.subr.bf16.mxu0 %v19387_v6  ;;  %v19430_v6 = vld [vmem:[%s25771_s5 + $0x680] ss:$16 sps:$4 sm:$0xff]  }
 0x5f8   : > { %10310 = vmatpush2.bf16.msra.mxu1 %v19382_v59  ;;  %v19438_v59 = vld [vmem:[%s25771_s5 + $0x664] ss:$16 sps:$4 sm:$0xff]  }
 0x5f9   : > { %10311 = vmatprep.subr.bf16.mxu1 %v19390_v60  ;;  %v19433_v60 = vld [vmem:[%s25771_s5 + $0x460] ss:$16 sps:$4 sm:$0xff]  }
 0x5fa   : > { %10269 = vmatpush2.bf16.msra.mxu0 %v19385_v45  ;;  %v19441_v45 = vld [vmem:[%s25771_s5 + $0x444] ss:$16 sps:$4 sm:$0xff]  }
 0x5fb   : > { %10270 = vmatprep.subr.bf16.mxu0 %v19393_v55  ;;  %v19436_v55 = vld [vmem:[%s25771_s5 + $0x660] ss:$16 sps:$4 sm:$0xff]  }
 0x5fc   : > { %10312 = vmatpush2.bf16.msra.mxu1 %v19388_v4  ;;  %v19444_v4 = vld [vmem:[%s25771_s5 + $0x644] ss:$16 sps:$4 sm:$0xff]  }
 0x5fd   : > { %10313 = vmatprep.subr.bf16.mxu1 %v19396_v39  ;;  %v19439_v39 = vld [vmem:[%s25771_s5 + $0x440] ss:$16 sps:$4 sm:$0xff]  }
 0x5fe   : > { %10271 = vmatpush2.bf16.msra.mxu0 %v19391_v42  ;;  %v19447_v42 = vld [vmem:[%s25771_s5 + $0x424] ss:$16 sps:$4 sm:$0xff]  }
 0x5ff   : > { %10272 = vmatprep.subr.bf16.mxu0 %v19399_v56  ;;  %v19442_v56 = vld [vmem:[%s25771_s5 + $0x640] ss:$16 sps:$4 sm:$0xff]  }
 0x600   : > { %10314 = vmatpush2.bf16.msra.mxu1 %v19394_v27  ;;  %v19450_v27 = vld [vmem:[%s25771_s5 + $0x624] ss:$16 sps:$4 sm:$0xff]  }
 0x601   : > { %10315 = vmatprep.subr.bf16.mxu1 %v19402_v24  ;;  %v19445_v24 = vld [vmem:[%s25771_s5 + $0x420] ss:$16 sps:$4 sm:$0xff]  }
 0x602   : > { %10273 = vmatpush2.bf16.msra.mxu0 %v19397_v57  ;;  %v19453_v57 = vld [vmem:[%s25771_s5 + $0x404] ss:$16 sps:$4 sm:$0xff]  }
 0x603   : > { %10274 = vmatprep.subr.bf16.mxu0 %v19405_v16  ;;  %v19448_v16 = vld [vmem:[%s25771_s5 + $0x620] ss:$16 sps:$4 sm:$0xff]  }
 0x604   : > { %10316 = vmatpush2.bf16.msra.mxu1 %v19400_v20  ;;  %v19456_v20 = vld [vmem:[%s25771_s5 + $0x604] ss:$16 sps:$4 sm:$0xff]  }
 0x605   : > { %10317 = vmatprep.subr.bf16.mxu1 %v19408_v1  ;;  %v19451_v1 = vld [vmem:[%s25771_s5 + $0x400] ss:$16 sps:$4 sm:$0xff]  }
 0x606   : > { %10275 = vmatpush2.bf16.msra.mxu0 %v19403_v9  ;;  %v19459_v9 = vld [vmem:[%s25771_s5 + $0x5e4] ss:$16 sps:$4 sm:$0xff]  }
 0x607   : > { %10330 = vmatprep.subr.bf16.mxu0 %v19411_v38  ;;  %v19454_v38 = vld [vmem:[%s25771_s5 + $0x600] ss:$16 sps:$4 sm:$0xff]  }
 0x608   : > { %10318 = vmatpush2.bf16.msra.mxu1 %v19406_v3  ;;  %v19462_v3 = vld [vmem:[%s25771_s5 + $0x7e4] ss:$16 sps:$4 sm:$0xff]  }
 0x609   : > { %v8740_v44 = vpop.f32.mrf.mxu0  ;;  %10277 = vmatmul.mubr.bf16.vlgmr.msra.gmra.mxu0 %v23281_v0  ;;  %10373 = vmatprep.subr.bf16.mxu1 %v19414_v7  ;;  %v19460_v7 = vld [vmem:[%s25771_s5 + $0x7e0] ss:$16 sps:$4 sm:$0xff]  }
 0x60a   : > { %v8741_v19 = vadd.f32 %v8740_v44, %v23095_v31  ;;  %10331 = vmatpush1.bf16.msra.mxu0 %v19409_v12  ;;  %10362 = vmatprep.mubr.bf16.mxu0 %v23289_v23  ;;  %v19474_v12 = vld [vmem:[%s25771_s5 + $0x7a4] ss:$16 sps:$4 sm:$0xff]   ;;  %v19475_v44 = vld [vmem:[%s25771_s5 + $0x580] ss:$16 sps:$4 sm:$0xff]  }
 0x60b   : > { %v8783_v58 = vpop.f32.mrf.mxu1  ;;  %10320 = vmatmul.mubr.bf16.vlgmr.msra.gmra.mxu1 %v23292_v52  ;;  %v8742_v63 = vpop.f32.mrf.mxu0  ;;  %10332 = vmatprep.subr.bf16.mxu0 %v19417_v40  ;;  %v19472_v40 = vld [vmem:[%s25771_s5 + $0x7a0] ss:$16 sps:$4 sm:$0xff]  }
 0x60c   : > { %v23308_v28 = vadd.f32 %v8783_v58, %v8741_v19  ;;  %10374 = vmatpush1.bf16.msra.mxu1 %v19412_v13  ;;  %10405 = vmatprep.mubr.bf16.mxu1 %v23299_v15  ;;  %v8743_v31 = vadd.f32 %v8742_v63, %v23104_v41  ;;  %v19421_v41 = vld [vmem:[%s25771_s5 + $0x4a0] ss:$16 sps:$4 sm:$0xff]   ;;  %v19480_v13 = vld [vmem:[%s25771_s5 + $0x784] ss:$16 sps:$4 sm:$0xff]  }
 0x60d   : > { %v8785_v5 = vpop.f32.mrf.mxu1  ;;  %v8744_v30 = vpop.f32.mrf.mxu0  ;;  %10375 = vmatprep.subr.bf16.mxu1 %v19420_v51  ;;  %v19483_v51 = vld [vmem:[%s25771_s5 + $0x564] ss:$16 sps:$4 sm:$0xff]   ;;  %v19478_v19 = vld [vmem:[%s25771_s5 + $0x780] ss:$16 sps:$4 sm:$0xff]  }
 0x60e   : > { %v23318_v43 = vadd.f32 %v8785_v5, %v8743_v31  ;;  %v8745_v35 = vadd.f32 %v8744_v30, %v23112_v22  ;;  %10333 = vmatpush1.bf16.msra.mxu0 %v19415_v17  ;;  %v19424_v22 = vld [vmem:[%s25771_s5 + $0x6a0] ss:$16 sps:$4 sm:$0xff]   ;;  %v19486_v17 = vld [vmem:[%s25771_s5 + $0x764] ss:$16 sps:$4 sm:$0xff]  }
 0x60f   : > { %v8787_v37 = vpop.f32.mrf.mxu1  ;;  %v8746_v46 = vpop.f32.mrf.mxu0  ;;  %10334 = vmatprep.subr.bf16.mxu0 %v19423_v2  ;;  %v19481_v58 = vld [vmem:[%s25771_s5 + $0x560] ss:$16 sps:$4 sm:$0xff]   ;;  %v19489_v63 = vld [vmem:[%s25771_s5 + $0x544] ss:$16 sps:$4 sm:$0xff]  }
 0x610   : > { %v23327_v33 = vadd.f32 %v8787_v37, %v8745_v35  ;;  %10376 = vmatpush1.bf16.msra.mxu1 %v19418_v21  ;;  %v8747_v53 = vadd.f32 %v8746_v46, %v23120_v34  ;;  %v19435_v34 = vld [vmem:[%s25771_s5 + $0x464] ss:$16 sps:$4 sm:$0xff]   ;;  %v19484_v2 = vld [vmem:[%s25771_s5 + $0x760] ss:$16 sps:$4 sm:$0xff]  }
 0x611   : > { %v8789_v48 = vpop.f32.mrf.mxu1  ;;  %10377 = vmatprep.subr.bf16.mxu1 %v19426_v32  ;;  %v19492_v31 = vld [vmem:[%s25771_s5 + $0x744] ss:$16 sps:$4 sm:$0xff]   ;;  %v19487_v21 = vld [vmem:[%s25771_s5 + $0x540] ss:$16 sps:$4 sm:$0xff]  }
 0x612   : > { %v23336_v61 = vadd.f32 %v8789_v48, %v8747_v53  ;;  %10335 = vmatpush1.bf16.msra.mxu0 %v19421_v41  ;;  %v19495_v5 = vld [vmem:[%s25771_s5 + $0x524] ss:$16 sps:$4 sm:$0xff]   ;;  %v19490_v30 = vld [vmem:[%s25771_s5 + $0x740] ss:$16 sps:$4 sm:$0xff]   ;;  %v19507_v53 = vld [vmem:[%s25771_s5 + $0xec] ss:$16 sps:$4 sm:$0xff]  }
 0x613   : > { %10336 = vmatprep.subr.bf16.mxu0 %v19429_v18  ;;  %v19498_v32 = vld [vmem:[%s25771_s5 + $0x724] ss:$16 sps:$4 sm:$0xff]   ;;  %v19493_v35 = vld [vmem:[%s25771_s5 + $0x520] ss:$16 sps:$4 sm:$0xff]  }
 0x614   : > { %10378 = vmatpush1.bf16.msra.mxu1 %v19424_v22  ;;  %v19501_v41 = vld [vmem:[%s25771_s5 + $0x504] ss:$16 sps:$4 sm:$0xff]   ;;  %v19496_v37 = vld [vmem:[%s25771_s5 + $0x720] ss:$16 sps:$4 sm:$0xff]  }
 0x615   : > { %10379 = vmatprep.subr.bf16.mxu1 %v19432_v54  ;;  %v19504_v46 = vld [vmem:[%s25771_s5 + $0x704] ss:$16 sps:$4 sm:$0xff]   ;;  %v19499_v18 = vld [vmem:[%s25771_s5 + $0x500] ss:$16 sps:$4 sm:$0xff]   ;;  %v6790_v54 = vld [vmem:[#allocation8 + $0x1a8] sm:$0x1] }
 0x616   : > { %10337 = vmatpush1.bf16.msra.mxu0 %v19427_v11  ;;  %v19502_v22 = vld [vmem:[%s25771_s5 + $0x700] ss:$16 sps:$4 sm:$0xff]   ;;  %v19510_v11 = vld [vmem:[%s25771_s5 + $0x2ec] ss:$16 sps:$4 sm:$0xff]  }
 0x617   : > { %10338 = vmatprep.subr.bf16.mxu0 %v19435_v34  ;;  %v6782_v48 = vld [vmem:[#allocation8 + $0x130] sm:$0xff]  ;;  %v6784_v34 = vld [vmem:[#allocation8 + $0x178] sm:$0xff] }
 0x618   : > { %10380 = vmatpush1.bf16.msra.mxu1 %v19430_v6  ;;  %v6792_v6 = vld [vmem:[#allocation8 + $0xe8] sm:$0x1] }
 0x619   : > { %10381 = vmatprep.subr.bf16.mxu1 %v19438_v59  ;;  %v19505_v59 = vld [vmem:[%s25771_s5 + $0xe8] ss:$16 sps:$4 sm:$0xff]  }
 0x61a   : > { %10339 = vmatpush1.bf16.msra.mxu0 %v19433_v60  ;;  %v23497_v60 = vpack.c.bf16 %v6790_v54, %v6782_v48  ;;  %v19559_v48 = vld [vmem:[%s25771_s5 + $0x1c8] ss:$16 sps:$4 sm:$0xff]   ;;  %v19567_v54 = vld [vmem:[%s25771_s5 + $0x1ac] ss:$16 sps:$4 sm:$0xff]  }
 0x61b   : > { %10340 = vmatprep.subr.bf16.mxu0 %v19441_v45  ;;  %v19513_v45 = vld [vmem:[%s25771_s5 + $0xcc] ss:$16 sps:$4 sm:$0xff]  }
 0x61c   : > { %10382 = vmatpush1.bf16.msra.mxu1 %v19436_v55  ;;  %v19508_v55 = vld [vmem:[%s25771_s5 + $0x2e8] ss:$16 sps:$4 sm:$0xff]  }
 0x61d   : > { %10383 = vmatprep.subr.bf16.mxu1 %v19444_v4 }
 0x61e   : > { %10341 = vmatpush1.bf16.msra.mxu0 %v19439_v39  ;;  %v23506_v39 = vpack.c.bf16 %v6792_v6, %v6784_v34  ;;  %v19570_v34 = vld [vmem:[%s25771_s5 + $0x3ac] ss:$16 sps:$4 sm:$0xff]   ;;  %v19565_v6 = vld [vmem:[%s25771_s5 + $0x1a8] ss:$16 sps:$4 sm:$0xff]  }
 0x61f   : > { %10342 = vmatprep.subr.bf16.mxu0 %v19447_v42  ;;  %v19516_v42 = vld [vmem:[%s25771_s5 + $0x2cc] ss:$16 sps:$4 sm:$0xff]  }
 0x620   : > { %10384 = vmatpush1.bf16.msra.mxu1 %v19442_v56  ;;  %v19511_v56 = vld [vmem:[%s25771_s5 + $0xc8] ss:$16 sps:$4 sm:$0xff]  }
 0x621   : > { %10385 = vmatprep.subr.bf16.mxu1 %v19450_v27 }
 0x622   : > { %10343 = vmatpush1.bf16.msra.mxu0 %v19445_v24 }
 0x623   : > { %10344 = vmatprep.subr.bf16.mxu0 %v19453_v57  ;;  %v19519_v57 = vld [vmem:[%s25771_s5 + $0xac] ss:$16 sps:$4 sm:$0xff]  }
 0x624   : > { %10386 = vmatpush1.bf16.msra.mxu1 %v19448_v16 }
 0x625   : > { %10387 = vmatprep.subr.bf16.mxu1 %v19456_v20 }
 0x626   : > { %10345 = vmatpush1.bf16.msra.mxu0 %v19451_v1 }
 0x627   : > { %10346 = vmatprep.subr.bf16.mxu0 %v19459_v9  ;;  %v19522_v9 = vld [vmem:[%s25771_s5 + $0x2ac] ss:$16 sps:$4 sm:$0xff]  }
 0x628   : > { %10388 = vmatpush1.bf16.msra.mxu1 %v19454_v38 }
 0x629   : > { %10389 = vmatprep.subr.bf16.mxu1 %v19462_v3  ;;  %v19517_v3 = vld [vmem:[%s25771_s5 + $0xa8] ss:$16 sps:$4 sm:$0xff]  }
 0x62a   : > { %10347 = vmatpush2.bf16.msra.mxu0 %v19457_v10 }
 0x62b   : > { %10348 = vmatprep.subr.bf16.mxu0 %v19465_v8  ;;  %v19525_v8 = vld [vmem:[%s25771_s5 + $0x8c] ss:$16 sps:$4 sm:$0xff]  }
 0x62c   : > { %10390 = vmatpush2.bf16.msra.mxu1 %v19460_v7 }
 0x62d   : > { %10391 = vmatprep.subr.bf16.mxu1 %v19468_v49  ;;  %v19520_v49 = vld [vmem:[%s25771_s5 + $0x2a8] ss:$16 sps:$4 sm:$0xff]  }
 0x62e   : > { %10349 = vmatpush2.bf16.msra.mxu0 %v19463_v25 }
 0x62f   : > { %10350 = vmatprep.subr.bf16.mxu0 %v19471_v29  ;;  %v19528_v29 = vld [vmem:[%s25771_s5 + $0x28c] ss:$16 sps:$4 sm:$0xff]  }
 0x630   : > { %10392 = vmatpush2.bf16.msra.mxu1 %v19466_v14 }
 0x631   : > { %10393 = vmatprep.subr.bf16.mxu1 %v19474_v12  ;;  %v19523_v12 = vld [vmem:[%s25771_s5 + $0x88] ss:$16 sps:$4 sm:$0xff]  }
 0x632   : > { %10351 = vmatpush2.bf16.msra.mxu0 %v19469_v62  ;;  %v19531_v62 = vld [vmem:[%s25771_s5 + $0x6c] ss:$16 sps:$4 sm:$0xff]  }
 0x633   : > { %10352 = vmatprep.subr.bf16.mxu0 %v19477_v36  ;;  %v19526_v36 = vld [vmem:[%s25771_s5 + $0x288] ss:$16 sps:$4 sm:$0xff]  }
 0x634   : > { %10394 = vmatpush2.bf16.msra.mxu1 %v19472_v40  ;;  %v19534_v40 = vld [vmem:[%s25771_s5 + $0x26c] ss:$16 sps:$4 sm:$0xff]  }
 0x635   : > { %10395 = vmatprep.subr.bf16.mxu1 %v19480_v13  ;;  %v19529_v13 = vld [vmem:[%s25771_s5 + $0x68] ss:$16 sps:$4 sm:$0xff]  }
 0x636   : > { %10353 = vmatpush2.bf16.msra.mxu0 %v19475_v44  ;;  %v19537_v44 = vld [vmem:[%s25771_s5 + $0x4c] ss:$16 sps:$4 sm:$0xff]  }
 0x637   : > { %10354 = vmatprep.subr.bf16.mxu0 %v19483_v51  ;;  %v19532_v51 = vld [vmem:[%s25771_s5 + $0x268] ss:$16 sps:$4 sm:$0xff]  }
 0x638   : > { %10396 = vmatpush2.bf16.msra.mxu1 %v19478_v19  ;;  %v19540_v19 = vld [vmem:[%s25771_s5 + $0x24c] ss:$16 sps:$4 sm:$0xff]  }
 0x639   : > { %10397 = vmatprep.subr.bf16.mxu1 %v19486_v17  ;;  %v19535_v17 = vld [vmem:[%s25771_s5 + $0x48] ss:$16 sps:$4 sm:$0xff]  }
 0x63a   : > { %10355 = vmatpush2.bf16.msra.mxu0 %v19481_v58  ;;  %v19543_v58 = vld [vmem:[%s25771_s5 + $0x2c] ss:$16 sps:$4 sm:$0xff]  }
 0x63b   : > { %10356 = vmatprep.subr.bf16.mxu0 %v19489_v63  ;;  %v19538_v63 = vld [vmem:[%s25771_s5 + $0x248] ss:$16 sps:$4 sm:$0xff]  }
 0x63c   : > { %10398 = vmatpush2.bf16.msra.mxu1 %v19484_v2  ;;  %v19546_v2 = vld [vmem:[%s25771_s5 + $0x22c] ss:$16 sps:$4 sm:$0xff]  }
 0x63d   : > { %10399 = vmatprep.subr.bf16.mxu1 %v19492_v31  ;;  %v19541_v31 = vld [vmem:[%s25771_s5 + $0x28] ss:$16 sps:$4 sm:$0xff]  }
 0x63e   : > { %10357 = vmatpush2.bf16.msra.mxu0 %v19487_v21  ;;  %v19549_v21 = vld [vmem:[%s25771_s5 + $0xc] ss:$16 sps:$4 sm:$0xff]  }
 0x63f   : > { %10358 = vmatprep.subr.bf16.mxu0 %v19495_v5  ;;  %v19544_v5 = vld [vmem:[%s25771_s5 + $0x228] ss:$16 sps:$4 sm:$0xff]  }
 0x640   : > { %10400 = vmatpush2.bf16.msra.mxu1 %v19490_v30  ;;  %v19552_v30 = vld [vmem:[%s25771_s5 + $0x20c] ss:$16 sps:$4 sm:$0xff]  }
 0x641   : > { %10401 = vmatprep.subr.bf16.mxu1 %v19498_v32  ;;  %v19547_v32 = vld [vmem:[%s25771_s5 + $0x8] ss:$16 sps:$4 sm:$0xff]  }
 0x642   : > { %10359 = vmatpush2.bf16.msra.mxu0 %v19493_v35  ;;  %v19555_v35 = vld [vmem:[%s25771_s5 + $0x1ec] ss:$16 sps:$4 sm:$0xff]  }
 0x643   : > { %10360 = vmatprep.subr.bf16.mxu0 %v19501_v41  ;;  %v19550_v41 = vld [vmem:[%s25771_s5 + $0x208] ss:$16 sps:$4 sm:$0xff]  }
 0x644   : > { %10402 = vmatpush2.bf16.msra.mxu1 %v19496_v37  ;;  %v19558_v37 = vld [vmem:[%s25771_s5 + $0x3ec] ss:$16 sps:$4 sm:$0xff]  }
 0x645   : > { %10403 = vmatprep.subr.bf16.mxu1 %v19504_v46  ;;  %v19553_v46 = vld [vmem:[%s25771_s5 + $0x1e8] ss:$16 sps:$4 sm:$0xff]  }
 0x646   : > { %10361 = vmatpush2.bf16.msra.mxu0 %v19499_v18  ;;  %v19561_v18 = vld [vmem:[%s25771_s5 + $0x1cc] ss:$16 sps:$4 sm:$0xff]  }
 0x647   : > { %10416 = vmatprep.subr.bf16.mxu0 %v19507_v53  ;;  %v19556_v53 = vld [vmem:[%s25771_s5 + $0x3e8] ss:$16 sps:$4 sm:$0xff]  }
 0x648   : > { %10404 = vmatpush2.bf16.msra.mxu1 %v19502_v22  ;;  %v19564_v22 = vld [vmem:[%s25771_s5 + $0x3cc] ss:$16 sps:$4 sm:$0xff]  }
 0x649   : > { %v8826_v4 = vpop.f32.mrf.mxu0  ;;  %10363 = vmatmul.mubr.bf16.vlgmr.msra.gmra.mxu0 %v23497_v60  ;;  %10459 = vmatprep.subr.bf16.mxu1 %v19510_v11  ;;  %v19562_v11 = vld [vmem:[%s25771_s5 + $0x3c8] ss:$16 sps:$4 sm:$0xff]  }
 0x64a   : > { %10417 = vmatpush1.bf16.msra.mxu0 %v19505_v59  ;;  %10448 = vmatprep.mubr.bf16.mxu0 %v23079_v26  ;;  %v19514_v26 = vld [vmem:[%s25771_s5 + $0x2c8] ss:$16 sps:$4 sm:$0xff]   ;;  %v19573_v59 = vld [vmem:[%s25771_s5 + $0x18c] ss:$16 sps:$4 sm:$0xff]  }
 0x64b   : > { %v8869_v27 = vpop.f32.mrf.mxu1  ;;  %10406 = vmatmul.mubr.bf16.vlgmr.msra.gmra.mxu1 %v23506_v39  ;;  %v8828_v24 = vpop.f32.mrf.mxu0  ;;  %10418 = vmatprep.subr.bf16.mxu0 %v19513_v45  ;;  %v19568_v45 = vld [vmem:[%s25771_s5 + $0x3a8] ss:$16 sps:$4 sm:$0xff]  }
 0x64c   : > { %v23519_v16 = vadd.f32 %v8869_v27, %v8826_v4  ;;  %10460 = vmatpush1.bf16.msra.mxu1 %v19508_v55  ;;  %10491 = vmatprep.mubr.bf16.mxu1 %v23086_v47  ;;  %v19576_v55 = vld [vmem:[%s25771_s5 + $0x38c] ss:$16 sps:$4 sm:$0xff]   ;;  %v19571_v4 = vld [vmem:[%s25771_s5 + $0x188] ss:$16 sps:$4 sm:$0xff]  }
 0x64d   : > { %v8871_v20 = vpop.f32.mrf.mxu1  ;;  %v8830_v1 = vpop.f32.mrf.mxu0  ;;  %10461 = vmatprep.subr.bf16.mxu1 %v19516_v42  ;;  %v19579_v42 = vld [vmem:[%s25771_s5 + $0x16c] ss:$16 sps:$4 sm:$0xff]  }
 0x64e   : > { %v23528_v38 = vadd.f32 %v8871_v20, %v8828_v24  ;;  %10419 = vmatpush1.bf16.msra.mxu0 %v19511_v56  ;;  %v19574_v56 = vld [vmem:[%s25771_s5 + $0x388] ss:$16 sps:$4 sm:$0xff]   ;;  %v19582_v27 = vld [vmem:[%s25771_s5 + $0x36c] ss:$16 sps:$4 sm:$0xff]  }
 0x64f   : > { %v8873_v10 = vpop.f32.mrf.mxu1  ;;  %v8832_v47 = vpop.f32.mrf.mxu0  ;;  %10420 = vmatprep.subr.bf16.mxu0 %v19519_v57  ;;  %v19577_v24 = vld [vmem:[%s25771_s5 + $0x168] ss:$16 sps:$4 sm:$0xff]   ;;  %v19585_v57 = vld [vmem:[%s25771_s5 + $0x14c] ss:$16 sps:$4 sm:$0xff]  }
 0x650   : > { %v23536_v7 = vadd.f32 %v8873_v10, %v8830_v1  ;;  %10462 = vmatpush1.bf16.msra.mxu1 %v19514_v26  ;;  %v19580_v26 = vld [vmem:[%s25771_s5 + $0x368] ss:$16 sps:$4 sm:$0xff]   ;;  %v19588_v20 = vld [vmem:[%s25771_s5 + $0x34c] ss:$16 sps:$4 sm:$0xff]  }
 0x651   : > { %v8875_v25 = vpop.f32.mrf.mxu1  ;;  %10463 = vmatprep.subr.bf16.mxu1 %v19522_v9  ;;  %v19583_v1 = vld [vmem:[%s25771_s5 + $0x148] ss:$16 sps:$4 sm:$0xff]   ;;  %v19591_v9 = vld [vmem:[%s25771_s5 + $0x12c] ss:$16 sps:$4 sm:$0xff]  }
 0x652   : > { %v23544_v14 = vadd.f32 %v8875_v25, %v8832_v47  ;;  %10421 = vmatpush1.bf16.msra.mxu0 %v19517_v3  ;;  %v19586_v3 = vld [vmem:[%s25771_s5 + $0x348] ss:$16 sps:$4 sm:$0xff]   ;;  %v19594_v10 = vld [vmem:[%s25771_s5 + $0x32c] ss:$16 sps:$4 sm:$0xff]  }
 0x653   : > { %10422 = vmatprep.subr.bf16.mxu0 %v19525_v8  ;;  %v19589_v47 = vld [vmem:[%s25771_s5 + $0x128] ss:$16 sps:$4 sm:$0xff]   ;;  %v19597_v8 = vld [vmem:[%s25771_s5 + $0x10c] ss:$16 sps:$4 sm:$0xff]  }
 0x654   : > { %10464 = vmatpush1.bf16.msra.mxu1 %v19520_v49  ;;  %v19592_v49 = vld [vmem:[%s25771_s5 + $0x328] ss:$16 sps:$4 sm:$0xff]   ;;  %v19600_v25 = vld [vmem:[%s25771_s5 + $0x30c] ss:$16 sps:$4 sm:$0xff]  }
 0x655   : > { %10465 = vmatprep.subr.bf16.mxu1 %v19528_v29  ;;  %v19595_v29 = vld [vmem:[%s25771_s5 + $0x108] ss:$16 sps:$4 sm:$0xff]  }
 0x656   : > { %10423 = vmatpush1.bf16.msra.mxu0 %v19523_v12  ;;  %v19603_v12 = vld [vmem:[%s25771_s5 + $0x4ec] ss:$16 sps:$4 sm:$0xff]  }
 0x657   : > { %10424 = vmatprep.subr.bf16.mxu0 %v19531_v62  ;;  %v19598_v62 = vld [vmem:[%s25771_s5 + $0x308] ss:$16 sps:$4 sm:$0xff]  }
 0x658   : > { %10466 = vmatpush1.bf16.msra.mxu1 %v19526_v36  ;;  %v19606_v36 = vld [vmem:[%s25771_s5 + $0x6ec] ss:$16 sps:$4 sm:$0xff]  }
 0x659   : > { %10467 = vmatprep.subr.bf16.mxu1 %v19534_v40  ;;  %v19601_v40 = vld [vmem:[%s25771_s5 + $0x4e8] ss:$16 sps:$4 sm:$0xff]  }
 0x65a   : > { %10425 = vmatpush1.bf16.msra.mxu0 %v19529_v13  ;;  %v19609_v13 = vld [vmem:[%s25771_s5 + $0x4cc] ss:$16 sps:$4 sm:$0xff]  }
 0x65b   : > { %10426 = vmatprep.subr.bf16.mxu0 %v19537_v44  ;;  %v19604_v44 = vld [vmem:[%s25771_s5 + $0x6e8] ss:$16 sps:$4 sm:$0xff]  }
 0x65c   : > { %10468 = vmatpush1.bf16.msra.mxu1 %v19532_v51 }
 0x65d   : > { %10469 = vmatprep.subr.bf16.mxu1 %v19540_v19  ;;  %v19612_v19 = vld [vmem:[%s25771_s5 + $0x6cc] ss:$16 sps:$4 sm:$0xff]  }
 0x65e   : > { %10427 = vmatpush1.bf16.msra.mxu0 %v19535_v17 }
 0x65f   : > { %10428 = vmatprep.subr.bf16.mxu0 %v19543_v58  ;;  %v19607_v58 = vld [vmem:[%s25771_s5 + $0x4c8] ss:$16 sps:$4 sm:$0xff]  }
 0x660   : > { %10470 = vmatpush1.bf16.msra.mxu1 %v19538_v63 }
 0x661   : > { %10471 = vmatprep.subr.bf16.mxu1 %v19546_v2 }
 0x662   : > { %10429 = vmatpush1.bf16.msra.mxu0 %v19541_v31 }
 0x663   : > { %10430 = vmatprep.subr.bf16.mxu0 %v19549_v21 }
 0x664   : > { %10472 = vmatpush1.bf16.msra.mxu1 %v19544_v5 }
 0x665   : > { %10473 = vmatprep.subr.bf16.mxu1 %v19552_v30 }
 0x666   : > { %10431 = vmatpush1.bf16.msra.mxu0 %v19547_v32 }
 0x667   : > { %10432 = vmatprep.subr.bf16.mxu0 %v19555_v35 }
 0x668   : > { %10474 = vmatpush1.bf16.msra.mxu1 %v19550_v41  ;;  %v19621_v41 = vld [vmem:[%s25771_s5 + $0x48c] ss:$16 sps:$4 sm:$0xff]  }
 0x669   : > { %10475 = vmatprep.subr.bf16.mxu1 %v19558_v37 }
 0x66a   : > { %10433 = vmatpush2.bf16.msra.mxu0 %v19553_v46 }
 0x66b   : > { %10434 = vmatprep.subr.bf16.mxu0 %v19561_v18 }
 0x66c   : > { %10476 = vmatpush2.bf16.msra.mxu1 %v19556_v53  ;;  %v19624_v53 = vld [vmem:[%s25771_s5 + $0x68c] ss:$16 sps:$4 sm:$0xff]  }
 0x66d   : > { %10477 = vmatprep.subr.bf16.mxu1 %v19564_v22 }
 0x66e   : > { %10435 = vmatpush2.bf16.msra.mxu0 %v19559_v48  ;;  %v19619_v48 = vld [vmem:[%s25771_s5 + $0x488] ss:$16 sps:$4 sm:$0xff]  }
 0x66f   : > { %10436 = vmatprep.subr.bf16.mxu0 %v19567_v54  ;;  %v19622_v54 = vld [vmem:[%s25771_s5 + $0x688] ss:$16 sps:$4 sm:$0xff]  }
 0x670   : > { %10478 = vmatpush2.bf16.msra.mxu1 %v19562_v11  ;;  %v19630_v11 = vld [vmem:[%s25771_s5 + $0x66c] ss:$16 sps:$4 sm:$0xff]  }
 0x671   : > { %10479 = vmatprep.subr.bf16.mxu1 %v19570_v34  ;;  %v19625_v34 = vld [vmem:[%s25771_s5 + $0x468] ss:$16 sps:$4 sm:$0xff]  }
 0x672   : > { %10437 = vmatpush2.bf16.msra.mxu0 %v19565_v6  ;;  %v19633_v6 = vld [vmem:[%s25771_s5 + $0x44c] ss:$16 sps:$4 sm:$0xff]  }
 0x673   : > { %10438 = vmatprep.subr.bf16.mxu0 %v19573_v59  ;;  %v19628_v59 = vld [vmem:[%s25771_s5 + $0x668] ss:$16 sps:$4 sm:$0xff]  }
 0x674   : > { %10480 = vmatpush2.bf16.msra.mxu1 %v19568_v45  ;;  %v19636_v45 = vld [vmem:[%s25771_s5 + $0x64c] ss:$16 sps:$4 sm:$0xff]  }
 0x675   : > { %10481 = vmatprep.subr.bf16.mxu1 %v19576_v55  ;;  %v19631_v55 = vld [vmem:[%s25771_s5 + $0x448] ss:$16 sps:$4 sm:$0xff]  }
 0x676   : > { %10439 = vmatpush2.bf16.msra.mxu0 %v19571_v4  ;;  %v19639_v4 = vld [vmem:[%s25771_s5 + $0x42c] ss:$16 sps:$4 sm:$0xff]  }
 0x677   : > { %10440 = vmatprep.subr.bf16.mxu0 %v19579_v42  ;;  %v19634_v42 = vld [vmem:[%s25771_s5 + $0x648] ss:$16 sps:$4 sm:$0xff]  }
 0x678   : > { %10482 = vmatpush2.bf16.msra.mxu1 %v19574_v56  ;;  %v19642_v56 = vld [vmem:[%s25771_s5 + $0x62c] ss:$16 sps:$4 sm:$0xff]  }
 0x679   : > { %10483 = vmatprep.subr.bf16.mxu1 %v19582_v27  ;;  %v19637_v27 = vld [vmem:[%s25771_s5 + $0x428] ss:$16 sps:$4 sm:$0xff]  }
 0x67a   : > { %10441 = vmatpush2.bf16.msra.mxu0 %v19577_v24  ;;  %v19645_v24 = vld [vmem:[%s25771_s5 + $0x40c] ss:$16 sps:$4 sm:$0xff]  }
 0x67b   : > { %10442 = vmatprep.subr.bf16.mxu0 %v19585_v57  ;;  %v19640_v57 = vld [vmem:[%s25771_s5 + $0x628] ss:$16 sps:$4 sm:$0xff]  }
 0x67c   : > { %10484 = vmatpush2.bf16.msra.mxu1 %v19580_v26  ;;  %v19648_v26 = vld [vmem:[%s25771_s5 + $0x60c] ss:$16 sps:$4 sm:$0xff]  }
 0x67d   : > { %10485 = vmatprep.subr.bf16.mxu1 %v19588_v20  ;;  %v19643_v20 = vld [vmem:[%s25771_s5 + $0x408] ss:$16 sps:$4 sm:$0xff]  }
 0x67e   : > { %10443 = vmatpush2.bf16.msra.mxu0 %v19583_v1  ;;  %v19651_v1 = vld [vmem:[%s25771_s5 + $0x5ec] ss:$16 sps:$4 sm:$0xff]  }
 0x67f   : > { %10444 = vmatprep.subr.bf16.mxu0 %v19591_v9  ;;  %v19646_v9 = vld [vmem:[%s25771_s5 + $0x608] ss:$16 sps:$4 sm:$0xff]  }
 0x680   : > { %10486 = vmatpush2.bf16.msra.mxu1 %v19586_v3  ;;  %v19654_v3 = vld [vmem:[%s25771_s5 + $0x7ec] ss:$16 sps:$4 sm:$0xff]  }
 0x681   : > { %10487 = vmatprep.subr.bf16.mxu1 %v19594_v10  ;;  %v19649_v10 = vld [vmem:[%s25771_s5 + $0x5e8] ss:$16 sps:$4 sm:$0xff]  }
 0x682   : > { %10445 = vmatpush2.bf16.msra.mxu0 %v19589_v47  ;;  %v19657_v47 = vld [vmem:[%s25771_s5 + $0x5cc] ss:$16 sps:$4 sm:$0xff]  }
 0x683   : > { %10446 = vmatprep.subr.bf16.mxu0 %v19597_v8  ;;  %v19652_v8 = vld [vmem:[%s25771_s5 + $0x7e8] ss:$16 sps:$4 sm:$0xff]  }
 0x684   : > { %10488 = vmatpush2.bf16.msra.mxu1 %v19592_v49  ;;  %v19660_v49 = vld [vmem:[%s25771_s5 + $0x7cc] ss:$16 sps:$4 sm:$0xff]  }
 0x685   : > { %10489 = vmatprep.subr.bf16.mxu1 %v19600_v25  ;;  %v19655_v25 = vld [vmem:[%s25771_s5 + $0x5c8] ss:$16 sps:$4 sm:$0xff]  }
 0x686   : > { %10447 = vmatpush2.bf16.msra.mxu0 %v19595_v29  ;;  %v19663_v29 = vld [vmem:[%s25771_s5 + $0x5ac] ss:$16 sps:$4 sm:$0xff]  }
 0x687   : > { %10502 = vmatprep.subr.bf16.mxu0 %v19603_v12  ;;  %v19658_v12 = vld [vmem:[%s25771_s5 + $0x7c8] ss:$16 sps:$4 sm:$0xff]  }
 0x688   : > { %10490 = vmatpush2.bf16.msra.mxu1 %v19598_v62  ;;  %v19666_v62 = vld [vmem:[%s25771_s5 + $0x7ac] ss:$16 sps:$4 sm:$0xff]  }
 0x689   : > { %v8912_v51 = vpop.f32.mrf.mxu0  ;;  %10449 = vmatmul.mubr.bf16.vlgmr.msra.gmra.mxu0 %v23281_v0  ;;  %10545 = vmatprep.subr.bf16.mxu1 %v19606_v36  ;;  %v19615_v0 = vld [vmem:[%s25771_s5 + $0x4ac] ss:$16 sps:$4 sm:$0xff]   ;;  %v19661_v36 = vld [vmem:[%s25771_s5 + $0x5a8] ss:$16 sps:$4 sm:$0xff]  }
 0x68a   : > { %v8913_v17 = vadd.f32 %v8912_v51, %v23519_v16  ;;  %10503 = vmatpush1.bf16.msra.mxu0 %v19601_v40  ;;  %10534 = vmatprep.mubr.bf16.mxu0 %v23289_v23  ;;  %v19610_v16 = vld [vmem:[%s25771_s5 + $0x6c8] ss:$16 sps:$4 sm:$0xff]   ;;  %v19669_v40 = vld [vmem:[%s25771_s5 + $0x58c] ss:$16 sps:$4 sm:$0xff]  }
 0x68b   : > { %v8955_v63 = vpop.f32.mrf.mxu1  ;;  %10492 = vmatmul.mubr.bf16.vlgmr.msra.gmra.mxu1 %v23292_v52  ;;  %v8914_v2 = vpop.f32.mrf.mxu0  ;;  %10504 = vmatprep.subr.bf16.mxu0 %v19609_v13  ;;  %v19618_v52 = vld [vmem:[%s25771_s5 + $0x6ac] ss:$16 sps:$4 sm:$0xff]   ;;  %v19664_v13 = vld [vmem:[%s25771_s5 + $0x7a8] ss:$16 sps:$4 sm:$0xff]  }
 0x68c   : > { %v23724_v31 = vadd.f32 %v8955_v63, %v8913_v17  ;;  %10546 = vmatpush1.bf16.msra.mxu1 %v19604_v44  ;;  %10577 = vmatprep.mubr.bf16.mxu1 %v23299_v15  ;;  %v8915_v23 = vadd.f32 %v8914_v2, %v23528_v38  ;;  %v19613_v15 = vld [vmem:[%s25771_s5 + $0x4a8] ss:$16 sps:$4 sm:$0xff]   ;;  %v19672_v44 = vld [vmem:[%s25771_s5 + $0x78c] ss:$16 sps:$4 sm:$0xff]  }
 0x68d   : > { %v8957_v21 = vpop.f32.mrf.mxu1  ;;  %v8916_v5 = vpop.f32.mrf.mxu0  ;;  %10547 = vmatprep.subr.bf16.mxu1 %v19612_v19  ;;  %v19667_v51 = vld [vmem:[%s25771_s5 + $0x588] ss:$16 sps:$4 sm:$0xff]   ;;  %v19675_v19 = vld [vmem:[%s25771_s5 + $0x56c] ss:$16 sps:$4 sm:$0xff]  }
 0x68e   : > { %v23734_v30 = vadd.f32 %v8957_v21, %v8915_v23  ;;  %v8917_v32 = vadd.f32 %v8916_v5, %v23536_v7  ;;  %10505 = vmatpush1.bf16.msra.mxu0 %v19607_v58  ;;  %v19616_v7 = vld [vmem:[%s25771_s5 + $0x6a8] ss:$16 sps:$4 sm:$0xff]   ;;  %v19678_v58 = vld [vmem:[%s25771_s5 + $0x76c] ss:$16 sps:$4 sm:$0xff]  }
 0x68f   : > { %v8959_v38 = vpop.f32.mrf.mxu1  ;;  %v8918_v35 = vpop.f32.mrf.mxu0  ;;  %10506 = vmatprep.subr.bf16.mxu0 %v19615_v0  ;;  %v19670_v17 = vld [vmem:[%s25771_s5 + $0x788] ss:$16 sps:$4 sm:$0xff]   ;;  %v19681_v2 = vld [vmem:[%s25771_s5 + $0x54c] ss:$16 sps:$4 sm:$0xff]  }
 0x690   : > { %v23743_v37 = vadd.f32 %v8959_v38, %v8917_v32  ;;  %10548 = vmatpush1.bf16.msra.mxu1 %v19610_v16  ;;  %v8919_v46 = vadd.f32 %v8918_v35, %v23544_v14  ;;  %v19627_v14 = vld [vmem:[%s25771_s5 + $0x46c] ss:$16 sps:$4 sm:$0xff]   ;;  %v19673_v63 = vld [vmem:[%s25771_s5 + $0x568] ss:$16 sps:$4 sm:$0xff]  }
 0x691   : > { %v8961_v18 = vpop.f32.mrf.mxu1  ;;  %10549 = vmatprep.subr.bf16.mxu1 %v19618_v52  ;;  %v19676_v0 = vld [vmem:[%s25771_s5 + $0x768] ss:$16 sps:$4 sm:$0xff]   ;;  %v19684_v23 = vld [vmem:[%s25771_s5 + $0x74c] ss:$16 sps:$4 sm:$0xff]  }
 0x692   : > { %v23752_v22 = vadd.f32 %v8961_v18, %v8919_v46  ;;  %10507 = vmatpush1.bf16.msra.mxu0 %v19613_v15  ;;  %v19679_v16 = vld [vmem:[%s25771_s5 + $0x548] ss:$16 sps:$4 sm:$0xff]   ;;  %v19687_v21 = vld [vmem:[%s25771_s5 + $0x52c] ss:$16 sps:$4 sm:$0xff]   ;;  %v19699_v46 = vld [vmem:[%s25771_s5 + $0x10e4] ss:$16 sps:$4 sm:$0xff]  }
 0x693   : > { %10508 = vmatprep.subr.bf16.mxu0 %v19621_v41  ;;  %v19682_v5 = vld [vmem:[%s25771_s5 + $0x748] ss:$16 sps:$4 sm:$0xff]   ;;  %v19690_v52 = vld [vmem:[%s25771_s5 + $0x72c] ss:$16 sps:$4 sm:$0xff]   ;;  %v19702_v18 = vld [vmem:[%s25771_s5 + $0x12e4] ss:$16 sps:$4 sm:$0xff]  }
 0x694   : > { %10550 = vmatpush1.bf16.msra.mxu1 %v19616_v7  ;;  %v19685_v32 = vld [vmem:[%s25771_s5 + $0x528] ss:$16 sps:$4 sm:$0xff]   ;;  %v19693_v15 = vld [vmem:[%s25771_s5 + $0x50c] ss:$16 sps:$4 sm:$0xff]  }
 0x695   : > { %10551 = vmatprep.subr.bf16.mxu1 %v19624_v53  ;;  %v19688_v38 = vld [vmem:[%s25771_s5 + $0x728] ss:$16 sps:$4 sm:$0xff]   ;;  %v19696_v35 = vld [vmem:[%s25771_s5 + $0x70c] ss:$16 sps:$4 sm:$0xff]  }
 0x696   : > { %10509 = vmatpush1.bf16.msra.mxu0 %v19619_v48  ;;  %v19691_v41 = vld [vmem:[%s25771_s5 + $0x508] ss:$16 sps:$4 sm:$0xff]  }
 0x697   : > { %10510 = vmatprep.subr.bf16.mxu0 %v19627_v14  ;;  %v19694_v7 = vld [vmem:[%s25771_s5 + $0x708] ss:$16 sps:$4 sm:$0xff]   ;;  %v19697_v14 = vld [vmem:[%s25771_s5 + $0x10e0] ss:$16 sps:$4 sm:$0xff]  }
 0x698   : > { %10552 = vmatpush1.bf16.msra.mxu1 %v19622_v54  ;;  %v10590_v53 = vld [vmem:[#allocation8 + $0x158] sm:$0xff]  ;;  %v10592_v54 = vld [vmem:[#allocation8 + $0xd0] sm:$0xff] }
 0x699   : > { %10553 = vmatprep.subr.bf16.mxu1 %v19630_v11  ;;  %v10598_v48 = vld [vmem:[#allocation8 + $0x1f8] sm:$0x1]  ;;  %v10600_v11 = vld [vmem:[#allocation8 + $0xa0] sm:$0x1] }
 0x69a   : > { %10511 = vmatpush1.bf16.msra.mxu0 %v19625_v34  ;;  %v19705_v34 = vld [vmem:[%s25771_s5 + $0x10c4] ss:$16 sps:$4 sm:$0xff]  }
 0x69b   : > { %10512 = vmatprep.subr.bf16.mxu0 %v19633_v6  ;;  %v19700_v6 = vld [vmem:[%s25771_s5 + $0x12e0] ss:$16 sps:$4 sm:$0xff]  }
 0x69c   : > { %10554 = vmatpush1.bf16.msra.mxu1 %v19628_v59  ;;  %v23919_v59 = vpack.c.bf16 %v10598_v48, %v10590_v53  ;;  %v19759_v53 = vld [vmem:[%s25771_s5 + $0x11a4] ss:$16 sps:$4 sm:$0xff]   ;;  %v19754_v48 = vld [vmem:[%s25771_s5 + $0x13c0] ss:$16 sps:$4 sm:$0xff]  }
 0x69d   : > { %10555 = vmatprep.subr.bf16.mxu1 %v19636_v45 }
 0x69e   : > { %10513 = vmatpush1.bf16.msra.mxu0 %v19631_v55  ;;  %v19708_v55 = vld [vmem:[%s25771_s5 + $0x12c4] ss:$16 sps:$4 sm:$0xff]  }
 0x69f   : > { %10514 = vmatprep.subr.bf16.mxu0 %v19639_v4 }
 0x6a0   : > { %10556 = vmatpush1.bf16.msra.mxu1 %v19634_v42  ;;  %v23927_v42 = vpack.c.bf16 %v10600_v11, %v10592_v54  ;;  %v19757_v54 = vld [vmem:[%s25771_s5 + $0x11a0] ss:$16 sps:$4 sm:$0xff]   ;;  %v19765_v11 = vld [vmem:[%s25771_s5 + $0x1184] ss:$16 sps:$4 sm:$0xff]  }
 0x6a1   : > { %10557 = vmatprep.subr.bf16.mxu1 %v19642_v56  ;;  %v19703_v56 = vld [vmem:[%s25771_s5 + $0x10c0] ss:$16 sps:$4 sm:$0xff]  }
 0x6a2   : > { %10515 = vmatpush1.bf16.msra.mxu0 %v19637_v27 }
 0x6a3   : > { %10516 = vmatprep.subr.bf16.mxu0 %v19645_v24  ;;  %v19711_v24 = vld [vmem:[%s25771_s5 + $0x10a4] ss:$16 sps:$4 sm:$0xff]  }
 0x6a4   : > { %10558 = vmatpush1.bf16.msra.mxu1 %v19640_v57 }
 0x6a5   : > { %10559 = vmatprep.subr.bf16.mxu1 %v19648_v26  ;;  %v19706_v26 = vld [vmem:[%s25771_s5 + $0x12c0] ss:$16 sps:$4 sm:$0xff]  }
 0x6a6   : > { %10517 = vmatpush1.bf16.msra.mxu0 %v19643_v20 }
 0x6a7   : > { %10518 = vmatprep.subr.bf16.mxu0 %v19651_v1 }
 0x6a8   : > { %10560 = vmatpush1.bf16.msra.mxu1 %v19646_v9 }
 0x6a9   : > { %10561 = vmatprep.subr.bf16.mxu1 %v19654_v3 }
 0x6aa   : > { %10519 = vmatpush2.bf16.msra.mxu0 %v19649_v10 }
 0x6ab   : > { %10520 = vmatprep.subr.bf16.mxu0 %v19657_v47 }
 0x6ac   : > { %10562 = vmatpush2.bf16.msra.mxu1 %v19652_v8  ;;  %v19717_v8 = vld [vmem:[%s25771_s5 + $0x1084] ss:$16 sps:$4 sm:$0xff]  }
 0x6ad   : > { %10563 = vmatprep.subr.bf16.mxu1 %v19660_v49 }
 0x6ae   : > { %10521 = vmatpush2.bf16.msra.mxu0 %v19655_v25 }
 0x6af   : > { %10522 = vmatprep.subr.bf16.mxu0 %v19663_v29 }
 0x6b0   : > { %10564 = vmatpush2.bf16.msra.mxu1 %v19658_v12  ;;  %v19720_v12 = vld [vmem:[%s25771_s5 + $0x1284] ss:$16 sps:$4 sm:$0xff]  }
 0x6b1   : > { %10565 = vmatprep.subr.bf16.mxu1 %v19666_v62 }
 0x6b2   : > { %10523 = vmatpush2.bf16.msra.mxu0 %v19661_v36  ;;  %v19715_v36 = vld [vmem:[%s25771_s5 + $0x1080] ss:$16 sps:$4 sm:$0xff]  }
 0x6b3   : > { %10524 = vmatprep.subr.bf16.mxu0 %v19669_v40  ;;  %v19718_v40 = vld [vmem:[%s25771_s5 + $0x1280] ss:$16 sps:$4 sm:$0xff]  }
 0x6b4   : > { %10566 = vmatpush2.bf16.msra.mxu1 %v19664_v13  ;;  %v19726_v13 = vld [vmem:[%s25771_s5 + $0x1264] ss:$16 sps:$4 sm:$0xff]  }
 0x6b5   : > { %10567 = vmatprep.subr.bf16.mxu1 %v19672_v44  ;;  %v19721_v44 = vld [vmem:[%s25771_s5 + $0x1060] ss:$16 sps:$4 sm:$0xff]  }
 0x6b6   : > { %10525 = vmatpush2.bf16.msra.mxu0 %v19667_v51  ;;  %v19729_v51 = vld [vmem:[%s25771_s5 + $0x1044] ss:$16 sps:$4 sm:$0xff]  }
 0x6b7   : > { %10526 = vmatprep.subr.bf16.mxu0 %v19675_v19  ;;  %v19724_v19 = vld [vmem:[%s25771_s5 + $0x1260] ss:$16 sps:$4 sm:$0xff]  }
 0x6b8   : > { %10568 = vmatpush2.bf16.msra.mxu1 %v19670_v17  ;;  %v19732_v17 = vld [vmem:[%s25771_s5 + $0x1244] ss:$16 sps:$4 sm:$0xff]  }
 0x6b9   : > { %10569 = vmatprep.subr.bf16.mxu1 %v19678_v58  ;;  %v19727_v58 = vld [vmem:[%s25771_s5 + $0x1040] ss:$16 sps:$4 sm:$0xff]  }
 0x6ba   : > { %10527 = vmatpush2.bf16.msra.mxu0 %v19673_v63  ;;  %v19735_v63 = vld [vmem:[%s25771_s5 + $0x1024] ss:$16 sps:$4 sm:$0xff]  }
 0x6bb   : > { %10528 = vmatprep.subr.bf16.mxu0 %v19681_v2  ;;  %v19730_v2 = vld [vmem:[%s25771_s5 + $0x1240] ss:$16 sps:$4 sm:$0xff]  }
 0x6bc   : > { %10570 = vmatpush2.bf16.msra.mxu1 %v19676_v0  ;;  %v19738_v0 = vld [vmem:[%s25771_s5 + $0x1224] ss:$16 sps:$4 sm:$0xff]  }
 0x6bd   : > { %10571 = vmatprep.subr.bf16.mxu1 %v19684_v23  ;;  %v19733_v23 = vld [vmem:[%s25771_s5 + $0x1020] ss:$16 sps:$4 sm:$0xff]  }
 0x6be   : > { %10529 = vmatpush2.bf16.msra.mxu0 %v19679_v16  ;;  %v19741_v16 = vld [vmem:[%s25771_s5 + $0x1004] ss:$16 sps:$4 sm:$0xff]  }
 0x6bf   : > { %10530 = vmatprep.subr.bf16.mxu0 %v19687_v21  ;;  %v19736_v21 = vld [vmem:[%s25771_s5 + $0x1220] ss:$16 sps:$4 sm:$0xff]  }
 0x6c0   : > { %10572 = vmatpush2.bf16.msra.mxu1 %v19682_v5  ;;  %v19744_v5 = vld [vmem:[%s25771_s5 + $0x1204] ss:$16 sps:$4 sm:$0xff]  }
 0x6c1   : > { %10573 = vmatprep.subr.bf16.mxu1 %v19690_v52  ;;  %v19739_v52 = vld [vmem:[%s25771_s5 + $0x1000] ss:$16 sps:$4 sm:$0xff]  }
 0x6c2   : > { %10531 = vmatpush2.bf16.msra.mxu0 %v19685_v32  ;;  %v19747_v32 = vld [vmem:[%s25771_s5 + $0x11e4] ss:$16 sps:$4 sm:$0xff]  }
 0x6c3   : > { %10532 = vmatprep.subr.bf16.mxu0 %v19693_v15  ;;  %v19742_v15 = vld [vmem:[%s25771_s5 + $0x1200] ss:$16 sps:$4 sm:$0xff]  }
 0x6c4   : > { %10574 = vmatpush2.bf16.msra.mxu1 %v19688_v38  ;;  %v19750_v38 = vld [vmem:[%s25771_s5 + $0x13e4] ss:$16 sps:$4 sm:$0xff]  }
 0x6c5   : > { %10575 = vmatprep.subr.bf16.mxu1 %v19696_v35  ;;  %v19745_v35 = vld [vmem:[%s25771_s5 + $0x11e0] ss:$16 sps:$4 sm:$0xff]  }
 0x6c6   : > { %10533 = vmatpush2.bf16.msra.mxu0 %v19691_v41  ;;  %v19753_v41 = vld [vmem:[%s25771_s5 + $0x11c4] ss:$16 sps:$4 sm:$0xff]  }
 0x6c7   : > { %12150 = vmatprep.subr.bf16.mxu0 %v19699_v46  ;;  %v19748_v46 = vld [vmem:[%s25771_s5 + $0x13e0] ss:$16 sps:$4 sm:$0xff]  }
 0x6c8   : > { %10576 = vmatpush2.bf16.msra.mxu1 %v19694_v7  ;;  %v19756_v7 = vld [vmem:[%s25771_s5 + $0x13c4] ss:$16 sps:$4 sm:$0xff]  }
 0x6c9   : > { %v10278_v45 = vpop.f32.mrf.mxu0  ;;  %10535 = vmatmul.mubr.bf16.vlgmr.msra.gmra.mxu0 %v23497_v60  ;;  %12193 = vmatprep.subr.bf16.mxu1 %v19702_v18  ;;  %v19751_v18 = vld [vmem:[%s25771_s5 + $0x11c0] ss:$16 sps:$4 sm:$0xff]  }
 0x6ca   : > { %v10279_v4 = vadd.f32 %v10278_v45, %v23308_v28  ;;  %12151 = vmatpush1.bf16.msra.mxu0 %v19697_v14  ;;  %12182 = vmatprep.mubr.bf16.mxu0 %v23919_v59  ;;  %v19762_v14 = vld [vmem:[%s25771_s5 + $0x13a4] ss:$16 sps:$4 sm:$0xff]   ;;  %v19763_v45 = vld [vmem:[%s25771_s5 + $0x1180] ss:$16 sps:$4 sm:$0xff]  }
 0x6cb   : > { %v10321_v27 = vpop.f32.mrf.mxu1  ;;  %10578 = vmatmul.mubr.bf16.vlgmr.msra.gmra.mxu1 %v23506_v39  ;;  %v10280_v60 = vpop.f32.mrf.mxu0  ;;  %12152 = vmatprep.subr.bf16.mxu0 %v19705_v34  ;;  %v19714_v39 = vld [vmem:[%s25771_s5 + $0x12a4] ss:$16 sps:$4 sm:$0xff]   ;;  %v19760_v34 = vld [vmem:[%s25771_s5 + $0x13a0] ss:$16 sps:$4 sm:$0xff]  }
 0x6cc   : > { %v23936_v57 = vadd.f32 %v10321_v27, %v10279_v4  ;;  %12194 = vmatpush1.bf16.msra.mxu1 %v19700_v6  ;;  %12225 = vmatprep.mubr.bf16.mxu1 %v23927_v42  ;;  %v10281_v28 = vadd.f32 %v10280_v60, %v23318_v43  ;;  %v19709_v43 = vld [vmem:[%s25771_s5 + $0x10a0] ss:$16 sps:$4 sm:$0xff]   ;;  %v19768_v6 = vld [vmem:[%s25771_s5 + $0x1384] ss:$16 sps:$4 sm:$0xff]  }
 0x6cd   : > { %v10323_v20 = vpop.f32.mrf.mxu1  ;;  %v10282_v1 = vpop.f32.mrf.mxu0  ;;  %12195 = vmatprep.subr.bf16.mxu1 %v19708_v55  ;;  %v19771_v55 = vld [vmem:[%s25771_s5 + $0x1164] ss:$16 sps:$4 sm:$0xff]   ;;  %v19766_v4 = vld [vmem:[%s25771_s5 + $0x1380] ss:$16 sps:$4 sm:$0xff]  }
 0x6ce   : > { %v23946_v9 = vadd.f32 %v10323_v20, %v10281_v28  ;;  %v10283_v3 = vadd.f32 %v10282_v1, %v23327_v33  ;;  %12153 = vmatpush1.bf16.msra.mxu0 %v19703_v56  ;;  %v19712_v33 = vld [vmem:[%s25771_s5 + $0x12a0] ss:$16 sps:$4 sm:$0xff]   ;;  %v19774_v56 = vld [vmem:[%s25771_s5 + $0x1364] ss:$16 sps:$4 sm:$0xff]  }
 0x6cf   : > { %v10325_v10 = vpop.f32.mrf.mxu1  ;;  %v10284_v47 = vpop.f32.mrf.mxu0  ;;  %12154 = vmatprep.subr.bf16.mxu0 %v19711_v24  ;;  %v19769_v27 = vld [vmem:[%s25771_s5 + $0x1160] ss:$16 sps:$4 sm:$0xff]   ;;  %v19777_v60 = vld [vmem:[%s25771_s5 + $0x1144] ss:$16 sps:$4 sm:$0xff]  }
 0x6d0   : > { %v23955_v49 = vadd.f32 %v10325_v10, %v10283_v3  ;;  %12196 = vmatpush1.bf16.msra.mxu1 %v19706_v26  ;;  %v10285_v25 = vadd.f32 %v10284_v47, %v23336_v61  ;;  %v19723_v61 = vld [vmem:[%s25771_s5 + $0x1064] ss:$16 sps:$4 sm:$0xff]   ;;  %v19772_v24 = vld [vmem:[%s25771_s5 + $0x1360] ss:$16 sps:$4 sm:$0xff]  }
 0x6d1   : > { %v10327_v29 = vpop.f32.mrf.mxu1  ;;  %12197 = vmatprep.subr.bf16.mxu1 %v19714_v39  ;;  %v19780_v28 = vld [vmem:[%s25771_s5 + $0x1344] ss:$16 sps:$4 sm:$0xff]   ;;  %v19775_v26 = vld [vmem:[%s25771_s5 + $0x1140] ss:$16 sps:$4 sm:$0xff]  }
 0x6d2   : > { %v23964_v62 = vadd.f32 %v10327_v29, %v10285_v25  ;;  %12155 = vmatpush1.bf16.msra.mxu0 %v19709_v43  ;;  %v19783_v20 = vld [vmem:[%s25771_s5 + $0x1124] ss:$16 sps:$4 sm:$0xff]   ;;  %v19778_v1 = vld [vmem:[%s25771_s5 + $0x1340] ss:$16 sps:$4 sm:$0xff]  }
 0x6d3   : > { %12156 = vmatprep.subr.bf16.mxu0 %v19717_v8  ;;  %v19786_v39 = vld [vmem:[%s25771_s5 + $0x1324] ss:$16 sps:$4 sm:$0xff]   ;;  %v19781_v3 = vld [vmem:[%s25771_s5 + $0x1120] ss:$16 sps:$4 sm:$0xff]  }
 0x6d4   : > { %12198 = vmatpush1.bf16.msra.mxu1 %v19712_v33  ;;  %v19789_v43 = vld [vmem:[%s25771_s5 + $0x1104] ss:$16 sps:$4 sm:$0xff]   ;;  %v19784_v10 = vld [vmem:[%s25771_s5 + $0x1320] ss:$16 sps:$4 sm:$0xff]  }
 0x6d5   : > { %12199 = vmatprep.subr.bf16.mxu1 %v19720_v12  ;;  %v19792_v47 = vld [vmem:[%s25771_s5 + $0x1304] ss:$16 sps:$4 sm:$0xff]   ;;  %v19787_v8 = vld [vmem:[%s25771_s5 + $0x1100] ss:$16 sps:$4 sm:$0xff]  }
 0x6d6   : > { %12157 = vmatpush1.bf16.msra.mxu0 %v19715_v36  ;;  %v19795_v25 = vld [vmem:[%s25771_s5 + $0x14e4] ss:$16 sps:$4 sm:$0xff]   ;;  %v19790_v33 = vld [vmem:[%s25771_s5 + $0x1300] ss:$16 sps:$4 sm:$0xff]  }
 0x6d7   : > { %12158 = vmatprep.subr.bf16.mxu0 %v19723_v61  ;;  %v10589_v29 = vld [vmem:[#allocation8 + $0x90] sm:$0xff]  ;;  %v10594_v61 = vld [vmem:[#allocation8 + $0x168] sm:$0xff] }
 0x6d8   : > { %12200 = vmatpush1.bf16.msra.mxu1 %v19718_v40  ;;  %v10597_v12 = vld [vmem:[#allocation8 + $0x10] sm:$0x1]  ;;  %v19798_v36 = vld [vmem:[%s25771_s5 + $0x16e4] ss:$16 sps:$4 sm:$0xff]   ;;  %v10602_v40 = vld [vmem:[#allocation8 + $0x1d8] sm:$0x1] }
 0x6d9   : > { %12201 = vmatprep.subr.bf16.mxu1 %v19726_v13  ;;  %v10591_v13 = vld [vmem:[#allocation8 + $0x140] sm:$0xff] }
 0x6da   : > { %12159 = vmatpush1.bf16.msra.mxu0 %v19721_v44  ;;  %v10599_v44 = vld [vmem:[#allocation8 + $0x190] sm:$0x1] }
 0x6db   : > { %12160 = vmatprep.subr.bf16.mxu0 %v19729_v51  ;;  %v19793_v51 = vld [vmem:[%s25771_s5 + $0x14e0] ss:$16 sps:$4 sm:$0xff]  }
 0x6dc   : > { %12202 = vmatpush1.bf16.msra.mxu1 %v19724_v19  ;;  %v24125_v19 = vpack.c.bf16 %v10597_v12, %v10589_v29  ;;  %v19843_v29 = vld [vmem:[%s25771_s5 + $0x15e4] ss:$16 sps:$4 sm:$0xff]   ;;  %v19838_v12 = vld [vmem:[%s25771_s5 + $0x1600] ss:$16 sps:$4 sm:$0xff]  }
 0x6dd   : > { %12203 = vmatprep.subr.bf16.mxu1 %v19732_v17  ;;  %v10596_v17 = vld [vmem:[#allocation8] sm:$0xff] }
 0x6de   : > { %12161 = vmatpush1.bf16.msra.mxu0 %v19727_v58  ;;  %v10604_v58 = vld [vmem:[#allocation8 + $0x80] sm:$0x1] }
 0x6df   : > { %12162 = vmatprep.subr.bf16.mxu0 %v19735_v63  ;;  %v19801_v63 = vld [vmem:[%s25771_s5 + $0x14c4] ss:$16 sps:$4 sm:$0xff]  }
 0x6e0   : > { %12204 = vmatpush1.bf16.msra.mxu1 %v19730_v2  ;;  %v19796_v2 = vld [vmem:[%s25771_s5 + $0x16e0] ss:$16 sps:$4 sm:$0xff]  }
 0x6e1   : > { %12205 = vmatprep.subr.bf16.mxu1 %v19738_v0  ;;  %v24133_v0 = vpack.c.bf16 %v10602_v40, %v10594_v61  ;;  %v19841_v61 = vld [vmem:[%s25771_s5 + $0x15e0] ss:$16 sps:$4 sm:$0xff]   ;;  %v19849_v40 = vld [vmem:[%s25771_s5 + $0x15c4] ss:$16 sps:$4 sm:$0xff]  }
 0x6e2   : > { %12163 = vmatpush1.bf16.msra.mxu0 %v19733_v23 }
 0x6e3   : > { %12164 = vmatprep.subr.bf16.mxu0 %v19741_v16  ;;  %v24136_v16 = vpack.c.bf16 %v10599_v44, %v10591_v13  ;;  %v19844_v13 = vld [vmem:[%s25771_s5 + $0x17e0] ss:$16 sps:$4 sm:$0xff]   ;;  %v19852_v44 = vld [vmem:[%s25771_s5 + $0x17c4] ss:$16 sps:$4 sm:$0xff]  }
 0x6e4   : > { %12206 = vmatpush1.bf16.msra.mxu1 %v19736_v21  ;;  %v19804_v21 = vld [vmem:[%s25771_s5 + $0x16c4] ss:$16 sps:$4 sm:$0xff]  }
 0x6e5   : > { %12207 = vmatprep.subr.bf16.mxu1 %v19744_v5 }
 0x6e6   : > { %12165 = vmatpush1.bf16.msra.mxu0 %v19739_v52  ;;  %v24143_v52 = vpack.c.bf16 %v10604_v58, %v10596_v17  ;;  %v19855_v17 = vld [vmem:[%s25771_s5 + $0x15a4] ss:$16 sps:$4 sm:$0xff]   ;;  %v19850_v58 = vld [vmem:[%s25771_s5 + $0x17c0] ss:$16 sps:$4 sm:$0xff]  }
 0x6e7   : > { %12166 = vmatprep.subr.bf16.mxu0 %v19747_v32  ;;  %v19799_v32 = vld [vmem:[%s25771_s5 + $0x14c0] ss:$16 sps:$4 sm:$0xff]  }
 0x6e8   : > { %12208 = vmatpush1.bf16.msra.mxu1 %v19742_v15 }
 0x6e9   : > { %12209 = vmatprep.subr.bf16.mxu1 %v19750_v38 }
 0x6ea   : > { %12167 = vmatpush2.bf16.msra.mxu0 %v19745_v35  ;;  %v19807_v35 = vld [vmem:[%s25771_s5 + $0x14a4] ss:$16 sps:$4 sm:$0xff]  }
 0x6eb   : > { %12168 = vmatprep.subr.bf16.mxu0 %v19753_v41 }
 0x6ec   : > { %12210 = vmatpush2.bf16.msra.mxu1 %v19748_v46  ;;  %v19802_v46 = vld [vmem:[%s25771_s5 + $0x16c0] ss:$16 sps:$4 sm:$0xff]  }
 0x6ed   : > { %12211 = vmatprep.subr.bf16.mxu1 %v19756_v7 }
 0x6ee   : > { %12169 = vmatpush2.bf16.msra.mxu0 %v19751_v18 }
 0x6ef   : > { %12170 = vmatprep.subr.bf16.mxu0 %v19759_v53  ;;  %v19810_v53 = vld [vmem:[%s25771_s5 + $0x16a4] ss:$16 sps:$4 sm:$0xff]  }
 0x6f0   : > { %12212 = vmatpush2.bf16.msra.mxu1 %v19754_v48 }
 0x6f1   : > { %12213 = vmatprep.subr.bf16.mxu1 %v19762_v14  ;;  %v19805_v14 = vld [vmem:[%s25771_s5 + $0x14a0] ss:$16 sps:$4 sm:$0xff]  }
 0x6f2   : > { %12171 = vmatpush2.bf16.msra.mxu0 %v19757_v54 }
 0x6f3   : > { %12172 = vmatprep.subr.bf16.mxu0 %v19765_v11  ;;  %v19813_v11 = vld [vmem:[%s25771_s5 + $0x1484] ss:$16 sps:$4 sm:$0xff]  }
 0x6f4   : > { %12214 = vmatpush2.bf16.msra.mxu1 %v19760_v34 }
 0x6f5   : > { %12215 = vmatprep.subr.bf16.mxu1 %v19768_v6  ;;  %v19808_v6 = vld [vmem:[%s25771_s5 + $0x16a0] ss:$16 sps:$4 sm:$0xff]  }
 0x6f6   : > { %12173 = vmatpush2.bf16.msra.mxu0 %v19763_v45 }
 0x6f7   : > { %12174 = vmatprep.subr.bf16.mxu0 %v19771_v55  ;;  %v19816_v55 = vld [vmem:[%s25771_s5 + $0x1684] ss:$16 sps:$4 sm:$0xff]  }
 0x6f8   : > { %12216 = vmatpush2.bf16.msra.mxu1 %v19766_v4 }
 0x6f9   : > { %12217 = vmatprep.subr.bf16.mxu1 %v19774_v56  ;;  %v19811_v56 = vld [vmem:[%s25771_s5 + $0x1480] ss:$16 sps:$4 sm:$0xff]  }
 0x6fa   : > { %12175 = vmatpush2.bf16.msra.mxu0 %v19769_v27  ;;  %v19814_v27 = vld [vmem:[%s25771_s5 + $0x1680] ss:$16 sps:$4 sm:$0xff]  }
 0x6fb   : > { %12176 = vmatprep.subr.bf16.mxu0 %v19777_v60  ;;  %v19822_v60 = vld [vmem:[%s25771_s5 + $0x1664] ss:$16 sps:$4 sm:$0xff]  }
 0x6fc   : > { %12218 = vmatpush2.bf16.msra.mxu1 %v19772_v24  ;;  %v19817_v24 = vld [vmem:[%s25771_s5 + $0x1460] ss:$16 sps:$4 sm:$0xff]  }
 0x6fd   : > { %12219 = vmatprep.subr.bf16.mxu1 %v19780_v28  ;;  %v19825_v28 = vld [vmem:[%s25771_s5 + $0x1444] ss:$16 sps:$4 sm:$0xff]  }
 0x6fe   : > { %12177 = vmatpush2.bf16.msra.mxu0 %v19775_v26  ;;  %v19820_v26 = vld [vmem:[%s25771_s5 + $0x1660] ss:$16 sps:$4 sm:$0xff]  }
 0x6ff   : > { %12178 = vmatprep.subr.bf16.mxu0 %v19783_v20  ;;  %v19828_v20 = vld [vmem:[%s25771_s5 + $0x1644] ss:$16 sps:$4 sm:$0xff]  }
 0x700   : > { %12220 = vmatpush2.bf16.msra.mxu1 %v19778_v1  ;;  %v19823_v1 = vld [vmem:[%s25771_s5 + $0x1440] ss:$16 sps:$4 sm:$0xff]  }
 0x701   : > { %12221 = vmatprep.subr.bf16.mxu1 %v19786_v39  ;;  %v19831_v39 = vld [vmem:[%s25771_s5 + $0x1424] ss:$16 sps:$4 sm:$0xff]  }
 0x702   : > { %12179 = vmatpush2.bf16.msra.mxu0 %v19781_v3  ;;  %v19826_v3 = vld [vmem:[%s25771_s5 + $0x1640] ss:$16 sps:$4 sm:$0xff]  }
 0x703   : > { %12180 = vmatprep.subr.bf16.mxu0 %v19789_v43  ;;  %v19834_v43 = vld [vmem:[%s25771_s5 + $0x1624] ss:$16 sps:$4 sm:$0xff]  }
 0x704   : > { %12222 = vmatpush2.bf16.msra.mxu1 %v19784_v10  ;;  %v19829_v10 = vld [vmem:[%s25771_s5 + $0x1420] ss:$16 sps:$4 sm:$0xff]  }
 0x705   : > { %12223 = vmatprep.subr.bf16.mxu1 %v19792_v47  ;;  %v19837_v47 = vld [vmem:[%s25771_s5 + $0x1404] ss:$16 sps:$4 sm:$0xff]  }
 0x706   : > { %12181 = vmatpush2.bf16.msra.mxu0 %v19787_v8  ;;  %v19832_v8 = vld [vmem:[%s25771_s5 + $0x1620] ss:$16 sps:$4 sm:$0xff]  }
 0x707   : > { %12236 = vmatprep.subr.bf16.mxu0 %v19795_v25  ;;  %v19840_v25 = vld [vmem:[%s25771_s5 + $0x1604] ss:$16 sps:$4 sm:$0xff]  }
 0x708   : > { %12224 = vmatpush2.bf16.msra.mxu1 %v19790_v33  ;;  %v19835_v33 = vld [vmem:[%s25771_s5 + $0x1400] ss:$16 sps:$4 sm:$0xff]  }
 0x709   : > { %v10364_v23 = vpop.f32.mrf.mxu0  ;;  %12183 = vmatmul.mubr.bf16.vlgmr.msra.gmra.mxu0 %v24125_v19  ;;  %12279 = vmatprep.subr.bf16.mxu1 %v19798_v36  ;;  %v19846_v36 = vld [vmem:[%s25771_s5 + $0x17e4] ss:$16 sps:$4 sm:$0xff]  }
 0x70a   : > { %v10365_v5 = vadd.f32 %v10364_v23, %v23936_v57  ;;  %12237 = vmatpush1.bf16.msra.mxu0 %v19793_v51  ;;  %12268 = vmatprep.mubr.bf16.mxu0 %v24133_v0  ;;  %v19847_v51 = vld [vmem:[%s25771_s5 + $0x15c0] ss:$16 sps:$4 sm:$0xff]   ;;  %v19861_v23 = vld [vmem:[%s25771_s5 + $0x1584] ss:$16 sps:$4 sm:$0xff]  }
 0x70b   : > { %v10407_v15 = vpop.f32.mrf.mxu1  ;;  %12226 = vmatmul.mubr.bf16.vlgmr.msra.gmra.mxu1 %v24136_v16  ;;  %v10366_v38 = vpop.f32.mrf.mxu0  ;;  %12238 = vmatprep.subr.bf16.mxu0 %v19801_v63  ;;  %v19858_v63 = vld [vmem:[%s25771_s5 + $0x17a4] ss:$16 sps:$4 sm:$0xff]  }
 0x70c   : > { %v24152_v41 = vadd.f32 %v10407_v15, %v10365_v5  ;;  %12280 = vmatpush1.bf16.msra.mxu1 %v19796_v2  ;;  %12311 = vmatprep.mubr.bf16.mxu1 %v24143_v52  ;;  %v10367_v57 = vadd.f32 %v10366_v38, %v23946_v9  ;;  %v19853_v2 = vld [vmem:[%s25771_s5 + $0x15a0] ss:$16 sps:$4 sm:$0xff]   ;;  %v19864_v5 = vld [vmem:[%s25771_s5 + $0x1784] ss:$16 sps:$4 sm:$0xff]  }
 0x70d   : > { %v10409_v7 = vpop.f32.mrf.mxu1  ;;  %v24159_v18 = vpop.f32.mrf.mxu0  ;;  %12281 = vmatprep.subr.bf16.mxu1 %v19804_v21  ;;  %v19856_v21 = vld [vmem:[%s25771_s5 + $0x17a0] ss:$16 sps:$4 sm:$0xff]   ;;  %v19867_v15 = vld [vmem:[%s25771_s5 + $0x1564] ss:$16 sps:$4 sm:$0xff]  }
 0x70e   : > { %v24164_v48 = vadd.f32 %v10409_v7, %v10367_v57  ;;  %12239 = vmatpush1.bf16.msra.mxu0 %v19799_v32  ;;  %v19859_v32 = vld [vmem:[%s25771_s5 + $0x1580] ss:$16 sps:$4 sm:$0xff]  }
 0x70f   : > { %v24169_v9 = vpop.f32.mrf.mxu1  ;;  %v10370_v54 = vpop.f32.mrf.mxu0  ;;  %12240 = vmatprep.subr.bf16.mxu0 %v19807_v35  ;;  %v19862_v38 = vld [vmem:[%s25771_s5 + $0x1780] ss:$16 sps:$4 sm:$0xff]   ;;  %v19870_v35 = vld [vmem:[%s25771_s5 + $0x1764] ss:$16 sps:$4 sm:$0xff]  }
 0x710   : > { %12282 = vmatpush1.bf16.msra.mxu1 %v19802_v46  ;;  %v10371_v34 = vadd.f32 %v10370_v54, %v23964_v62  ;;  %v19819_v62 = vld [vmem:[%s25771_s5 + $0x1464] ss:$16 sps:$4 sm:$0xff]   ;;  %v19865_v57 = vld [vmem:[%s25771_s5 + $0x1560] ss:$16 sps:$4 sm:$0xff]  }
 0x711   : > { %v10413_v45 = vpop.f32.mrf.mxu1  ;;  %12283 = vmatprep.subr.bf16.mxu1 %v19810_v53  ;;  %v19873_v46 = vld [vmem:[%s25771_s5 + $0x1544] ss:$16 sps:$4 sm:$0xff]   ;;  %v19868_v7 = vld [vmem:[%s25771_s5 + $0x1760] ss:$16 sps:$4 sm:$0xff]  }
 0x712   : > { %v24181_v4 = vadd.f32 %v10413_v45, %v10371_v34  ;;  %12241 = vmatpush1.bf16.msra.mxu0 %v19805_v14  ;;  %v19876_v53 = vld [vmem:[%s25771_s5 + $0x1744] ss:$16 sps:$4 sm:$0xff]   ;;  %v19871_v14 = vld [vmem:[%s25771_s5 + $0x1540] ss:$16 sps:$4 sm:$0xff]  }
 0x713   : > { %12242 = vmatprep.subr.bf16.mxu0 %v19813_v11  ;;  %v19879_v54 = vld [vmem:[%s25771_s5 + $0x1524] ss:$16 sps:$4 sm:$0xff]   ;;  %v19874_v11 = vld [vmem:[%s25771_s5 + $0x1740] ss:$16 sps:$4 sm:$0xff]  }
 0x714   : > { %12284 = vmatpush1.bf16.msra.mxu1 %v19808_v6  ;;  %v19882_v34 = vld [vmem:[%s25771_s5 + $0x1724] ss:$16 sps:$4 sm:$0xff]   ;;  %v19877_v6 = vld [vmem:[%s25771_s5 + $0x1520] ss:$16 sps:$4 sm:$0xff]  }
 0x715   : > { %12285 = vmatprep.subr.bf16.mxu1 %v19816_v55  ;;  %v19885_v45 = vld [vmem:[%s25771_s5 + $0x1504] ss:$16 sps:$4 sm:$0xff]   ;;  %v19880_v55 = vld [vmem:[%s25771_s5 + $0x1720] ss:$16 sps:$4 sm:$0xff]  }
 0x716   : > { %12243 = vmatpush1.bf16.msra.mxu0 %v19811_v56  ;;  %v19888_v56 = vld [vmem:[%s25771_s5 + $0x1704] ss:$16 sps:$4 sm:$0xff]  }
 0x717   : > { %12244 = vmatprep.subr.bf16.mxu0 %v19819_v62  ;;  %v19883_v62 = vld [vmem:[%s25771_s5 + $0x1500] ss:$16 sps:$4 sm:$0xff]  }
 0x718   : > { %12286 = vmatpush1.bf16.msra.mxu1 %v19814_v27  ;;  %v19891_v27 = vld [vmem:[%s25771_s5 + $0x10ec] ss:$16 sps:$4 sm:$0xff]  }
 0x719   : > { %12287 = vmatprep.subr.bf16.mxu1 %v19822_v60  ;;  %v19886_v60 = vld [vmem:[%s25771_s5 + $0x1700] ss:$16 sps:$4 sm:$0xff]  }
 0x71a   : > { %12245 = vmatpush1.bf16.msra.mxu0 %v19817_v24  ;;  %v10593_v24 = vld [vmem:[#allocation8 + $0x20] sm:$0xff] }
 0x71b   : > { %12246 = vmatprep.subr.bf16.mxu0 %v19825_v28  ;;  %v10601_v28 = vld [vmem:[#allocation8 + $0x1d0] sm:$0x1] }
 0x71c   : > { %12288 = vmatpush1.bf16.msra.mxu1 %v19820_v26  ;;  %v19894_v26 = vld [vmem:[%s25771_s5 + $0x12ec] ss:$16 sps:$4 sm:$0xff]  }
 0x71d   : > { %12289 = vmatprep.subr.bf16.mxu1 %v19828_v20  ;;  %v10595_v20 = vld [vmem:[#allocation8 + $0x170] sm:$0xff] }
 0x71e   : > { %12247 = vmatpush1.bf16.msra.mxu0 %v19823_v1  ;;  %v10603_v1 = vld [vmem:[#allocation8 + $0xd8] sm:$0x1] }
 0x71f   : > { %12248 = vmatprep.subr.bf16.mxu0 %v19831_v39  ;;  %v19889_v39 = vld [vmem:[%s25771_s5 + $0x10e8] ss:$16 sps:$4 sm:$0xff]  }
 0x720   : > { %12290 = vmatpush1.bf16.msra.mxu1 %v19826_v3  ;;  %v24342_v3 = vpack.c.bf16 %v10601_v28, %v10593_v24  ;;  %v19934_v24 = vld [vmem:[%s25771_s5 + $0x1208] ss:$16 sps:$4 sm:$0xff]   ;;  %v19942_v28 = vld [vmem:[%s25771_s5 + $0x13ec] ss:$16 sps:$4 sm:$0xff]  }
 0x721   : > { %12291 = vmatprep.subr.bf16.mxu1 %v19834_v43  ;;  %v19897_v43 = vld [vmem:[%s25771_s5 + $0x10cc] ss:$16 sps:$4 sm:$0xff]  }
 0x722   : > { %12249 = vmatpush1.bf16.msra.mxu0 %v19829_v10  ;;  %v19892_v10 = vld [vmem:[%s25771_s5 + $0x12e8] ss:$16 sps:$4 sm:$0xff]  }
 0x723   : > { %12250 = vmatprep.subr.bf16.mxu0 %v19837_v47 }
 0x724   : > { %12292 = vmatpush1.bf16.msra.mxu1 %v19832_v8  ;;  %v24351_v8 = vpack.c.bf16 %v10603_v1, %v10595_v20  ;;  %v19945_v20 = vld [vmem:[%s25771_s5 + $0x11cc] ss:$16 sps:$4 sm:$0xff]   ;;  %v19940_v1 = vld [vmem:[%s25771_s5 + $0x13e8] ss:$16 sps:$4 sm:$0xff]  }
 0x725   : > { %12293 = vmatprep.subr.bf16.mxu1 %v19840_v25  ;;  %v19900_v25 = vld [vmem:[%s25771_s5 + $0x12cc] ss:$16 sps:$4 sm:$0xff]  }
 0x726   : > { %12251 = vmatpush1.bf16.msra.mxu0 %v19835_v33 }
 0x727   : > { %12252 = vmatprep.subr.bf16.mxu0 %v19843_v29  ;;  %v19895_v29 = vld [vmem:[%s25771_s5 + $0x10c8] ss:$16 sps:$4 sm:$0xff]  }
 0x728   : > { %12294 = vmatpush1.bf16.msra.mxu1 %v19838_v12 }
 0x729   : > { %12295 = vmatprep.subr.bf16.mxu1 %v19846_v36 }
 0x72a   : > { %12253 = vmatpush2.bf16.msra.mxu0 %v19841_v61  ;;  %v19903_v61 = vld [vmem:[%s25771_s5 + $0x10ac] ss:$16 sps:$4 sm:$0xff]  }
 0x72b   : > { %12254 = vmatprep.subr.bf16.mxu0 %v19849_v40 }
 0x72c   : > { %12296 = vmatpush2.bf16.msra.mxu1 %v19844_v13 }
 0x72d   : > { %12297 = vmatprep.subr.bf16.mxu1 %v19852_v44 }
 0x72e   : > { %12255 = vmatpush2.bf16.msra.mxu0 %v19847_v51  ;;  %v19906_v51 = vld [vmem:[%s25771_s5 + $0x12ac] ss:$16 sps:$4 sm:$0xff]  }
 0x72f   : > { %12256 = vmatprep.subr.bf16.mxu0 %v19855_v17 }
 0x730   : > { %12298 = vmatpush2.bf16.msra.mxu1 %v19850_v58 }
 0x731   : > { %12299 = vmatprep.subr.bf16.mxu1 %v19858_v63 }
 0x732   : > { %12257 = vmatpush2.bf16.msra.mxu0 %v19853_v2  ;;  %v19909_v2 = vld [vmem:[%s25771_s5 + $0x108c] ss:$16 sps:$4 sm:$0xff]  }
 0x733   : > { %12258 = vmatprep.subr.bf16.mxu0 %v19861_v23 }
 0x734   : > { %12300 = vmatpush2.bf16.msra.mxu1 %v19856_v21 }
 0x735   : > { %12301 = vmatprep.subr.bf16.mxu1 %v19864_v5 }
 0x736   : > { %12259 = vmatpush2.bf16.msra.mxu0 %v19859_v32  ;;  %v19912_v32 = vld [vmem:[%s25771_s5 + $0x128c] ss:$16 sps:$4 sm:$0xff]  }
 0x737   : > { %12260 = vmatprep.subr.bf16.mxu0 %v19867_v15 }
 0x738   : > { %12302 = vmatpush2.bf16.msra.mxu1 %v19862_v38  ;;  %v19907_v38 = vld [vmem:[%s25771_s5 + $0x1088] ss:$16 sps:$4 sm:$0xff]  }
 0x739   : > { %12303 = vmatprep.subr.bf16.mxu1 %v19870_v35  ;;  %v19910_v35 = vld [vmem:[%s25771_s5 + $0x1288] ss:$16 sps:$4 sm:$0xff]  }
 0x73a   : > { %12261 = vmatpush2.bf16.msra.mxu0 %v19865_v57  ;;  %v19918_v57 = vld [vmem:[%s25771_s5 + $0x126c] ss:$16 sps:$4 sm:$0xff]  }
 0x73b   : > { %12262 = vmatprep.subr.bf16.mxu0 %v19873_v46  ;;  %v19913_v46 = vld [vmem:[%s25771_s5 + $0x1068] ss:$16 sps:$4 sm:$0xff]  }
 0x73c   : > { %12304 = vmatpush2.bf16.msra.mxu1 %v19868_v7  ;;  %v19921_v7 = vld [vmem:[%s25771_s5 + $0x104c] ss:$16 sps:$4 sm:$0xff]  }
 0x73d   : > { %12305 = vmatprep.subr.bf16.mxu1 %v19876_v53  ;;  %v19916_v53 = vld [vmem:[%s25771_s5 + $0x1268] ss:$16 sps:$4 sm:$0xff]  }
 0x73e   : > { %12263 = vmatpush2.bf16.msra.mxu0 %v19871_v14  ;;  %v19924_v14 = vld [vmem:[%s25771_s5 + $0x124c] ss:$16 sps:$4 sm:$0xff]  }
 0x73f   : > { %12264 = vmatprep.subr.bf16.mxu0 %v19879_v54  ;;  %v19919_v54 = vld [vmem:[%s25771_s5 + $0x1048] ss:$16 sps:$4 sm:$0xff]  }
 0x740   : > { %12306 = vmatpush2.bf16.msra.mxu1 %v19874_v11  ;;  %v19927_v11 = vld [vmem:[%s25771_s5 + $0x102c] ss:$16 sps:$4 sm:$0xff]  }
 0x741   : > { %12307 = vmatprep.subr.bf16.mxu1 %v19882_v34  ;;  %v19922_v34 = vld [vmem:[%s25771_s5 + $0x1248] ss:$16 sps:$4 sm:$0xff]  }
 0x742   : > { %12265 = vmatpush2.bf16.msra.mxu0 %v19877_v6  ;;  %v19930_v6 = vld [vmem:[%s25771_s5 + $0x122c] ss:$16 sps:$4 sm:$0xff]  }
 0x743   : > { %12266 = vmatprep.subr.bf16.mxu0 %v19885_v45  ;;  %v19925_v45 = vld [vmem:[%s25771_s5 + $0x1028] ss:$16 sps:$4 sm:$0xff]  }
 0x744   : > { %12308 = vmatpush2.bf16.msra.mxu1 %v19880_v55  ;;  %v19933_v55 = vld [vmem:[%s25771_s5 + $0x100c] ss:$16 sps:$4 sm:$0xff]  }
 0x745   : > { %12309 = vmatprep.subr.bf16.mxu1 %v19888_v56  ;;  %v19928_v56 = vld [vmem:[%s25771_s5 + $0x1228] ss:$16 sps:$4 sm:$0xff]  }
 0x746   : > { %12267 = vmatpush2.bf16.msra.mxu0 %v19883_v62  ;;  %v19936_v62 = vld [vmem:[%s25771_s5 + $0x120c] ss:$16 sps:$4 sm:$0xff]  }
 0x747   : > { %12322 = vmatprep.subr.bf16.mxu0 %v19891_v27  ;;  %v19931_v27 = vld [vmem:[%s25771_s5 + $0x1008] ss:$16 sps:$4 sm:$0xff]  }
 0x748   : > { %12310 = vmatpush2.bf16.msra.mxu1 %v19886_v60  ;;  %v19939_v60 = vld [vmem:[%s25771_s5 + $0x11ec] ss:$16 sps:$4 sm:$0xff]  }
 0x749   : > { %v10450_v47 = vpop.f32.mrf.mxu0  ;;  %12269 = vmatmul.mubr.bf16.vlgmr.msra.gmra.mxu0 %v24342_v3  ;;  %12365 = vmatprep.subr.bf16.mxu1 %v19894_v26  ;;  %v19937_v26 = vld [vmem:[%s25771_s5 + $0x11e8] ss:$16 sps:$4 sm:$0xff]  }
 0x74a   : > { %v10451_v33 = vadd.f32 %v10450_v47, %v23724_v31  ;;  %12323 = vmatpush1.bf16.msra.mxu0 %v19889_v39  ;;  %12354 = vmatprep.mubr.bf16.mxu0 %v23919_v59  ;;  %v19898_v59 = vld [vmem:[%s25771_s5 + $0x12c8] ss:$16 sps:$4 sm:$0xff]   ;;  %v19948_v39 = vld [vmem:[%s25771_s5 + $0x13cc] ss:$16 sps:$4 sm:$0xff]  }
 0x74b   : > { %v10493_v12 = vpop.f32.mrf.mxu1  ;;  %12312 = vmatmul.mubr.bf16.vlgmr.msra.gmra.mxu1 %v24351_v8  ;;  %v10452_v36 = vpop.f32.mrf.mxu0  ;;  %12324 = vmatprep.subr.bf16.mxu0 %v19897_v43  ;;  %v19943_v43 = vld [vmem:[%s25771_s5 + $0x11c8] ss:$16 sps:$4 sm:$0xff]  }
 0x74c   : > { %v24365_v40 = vadd.f32 %v10493_v12, %v10451_v33  ;;  %12366 = vmatpush1.bf16.msra.mxu1 %v19892_v10  ;;  %12397 = vmatprep.mubr.bf16.mxu1 %v23927_v42  ;;  %v10453_v31 = vadd.f32 %v10452_v36, %v23734_v30  ;;  %v19901_v30 = vld [vmem:[%s25771_s5 + $0x10a8] ss:$16 sps:$4 sm:$0xff]   ;;  %v19951_v10 = vld [vmem:[%s25771_s5 + $0x11ac] ss:$16 sps:$4 sm:$0xff]  }
 0x74d   : > { %v10495_v13 = vpop.f32.mrf.mxu1  ;;  %v10454_v44 = vpop.f32.mrf.mxu0  ;;  %12367 = vmatprep.subr.bf16.mxu1 %v19900_v25  ;;  %v19946_v47 = vld [vmem:[%s25771_s5 + $0x13c8] ss:$16 sps:$4 sm:$0xff]   ;;  %v19954_v25 = vld [vmem:[%s25771_s5 + $0x13ac] ss:$16 sps:$4 sm:$0xff]  }
 0x74e   : > { %v24375_v17 = vadd.f32 %v10495_v13, %v10453_v31  ;;  %v10455_v58 = vadd.f32 %v10454_v44, %v23743_v37  ;;  %12325 = vmatpush1.bf16.msra.mxu0 %v19895_v29  ;;  %v19904_v37 = vld [vmem:[%s25771_s5 + $0x12a8] ss:$16 sps:$4 sm:$0xff]   ;;  %v19957_v29 = vld [vmem:[%s25771_s5 + $0x118c] ss:$16 sps:$4 sm:$0xff]  }
 0x74f   : > { %v10497_v42 = vpop.f32.mrf.mxu1  ;;  %v10456_v63 = vpop.f32.mrf.mxu0  ;;  %12326 = vmatprep.subr.bf16.mxu0 %v19903_v61  ;;  %v19949_v33 = vld [vmem:[%s25771_s5 + $0x11a8] ss:$16 sps:$4 sm:$0xff]   ;;  %v19960_v36 = vld [vmem:[%s25771_s5 + $0x138c] ss:$16 sps:$4 sm:$0xff]  }
 0x750   : > { %v24384_v23 = vadd.f32 %v10497_v42, %v10455_v58  ;;  %12368 = vmatpush1.bf16.msra.mxu1 %v19898_v59  ;;  %v10457_v21 = vadd.f32 %v10456_v63, %v23752_v22  ;;  %v19915_v22 = vld [vmem:[%s25771_s5 + $0x106c] ss:$16 sps:$4 sm:$0xff]   ;;  %v19952_v12 = vld [vmem:[%s25771_s5 + $0x13a8] ss:$16 sps:$4 sm:$0xff]  }
 0x751   : > { %v10499_v5 = vpop.f32.mrf.mxu1  ;;  %12369 = vmatprep.subr.bf16.mxu1 %v19906_v51  ;;  %v19955_v61 = vld [vmem:[%s25771_s5 + $0x1188] ss:$16 sps:$4 sm:$0xff]   ;;  %v19963_v31 = vld [vmem:[%s25771_s5 + $0x116c] ss:$16 sps:$4 sm:$0xff]  }
 0x752   : > { %v24393_v15 = vadd.f32 %v10499_v5, %v10457_v21  ;;  %12327 = vmatpush1.bf16.msra.mxu0 %v19901_v30  ;;  %v19958_v59 = vld [vmem:[%s25771_s5 + $0x1388] ss:$16 sps:$4 sm:$0xff]   ;;  %v19966_v13 = vld [vmem:[%s25771_s5 + $0x136c] ss:$16 sps:$4 sm:$0xff]  }
 0x753   : > { %12328 = vmatprep.subr.bf16.mxu0 %v19909_v2  ;;  %v19961_v44 = vld [vmem:[%s25771_s5 + $0x1168] ss:$16 sps:$4 sm:$0xff]   ;;  %v19969_v51 = vld [vmem:[%s25771_s5 + $0x114c] ss:$16 sps:$4 sm:$0xff]  }
 0x754   : > { %12370 = vmatpush1.bf16.msra.mxu1 %v19904_v37  ;;  %v19964_v58 = vld [vmem:[%s25771_s5 + $0x1368] ss:$16 sps:$4 sm:$0xff]   ;;  %v19972_v30 = vld [vmem:[%s25771_s5 + $0x134c] ss:$16 sps:$4 sm:$0xff]  }
 0x755   : > { %12371 = vmatprep.subr.bf16.mxu1 %v19912_v32  ;;  %v19967_v42 = vld [vmem:[%s25771_s5 + $0x1148] ss:$16 sps:$4 sm:$0xff]   ;;  %v19975_v63 = vld [vmem:[%s25771_s5 + $0x112c] ss:$16 sps:$4 sm:$0xff]  }
 0x756   : > { %12329 = vmatpush1.bf16.msra.mxu0 %v19907_v38  ;;  %v19970_v2 = vld [vmem:[%s25771_s5 + $0x1348] ss:$16 sps:$4 sm:$0xff]   ;;  %v19978_v21 = vld [vmem:[%s25771_s5 + $0x132c] ss:$16 sps:$4 sm:$0xff]  }
 0x757   : > { %12330 = vmatprep.subr.bf16.mxu0 %v19915_v22  ;;  %v19973_v37 = vld [vmem:[%s25771_s5 + $0x1128] ss:$16 sps:$4 sm:$0xff]   ;;  %v19981_v5 = vld [vmem:[%s25771_s5 + $0x110c] ss:$16 sps:$4 sm:$0xff]  }
 0x758   : > { %12372 = vmatpush1.bf16.msra.mxu1 %v19910_v35  ;;  %v19976_v32 = vld [vmem:[%s25771_s5 + $0x1328] ss:$16 sps:$4 sm:$0xff]   ;;  %v19984_v38 = vld [vmem:[%s25771_s5 + $0x130c] ss:$16 sps:$4 sm:$0xff]  }
 0x759   : > { %12373 = vmatprep.subr.bf16.mxu1 %v19918_v57  ;;  %v19979_v22 = vld [vmem:[%s25771_s5 + $0x1108] ss:$16 sps:$4 sm:$0xff]   ;;  %v19987_v35 = vld [vmem:[%s25771_s5 + $0x14ec] ss:$16 sps:$4 sm:$0xff]  }
 0x75a   : > { %12331 = vmatpush1.bf16.msra.mxu0 %v19913_v46  ;;  %v19982_v57 = vld [vmem:[%s25771_s5 + $0x1308] ss:$16 sps:$4 sm:$0xff]   ;;  %v19990_v46 = vld [vmem:[%s25771_s5 + $0x16ec] ss:$16 sps:$4 sm:$0xff]  }
 0x75b   : > { %12332 = vmatprep.subr.bf16.mxu0 %v19921_v7  ;;  %v19985_v7 = vld [vmem:[%s25771_s5 + $0x14e8] ss:$16 sps:$4 sm:$0xff]  }
 0x75c   : > { %12374 = vmatpush1.bf16.msra.mxu1 %v19916_v53  ;;  %v19993_v53 = vld [vmem:[%s25771_s5 + $0x14cc] ss:$16 sps:$4 sm:$0xff]  }
 0x75d   : > { %12375 = vmatprep.subr.bf16.mxu1 %v19924_v14  ;;  %v19988_v14 = vld [vmem:[%s25771_s5 + $0x16e8] ss:$16 sps:$4 sm:$0xff]  }
 0x75e   : > { %12333 = vmatpush1.bf16.msra.mxu0 %v19919_v54 }
 0x75f   : > { %12334 = vmatprep.subr.bf16.mxu0 %v19927_v11  ;;  %v19996_v11 = vld [vmem:[%s25771_s5 + $0x16cc] ss:$16 sps:$4 sm:$0xff]  }
 0x760   : > { %12376 = vmatpush1.bf16.msra.mxu1 %v19922_v34 }
 0x761   : > { %12377 = vmatprep.subr.bf16.mxu1 %v19930_v6  ;;  %v19991_v6 = vld [vmem:[%s25771_s5 + $0x14c8] ss:$16 sps:$4 sm:$0xff]  }
 0x762   : > { %12335 = vmatpush1.bf16.msra.mxu0 %v19925_v45 }
 0x763   : > { %12336 = vmatprep.subr.bf16.mxu0 %v19933_v55 }
 0x764   : > { %12378 = vmatpush1.bf16.msra.mxu1 %v19928_v56 }
 0x765   : > { %12379 = vmatprep.subr.bf16.mxu1 %v19936_v62 }
 0x766   : > { %12337 = vmatpush1.bf16.msra.mxu0 %v19931_v27 }
 0x767   : > { %12338 = vmatprep.subr.bf16.mxu0 %v19939_v60 }
 0x768   : > { %12380 = vmatpush1.bf16.msra.mxu1 %v19934_v24 }
 0x769   : > { %12381 = vmatprep.subr.bf16.mxu1 %v19942_v28 }
 0x76a   : > { %12339 = vmatpush2.bf16.msra.mxu0 %v19937_v26  ;;  %v20005_v26 = vld [vmem:[%s25771_s5 + $0x148c] ss:$16 sps:$4 sm:$0xff]  }
 0x76b   : > { %12340 = vmatprep.subr.bf16.mxu0 %v19945_v20 }
 0x76c   : > { %12382 = vmatpush2.bf16.msra.mxu1 %v19940_v1 }
 0x76d   : > { %12383 = vmatprep.subr.bf16.mxu1 %v19948_v39 }
 0x76e   : > { %12341 = vmatpush2.bf16.msra.mxu0 %v19943_v43  ;;  %v20008_v43 = vld [vmem:[%s25771_s5 + $0x168c] ss:$16 sps:$4 sm:$0xff]  }
 0x76f   : > { %12342 = vmatprep.subr.bf16.mxu0 %v19951_v10 }
 0x770   : > { %12384 = vmatpush2.bf16.msra.mxu1 %v19946_v47  ;;  %v20003_v47 = vld [vmem:[%s25771_s5 + $0x1488] ss:$16 sps:$4 sm:$0xff]  }
 0x771   : > { %12385 = vmatprep.subr.bf16.mxu1 %v19954_v25  ;;  %v20006_v25 = vld [vmem:[%s25771_s5 + $0x1688] ss:$16 sps:$4 sm:$0xff]  }
 0x772   : > { %12343 = vmatpush2.bf16.msra.mxu0 %v19949_v33  ;;  %v20014_v33 = vld [vmem:[%s25771_s5 + $0x166c] ss:$16 sps:$4 sm:$0xff]  }
 0x773   : > { %12344 = vmatprep.subr.bf16.mxu0 %v19957_v29  ;;  %v20009_v29 = vld [vmem:[%s25771_s5 + $0x1468] ss:$16 sps:$4 sm:$0xff]  }
 0x774   : > { %12386 = vmatpush2.bf16.msra.mxu1 %v19952_v12  ;;  %v20017_v12 = vld [vmem:[%s25771_s5 + $0x144c] ss:$16 sps:$4 sm:$0xff]  }
 0x775   : > { %12387 = vmatprep.subr.bf16.mxu1 %v19960_v36  ;;  %v20012_v36 = vld [vmem:[%s25771_s5 + $0x1668] ss:$16 sps:$4 sm:$0xff]  }
 0x776   : > { %12345 = vmatpush2.bf16.msra.mxu0 %v19955_v61  ;;  %v20020_v61 = vld [vmem:[%s25771_s5 + $0x164c] ss:$16 sps:$4 sm:$0xff]  }
 0x777   : > { %12346 = vmatprep.subr.bf16.mxu0 %v19963_v31  ;;  %v20015_v31 = vld [vmem:[%s25771_s5 + $0x1448] ss:$16 sps:$4 sm:$0xff]  }
 0x778   : > { %12388 = vmatpush2.bf16.msra.mxu1 %v19958_v59  ;;  %v20023_v59 = vld [vmem:[%s25771_s5 + $0x142c] ss:$16 sps:$4 sm:$0xff]  }
 0x779   : > { %12389 = vmatprep.subr.bf16.mxu1 %v19966_v13  ;;  %v20018_v13 = vld [vmem:[%s25771_s5 + $0x1648] ss:$16 sps:$4 sm:$0xff]  }
 0x77a   : > { %12347 = vmatpush2.bf16.msra.mxu0 %v19961_v44  ;;  %v20026_v44 = vld [vmem:[%s25771_s5 + $0x162c] ss:$16 sps:$4 sm:$0xff]  }
 0x77b   : > { %12348 = vmatprep.subr.bf16.mxu0 %v19969_v51  ;;  %v20021_v51 = vld [vmem:[%s25771_s5 + $0x1428] ss:$16 sps:$4 sm:$0xff]  }
 0x77c   : > { %12390 = vmatpush2.bf16.msra.mxu1 %v19964_v58  ;;  %v20029_v58 = vld [vmem:[%s25771_s5 + $0x140c] ss:$16 sps:$4 sm:$0xff]  }
 0x77d   : > { %12391 = vmatprep.subr.bf16.mxu1 %v19972_v30  ;;  %v20024_v30 = vld [vmem:[%s25771_s5 + $0x1628] ss:$16 sps:$4 sm:$0xff]  }
 0x77e   : > { %12349 = vmatpush2.bf16.msra.mxu0 %v19967_v42  ;;  %v20032_v42 = vld [vmem:[%s25771_s5 + $0x160c] ss:$16 sps:$4 sm:$0xff]  }
 0x77f   : > { %12350 = vmatprep.subr.bf16.mxu0 %v19975_v63  ;;  %v20027_v63 = vld [vmem:[%s25771_s5 + $0x1408] ss:$16 sps:$4 sm:$0xff]  }
 0x780   : > { %12392 = vmatpush2.bf16.msra.mxu1 %v19970_v2  ;;  %v20035_v2 = vld [vmem:[%s25771_s5 + $0x15ec] ss:$16 sps:$4 sm:$0xff]  }
 0x781   : > { %12393 = vmatprep.subr.bf16.mxu1 %v19978_v21  ;;  %v20030_v21 = vld [vmem:[%s25771_s5 + $0x1608] ss:$16 sps:$4 sm:$0xff]  }
 0x782   : > { %12351 = vmatpush2.bf16.msra.mxu0 %v19973_v37  ;;  %v20038_v37 = vld [vmem:[%s25771_s5 + $0x17ec] ss:$16 sps:$4 sm:$0xff]  }
 0x783   : > { %12352 = vmatprep.subr.bf16.mxu0 %v19981_v5  ;;  %v20033_v5 = vld [vmem:[%s25771_s5 + $0x15e8] ss:$16 sps:$4 sm:$0xff]  }
 0x784   : > { %12394 = vmatpush2.bf16.msra.mxu1 %v19976_v32  ;;  %v20041_v32 = vld [vmem:[%s25771_s5 + $0x15cc] ss:$16 sps:$4 sm:$0xff]  }
 0x785   : > { %12395 = vmatprep.subr.bf16.mxu1 %v19984_v38  ;;  %v20036_v38 = vld [vmem:[%s25771_s5 + $0x17e8] ss:$16 sps:$4 sm:$0xff]  }
 0x786   : > { %12353 = vmatpush2.bf16.msra.mxu0 %v19979_v22  ;;  %v20044_v22 = vld [vmem:[%s25771_s5 + $0x17cc] ss:$16 sps:$4 sm:$0xff]  }
 0x787   : > { %12408 = vmatprep.subr.bf16.mxu0 %v19987_v35  ;;  %v20039_v35 = vld [vmem:[%s25771_s5 + $0x15c8] ss:$16 sps:$4 sm:$0xff]  }
 0x788   : > { %12396 = vmatpush2.bf16.msra.mxu1 %v19982_v57  ;;  %v20047_v57 = vld [vmem:[%s25771_s5 + $0x15ac] ss:$16 sps:$4 sm:$0xff]  }
 0x789   : > { %v10536_v54 = vpop.f32.mrf.mxu0  ;;  %12355 = vmatmul.mubr.bf16.vlgmr.msra.gmra.mxu0 %v24125_v19  ;;  %12451 = vmatprep.subr.bf16.mxu1 %v19990_v46  ;;  %v19999_v19 = vld [vmem:[%s25771_s5 + $0x14ac] ss:$16 sps:$4 sm:$0xff]   ;;  %v20042_v46 = vld [vmem:[%s25771_s5 + $0x17c8] ss:$16 sps:$4 sm:$0xff]  }
 0x78a   : > { %v10537_v34 = vadd.f32 %v10536_v54, %v24365_v40  ;;  %12409 = vmatpush1.bf16.msra.mxu0 %v19985_v7  ;;  %12440 = vmatprep.mubr.bf16.mxu0 %v24133_v0  ;;  %v19994_v40 = vld [vmem:[%s25771_s5 + $0x16c8] ss:$16 sps:$4 sm:$0xff]   ;;  %v20050_v7 = vld [vmem:[%s25771_s5 + $0x17ac] ss:$16 sps:$4 sm:$0xff]  }
 0x78b   : > { %v10579_v45 = vpop.f32.mrf.mxu1  ;;  %12398 = vmatmul.mubr.bf16.vlgmr.msra.gmra.mxu1 %v24136_v16  ;;  %v10538_v55 = vpop.f32.mrf.mxu0  ;;  %12410 = vmatprep.subr.bf16.mxu0 %v19993_v53  ;;  %v20002_v16 = vld [vmem:[%s25771_s5 + $0x16ac] ss:$16 sps:$4 sm:$0xff]   ;;  %v20045_v53 = vld [vmem:[%s25771_s5 + $0x15a8] ss:$16 sps:$4 sm:$0xff]  }
 0x78c   : > { %v24573_v56 = vadd.f32 %v10579_v45, %v10537_v34  ;;  %12452 = vmatpush1.bf16.msra.mxu1 %v19988_v14  ;;  %12483 = vmatprep.mubr.bf16.mxu1 %v24143_v52  ;;  %v10539_v0 = vadd.f32 %v10538_v55, %v24375_v17  ;;  %v19997_v52 = vld [vmem:[%s25771_s5 + $0x14a8] ss:$16 sps:$4 sm:$0xff]   ;;  %v20053_v14 = vld [vmem:[%s25771_s5 + $0x158c] ss:$16 sps:$4 sm:$0xff]  }
 0x78d   : > { %v10581_v62 = vpop.f32.mrf.mxu1  ;;  %v10540_v27 = vpop.f32.mrf.mxu0  ;;  %12453 = vmatprep.subr.bf16.mxu1 %v19996_v11  ;;  %v20048_v54 = vld [vmem:[%s25771_s5 + $0x17a8] ss:$16 sps:$4 sm:$0xff]   ;;  %v20056_v11 = vld [vmem:[%s25771_s5 + $0x178c] ss:$16 sps:$4 sm:$0xff]  }
 0x78e   : > { %v24583_v60 = vadd.f32 %v10581_v62, %v10539_v0  ;;  %v10541_v24 = vadd.f32 %v10540_v27, %v24384_v23  ;;  %12411 = vmatpush1.bf16.msra.mxu0 %v19991_v6  ;;  %v20000_v23 = vld [vmem:[%s25771_s5 + $0x16a8] ss:$16 sps:$4 sm:$0xff]   ;;  %v20059_v6 = vld [vmem:[%s25771_s5 + $0x156c] ss:$16 sps:$4 sm:$0xff]  }
 0x78f   : > { %v10583_v17 = vpop.f32.mrf.mxu1  ;;  %v10542_v28 = vpop.f32.mrf.mxu0  ;;  %12412 = vmatprep.subr.bf16.mxu0 %v19999_v19  ;;  %v20051_v34 = vld [vmem:[%s25771_s5 + $0x1588] ss:$16 sps:$4 sm:$0xff]   ;;  %v20062_v55 = vld [vmem:[%s25771_s5 + $0x176c] ss:$16 sps:$4 sm:$0xff]  }
 0x790   : > { %v24592_v20 = vadd.f32 %v10583_v17, %v10541_v24  ;;  %12454 = vmatpush1.bf16.msra.mxu1 %v19994_v40  ;;  %v10543_v1 = vadd.f32 %v10542_v28, %v24393_v15  ;;  %v20011_v15 = vld [vmem:[%s25771_s5 + $0x146c] ss:$16 sps:$4 sm:$0xff]   ;;  %v20054_v45 = vld [vmem:[%s25771_s5 + $0x1788] ss:$16 sps:$4 sm:$0xff]  }
 0x791   : > { %v10585_v39 = vpop.f32.mrf.mxu1  ;;  %12455 = vmatprep.subr.bf16.mxu1 %v20002_v16  ;;  %v20057_v19 = vld [vmem:[%s25771_s5 + $0x1568] ss:$16 sps:$4 sm:$0xff]   ;;  %v20065_v0 = vld [vmem:[%s25771_s5 + $0x154c] ss:$16 sps:$4 sm:$0xff]  }
 0x792   : > { %v24601_v10 = vadd.f32 %v10585_v39, %v10543_v1  ;;  %12413 = vmatpush1.bf16.msra.mxu0 %v19997_v52  ;;  %v20060_v40 = vld [vmem:[%s25771_s5 + $0x1768] ss:$16 sps:$4 sm:$0xff]   ;;  %v20068_v62 = vld [vmem:[%s25771_s5 + $0x174c] ss:$16 sps:$4 sm:$0xff]   ;;  %v20083_v39 = vld [vmem:[%s25771_s5 + $0x18e4] ss:$16 sps:$4 sm:$0xff]  }
 0x793   : > { %12414 = vmatprep.subr.bf16.mxu0 %v20005_v26  ;;  %v20063_v27 = vld [vmem:[%s25771_s5 + $0x1548] ss:$16 sps:$4 sm:$0xff]   ;;  %v20071_v16 = vld [vmem:[%s25771_s5 + $0x152c] ss:$16 sps:$4 sm:$0xff]  }
 0x794   : > { %12456 = vmatpush1.bf16.msra.mxu1 %v20000_v23  ;;  %v20066_v24 = vld [vmem:[%s25771_s5 + $0x1748] ss:$16 sps:$4 sm:$0xff]   ;;  %v20074_v52 = vld [vmem:[%s25771_s5 + $0x172c] ss:$16 sps:$4 sm:$0xff]  }
 0x795   : > { %12457 = vmatprep.subr.bf16.mxu1 %v20008_v43  ;;  %v20069_v17 = vld [vmem:[%s25771_s5 + $0x1528] ss:$16 sps:$4 sm:$0xff]   ;;  %v20077_v28 = vld [vmem:[%s25771_s5 + $0x150c] ss:$16 sps:$4 sm:$0xff]  }
 0x796   : > { %12415 = vmatpush1.bf16.msra.mxu0 %v20003_v47  ;;  %v20072_v26 = vld [vmem:[%s25771_s5 + $0x1728] ss:$16 sps:$4 sm:$0xff]   ;;  %v20080_v1 = vld [vmem:[%s25771_s5 + $0x170c] ss:$16 sps:$4 sm:$0xff]   ;;  %v20086_v47 = vld [vmem:[%s25771_s5 + $0x1ae4] ss:$16 sps:$4 sm:$0xff]  }
 0x797   : > { %12416 = vmatprep.subr.bf16.mxu0 %v20011_v15  ;;  %v20075_v23 = vld [vmem:[%s25771_s5 + $0x1508] ss:$16 sps:$4 sm:$0xff]  }
 0x798   : > { %12458 = vmatpush1.bf16.msra.mxu1 %v20006_v25  ;;  %v20078_v43 = vld [vmem:[%s25771_s5 + $0x1708] ss:$16 sps:$4 sm:$0xff]  }
 0x799   : > { %12459 = vmatprep.subr.bf16.mxu1 %v20014_v33  ;;  %v12504_v15 = vld [vmem:[#allocation8 + $0x18] sm:$0xff]  ;;  %v12512_v25 = vld [vmem:[#allocation8 + $0x148] sm:$0x1]  ;;  %v20081_v33 = vld [vmem:[%s25771_s5 + $0x18e0] ss:$16 sps:$4 sm:$0xff]  }
 0x79a   : > { %12417 = vmatpush1.bf16.msra.mxu0 %v20009_v29  ;;  %v12506_v29 = vld [vmem:[#allocation8 + $0x110] sm:$0xff] }
 0x79b   : > { %12418 = vmatprep.subr.bf16.mxu0 %v20017_v12  ;;  %v12514_v12 = vld [vmem:[#allocation8 + $0xb0] sm:$0x1] }
 0x79c   : > { %12460 = vmatpush1.bf16.msra.mxu1 %v20012_v36  ;;  %v20089_v36 = vld [vmem:[%s25771_s5 + $0x18c4] ss:$16 sps:$4 sm:$0xff]  }
 0x79d   : > { %12461 = vmatprep.subr.bf16.mxu1 %v20020_v61  ;;  %v20084_v61 = vld [vmem:[%s25771_s5 + $0x1ae0] ss:$16 sps:$4 sm:$0xff]  }
 0x79e   : > { %12419 = vmatpush1.bf16.msra.mxu0 %v20015_v31  ;;  %v24768_v31 = vpack.c.bf16 %v12512_v25, %v12504_v15  ;;  %v20158_v15 = vld [vmem:[%s25771_s5 + $0x1b64] ss:$16 sps:$4 sm:$0xff]   ;;  %v20153_v25 = vld [vmem:[%s25771_s5 + $0x1960] ss:$16 sps:$4 sm:$0xff]  }
 0x79f   : > { %12420 = vmatprep.subr.bf16.mxu0 %v20023_v59  ;;  %v20092_v59 = vld [vmem:[%s25771_s5 + $0x1ac4] ss:$16 sps:$4 sm:$0xff]  }
 0x7a0   : > { %12462 = vmatpush1.bf16.msra.mxu1 %v20018_v13  ;;  %v24775_v13 = vpack.c.bf16 %v12514_v12, %v12506_v29  ;;  %v20156_v29 = vld [vmem:[%s25771_s5 + $0x1b60] ss:$16 sps:$4 sm:$0xff]   ;;  %v20164_v12 = vld [vmem:[%s25771_s5 + $0x1b44] ss:$16 sps:$4 sm:$0xff]  }
 0x7a1   : > { %12463 = vmatprep.subr.bf16.mxu1 %v20026_v44  ;;  %v20087_v44 = vld [vmem:[%s25771_s5 + $0x18c0] ss:$16 sps:$4 sm:$0xff]  }
 0x7a2   : > { %12421 = vmatpush1.bf16.msra.mxu0 %v20021_v51  ;;  %v20090_v51 = vld [vmem:[%s25771_s5 + $0x1ac0] ss:$16 sps:$4 sm:$0xff]  }
 0x7a3   : > { %12422 = vmatprep.subr.bf16.mxu0 %v20029_v58  ;;  %v20098_v58 = vld [vmem:[%s25771_s5 + $0x1aa4] ss:$16 sps:$4 sm:$0xff]  }
 0x7a4   : > { %12464 = vmatpush1.bf16.msra.mxu1 %v20024_v30  ;;  %v20101_v30 = vld [vmem:[%s25771_s5 + $0x1884] ss:$16 sps:$4 sm:$0xff]  }
 0x7a5   : > { %12465 = vmatprep.subr.bf16.mxu1 %v20032_v42  ;;  %v20096_v42 = vld [vmem:[%s25771_s5 + $0x1aa0] ss:$16 sps:$4 sm:$0xff]  }
 0x7a6   : > { %12423 = vmatpush1.bf16.msra.mxu0 %v20027_v63  ;;  %v20104_v63 = vld [vmem:[%s25771_s5 + $0x1a84] ss:$16 sps:$4 sm:$0xff]  }
 0x7a7   : > { %12424 = vmatprep.subr.bf16.mxu0 %v20035_v2  ;;  %v20099_v2 = vld [vmem:[%s25771_s5 + $0x1880] ss:$16 sps:$4 sm:$0xff]  }
 0x7a8   : > { %12466 = vmatpush1.bf16.msra.mxu1 %v20030_v21  ;;  %v20107_v21 = vld [vmem:[%s25771_s5 + $0x1864] ss:$16 sps:$4 sm:$0xff]  }
 0x7a9   : > { %12467 = vmatprep.subr.bf16.mxu1 %v20038_v37  ;;  %v20102_v37 = vld [vmem:[%s25771_s5 + $0x1a80] ss:$16 sps:$4 sm:$0xff]  }
 0x7aa   : > { %12425 = vmatpush2.bf16.msra.mxu0 %v20033_v5  ;;  %v20110_v5 = vld [vmem:[%s25771_s5 + $0x1a64] ss:$16 sps:$4 sm:$0xff]  }
 0x7ab   : > { %12426 = vmatprep.subr.bf16.mxu0 %v20041_v32  ;;  %v20105_v32 = vld [vmem:[%s25771_s5 + $0x1860] ss:$16 sps:$4 sm:$0xff]  }
 0x7ac   : > { %12468 = vmatpush2.bf16.msra.mxu1 %v20036_v38  ;;  %v20113_v38 = vld [vmem:[%s25771_s5 + $0x1844] ss:$16 sps:$4 sm:$0xff]  }
 0x7ad   : > { %12469 = vmatprep.subr.bf16.mxu1 %v20044_v22  ;;  %v20108_v22 = vld [vmem:[%s25771_s5 + $0x1a60] ss:$16 sps:$4 sm:$0xff]  }
 0x7ae   : > { %12427 = vmatpush2.bf16.msra.mxu0 %v20039_v35  ;;  %v20116_v35 = vld [vmem:[%s25771_s5 + $0x1a44] ss:$16 sps:$4 sm:$0xff]  }
 0x7af   : > { %12428 = vmatprep.subr.bf16.mxu0 %v20047_v57  ;;  %v20111_v57 = vld [vmem:[%s25771_s5 + $0x1840] ss:$16 sps:$4 sm:$0xff]  }
 0x7b0   : > { %12470 = vmatpush2.bf16.msra.mxu1 %v20042_v46  ;;  %v20119_v46 = vld [vmem:[%s25771_s5 + $0x1824] ss:$16 sps:$4 sm:$0xff]  }
 0x7b1   : > { %12471 = vmatprep.subr.bf16.mxu1 %v20050_v7  ;;  %v20114_v7 = vld [vmem:[%s25771_s5 + $0x1a40] ss:$16 sps:$4 sm:$0xff]  }
 0x7b2   : > { %12429 = vmatpush2.bf16.msra.mxu0 %v20045_v53  ;;  %v20122_v53 = vld [vmem:[%s25771_s5 + $0x1a24] ss:$16 sps:$4 sm:$0xff]  }
 0x7b3   : > { %12430 = vmatprep.subr.bf16.mxu0 %v20053_v14  ;;  %v20117_v14 = vld [vmem:[%s25771_s5 + $0x1820] ss:$16 sps:$4 sm:$0xff]  }
 0x7b4   : > { %12472 = vmatpush2.bf16.msra.mxu1 %v20048_v54  ;;  %v20125_v54 = vld [vmem:[%s25771_s5 + $0x1804] ss:$16 sps:$4 sm:$0xff]  }
 0x7b5   : > { %12473 = vmatprep.subr.bf16.mxu1 %v20056_v11  ;;  %v20120_v11 = vld [vmem:[%s25771_s5 + $0x1a20] ss:$16 sps:$4 sm:$0xff]  }
 0x7b6   : > { %12431 = vmatpush2.bf16.msra.mxu0 %v20051_v34  ;;  %v20128_v34 = vld [vmem:[%s25771_s5 + $0x1a04] ss:$16 sps:$4 sm:$0xff]  }
 0x7b7   : > { %12432 = vmatprep.subr.bf16.mxu0 %v20059_v6  ;;  %v20123_v6 = vld [vmem:[%s25771_s5 + $0x1800] ss:$16 sps:$4 sm:$0xff]  }
 0x7b8   : > { %12474 = vmatpush2.bf16.msra.mxu1 %v20054_v45  ;;  %v20131_v45 = vld [vmem:[%s25771_s5 + $0x19e4] ss:$16 sps:$4 sm:$0xff]  }
 0x7b9   : > { %12475 = vmatprep.subr.bf16.mxu1 %v20062_v55  ;;  %v20126_v55 = vld [vmem:[%s25771_s5 + $0x1a00] ss:$16 sps:$4 sm:$0xff]  }
 0x7ba   : > { %12433 = vmatpush2.bf16.msra.mxu0 %v20057_v19  ;;  %v20134_v19 = vld [vmem:[%s25771_s5 + $0x1be4] ss:$16 sps:$4 sm:$0xff]  }
 0x7bb   : > { %12434 = vmatprep.subr.bf16.mxu0 %v20065_v0  ;;  %v20129_v0 = vld [vmem:[%s25771_s5 + $0x19e0] ss:$16 sps:$4 sm:$0xff]  }
 0x7bc   : > { %12476 = vmatpush2.bf16.msra.mxu1 %v20060_v40  ;;  %v20137_v40 = vld [vmem:[%s25771_s5 + $0x19c4] ss:$16 sps:$4 sm:$0xff]  }
 0x7bd   : > { %12477 = vmatprep.subr.bf16.mxu1 %v20068_v62  ;;  %v20132_v62 = vld [vmem:[%s25771_s5 + $0x1be0] ss:$16 sps:$4 sm:$0xff]  }
 0x7be   : > { %12435 = vmatpush2.bf16.msra.mxu0 %v20063_v27  ;;  %v20140_v27 = vld [vmem:[%s25771_s5 + $0x1bc4] ss:$16 sps:$4 sm:$0xff]  }
 0x7bf   : > { %12436 = vmatprep.subr.bf16.mxu0 %v20071_v16  ;;  %v20135_v16 = vld [vmem:[%s25771_s5 + $0x19c0] ss:$16 sps:$4 sm:$0xff]  }
 0x7c0   : > { %12478 = vmatpush2.bf16.msra.mxu1 %v20066_v24  ;;  %v20143_v24 = vld [vmem:[%s25771_s5 + $0x19a4] ss:$16 sps:$4 sm:$0xff]  }
 0x7c1   : > { %12479 = vmatprep.subr.bf16.mxu1 %v20074_v52  ;;  %v20138_v52 = vld [vmem:[%s25771_s5 + $0x1bc0] ss:$16 sps:$4 sm:$0xff]  }
 0x7c2   : > { %12437 = vmatpush2.bf16.msra.mxu0 %v20069_v17  ;;  %v20146_v17 = vld [vmem:[%s25771_s5 + $0x1ba4] ss:$16 sps:$4 sm:$0xff]  }
 0x7c3   : > { %12438 = vmatprep.subr.bf16.mxu0 %v20077_v28  ;;  %v20141_v28 = vld [vmem:[%s25771_s5 + $0x19a0] ss:$16 sps:$4 sm:$0xff]  }
 0x7c4   : > { %12480 = vmatpush2.bf16.msra.mxu1 %v20072_v26  ;;  %v20149_v26 = vld [vmem:[%s25771_s5 + $0x1984] ss:$16 sps:$4 sm:$0xff]  }
 0x7c5   : > { %12481 = vmatprep.subr.bf16.mxu1 %v20080_v1  ;;  %v20144_v1 = vld [vmem:[%s25771_s5 + $0x1ba0] ss:$16 sps:$4 sm:$0xff]  }
 0x7c6   : > { %12439 = vmatpush2.bf16.msra.mxu0 %v20075_v23  ;;  %v20152_v23 = vld [vmem:[%s25771_s5 + $0x1b84] ss:$16 sps:$4 sm:$0xff]  }
 0x7c7   : > { %14064 = vmatprep.subr.bf16.mxu0 %v20083_v39  ;;  %v20147_v39 = vld [vmem:[%s25771_s5 + $0x1980] ss:$16 sps:$4 sm:$0xff]  }
 0x7c8   : > { %12482 = vmatpush2.bf16.msra.mxu1 %v20078_v43  ;;  %v20155_v43 = vld [vmem:[%s25771_s5 + $0x1964] ss:$16 sps:$4 sm:$0xff]  }
 0x7c9   : > { %12441 = vmatmul.mubr.bf16.vlgmr.msra.gmra.mxu0 %v24342_v3  ;;  %14107 = vmatprep.subr.bf16.mxu1 %v20086_v47  ;;  %v20095_v3 = vld [vmem:[%s25771_s5 + $0x18a4] ss:$16 sps:$4 sm:$0xff]   ;;  %v20150_v47 = vld [vmem:[%s25771_s5 + $0x1b80] ss:$16 sps:$4 sm:$0xff]  }
 0x7ca   : > { %14065 = vmatpush1.bf16.msra.mxu0 %v20081_v33  ;;  %14096 = vmatprep.mubr.bf16.mxu0 %v24768_v31  ;;  %v20161_v33 = vld [vmem:[%s25771_s5 + $0x1944] ss:$16 sps:$4 sm:$0xff]  }
 0x7cb   : > { %12484 = vmatmul.mubr.bf16.vlgmr.msra.gmra.mxu1 %v24351_v8  ;;  %14066 = vmatprep.subr.bf16.mxu0 %v20089_v36  ;;  %v20093_v8 = vld [vmem:[%s25771_s5 + $0x18a0] ss:$16 sps:$4 sm:$0xff]  }
 0x7cc   : > { %14108 = vmatpush1.bf16.msra.mxu1 %v20084_v61  ;;  %14139 = vmatprep.mubr.bf16.mxu1 %v24775_v13  ;;  %v20159_v36 = vld [vmem:[%s25771_s5 + $0x1940] ss:$16 sps:$4 sm:$0xff]   ;;  %v20167_v61 = vld [vmem:[%s25771_s5 + $0x1924] ss:$16 sps:$4 sm:$0xff]  }
 0x7cd   : > { %14109 = vmatprep.subr.bf16.mxu1 %v20092_v59  ;;  %v20162_v59 = vld [vmem:[%s25771_s5 + $0x1b40] ss:$16 sps:$4 sm:$0xff]  }
 0x7ce   : > { %14067 = vmatpush1.bf16.msra.mxu0 %v20087_v44  ;;  %v20170_v44 = vld [vmem:[%s25771_s5 + $0x1b24] ss:$16 sps:$4 sm:$0xff]  }
 0x7cf   : > { %14068 = vmatprep.subr.bf16.mxu0 %v20095_v3  ;;  %v20165_v3 = vld [vmem:[%s25771_s5 + $0x1920] ss:$16 sps:$4 sm:$0xff]  }
 0x7d0   : > { %14110 = vmatpush1.bf16.msra.mxu1 %v20090_v51  ;;  %v20173_v51 = vld [vmem:[%s25771_s5 + $0x1904] ss:$16 sps:$4 sm:$0xff]  }
 0x7d1   : > { %14111 = vmatprep.subr.bf16.mxu1 %v20098_v58  ;;  %v20168_v58 = vld [vmem:[%s25771_s5 + $0x1b20] ss:$16 sps:$4 sm:$0xff]  }
 0x7d2   : > { %14069 = vmatpush1.bf16.msra.mxu0 %v20093_v8  ;;  %v20176_v8 = vld [vmem:[%s25771_s5 + $0x1b04] ss:$16 sps:$4 sm:$0xff]  }
 0x7d3   : > { %14070 = vmatprep.subr.bf16.mxu0 %v20101_v30  ;;  %v20171_v30 = vld [vmem:[%s25771_s5 + $0x1900] ss:$16 sps:$4 sm:$0xff]  }
 0x7d4   : > { %14112 = vmatpush1.bf16.msra.mxu1 %v20096_v42  ;;  %v20179_v42 = vld [vmem:[%s25771_s5 + $0x1ce4] ss:$16 sps:$4 sm:$0xff]  }
 0x7d5   : > { %14113 = vmatprep.subr.bf16.mxu1 %v20104_v63  ;;  %v20174_v63 = vld [vmem:[%s25771_s5 + $0x1b00] ss:$16 sps:$4 sm:$0xff]  }
 0x7d6   : > { %14071 = vmatpush1.bf16.msra.mxu0 %v20099_v2  ;;  %v12503_v2 = vld [vmem:[#allocation8 + $0x1c0] sm:$0xff] }
 0x7d7   : > { %14072 = vmatprep.subr.bf16.mxu0 %v20107_v21  ;;  %v12511_v21 = vld [vmem:[#allocation8 + $0x100] sm:$0x1] }
 0x7d8   : > { %14114 = vmatpush1.bf16.msra.mxu1 %v20102_v37  ;;  %v20182_v37 = vld [vmem:[%s25771_s5 + $0x1ee4] ss:$16 sps:$4 sm:$0xff]  }
 0x7d9   : > { %14115 = vmatprep.subr.bf16.mxu1 %v20110_v5  ;;  %v12508_v5 = vld [vmem:[#allocation8 + $0x108] sm:$0xff] }
 0x7da   : > { %14073 = vmatpush1.bf16.msra.mxu0 %v20105_v32  ;;  %v12516_v32 = vld [vmem:[#allocation8 + $0xe0] sm:$0x1] }
 0x7db   : > { %14074 = vmatprep.subr.bf16.mxu0 %v20113_v38  ;;  %v12505_v38 = vld [vmem:[#allocation8 + $0x48] sm:$0xff] }
 0x7dc   : > { %14116 = vmatpush1.bf16.msra.mxu1 %v20108_v22  ;;  %v12513_v22 = vld [vmem:[#allocation8 + $0xf8] sm:$0x1] }
 0x7dd   : > { %14117 = vmatprep.subr.bf16.mxu1 %v20116_v35  ;;  %v20177_v35 = vld [vmem:[%s25771_s5 + $0x1ce0] ss:$16 sps:$4 sm:$0xff]  }
 0x7de   : > { %14075 = vmatpush1.bf16.msra.mxu0 %v20111_v57  ;;  %v24962_v57 = vpack.c.bf16 %v12511_v21, %v12503_v2  ;;  %v20234_v2 = vld [vmem:[%s25771_s5 + $0x1fc0] ss:$16 sps:$4 sm:$0xff]   ;;  %v25088_v21 = vpop.f32.mrf.mxu0 }
 0x7df   : > { %14076 = vmatprep.subr.bf16.mxu0 %v20119_v46  ;;  %v12510_v46 = vld [vmem:[#allocation8 + $0x8] sm:$0xff] }
 0x7e0   : > { %14118 = vmatpush1.bf16.msra.mxu1 %v20114_v7  ;;  %v12518_v7 = vld [vmem:[#allocation8 + $0x120] sm:$0x1] }
 0x7e1   : > { %14119 = vmatprep.subr.bf16.mxu1 %v20122_v53  ;;  %v20185_v53 = vld [vmem:[%s25771_s5 + $0x1cc4] ss:$16 sps:$4 sm:$0xff]  }
 0x7e2   : > { %14077 = vmatpush1.bf16.msra.mxu0 %v20117_v14  ;;  %v20180_v14 = vld [vmem:[%s25771_s5 + $0x1ee0] ss:$16 sps:$4 sm:$0xff]  }
 0x7e3   : > { %14078 = vmatprep.subr.bf16.mxu0 %v20125_v54  ;;  %v24970_v54 = vpack.c.bf16 %v12516_v32, %v12508_v5  ;;  %v20237_v5 = vld [vmem:[%s25771_s5 + $0x1da0] ss:$16 sps:$4 sm:$0xff]   ;;  %v25096_v32 = vpop.f32.mrf.mxu1 }
 0x7e4   : > { %14120 = vmatpush1.bf16.msra.mxu1 %v20120_v11  ;;  %v24973_v11 = vpack.c.bf16 %v12513_v22, %v12505_v38  ;;  %v20245_v38 = vld [vmem:[%s25771_s5 + $0x1d84] ss:$16 sps:$4 sm:$0xff]   ;;  %v20240_v22 = vld [vmem:[%s25771_s5 + $0x1fa0] ss:$16 sps:$4 sm:$0xff]  }
 0x7e5   : > { %14121 = vmatprep.subr.bf16.mxu1 %v20128_v34  ;;  %v20188_v34 = vld [vmem:[%s25771_s5 + $0x1ec4] ss:$16 sps:$4 sm:$0xff]  }
 0x7e6   : > { %14079 = vmatpush1.bf16.msra.mxu0 %v20123_v6  ;;  %v24979_v6 = vpack.c.bf16 %v12518_v7, %v12510_v46  ;;  %v20248_v46 = vld [vmem:[%s25771_s5 + $0x1f84] ss:$16 sps:$4 sm:$0xff]   ;;  %v20243_v7 = vld [vmem:[%s25771_s5 + $0x1d80] ss:$16 sps:$4 sm:$0xff]  }
 0x7e7   : > { %14080 = vmatprep.subr.bf16.mxu0 %v20131_v45  ;;  %v20183_v45 = vld [vmem:[%s25771_s5 + $0x1cc0] ss:$16 sps:$4 sm:$0xff]  }
 0x7e8   : > { %14122 = vmatpush1.bf16.msra.mxu1 %v20126_v55  ;;  %v20191_v55 = vld [vmem:[%s25771_s5 + $0x1ca4] ss:$16 sps:$4 sm:$0xff]  }
 0x7e9   : > { %14123 = vmatprep.subr.bf16.mxu1 %v20134_v19  ;;  %v20186_v19 = vld [vmem:[%s25771_s5 + $0x1ec0] ss:$16 sps:$4 sm:$0xff]  }
 0x7ea   : > { %14081 = vmatpush2.bf16.msra.mxu0 %v20129_v0  ;;  %v20194_v0 = vld [vmem:[%s25771_s5 + $0x1ea4] ss:$16 sps:$4 sm:$0xff]  }
 0x7eb   : > { %14082 = vmatprep.subr.bf16.mxu0 %v20137_v40  ;;  %v20189_v40 = vld [vmem:[%s25771_s5 + $0x1ca0] ss:$16 sps:$4 sm:$0xff]  }
 0x7ec   : > { %14124 = vmatpush2.bf16.msra.mxu1 %v20132_v62  ;;  %v20197_v62 = vld [vmem:[%s25771_s5 + $0x1c84] ss:$16 sps:$4 sm:$0xff]  }
 0x7ed   : > { %14125 = vmatprep.subr.bf16.mxu1 %v20140_v27  ;;  %v20192_v27 = vld [vmem:[%s25771_s5 + $0x1ea0] ss:$16 sps:$4 sm:$0xff]  }
 0x7ee   : > { %14083 = vmatpush2.bf16.msra.mxu0 %v20135_v16  ;;  %v20200_v16 = vld [vmem:[%s25771_s5 + $0x1e84] ss:$16 sps:$4 sm:$0xff]  }
 0x7ef   : > { %14084 = vmatprep.subr.bf16.mxu0 %v20143_v24  ;;  %v20195_v24 = vld [vmem:[%s25771_s5 + $0x1c80] ss:$16 sps:$4 sm:$0xff]  }
 0x7f0   : > { %14126 = vmatpush2.bf16.msra.mxu1 %v20138_v52  ;;  %v20203_v52 = vld [vmem:[%s25771_s5 + $0x1c64] ss:$16 sps:$4 sm:$0xff]  }
 0x7f1   : > { %14127 = vmatprep.subr.bf16.mxu1 %v20146_v17  ;;  %v20198_v17 = vld [vmem:[%s25771_s5 + $0x1e80] ss:$16 sps:$4 sm:$0xff]  }
 0x7f2   : > { %14085 = vmatpush2.bf16.msra.mxu0 %v20141_v28  ;;  %v20206_v28 = vld [vmem:[%s25771_s5 + $0x1e64] ss:$16 sps:$4 sm:$0xff]  }
 0x7f3   : > { %14086 = vmatprep.subr.bf16.mxu0 %v20149_v26  ;;  %v20201_v26 = vld [vmem:[%s25771_s5 + $0x1c60] ss:$16 sps:$4 sm:$0xff]  }
 0x7f4   : > { %14128 = vmatpush2.bf16.msra.mxu1 %v20144_v1  ;;  %v20209_v1 = vld [vmem:[%s25771_s5 + $0x1c44] ss:$16 sps:$4 sm:$0xff]  }
 0x7f5   : > { %14129 = vmatprep.subr.bf16.mxu1 %v20152_v23  ;;  %v20204_v23 = vld [vmem:[%s25771_s5 + $0x1e60] ss:$16 sps:$4 sm:$0xff]  }
 0x7f6   : > { %14087 = vmatpush2.bf16.msra.mxu0 %v20147_v39  ;;  %v20212_v39 = vld [vmem:[%s25771_s5 + $0x1e44] ss:$16 sps:$4 sm:$0xff]  }
 0x7f7   : > { %14088 = vmatprep.subr.bf16.mxu0 %v20155_v43  ;;  %v20207_v43 = vld [vmem:[%s25771_s5 + $0x1c40] ss:$16 sps:$4 sm:$0xff]  }
 0x7f8   : > { %14130 = vmatpush2.bf16.msra.mxu1 %v20150_v47  ;;  %v20215_v47 = vld [vmem:[%s25771_s5 + $0x1c24] ss:$16 sps:$4 sm:$0xff]  }
 0x7f9   : > { %14131 = vmatprep.subr.bf16.mxu1 %v20158_v15  ;;  %v20210_v15 = vld [vmem:[%s25771_s5 + $0x1e40] ss:$16 sps:$4 sm:$0xff]  }
 0x7fa   : > { %14089 = vmatpush2.bf16.msra.mxu0 %v20153_v25  ;;  %v20218_v25 = vld [vmem:[%s25771_s5 + $0x1e24] ss:$16 sps:$4 sm:$0xff]  }
 0x7fb   : > { %14090 = vmatprep.subr.bf16.mxu0 %v20161_v33  ;;  %v20213_v33 = vld [vmem:[%s25771_s5 + $0x1c20] ss:$16 sps:$4 sm:$0xff]  }
 0x7fc   : > { %14132 = vmatpush2.bf16.msra.mxu1 %v20156_v29  ;;  %v20221_v29 = vld [vmem:[%s25771_s5 + $0x1c04] ss:$16 sps:$4 sm:$0xff]  }
 0x7fd   : > { %14133 = vmatprep.subr.bf16.mxu1 %v20164_v12  ;;  %v20216_v12 = vld [vmem:[%s25771_s5 + $0x1e20] ss:$16 sps:$4 sm:$0xff]  }
 0x7fe   : > { %14091 = vmatpush2.bf16.msra.mxu0 %v20159_v36  ;;  %v20224_v36 = vld [vmem:[%s25771_s5 + $0x1e04] ss:$16 sps:$4 sm:$0xff]  }
 0x7ff   : > { %14092 = vmatprep.subr.bf16.mxu0 %v20167_v61  ;;  %v20219_v61 = vld [vmem:[%s25771_s5 + $0x1c00] ss:$16 sps:$4 sm:$0xff]  }
 0x800   : > { %14134 = vmatpush2.bf16.msra.mxu1 %v20162_v59  ;;  %v20227_v59 = vld [vmem:[%s25771_s5 + $0x1de4] ss:$16 sps:$4 sm:$0xff]  }
 0x801   : > { %14135 = vmatprep.subr.bf16.mxu1 %v20170_v44  ;;  %v20222_v44 = vld [vmem:[%s25771_s5 + $0x1e00] ss:$16 sps:$4 sm:$0xff]  }
 0x802   : > { %14093 = vmatpush2.bf16.msra.mxu0 %v20165_v3  ;;  %v20230_v3 = vld [vmem:[%s25771_s5 + $0x1fe4] ss:$16 sps:$4 sm:$0xff]  }
 0x803   : > { %14094 = vmatprep.subr.bf16.mxu0 %v20173_v51  ;;  %v20225_v51 = vld [vmem:[%s25771_s5 + $0x1de0] ss:$16 sps:$4 sm:$0xff]  }
 0x804   : > { %14136 = vmatpush2.bf16.msra.mxu1 %v20168_v58  ;;  %v20233_v58 = vld [vmem:[%s25771_s5 + $0x1dc4] ss:$16 sps:$4 sm:$0xff]  }
 0x805   : > { %14137 = vmatprep.subr.bf16.mxu1 %v20176_v8  ;;  %v20228_v8 = vld [vmem:[%s25771_s5 + $0x1fe0] ss:$16 sps:$4 sm:$0xff]  }
 0x806   : > { %14095 = vmatpush2.bf16.msra.mxu0 %v20171_v30  ;;  %v20236_v30 = vld [vmem:[%s25771_s5 + $0x1fc4] ss:$16 sps:$4 sm:$0xff]  }
 0x807   : > { %14150 = vmatprep.subr.bf16.mxu0 %v20179_v42  ;;  %v20231_v42 = vld [vmem:[%s25771_s5 + $0x1dc0] ss:$16 sps:$4 sm:$0xff]  }
 0x808   : > { %14138 = vmatpush2.bf16.msra.mxu1 %v20174_v63  ;;  %v20239_v63 = vld [vmem:[%s25771_s5 + $0x1da4] ss:$16 sps:$4 sm:$0xff]  }
 0x809   : > { %14097 = vmatmul.mubr.bf16.vlgmr.msra.gmra.mxu0 %v24962_v57  ;;  %14193 = vmatprep.subr.bf16.mxu1 %v20182_v37  ;;  %v20242_v37 = vld [vmem:[%s25771_s5 + $0x1fa4] ss:$16 sps:$4 sm:$0xff]  }
 0x80a   : > { %14151 = vmatpush1.bf16.msra.mxu0 %v20177_v35  ;;  %14182 = vmatprep.mubr.bf16.mxu0 %v24970_v54  ;;  %v25104_v35 = vpop.f32.mrf.mxu0 }
 0x80b   : > { %14140 = vmatmul.mubr.bf16.vlgmr.msra.gmra.mxu1 %v24973_v11  ;;  %14152 = vmatprep.subr.bf16.mxu0 %v20185_v53  ;;  %v25112_v53 = vpop.f32.mrf.mxu1 }
 0x80c   : > { %14194 = vmatpush1.bf16.msra.mxu1 %v20180_v14  ;;  %14225 = vmatprep.mubr.bf16.mxu1 %v24979_v6  ;;  %v20251_v14 = vld [vmem:[%s25771_s5 + $0x1d64] ss:$16 sps:$4 sm:$0xff]  }
 0x80d   : > { %14195 = vmatprep.subr.bf16.mxu1 %v20188_v34  ;;  %v20246_v34 = vld [vmem:[%s25771_s5 + $0x1f80] ss:$16 sps:$4 sm:$0xff]  }
 0x80e   : > { %14153 = vmatpush1.bf16.msra.mxu0 %v20183_v45  ;;  %v25120_v45 = vpop.f32.mrf.mxu0 }
 0x80f   : > { %14154 = vmatprep.subr.bf16.mxu0 %v20191_v55  ;;  %v20254_v55 = vld [vmem:[%s25771_s5 + $0x1f64] ss:$16 sps:$4 sm:$0xff]  }
 0x810   : > { %14196 = vmatpush1.bf16.msra.mxu1 %v20186_v19  ;;  %v20249_v19 = vld [vmem:[%s25771_s5 + $0x1d60] ss:$16 sps:$4 sm:$0xff]  }
 0x811   : > { %14197 = vmatprep.subr.bf16.mxu1 %v20194_v0  ;;  %v25128_v0 = vpop.f32.mrf.mxu1 }
 0x812   : > { %14155 = vmatpush1.bf16.msra.mxu0 %v20189_v40  ;;  %v20257_v40 = vld [vmem:[%s25771_s5 + $0x1d44] ss:$16 sps:$4 sm:$0xff]  }
 0x813   : > { %14156 = vmatprep.subr.bf16.mxu0 %v20197_v62  ;;  %v20252_v62 = vld [vmem:[%s25771_s5 + $0x1f60] ss:$16 sps:$4 sm:$0xff]  }
 0x814   : > { %14198 = vmatpush1.bf16.msra.mxu1 %v20192_v27  ;;  %v25136_v27 = vpop.f32.mrf.mxu0 }
 0x815   : > { %14199 = vmatprep.subr.bf16.mxu1 %v20200_v16  ;;  %v20260_v16 = vld [vmem:[%s25771_s5 + $0x1f44] ss:$16 sps:$4 sm:$0xff]  }
 0x816   : > { %14157 = vmatpush1.bf16.msra.mxu0 %v20195_v24  ;;  %v20255_v24 = vld [vmem:[%s25771_s5 + $0x1d40] ss:$16 sps:$4 sm:$0xff]  }
 0x817   : > { %14158 = vmatprep.subr.bf16.mxu0 %v20203_v52  ;;  %v25144_v52 = vpop.f32.mrf.mxu1 }
 0x818   : > { %14200 = vmatpush1.bf16.msra.mxu1 %v20198_v17  ;;  %v25146_v17 = vpop.f32.mrf.mxu0 }
 0x819   : > { %14201 = vmatprep.subr.bf16.mxu1 %v20206_v28  ;;  %v20263_v28 = vld [vmem:[%s25771_s5 + $0x1d24] ss:$16 sps:$4 sm:$0xff]  }
 0x81a   : > { %14159 = vmatpush1.bf16.msra.mxu0 %v20201_v26  ;;  %v20258_v26 = vld [vmem:[%s25771_s5 + $0x1f40] ss:$16 sps:$4 sm:$0xff]  }
 0x81b   : > { %14160 = vmatprep.subr.bf16.mxu0 %v20209_v1  ;;  %v25154_v1 = vpop.f32.mrf.mxu1 }
 0x81c   : > { %14202 = vmatpush1.bf16.msra.mxu1 %v20204_v23  ;;  %v20266_v23 = vld [vmem:[%s25771_s5 + $0x1f24] ss:$16 sps:$4 sm:$0xff]  }
 0x81d   : > { %14203 = vmatprep.subr.bf16.mxu1 %v20212_v39  ;;  %v20261_v39 = vld [vmem:[%s25771_s5 + $0x1d20] ss:$16 sps:$4 sm:$0xff]  }
 0x81e   : > { %14161 = vmatpush1.bf16.msra.mxu0 %v20207_v43  ;;  %v25162_v43 = vpop.f32.mrf.mxu0 }
 0x81f   : > { %14162 = vmatprep.subr.bf16.mxu0 %v20215_v47  ;;  %v20269_v47 = vld [vmem:[%s25771_s5 + $0x1d04] ss:$16 sps:$4 sm:$0xff]  }
 0x820   : > { %14204 = vmatpush1.bf16.msra.mxu1 %v20210_v15  ;;  %v20264_v15 = vld [vmem:[%s25771_s5 + $0x1f20] ss:$16 sps:$4 sm:$0xff]  }
 0x821   : > { %14205 = vmatprep.subr.bf16.mxu1 %v20218_v25  ;;  %v25170_v25 = vpop.f32.mrf.mxu1 }
 0x822   : > { %14163 = vmatpush1.bf16.msra.mxu0 %v20213_v33  ;;  %v20272_v33 = vld [vmem:[%s25771_s5 + $0x1f04] ss:$16 sps:$4 sm:$0xff]  }
 0x823   : > { %14164 = vmatprep.subr.bf16.mxu0 %v20221_v29  ;;  %v20267_v29 = vld [vmem:[%s25771_s5 + $0x1d00] ss:$16 sps:$4 sm:$0xff]  }
 0x824   : > { %14206 = vmatpush1.bf16.msra.mxu1 %v20216_v12  ;;  %v25178_v12 = vpop.f32.mrf.mxu0 }
 0x825   : > { %14207 = vmatprep.subr.bf16.mxu1 %v20224_v36  ;;  %v20275_v36 = vld [vmem:[%s25771_s5 + $0x18ec] ss:$16 sps:$4 sm:$0xff]  }
 0x826   : > { %14165 = vmatpush1.bf16.msra.mxu0 %v20219_v61  ;;  %v20270_v61 = vld [vmem:[%s25771_s5 + $0x1f00] ss:$16 sps:$4 sm:$0xff]  }
 0x827   : > { %14166 = vmatprep.subr.bf16.mxu0 %v20227_v59  ;;  %v12507_v59 = vld [vmem:[#allocation8 + $0x1e8] sm:$0xff] }
 0x828   : > { %14208 = vmatpush1.bf16.msra.mxu1 %v20222_v44  ;;  %v12515_v44 = vld [vmem:[#allocation8 + $0x118] sm:$0x1] }
 0x829   : > { %14209 = vmatprep.subr.bf16.mxu1 %v20230_v3  ;;  %v25186_v3 = vpop.f32.mrf.mxu1 }
 0x82a   : > { %14167 = vmatpush2.bf16.msra.mxu0 %v20225_v51  ;;  %v20278_v51 = vld [vmem:[%s25771_s5 + $0x1aec] ss:$16 sps:$4 sm:$0xff]  }
 0x82b   : > { %14168 = vmatprep.subr.bf16.mxu0 %v20233_v58  ;;  %v12509_v58 = vld [vmem:[#allocation8 + $0x1b0] sm:$0xff] }
 0x82c   : > { %14210 = vmatpush2.bf16.msra.mxu1 %v20228_v8  ;;  %v12517_v8 = vld [vmem:[#allocation8 + $0x98] sm:$0x1] }
 0x82d   : > { %14211 = vmatprep.subr.bf16.mxu1 %v20236_v30  ;;  %v20273_v30 = vld [vmem:[%s25771_s5 + $0x18e8] ss:$16 sps:$4 sm:$0xff]  }
 0x82e   : > { %14169 = vmatpush2.bf16.msra.mxu0 %v20231_v42  ;;  %v25194_v42 = vpop.f32.mrf.mxu0 }
 0x82f   : > { %14170 = vmatprep.subr.bf16.mxu0 %v20239_v63  ;;  %v25196_v63 = vpack.c.bf16 %v12515_v44, %v12507_v59  ;;  %v20294_v59 = vld [vmem:[%s25771_s5 + $0x1a88] ss:$16 sps:$4 sm:$0xff]   ;;  %v20302_v44 = vld [vmem:[%s25771_s5 + $0x1a6c] ss:$16 sps:$4 sm:$0xff]  }
 0x830   : > { %14212 = vmatpush2.bf16.msra.mxu1 %v20234_v2  ;;  %v20281_v2 = vld [vmem:[%s25771_s5 + $0x18cc] ss:$16 sps:$4 sm:$0xff]  }
 0x831   : > { %14213 = vmatprep.subr.bf16.mxu1 %v20242_v37  ;;  %v20276_v37 = vld [vmem:[%s25771_s5 + $0x1ae8] ss:$16 sps:$4 sm:$0xff]  }
 0x832   : > { %14171 = vmatpush2.bf16.msra.mxu0 %v20237_v5  ;;  %v25204_v5 = vpop.f32.mrf.mxu1 }
 0x833   : > { %14172 = vmatprep.subr.bf16.mxu0 %v20245_v38 }
 0x834   : > { %14214 = vmatpush2.bf16.msra.mxu1 %v20240_v22  ;;  %v25207_v22 = vpack.c.bf16 %v12517_v8, %v12509_v58  ;;  %v20305_v58 = vld [vmem:[%s25771_s5 + $0x184c] ss:$16 sps:$4 sm:$0xff]   ;;  %v20300_v8 = vld [vmem:[%s25771_s5 + $0x1a68] ss:$16 sps:$4 sm:$0xff]  }
 0x835   : > { %14215 = vmatprep.subr.bf16.mxu1 %v20248_v46  ;;  %v20284_v46 = vld [vmem:[%s25771_s5 + $0x1acc] ss:$16 sps:$4 sm:$0xff]  }
 0x836   : > { %14173 = vmatpush2.bf16.msra.mxu0 %v20243_v7  ;;  %v20279_v7 = vld [vmem:[%s25771_s5 + $0x18c8] ss:$16 sps:$4 sm:$0xff]  }
 0x837   : > { %14174 = vmatprep.subr.bf16.mxu0 %v20251_v14 }
 0x838   : > { %14216 = vmatpush2.bf16.msra.mxu1 %v20246_v34 }
 0x839   : > { %14217 = vmatprep.subr.bf16.mxu1 %v20254_v55  ;;  %v20287_v55 = vld [vmem:[%s25771_s5 + $0x18ac] ss:$16 sps:$4 sm:$0xff]  }
 0x83a   : > { %14175 = vmatpush2.bf16.msra.mxu0 %v20249_v19 }
 0x83b   : > { %14176 = vmatprep.subr.bf16.mxu0 %v20257_v40 }
 0x83c   : > { %14218 = vmatpush2.bf16.msra.mxu1 %v20252_v62 }
 0x83d   : > { %14219 = vmatprep.subr.bf16.mxu1 %v20260_v16  ;;  %v20290_v16 = vld [vmem:[%s25771_s5 + $0x1aac] ss:$16 sps:$4 sm:$0xff]  }
 0x83e   : > { %14177 = vmatpush2.bf16.msra.mxu0 %v20255_v24 }
 0x83f   : > { %14178 = vmatprep.subr.bf16.mxu0 %v20263_v28  ;;  %v20285_v28 = vld [vmem:[%s25771_s5 + $0x18a8] ss:$16 sps:$4 sm:$0xff]  }
 0x840   : > { %14220 = vmatpush2.bf16.msra.mxu1 %v20258_v26 }
 0x841   : > { %14221 = vmatprep.subr.bf16.mxu1 %v20266_v23  ;;  %v20293_v23 = vld [vmem:[%s25771_s5 + $0x188c] ss:$16 sps:$4 sm:$0xff]  }
 0x842   : > { %14179 = vmatpush2.bf16.msra.mxu0 %v20261_v39 }
 0x843   : > { %14180 = vmatprep.subr.bf16.mxu0 %v20269_v47  ;;  %v20288_v47 = vld [vmem:[%s25771_s5 + $0x1aa8] ss:$16 sps:$4 sm:$0xff]  }
 0x844   : > { %14222 = vmatpush2.bf16.msra.mxu1 %v20264_v15 }
 0x845   : > { %14223 = vmatprep.subr.bf16.mxu1 %v20272_v33  ;;  %v20296_v33 = vld [vmem:[%s25771_s5 + $0x1a8c] ss:$16 sps:$4 sm:$0xff]  }
 0x846   : > { %14181 = vmatpush2.bf16.msra.mxu0 %v20267_v29 }
 0x847   : > { %14236 = vmatprep.subr.bf16.mxu0 %v20275_v36  ;;  %v20291_v36 = vld [vmem:[%s25771_s5 + $0x1888] ss:$16 sps:$4 sm:$0xff]  }
 0x848   : > { %14224 = vmatpush2.bf16.msra.mxu1 %v20270_v61  ;;  %v20299_v61 = vld [vmem:[%s25771_s5 + $0x186c] ss:$16 sps:$4 sm:$0xff]  }
 0x849   : > { %v12356_v38 = vpop.f32.mrf.mxu0  ;;  %14183 = vmatmul.mubr.bf16.vlgmr.msra.gmra.mxu0 %v25196_v63  ;;  %14279 = vmatprep.subr.bf16.mxu1 %v20278_v51  ;;  %v20297_v51 = vld [vmem:[%s25771_s5 + $0x1868] ss:$16 sps:$4 sm:$0xff]  }
 0x84a   : > { %14237 = vmatpush1.bf16.msra.mxu0 %v20273_v30  ;;  %14268 = vmatprep.mubr.bf16.mxu0 %v24768_v31  ;;  %v20282_v31 = vld [vmem:[%s25771_s5 + $0x1ac8] ss:$16 sps:$4 sm:$0xff]   ;;  %v20308_v30 = vld [vmem:[%s25771_s5 + $0x1a4c] ss:$16 sps:$4 sm:$0xff]  }
 0x84b   : > { %v12399_v14 = vpop.f32.mrf.mxu1  ;;  %14226 = vmatmul.mubr.bf16.vlgmr.msra.gmra.mxu1 %v25207_v22  ;;  %v12358_v34 = vpop.f32.mrf.mxu0  ;;  %14238 = vmatprep.subr.bf16.mxu0 %v20281_v2  ;;  %v20303_v2 = vld [vmem:[%s25771_s5 + $0x1848] ss:$16 sps:$4 sm:$0xff]  }
 0x84c   : > { %v25220_v19 = vadd.f32 %v12399_v14, %v12356_v38  ;;  %14280 = vmatpush1.bf16.msra.mxu1 %v20276_v37  ;;  %14311 = vmatprep.mubr.bf16.mxu1 %v24775_v13  ;;  %v20311_v37 = vld [vmem:[%s25771_s5 + $0x182c] ss:$16 sps:$4 sm:$0xff]   ;;  %v20306_v38 = vld [vmem:[%s25771_s5 + $0x1a48] ss:$16 sps:$4 sm:$0xff]  }
 0x84d   : > { %v12401_v40 = vpop.f32.mrf.mxu1  ;;  %v12360_v62 = vpop.f32.mrf.mxu0  ;;  %14281 = vmatprep.subr.bf16.mxu1 %v20284_v46  ;;  %v20314_v46 = vld [vmem:[%s25771_s5 + $0x1a2c] ss:$16 sps:$4 sm:$0xff]  }
 0x84e   : > { %v25229_v24 = vadd.f32 %v12401_v40, %v12358_v34  ;;  %14239 = vmatpush1.bf16.msra.mxu0 %v20279_v7  ;;  %v20309_v7 = vld [vmem:[%s25771_s5 + $0x1828] ss:$16 sps:$4 sm:$0xff]   ;;  %v20317_v14 = vld [vmem:[%s25771_s5 + $0x180c] ss:$16 sps:$4 sm:$0xff]  }
 0x84f   : > { %v12403_v26 = vpop.f32.mrf.mxu1  ;;  %v12362_v13 = vpop.f32.mrf.mxu0  ;;  %14240 = vmatprep.subr.bf16.mxu0 %v20287_v55  ;;  %v20312_v34 = vld [vmem:[%s25771_s5 + $0x1a28] ss:$16 sps:$4 sm:$0xff]   ;;  %v20320_v55 = vld [vmem:[%s25771_s5 + $0x1a0c] ss:$16 sps:$4 sm:$0xff]  }
 0x850   : > { %v25237_v39 = vadd.f32 %v12403_v26, %v12360_v62  ;;  %14282 = vmatpush1.bf16.msra.mxu1 %v20282_v31  ;;  %v20315_v31 = vld [vmem:[%s25771_s5 + $0x1808] ss:$16 sps:$4 sm:$0xff]   ;;  %v20323_v40 = vld [vmem:[%s25771_s5 + $0x19ec] ss:$16 sps:$4 sm:$0xff]  }
 0x851   : > { %v12405_v15 = vpop.f32.mrf.mxu1  ;;  %14283 = vmatprep.subr.bf16.mxu1 %v20290_v16  ;;  %v20318_v62 = vld [vmem:[%s25771_s5 + $0x1a08] ss:$16 sps:$4 sm:$0xff]   ;;  %v20326_v16 = vld [vmem:[%s25771_s5 + $0x1bec] ss:$16 sps:$4 sm:$0xff]  }
 0x852   : > { %v25245_v29 = vadd.f32 %v12405_v15, %v12362_v13  ;;  %14241 = vmatpush1.bf16.msra.mxu0 %v20285_v28  ;;  %v20321_v28 = vld [vmem:[%s25771_s5 + $0x19e8] ss:$16 sps:$4 sm:$0xff]   ;;  %v20329_v26 = vld [vmem:[%s25771_s5 + $0x19cc] ss:$16 sps:$4 sm:$0xff]  }
 0x853   : > { %14242 = vmatprep.subr.bf16.mxu0 %v20293_v23  ;;  %v20324_v13 = vld [vmem:[%s25771_s5 + $0x1be8] ss:$16 sps:$4 sm:$0xff]   ;;  %v20332_v23 = vld [vmem:[%s25771_s5 + $0x1bcc] ss:$16 sps:$4 sm:$0xff]  }
 0x854   : > { %14284 = vmatpush1.bf16.msra.mxu1 %v20288_v47  ;;  %v20327_v47 = vld [vmem:[%s25771_s5 + $0x19c8] ss:$16 sps:$4 sm:$0xff]   ;;  %v20335_v15 = vld [vmem:[%s25771_s5 + $0x19ac] ss:$16 sps:$4 sm:$0xff]  }
 0x855   : > { %14285 = vmatprep.subr.bf16.mxu1 %v20296_v33  ;;  %v20330_v33 = vld [vmem:[%s25771_s5 + $0x1bc8] ss:$16 sps:$4 sm:$0xff]  }
 0x856   : > { %14243 = vmatpush1.bf16.msra.mxu0 %v20291_v36  ;;  %v20338_v36 = vld [vmem:[%s25771_s5 + $0x1bac] ss:$16 sps:$4 sm:$0xff]  }
 0x857   : > { %14244 = vmatprep.subr.bf16.mxu0 %v20299_v61  ;;  %v20333_v61 = vld [vmem:[%s25771_s5 + $0x19a8] ss:$16 sps:$4 sm:$0xff]  }
 0x858   : > { %14286 = vmatpush1.bf16.msra.mxu1 %v20294_v59  ;;  %v20341_v59 = vld [vmem:[%s25771_s5 + $0x198c] ss:$16 sps:$4 sm:$0xff]  }
 0x859   : > { %14287 = vmatprep.subr.bf16.mxu1 %v20302_v44  ;;  %v20336_v44 = vld [vmem:[%s25771_s5 + $0x1ba8] ss:$16 sps:$4 sm:$0xff]  }
 0x85a   : > { %14245 = vmatpush1.bf16.msra.mxu0 %v20297_v51  ;;  %v20344_v51 = vld [vmem:[%s25771_s5 + $0x1b8c] ss:$16 sps:$4 sm:$0xff]  }
 0x85b   : > { %14246 = vmatprep.subr.bf16.mxu0 %v20305_v58  ;;  %v20339_v58 = vld [vmem:[%s25771_s5 + $0x1988] ss:$16 sps:$4 sm:$0xff]  }
 0x85c   : > { %14288 = vmatpush1.bf16.msra.mxu1 %v20300_v8  ;;  %v20347_v8 = vld [vmem:[%s25771_s5 + $0x196c] ss:$16 sps:$4 sm:$0xff]  }
 0x85d   : > { %14289 = vmatprep.subr.bf16.mxu1 %v20308_v30  ;;  %v20342_v30 = vld [vmem:[%s25771_s5 + $0x1b88] ss:$16 sps:$4 sm:$0xff]  }
 0x85e   : > { %14247 = vmatpush1.bf16.msra.mxu0 %v20303_v2  ;;  %v20350_v2 = vld [vmem:[%s25771_s5 + $0x1b6c] ss:$16 sps:$4 sm:$0xff]  }
 0x85f   : > { %14248 = vmatprep.subr.bf16.mxu0 %v20311_v37  ;;  %v20345_v37 = vld [vmem:[%s25771_s5 + $0x1968] ss:$16 sps:$4 sm:$0xff]  }
 0x860   : > { %14290 = vmatpush1.bf16.msra.mxu1 %v20306_v38  ;;  %v20353_v38 = vld [vmem:[%s25771_s5 + $0x194c] ss:$16 sps:$4 sm:$0xff]  }
 0x861   : > { %14291 = vmatprep.subr.bf16.mxu1 %v20314_v46  ;;  %v20348_v46 = vld [vmem:[%s25771_s5 + $0x1b68] ss:$16 sps:$4 sm:$0xff]  }
 0x862   : > { %14249 = vmatpush1.bf16.msra.mxu0 %v20309_v7  ;;  %v20356_v7 = vld [vmem:[%s25771_s5 + $0x1b4c] ss:$16 sps:$4 sm:$0xff]  }
 0x863   : > { %14250 = vmatprep.subr.bf16.mxu0 %v20317_v14  ;;  %v20351_v14 = vld [vmem:[%s25771_s5 + $0x1948] ss:$16 sps:$4 sm:$0xff]  }
 0x864   : > { %14292 = vmatpush1.bf16.msra.mxu1 %v20312_v34  ;;  %v20359_v34 = vld [vmem:[%s25771_s5 + $0x192c] ss:$16 sps:$4 sm:$0xff]  }
 0x865   : > { %14293 = vmatprep.subr.bf16.mxu1 %v20320_v55  ;;  %v20354_v55 = vld [vmem:[%s25771_s5 + $0x1b48] ss:$16 sps:$4 sm:$0xff]  }
 0x866   : > { %14251 = vmatpush1.bf16.msra.mxu0 %v20315_v31  ;;  %v20362_v31 = vld [vmem:[%s25771_s5 + $0x1b2c] ss:$16 sps:$4 sm:$0xff]  }
 0x867   : > { %14252 = vmatprep.subr.bf16.mxu0 %v20323_v40  ;;  %v20357_v40 = vld [vmem:[%s25771_s5 + $0x1928] ss:$16 sps:$4 sm:$0xff]  }
 0x868   : > { %14294 = vmatpush1.bf16.msra.mxu1 %v20318_v62  ;;  %v20365_v62 = vld [vmem:[%s25771_s5 + $0x190c] ss:$16 sps:$4 sm:$0xff]  }
 0x869   : > { %14295 = vmatprep.subr.bf16.mxu1 %v20326_v16  ;;  %v20360_v16 = vld [vmem:[%s25771_s5 + $0x1b28] ss:$16 sps:$4 sm:$0xff]  }
 0x86a   : > { %14253 = vmatpush2.bf16.msra.mxu0 %v20321_v28  ;;  %v20368_v28 = vld [vmem:[%s25771_s5 + $0x1b0c] ss:$16 sps:$4 sm:$0xff]  }
 0x86b   : > { %14254 = vmatprep.subr.bf16.mxu0 %v20329_v26  ;;  %v20363_v26 = vld [vmem:[%s25771_s5 + $0x1908] ss:$16 sps:$4 sm:$0xff]  }
 0x86c   : > { %14296 = vmatpush2.bf16.msra.mxu1 %v20324_v13  ;;  %v20371_v13 = vld [vmem:[%s25771_s5 + $0x1cec] ss:$16 sps:$4 sm:$0xff]  }
 0x86d   : > { %14297 = vmatprep.subr.bf16.mxu1 %v20332_v23  ;;  %v20366_v23 = vld [vmem:[%s25771_s5 + $0x1b08] ss:$16 sps:$4 sm:$0xff]  }
 0x86e   : > { %14255 = vmatpush2.bf16.msra.mxu0 %v20327_v47  ;;  %v20374_v47 = vld [vmem:[%s25771_s5 + $0x1eec] ss:$16 sps:$4 sm:$0xff]  }
 0x86f   : > { %14256 = vmatprep.subr.bf16.mxu0 %v20335_v15  ;;  %v20369_v15 = vld [vmem:[%s25771_s5 + $0x1ce8] ss:$16 sps:$4 sm:$0xff]  }
 0x870   : > { %14298 = vmatpush2.bf16.msra.mxu1 %v20330_v33  ;;  %v20377_v33 = vld [vmem:[%s25771_s5 + $0x1ccc] ss:$16 sps:$4 sm:$0xff]  }
 0x871   : > { %14299 = vmatprep.subr.bf16.mxu1 %v20338_v36  ;;  %v20372_v36 = vld [vmem:[%s25771_s5 + $0x1ee8] ss:$16 sps:$4 sm:$0xff]  }
 0x872   : > { %14257 = vmatpush2.bf16.msra.mxu0 %v20333_v61 }
 0x873   : > { %14258 = vmatprep.subr.bf16.mxu0 %v20341_v59  ;;  %v20380_v59 = vld [vmem:[%s25771_s5 + $0x1ecc] ss:$16 sps:$4 sm:$0xff]  }
 0x874   : > { %14300 = vmatpush2.bf16.msra.mxu1 %v20336_v44 }
 0x875   : > { %14301 = vmatprep.subr.bf16.mxu1 %v20344_v51  ;;  %v20375_v51 = vld [vmem:[%s25771_s5 + $0x1cc8] ss:$16 sps:$4 sm:$0xff]  }
 0x876   : > { %14259 = vmatpush2.bf16.msra.mxu0 %v20339_v58 }
 0x877   : > { %14260 = vmatprep.subr.bf16.mxu0 %v20347_v8 }
 0x878   : > { %14302 = vmatpush2.bf16.msra.mxu1 %v20342_v30 }
 0x879   : > { %14303 = vmatprep.subr.bf16.mxu1 %v20350_v2 }
 0x87a   : > { %14261 = vmatpush2.bf16.msra.mxu0 %v20345_v37 }
 0x87b   : > { %14262 = vmatprep.subr.bf16.mxu0 %v20353_v38 }
 0x87c   : > { %14304 = vmatpush2.bf16.msra.mxu1 %v20348_v46 }
 0x87d   : > { %14305 = vmatprep.subr.bf16.mxu1 %v20356_v7 }
 0x87e   : > { %14263 = vmatpush2.bf16.msra.mxu0 %v20351_v14 }
 0x87f   : > { %14264 = vmatprep.subr.bf16.mxu0 %v20359_v34  ;;  %v20389_v34 = vld [vmem:[%s25771_s5 + $0x1c8c] ss:$16 sps:$4 sm:$0xff]  }
 0x880   : > { %14306 = vmatpush2.bf16.msra.mxu1 %v20354_v55 }
 0x881   : > { %14307 = vmatprep.subr.bf16.mxu1 %v20362_v31 }
 0x882   : > { %14265 = vmatpush2.bf16.msra.mxu0 %v20357_v40 }
 0x883   : > { %14266 = vmatprep.subr.bf16.mxu0 %v20365_v62  ;;  %v20392_v62 = vld [vmem:[%s25771_s5 + $0x1e8c] ss:$16 sps:$4 sm:$0xff]  }
 0x884   : > { %14308 = vmatpush2.bf16.msra.mxu1 %v20360_v16 }
 0x885   : > { %14309 = vmatprep.subr.bf16.mxu1 %v20368_v28 }
 0x886   : > { %14267 = vmatpush2.bf16.msra.mxu0 %v20363_v26 }
 0x887   : > { %14322 = vmatprep.subr.bf16.mxu0 %v20371_v13  ;;  %v20398_v13 = vld [vmem:[%s25771_s5 + $0x1e6c] ss:$16 sps:$4 sm:$0xff]  }
 0x888   : > { %14310 = vmatpush2.bf16.msra.mxu1 %v20366_v23  ;;  %v20393_v23 = vld [vmem:[%s25771_s5 + $0x1c68] ss:$16 sps:$4 sm:$0xff]  }
 0x889   : > { %v12442_v61 = vpop.f32.mrf.mxu0  ;;  %14269 = vmatmul.mubr.bf16.vlgmr.msra.gmra.mxu0 %v24962_v57  ;;  %14365 = vmatprep.subr.bf16.mxu1 %v20374_v47  ;;  %v20383_v57 = vld [vmem:[%s25771_s5 + $0x1cac] ss:$16 sps:$4 sm:$0xff]   ;;  %v20396_v47 = vld [vmem:[%s25771_s5 + $0x1e68] ss:$16 sps:$4 sm:$0xff]  }
 0x88a   : > { %v12443_v44 = vadd.f32 %v12442_v61, %v25220_v19  ;;  %14323 = vmatpush1.bf16.msra.mxu0 %v20369_v15  ;;  %14354 = vmatprep.mubr.bf16.mxu0 %v24970_v54  ;;  %v20378_v54 = vld [vmem:[%s25771_s5 + $0x1ec8] ss:$16 sps:$4 sm:$0xff]   ;;  %v20404_v15 = vld [vmem:[%s25771_s5 + $0x1e4c] ss:$16 sps:$4 sm:$0xff]  }
 0x88b   : > { %v12485_v58 = vpop.f32.mrf.mxu1  ;;  %14312 = vmatmul.mubr.bf16.vlgmr.msra.gmra.mxu1 %v24973_v11  ;;  %v12444_v8 = vpop.f32.mrf.mxu0  ;;  %14324 = vmatprep.subr.bf16.mxu0 %v20377_v33  ;;  %v20386_v11 = vld [vmem:[%s25771_s5 + $0x1eac] ss:$16 sps:$4 sm:$0xff]   ;;  %v20399_v33 = vld [vmem:[%s25771_s5 + $0x1c48] ss:$16 sps:$4 sm:$0xff]  }
 0x88c   : > { %v12486_v30 = vadd.f32 %v12485_v58, %v12443_v44  ;;  %14366 = vmatpush1.bf16.msra.mxu1 %v20372_v36  ;;  %14397 = vmatprep.mubr.bf16.mxu1 %v24979_v6  ;;  %v12445_v19 = vadd.f32 %v12444_v8, %v25229_v24  ;;  %v20381_v6 = vld [vmem:[%s25771_s5 + $0x1ca8] ss:$16 sps:$4 sm:$0xff]   ;;  %v20407_v36 = vld [vmem:[%s25771_s5 + $0x1c2c] ss:$16 sps:$4 sm:$0xff]  }
 0x88d   : > { %v12487_v2 = vpop.f32.mrf.mxu1  ;;  %v12446_v37 = vpop.f32.mrf.mxu0  ;;  %14367 = vmatprep.subr.bf16.mxu1 %v20380_v59  ;;  %v20402_v61 = vld [vmem:[%s25771_s5 + $0x1e48] ss:$16 sps:$4 sm:$0xff]   ;;  %v20410_v59 = vld [vmem:[%s25771_s5 + $0x1e2c] ss:$16 sps:$4 sm:$0xff]  }
 0x88e   : > { %v25434_v38 = vadd.f32 %v12486_v30, %v24573_v56  ;;  %v12488_v46 = vadd.f32 %v12487_v2, %v12445_v19  ;;  %v12447_v7 = vadd.f32 %v12446_v37, %v25237_v39  ;;  %14325 = vmatpush1.bf16.msra.mxu0 %v20375_v51  ;;  %v20384_v39 = vld [vmem:[%s25771_s5 + $0x1ea8] ss:$16 sps:$4 sm:$0xff]   ;;  %v20413_v51 = vld [vmem:[%s25771_s5 + $0x1c0c] ss:$16 sps:$4 sm:$0xff]  }
 0x88f   : > { %v12489_v24 = vpop.f32.mrf.mxu1  ;;  %v12448_v14 = vpop.f32.mrf.mxu0  ;;  %14326 = vmatprep.subr.bf16.mxu0 %v20383_v57  ;;  %v20405_v44 = vld [vmem:[%s25771_s5 + $0x1c28] ss:$16 sps:$4 sm:$0xff]   ;;  %v20416_v8 = vld [vmem:[%s25771_s5 + $0x1e0c] ss:$16 sps:$4 sm:$0xff]  }
 0x890   : > { %v25444_v55 = vadd.f32 %v12488_v46, %v24583_v60  ;;  %v12490_v56 = vadd.f32 %v12489_v24, %v12447_v7  ;;  %14368 = vmatpush1.bf16.msra.mxu1 %v20378_v54  ;;  %v12449_v31 = vadd.f32 %v12448_v14, %v25245_v29  ;;  %v20387_v60 = vld [vmem:[%s25771_s5 + $0x1c88] ss:$16 sps:$4 sm:$0xff]   ;;  %v20395_v29 = vld [vmem:[%s25771_s5 + $0x1c6c] ss:$16 sps:$4 sm:$0xff]  }
 0x891   : > { %v12491_v40 = vpop.f32.mrf.mxu1  ;;  %14369 = vmatprep.subr.bf16.mxu1 %v20386_v11  ;;  %v20408_v58 = vld [vmem:[%s25771_s5 + $0x1e28] ss:$16 sps:$4 sm:$0xff]   ;;  %v20419_v30 = vld [vmem:[%s25771_s5 + $0x1dec] ss:$16 sps:$4 sm:$0xff]  }
 0x892   : > { %v25454_v16 = vadd.f32 %v12490_v56, %v24592_v20  ;;  %v12492_v28 = vadd.f32 %v12491_v40, %v12449_v31  ;;  %14327 = vmatpush1.bf16.msra.mxu0 %v20381_v6  ;;  %v20390_v20 = vld [vmem:[%s25771_s5 + $0x1e88] ss:$16 sps:$4 sm:$0xff]   ;;  %v20422_v54 = vld [vmem:[%s25771_s5 + $0x1fec] ss:$16 sps:$4 sm:$0xff]  }
 0x893   : > { %14328 = vmatprep.subr.bf16.mxu0 %v20389_v34  ;;  %v20411_v57 = vld [vmem:[%s25771_s5 + $0x1c08] ss:$16 sps:$4 sm:$0xff]   ;;  %v20425_v37 = vld [vmem:[%s25771_s5 + $0x1dcc] ss:$16 sps:$4 sm:$0xff]  }
 0x894   : > { %v25463_v26 = vadd.f32 %v12492_v28, %v24601_v10  ;;  %14370 = vmatpush1.bf16.msra.mxu1 %v20384_v39  ;;  %v20401_v10 = vld [vmem:[%s25771_s5 + $0x1c4c] ss:$16 sps:$4 sm:$0xff]   ;;  %v20414_v19 = vld [vmem:[%s25771_s5 + $0x1e08] ss:$16 sps:$4 sm:$0xff]  }
 0x895   : > { %14371 = vmatprep.subr.bf16.mxu1 %v20392_v62  ;;  %v20417_v2 = vld [vmem:[%s25771_s5 + $0x1de8] ss:$16 sps:$4 sm:$0xff]   ;;  %v20428_v46 = vld [vmem:[%s25771_s5 + $0x1fcc] ss:$16 sps:$4 sm:$0xff]  }
 0x896   : > { %14329 = vmatpush1.bf16.msra.mxu0 %v20387_v60  ;;  %v20420_v11 = vld [vmem:[%s25771_s5 + $0x1fe8] ss:$16 sps:$4 sm:$0xff]   ;;  %v20431_v6 = vld [vmem:[%s25771_s5 + $0x1dac] ss:$16 sps:$4 sm:$0xff]  }
 0x897   : > { %14330 = vmatprep.subr.bf16.mxu0 %v20395_v29  ;;  %v20423_v7 = vld [vmem:[%s25771_s5 + $0x1dc8] ss:$16 sps:$4 sm:$0xff]   ;;  %v20434_v14 = vld [vmem:[%s25771_s5 + $0x1fac] ss:$16 sps:$4 sm:$0xff]  }
 0x898   : > { %14372 = vmatpush1.bf16.msra.mxu1 %v20390_v20  ;;  %v20426_v24 = vld [vmem:[%s25771_s5 + $0x1fc8] ss:$16 sps:$4 sm:$0xff]   ;;  %v20437_v56 = vld [vmem:[%s25771_s5 + $0x1d8c] ss:$16 sps:$4 sm:$0xff]  }
 0x899   : > { %14373 = vmatprep.subr.bf16.mxu1 %v20398_v13  ;;  %v20429_v34 = vld [vmem:[%s25771_s5 + $0x1da8] ss:$16 sps:$4 sm:$0xff]   ;;  %v20440_v39 = vld [vmem:[%s25771_s5 + $0x1f8c] ss:$16 sps:$4 sm:$0xff]  }
 0x89a   : > { %14331 = vmatpush1.bf16.msra.mxu0 %v20393_v23  ;;  %v20432_v31 = vld [vmem:[%s25771_s5 + $0x1fa8] ss:$16 sps:$4 sm:$0xff]   ;;  %v20443_v62 = vld [vmem:[%s25771_s5 + $0x1d6c] ss:$16 sps:$4 sm:$0xff]  }
 0x89b   : > { %14332 = vmatprep.subr.bf16.mxu0 %v20401_v10  ;;  %v20435_v40 = vld [vmem:[%s25771_s5 + $0x1d88] ss:$16 sps:$4 sm:$0xff]   ;;  %v20446_v60 = vld [vmem:[%s25771_s5 + $0x1f6c] ss:$16 sps:$4 sm:$0xff]  }
 0x89c   : > { %14374 = vmatpush1.bf16.msra.mxu1 %v20396_v47  ;;  %v20438_v28 = vld [vmem:[%s25771_s5 + $0x1f88] ss:$16 sps:$4 sm:$0xff]   ;;  %v20449_v20 = vld [vmem:[%s25771_s5 + $0x1d4c] ss:$16 sps:$4 sm:$0xff]  }
 0x89d   : > { %14375 = vmatprep.subr.bf16.mxu1 %v20404_v15  ;;  %v20441_v29 = vld [vmem:[%s25771_s5 + $0x1d68] ss:$16 sps:$4 sm:$0xff]   ;;  %v20452_v23 = vld [vmem:[%s25771_s5 + $0x1f4c] ss:$16 sps:$4 sm:$0xff]  }
 0x89e   : > { %14333 = vmatpush1.bf16.msra.mxu0 %v20399_v33  ;;  %v20444_v13 = vld [vmem:[%s25771_s5 + $0x1f68] ss:$16 sps:$4 sm:$0xff]   ;;  %v20455_v47 = vld [vmem:[%s25771_s5 + $0x1d2c] ss:$16 sps:$4 sm:$0xff]  }
 0x89f   : > { %14334 = vmatprep.subr.bf16.mxu0 %v20407_v36  ;;  %v20447_v10 = vld [vmem:[%s25771_s5 + $0x1d48] ss:$16 sps:$4 sm:$0xff]   ;;  %v20458_v33 = vld [vmem:[%s25771_s5 + $0x1f2c] ss:$16 sps:$4 sm:$0xff]  }
 0x8a0   : > { %14376 = vmatpush1.bf16.msra.mxu1 %v20402_v61  ;;  %v20450_v15 = vld [vmem:[%s25771_s5 + $0x1f48] ss:$16 sps:$4 sm:$0xff]   ;;  %v20461_v61 = vld [vmem:[%s25771_s5 + $0x1d0c] ss:$16 sps:$4 sm:$0xff]  }
 0x8a1   : > { %14377 = vmatprep.subr.bf16.mxu1 %v20410_v59  ;;  %v20453_v36 = vld [vmem:[%s25771_s5 + $0x1d28] ss:$16 sps:$4 sm:$0xff]  }
 0x8a2   : > { %14335 = vmatpush1.bf16.msra.mxu0 %v20405_v44  ;;  %v20456_v59 = vld [vmem:[%s25771_s5 + $0x1f28] ss:$16 sps:$4 sm:$0xff]   ;;  %v20464_v44 = vld [vmem:[%s25771_s5 + $0x1f0c] ss:$16 sps:$4 sm:$0xff]  }
 0x8a3   : > { %14336 = vmatprep.subr.bf16.mxu0 %v20413_v51  ;;  %v20459_v51 = vld [vmem:[%s25771_s5 + $0x1d08] ss:$16 sps:$4 sm:$0xff]  }
 0x8a4   : > { %14378 = vmatpush1.bf16.msra.mxu1 %v20408_v58  ;;  %v20462_v58 = vld [vmem:[%s25771_s5 + $0x1f08] ss:$16 sps:$4 sm:$0xff]  }
 0x8a5   : > { %14379 = vmatprep.subr.bf16.mxu1 %v20416_v8 }
 0x8a6   : > { %14337 = vmatpush1.bf16.msra.mxu0 %v20411_v57 }
 0x8a7   : > { %14338 = vmatprep.subr.bf16.mxu0 %v20419_v30 }
 0x8a8   : > { %14380 = vmatpush1.bf16.msra.mxu1 %v20414_v19 }
 0x8a9   : > { %14381 = vmatprep.subr.bf16.mxu1 %v20422_v54 }
 0x8aa   : > { %14339 = vmatpush2.bf16.msra.mxu0 %v20417_v2 }
 0x8ab   : > { %14340 = vmatprep.subr.bf16.mxu0 %v20425_v37  ;;  %v12232_v37 = vadd.f32 %v25128_v0, %v25120_v45  ;;  %v10369_v45 = vadd.f32 %v24159_v18, %v23955_v49 }
 0x8ac   : > { %14382 = vmatpush2.bf16.msra.mxu1 %v20420_v11  ;;  %v12228_v11 = vadd.f32 %v25096_v32, %v25088_v21 }
 0x8ad   : > { %14383 = vmatprep.subr.bf16.mxu1 %v20428_v46 }
 0x8ae   : > { %14341 = vmatpush2.bf16.msra.mxu0 %v20423_v7  ;;  %v12234_v7 = vadd.f32 %v25144_v52, %v25136_v27 }
 0x8af   : > { %14342 = vmatprep.subr.bf16.mxu0 %v20431_v6  ;;  %v12271_v6 = vadd.f32 %v25146_v17, %v12228_v11 }
 0x8b0   : > { %14384 = vmatpush2.bf16.msra.mxu1 %v20426_v24  ;;  %v12277_v0 = vadd.f32 %v25194_v42, %v12234_v7 }
 0x8b1   : > { %14385 = vmatprep.subr.bf16.mxu1 %v20434_v14 }
 0x8b2   : > { %14343 = vmatpush2.bf16.msra.mxu0 %v20429_v34  ;;  %v12320_v49 = vadd.f32 %v25204_v5, %v12277_v0 }
 0x8b3   : > { %14344 = vmatprep.subr.bf16.mxu0 %v20437_v56 }
 0x8b4   : > { %14386 = vmatpush2.bf16.msra.mxu1 %v20432_v31 }
 0x8b5   : > { %14387 = vmatprep.subr.bf16.mxu1 %v20440_v39 }
 0x8b6   : > { %14345 = vmatpush2.bf16.msra.mxu0 %v20435_v40  ;;  %v10412_v40 = vadd.f32 %v24169_v9, %v10369_v45  ;;  %v20488_v9 = vld [vmem:[#allocation2 + $0x8] sm:$0xff] }
 0x8b7   : > { %14346 = vmatprep.subr.bf16.mxu0 %v20443_v62  ;;  %14557 = vst.msk [vmem:[#allocation5] ss:$8 sm:$0xf] %vm14555_vm13, %v20488_v9  ;;  %14560 = vst.msk [vmem:[#allocation5 + $0x20] ss:$8 sm:$0xf] %vm14555_vm13, %v20488_v9 }
 0x8b8   : > { %14388 = vmatpush2.bf16.msra.mxu1 %v20438_v28  ;;  %14563 = vst.msk [vmem:[#allocation5 + $0x40] ss:$8 sm:$0xf] %vm14555_vm13, %v20488_v9  ;;  %14566 = vst.msk [vmem:[#allocation5 + $0x60] ss:$8 sm:$0xf] %vm14555_vm13, %v20488_v9 }
 0x8b9   : > { %14389 = vmatprep.subr.bf16.mxu1 %v20446_v60  ;;  %14569 = vst.msk [vmem:[#allocation5 + $0x80] ss:$8 sm:$0xf] %vm14555_vm13, %v20488_v9  ;;  %14572 = vst.msk [vmem:[#allocation5 + $0x4] ss:$8 sm:$0xf] %vm14555_vm13, %v20488_v9 }
 0x8ba   : > { %14347 = vmatpush2.bf16.msra.mxu0 %v20441_v29  ;;  %14575 = vst.msk [vmem:[#allocation5 + $0x24] ss:$8 sm:$0xf] %vm14555_vm13, %v20488_v9  ;;  %14578 = vst.msk [vmem:[#allocation5 + $0x44] ss:$8 sm:$0xf] %vm14555_vm13, %v20488_v9 }
 0x8bb   : > { %14348 = vmatprep.subr.bf16.mxu0 %v20449_v20  ;;  %14581 = vst.msk [vmem:[#allocation5 + $0x64] ss:$8 sm:$0xf] %vm14555_vm13, %v20488_v9  ;;  %14584 = vst.msk [vmem:[#allocation5 + $0x84] ss:$8 sm:$0xf] %vm14555_vm13, %v20488_v9 }
 0x8bc   : > { %14390 = vmatpush2.bf16.msra.mxu1 %v20444_v13 }
 0x8bd   : > { %14391 = vmatprep.subr.bf16.mxu1 %v20452_v23 }
 0x8be   : > { %14349 = vmatpush2.bf16.msra.mxu0 %v20447_v10 }
 0x8bf   : > { %14350 = vmatprep.subr.bf16.mxu0 %v20455_v47 }
 0x8c0   : > { %14392 = vmatpush2.bf16.msra.mxu1 %v20450_v15 }
 0x8c1   : > { %14393 = vmatprep.subr.bf16.mxu1 %v20458_v33 }
 0x8c2   : > { %14351 = vmatpush2.bf16.msra.mxu0 %v20453_v36 }
 0x8c3   : > { %14352 = vmatprep.subr.bf16.mxu0 %v20461_v61 }
 0x8c4   : > { %14394 = vmatpush2.bf16.msra.mxu1 %v20456_v59 }
 0x8c5   : > { %14395 = vmatprep.subr.bf16.mxu1 %v20464_v44 }
 0x8c6   : > { %14353 = vmatpush2.bf16.msra.mxu0 %v20459_v51 }
 0x8c8   : > { %14396 = vmatpush2.bf16.msra.mxu1 %v20462_v58 }
 0x8c9   : > { %14355 = vmatmul.mubr.bf16.vlgmr.msra.gmra.mxu0 %v25196_v63  ;;  %v14098_v8 = vpop.f32.mrf.mxu0  ;;  %v12275_v63 = vadd.f32 %v25178_v12, %v12232_v37 }
 0x8cb   : > { %14398 = vmatmul.mubr.bf16.vlgmr.msra.gmra.mxu1 %v25207_v22  ;;  %v14141_v57 = vpop.f32.mrf.mxu1  ;;  %v14100_v30 = vpop.f32.mrf.mxu0  ;;  %v12230_v22 = vadd.f32 %v25112_v53, %v25104_v35  ;;  %v12318_v12 = vadd.f32 %v25186_v3, %v12275_v63  ;;  %v12314_v35 = vadd.f32 %v25154_v1, %v12271_v6 }
 0x8cc   : > { %v14142_v24 = vadd.f32 %v14141_v57, %v14098_v8 }
 0x8cd   : > { %v14143_v19 = vpop.f32.mrf.mxu1  ;;  %v14102_v54 = vpop.f32.mrf.mxu0  ;;  %v12273_v21 = vadd.f32 %v25162_v43, %v12230_v22  ;;  %v12498_v29 = vadd.f32 %v12318_v12, %v10412_v40  ;;  %v12494_v1 = vadd.f32 %v12314_v35, %v24152_v41 }
 0x8ce   : > { %v14144_v32 = vadd.f32 %v14143_v19, %v14100_v30 }
 0x8cf   : > { %v14145_v2 = vpop.f32.mrf.mxu1  ;;  %v14104_v46 = vpop.f32.mrf.mxu0  ;;  %v12316_v43 = vadd.f32 %v25170_v25, %v12273_v21  ;;  %v12499_v25 = vadd.f32 %v12320_v49, %v24181_v4 }
 0x8d0   : > { %v14146_v31 = vadd.f32 %v14145_v2, %v14102_v54 }
 0x8d1   : > { %v14147_v14 = vpop.f32.mrf.mxu1  ;;  %v12495_v41 = vadd.f32 %v12316_v43, %v24164_v48 }
 0x8d2   : > { %v14148_v18 = vadd.f32 %v14147_v14, %v14104_v46 }
 0x909   : > { %v14184_v34 = vpop.f32.mrf.mxu0 }
 0x90a   : > { %v14185_v56 = vadd.f32 %v14184_v34, %v14142_v24 }
 0x90b   : > { %v14227_v27 = vpop.f32.mrf.mxu1  ;;  %v14186_v52 = vpop.f32.mrf.mxu0 }
 0x90c   : > { %v14187_v53 = vadd.f32 %v14186_v52, %v14144_v32  ;;  %v14228_v62 = vadd.f32 %v14227_v27, %v14185_v56 }
 0x90d   : > { %v14229_v17 = vpop.f32.mrf.mxu1  ;;  %v14188_v39 = vpop.f32.mrf.mxu0 }
 0x90e   : > { %v14189_v42 = vadd.f32 %v14188_v39, %v14146_v31  ;;  %v14230_v13 = vadd.f32 %v14229_v17, %v14187_v53  ;;  %v14408_v10 = vadd.f32 %v14228_v62, %v12494_v1 }
 0x90f   : > { %v14231_v28 = vpop.f32.mrf.mxu1  ;;  %v14190_v60 = vpop.f32.mrf.mxu0 }
 0x910   : > { %v14232_v20 = vadd.f32 %v14231_v28, %v14189_v42  ;;  %v14191_v3 = vadd.f32 %v14190_v60, %v14148_v18  ;;  %v14409_v33 = vadd.f32 %v14230_v13, %v12495_v41 }
 0x911   : > { %v14233_v23 = vpop.f32.mrf.mxu1 }
 0x912   : > { %v14412_v5 = vadd.f32 %v14232_v20, %v12498_v29  ;;  %v14234_v50 = vadd.f32 %v14233_v23, %v14191_v3 }
 0x914   : > { %v14417_v47 = vsel %vm14416_vm14, %v14412_v5, 0.0  ;;  %v14413_v15 = vadd.f32 %v14234_v50, %v12499_v25 }
 0x915   : > { %v14418_v36 = vadd.f32 %v14417_v47, %v14408_v10 }
 0x916   : > { %v14425_v61 = vsel %vm14416_vm14, %v14413_v15, 0.0 }
 0x917   : > { %v14419_v59 = vrot.slane %v14418_v36, 4  ;;  %v14426_v44 = vadd.f32 %v14425_v61, %v14409_v33 }
 0x919   : > { %v14420_v51 = vadd.f32 %v14419_v59, %v14418_v36  ;;  %v14427_v58 = vrot.slane %v14426_v44, 4 }
 0x91b   : > { %v14421_v8 = vrot.slane %v14420_v51, 2  ;;  %v14428_v57 = vadd.f32 %v14427_v58, %v14426_v44 }
 0x91d   : > { %v14422_v30 = vadd.f32 %v14421_v8, %v14420_v51  ;;  %v14429_v4 = vrot.slane %v14428_v57, 2 }
 0x91f   : > { %v14423_v19 = vrot.slane %v14422_v30, 1  ;;  %v14430_v54 = vadd.f32 %v14429_v4, %v14428_v57 }
 0x921   : > { %v14424_v2 = vadd.f32 %v14423_v19, %v14422_v30  ;;  %v14431_v48 = vrot.slane %v14430_v54, 1 }
 0x923   : > { %v14450_v37 = vmul.f32 0.11111111, %v14424_v2  ;;  %v14432_v11 = vadd.f32 %v14431_v48, %v14430_v54 }
 0x925   : > { %v14454_v46 = vsub.f32 %v14408_v10, %v14450_v37  ;;  %v14458_v7 = vsub.f32 %v14412_v5, %v14450_v37  ;;  %v14451_v63 = vmul.f32 0.11111111, %v14432_v11 }
 0x927   : > { %v14462_v22 = vmul.f32 %v14454_v46, %v14454_v46  ;;  %v14466_v6 = vmul.f32 %v14458_v7, %v14458_v7  ;;  %v14455_v24 = vsub.f32 %v14409_v33, %v14451_v63  ;;  %v14459_v14 = vsub.f32 %v14413_v15, %v14451_v63 }
 0x929   : > { %v14470_v34 = vsel %vm14416_vm14, %v14466_v6, 0.0  ;;  %v14463_v45 = vmul.f32 %v14455_v24, %v14455_v24  ;;  %v14467_v0 = vmul.f32 %v14459_v14, %v14459_v14 }
 0x92a   : > { %v14471_v21 = vadd.f32 %v14470_v34, %v14462_v22 }
 0x92b   : > { %v14478_v32 = vsel %vm14416_vm14, %v14467_v0, 0.0 }
 0x92c   : > { %v14472_v56 = vrot.slane %v14471_v21, 4  ;;  %v14479_v27 = vadd.f32 %v14478_v32, %v14463_v45 }
 0x92e   : > { %v14473_v52 = vadd.f32 %v14472_v56, %v14471_v21  ;;  %v14480_v12 = vrot.slane %v14479_v27, 4 }
 0x930   : > { %v14474_v31 = vrot.slane %v14473_v52, 2  ;;  %v14481_v35 = vadd.f32 %v14480_v12, %v14479_v27 }
 0x932   : > { %v14475_v53 = vadd.f32 %v14474_v31, %v14473_v52  ;;  %v14482_v17 = vrot.slane %v14481_v35, 2 }
 0x934   : > { %v14476_v39 = vrot.slane %v14475_v53, 1  ;;  %v14483_v40 = vadd.f32 %v14482_v17, %v14481_v35 }
 0x936   : > { %v14477_v49 = vadd.f32 %v14476_v39, %v14475_v53  ;;  %v14484_v18 = vrot.slane %v14483_v40, 1 }
 0x938   : > { %v14502_v42 = vmul.f32 0.11111111, %v14477_v49  ;;  %v14485_v43 = vadd.f32 %v14484_v18, %v14483_v40 }
 0x93a   : > { %v14506_v62 = vadd.f32 1e-05, %v14502_v42  ;;  %v14503_v28 = vmul.f32 0.11111111, %v14485_v43 }
 0x93c   : > { %20479 = vrsqrt.f32 %v14506_v62  ;;  %v14507_v60 = vadd.f32 1e-05, %v14503_v28 }
 0x93e   : > { %20481 = vrsqrt.f32 %v14507_v60 }
 0x949   : > { %v20480_v29 = vpop.eup %20479  ;;  %v14270_v4 = vpop.f32.mrf.mxu0 }
 0x94a   : > { %v14514_v20 = vmul.f32 %v20480_v29, %v14454_v46  ;;  %v14518_v3 = vmul.f32 %v20480_v29, %v14458_v7 }
 0x94b   : > { %v20482_v1 = vpop.eup %20481  ;;  %v14313_v19 = vpop.f32.mrf.mxu1 }
 0x94c   : > { %vm14522_vm15 = vcmp.gt.f32.partialorder %v14514_v20, 0.0  ;;  %vm14526_vm0 = vcmp.gt.f32.partialorder %v14518_v3, 0.0  ;;  %v14530_v13 = vmul.f32 0.2, %v14514_v20  ;;  %v14534_v23 = vmul.f32 0.2, %v14518_v3  ;;  %v14272_v54 = vpop.f32.mrf.mxu0 }
 0x94d   : > { %v14515_v9 = vmul.f32 %v20482_v1, %v14455_v24  ;;  %v14519_v25 = vmul.f32 %v20482_v1, %v14459_v14  ;;  %v14315_v2 = vpop.f32.mrf.mxu1  ;;  %v14314_v46 = vadd.f32 %v14313_v19, %v14270_v4 }
 0x94e   : > { %v14538_v5 = vsel %vm14522_vm15, %v14514_v20, %v14530_v13  ;;  %v14542_v50 = vsel %vm14526_vm0, %v14518_v3, %v14534_v23  ;;  %v14274_v48 = vpop.f32.mrf.mxu0  ;;  %v14316_v22 = vadd.f32 %v14315_v2, %v14272_v54  ;;  %v14659_v54 = vld [vmem:[#allocation5 + $0x8] sm:$0x1e] }
 0x94f   : > { %v14590_v41 = vrot.slane %v14538_v5, 7  ;;  %v14603_v10 = vrot.slane %v14538_v5, 2  ;;  %v14621_v47 = vrot.slane %v14538_v5, 5  ;;  %v14622_v15 = vrot.slane %v14542_v50, 5  ;;  %v14317_v37 = vpop.f32.mrf.mxu1 }
 0x950   : > { %vm14523_vm2 = vcmp.gt.f32.partialorder %v14515_v9, 0.0  ;;  %vm14527_vm3 = vcmp.gt.f32.partialorder %v14519_v25, 0.0  ;;  %v14531_v33 = vmul.f32 0.2, %v14515_v9  ;;  %v14535_v36 = vmul.f32 0.2, %v14519_v25  ;;  %v14276_v11 = vpop.f32.mrf.mxu0 }
 0x951   : > { %14599 = vst [vmem:[#allocation5 + $0x20] sm:$0xe] %v14590_v41  ;;  %14612 = vst [vmem:[#allocation5 + $0x40] sm:$0xe] %v14603_v10  ;;  %v14623_v61 = vsel %vm14620_vm1, %v14621_v47, %v14622_v15  ;;  %v14319_v7 = vpop.f32.mrf.mxu1  ;;  %v14318_v34 = vadd.f32 %v14317_v37, %v14274_v48 }
 0x952   : > { %14638 = vst [vmem:[#allocation5 + $0x60] sm:$0xe] %v14623_v61  ;;  %v14539_v59 = vsel %vm14523_vm2, %v14515_v9, %v14531_v33  ;;  %v14543_v44 = vsel %vm14527_vm3, %v14519_v25, %v14535_v36  ;;  %v14320_v32 = vadd.f32 %v14319_v7, %v14276_v11  ;;  %v14642_v11 = vld [vmem:[#allocation5] sm:$0xf] }
 0x953   : > { %v14591_v51 = vrot.slane %v14539_v59, 7  ;;  %v14604_v58 = vrot.slane %v14539_v59, 2  ;;  %v14624_v8 = vrot.slane %v14539_v59, 5  ;;  %v14625_v57 = vrot.slane %v14543_v44, 5 }
 0x955   : > { %14600 = vst [vmem:[#allocation5 + $0x28] sm:$0xe] %v14591_v51  ;;  %14613 = vst [vmem:[#allocation5 + $0x48] sm:$0xe] %v14604_v58  ;;  %v14626_v30 = vsel %vm14620_vm1, %v14624_v8, %v14625_v57  ;;  %v14658_v8 = vld [vmem:[#allocation5] sm:$0x1e] }
 0x956   : > { %14639 = vst [vmem:[#allocation5 + $0x68] sm:$0xe] %v14626_v30  ;;  %v14690_v37 = vrot.slane %v14658_v8, 1 }
 0x958   : > { %v14662_v4 = vld [vmem:[#allocation5 + $0x20] sm:$0x1e] }
 0x95c   : > { %v14663_v19 = vld [vmem:[#allocation5 + $0x28] sm:$0x1e] }
 0x95d   : > { %v14695_v7 = vrot.slane %v14663_v19, 1 }
 0x989   : > { %v14356_v63 = vpop.f32.mrf.mxu0 }
 0x98a   : > { %v14357_v6 = vadd.f32 %v14356_v63, %v14314_v46  ;;  %v14694_v46 = vrot.slane %v14662_v4, 1  ;;  %v25664_v63 = vld [vmem:[#allocation5 + $0x80] sm:$0x1e] }
 0x98b   : > { %v14399_v24 = vpop.f32.mrf.mxu1  ;;  %v14358_v14 = vpop.f32.mrf.mxu0 }
 0x98c   : > { %v14359_v45 = vadd.f32 %v14358_v14, %v14316_v22  ;;  %v14400_v27 = vadd.f32 %v14399_v24, %v14357_v6  ;;  %v14666_v24 = vld [vmem:[#allocation5 + $0x40] sm:$0x1e] }
 0x98d   : > { %v14401_v0 = vpop.f32.mrf.mxu1  ;;  %v14360_v21 = vpop.f32.mrf.mxu0  ;;  %v14670_v14 = vld [vmem:[#allocation5 + $0x60] sm:$0x1e] }
 0x98e   : > { %v14361_v56 = vadd.f32 %v14360_v21, %v14318_v34  ;;  %v14402_v53 = vadd.f32 %v14401_v0, %v14359_v45  ;;  %v14410_v49 = vadd.f32 %v14400_v27, %v25434_v38  ;;  %v14691_v34 = vrot.slane %v14659_v54, 1  ;;  %v14643_v45 = vld [vmem:[#allocation5 + $0x8] sm:$0xf] }
 0x98f   : > { %v14403_v52 = vpop.f32.mrf.mxu1  ;;  %v14362_v12 = vpop.f32.mrf.mxu0  ;;  %v14667_v0 = vld [vmem:[#allocation5 + $0x48] sm:$0x1e] }
 0x990   : > { %v14404_v31 = vadd.f32 %v14403_v52, %v14361_v56  ;;  %v14363_v35 = vadd.f32 %v14362_v12, %v14320_v32  ;;  %v14411_v43 = vadd.f32 %v14402_v53, %v25444_v55  ;;  %v14646_v56 = vld [vmem:[#allocation5 + $0x20] sm:$0xf]  ;;  %v14647_v27 = vld [vmem:[#allocation5 + $0x28] sm:$0xf]  ;;  %v14722_v52 = vadd.f32 %v14690_v37, %v14642_v11 }
 0x991   : > { %v14405_v17 = vpop.f32.mrf.mxu1  ;;  %v14814_v12 = vrot.slane %v25664_v63, 1  ;;  %v14702_v53 = vrot.slane %v14670_v14, 1  ;;  %v14751_v37 = vld [vmem:[#allocation5 + $0x88] sm:$0xf]  ;;  %v14746_v11 = vld [vmem:[#allocation5 + $0x60] sm:$0xf] }
 0x992   : > { %v14414_v39 = vadd.f32 %v14404_v31, %v25454_v16  ;;  %v14406_v40 = vadd.f32 %v14405_v17, %v14363_v35  ;;  %v14671_v31 = vld [vmem:[#allocation5 + $0x68] sm:$0x1e]  ;;  %v14698_v35 = vrot.slane %v14666_v24, 1  ;;  %v14726_v17 = vadd.f32 %v14694_v46, %v14646_v56  ;;  %v14868_v24 = vld [vmem:[%s25772_s6 + $0x10] sm:$0xff] }
 0x993   : > { %v14747_v46 = vld [vmem:[#allocation5 + $0x68] sm:$0xf] }
 0x994   : > { %v14433_v18 = vsel %vm14416_vm14, %v14414_v39, 0.0  ;;  %v14415_v42 = vadd.f32 %v14406_v40, %v25463_v26  ;;  %v14738_v40 = vld [vmem:[#allocation5 + $0x20] sm:$0xf] }
 0x995   : > { %v14434_v62 = vadd.f32 %v14433_v18, %v14410_v49 }
 0x996   : > { %v14441_v28 = vsel %vm14416_vm14, %v14415_v42, 0.0 }
 0x997   : > { %v14435_v60 = vrot.slane %v14434_v62, 4  ;;  %v14442_v29 = vadd.f32 %v14441_v28, %v14411_v43  ;;  %v14742_v28 = vld [vmem:[#allocation5 + $0x40] sm:$0xf] }
 0x999   : > { %v14436_v20 = vadd.f32 %v14435_v60, %v14434_v62  ;;  %v14443_v3 = vrot.slane %v14442_v29, 4  ;;  %v14723_v62 = vadd.f32 %v14691_v34, %v14643_v45  ;;  %v14770_v60 = vld [vmem:[#allocation5 + $0x20] sm:$0x1e]  ;;  %v14779_v45 = vld [vmem:[#allocation5 + $0x68] sm:$0x1e] }
 0x99a   : > { %v14802_v8 = vrot.slane %v14770_v60, 1  ;;  %v14778_v34 = vld [vmem:[#allocation5 + $0x60] sm:$0x1e] }
 0x99b   : > { %v14437_v1 = vrot.slane %v14436_v20, 2  ;;  %v14444_v13 = vadd.f32 %v14443_v3, %v14442_v29  ;;  %v14739_v29 = vld [vmem:[#allocation5 + $0x28] sm:$0xf] }
 0x99c   : > { %v14771_v3 = vld [vmem:[#allocation5 + $0x28] sm:$0x1e] }
 0x99d   : > { %v14438_v23 = vadd.f32 %v14437_v1, %v14436_v20  ;;  %v14445_v16 = vrot.slane %v14444_v13, 2  ;;  %v14743_v20 = vld [vmem:[#allocation5 + $0x48] sm:$0xf] }
 0x99f   : > { %v14439_v9 = vrot.slane %v14438_v23, 1  ;;  %v14446_v25 = vadd.f32 %v14445_v16, %v14444_v13  ;;  %v14774_v16 = vld [vmem:[#allocation5 + $0x40] sm:$0x1e] }
 0x9a1   : > { %v14440_v38 = vadd.f32 %v14439_v9, %v14438_v23  ;;  %v14447_v5 = vrot.slane %v14446_v25, 1  ;;  %v14703_v23 = vrot.slane %v14671_v31, 1  ;;  %v14775_v9 = vld [vmem:[#allocation5 + $0x48] sm:$0x1e] }
 0x9a2   : > { %v14807_v4 = vrot.slane %v14775_v9, 1 }
 0x9a3   : > { %v14452_v50 = vmul.f32 0.11111111, %v14440_v38  ;;  %v14448_v41 = vadd.f32 %v14447_v5, %v14446_v25  ;;  %v14651_v25 = vld [vmem:[#allocation5 + $0x48] sm:$0xf]  ;;  %v14754_v5 = vadd.f32 %v14738_v40, %v14722_v52 }
 0x9a5   : > { %v25646_v26 = vsub.f32 %v14410_v49, %v14452_v50  ;;  %v25648_v55 = vsub.f32 %v14414_v39, %v14452_v50  ;;  %v14453_v10 = vmul.f32 0.11111111, %v14448_v41  ;;  %v14727_v39 = vadd.f32 %v14695_v7, %v14647_v27  ;;  %v14866_v27 = vld [vmem:[%s25772_s6] sm:$0xff] }
 0x9a6   : > { %v14758_v50 = vadd.f32 %v14742_v28, %v14726_v17  ;;  %v14811_v17 = vrot.slane %v14779_v45, 1  ;;  %v14870_v28 = vld [vmem:[%s25772_s6 + $0x20] sm:$0xff] }
 0x9a7   : > { %v14464_v47 = vmul.f32 %v25646_v26, %v25646_v26  ;;  %v14468_v15 = vmul.f32 %v25648_v55, %v25648_v55  ;;  %v25654_v33 = vsub.f32 %v14411_v43, %v14453_v10  ;;  %v25656_v36 = vsub.f32 %v14415_v42, %v14453_v10  ;;  %v14650_v42 = vld [vmem:[#allocation5 + $0x40] sm:$0xf] }
 0x9a8   : > { %v14699_v43 = vrot.slane %v14667_v0, 1  ;;  %v14730_v38 = vadd.f32 %v14698_v35, %v14650_v42  ;;  %v14759_v41 = vadd.f32 %v14743_v20, %v14727_v39  ;;  %v14884_v35 = vcombine.high %v14868_v24, %v14868_v24  ;;  %v14872_v20 = vld [vmem:[%s25772_s6 + $0x30] sm:$0xff] }
 0x9a9   : > { %v14486_v61 = vsel %vm14416_vm14, %v14468_v15, 0.0  ;;  %v14465_v59 = vmul.f32 %v25654_v33, %v25654_v33  ;;  %v14469_v44 = vmul.f32 %v25656_v36, %v25656_v36  ;;  %v14654_v15 = vld [vmem:[#allocation5 + $0x60] sm:$0xf] }
 0x9aa   : > { %v14487_v51 = vadd.f32 %v14486_v61, %v14464_v47  ;;  %v14731_v61 = vadd.f32 %v14699_v43, %v14651_v25  ;;  %v14762_v0 = vadd.f32 %v14746_v11, %v14730_v38  ;;  %v14888_v38 = vcombine.high %v14872_v20, %v14872_v20 }
 0x9ab   : > { %v14494_v58 = vsel %vm14416_vm14, %v14469_v44, 0.0  ;;  %v14783_v44 = vld [vmem:[#allocation5 + $0x88] sm:$0x1e] }
 0x9ac   : > { %v14488_v57 = vrot.slane %v14487_v51, 4  ;;  %v14495_v30 = vadd.f32 %v14494_v58, %v14465_v59  ;;  %v14755_v59 = vadd.f32 %v14739_v29, %v14723_v62  ;;  %v14750_v58 = vld [vmem:[#allocation5 + $0x80] sm:$0xf]  ;;  %v14815_v7 = vrot.slane %v14783_v44, 1 }
 0x9ae   : > { %v14489_v2 = vadd.f32 %v14488_v57, %v14487_v51  ;;  %v14496_v48 = vrot.slane %v14495_v30, 4  ;;  %v14655_v51 = vld [vmem:[#allocation5 + $0x68] sm:$0xf]  ;;  %v14803_v57 = vrot.slane %v14771_v3, 1 }
 0x9b0   : > { %v14490_v22 = vrot.slane %v14489_v2, 2  ;;  %v14497_v6 = vadd.f32 %v14496_v48, %v14495_v30  ;;  %v14806_v30 = vrot.slane %v14774_v16, 1  ;;  %v14735_v48 = vadd.f32 %v14703_v23, %v14655_v51 }
 0x9b1   : > { %v14835_v56 = vadd.f32 %v14803_v57, %v14755_v59 }
 0x9b2   : > { %v14491_v21 = vadd.f32 %v14490_v22, %v14489_v2  ;;  %v14498_v32 = vrot.slane %v14497_v6, 2  ;;  %v14734_v2 = vadd.f32 %v14702_v53, %v14654_v15  ;;  %v14838_v22 = vadd.f32 %v14806_v30, %v14758_v50 }
 0x9b3   : > { %v14767_v31 = vadd.f32 %v14751_v37, %v14735_v48  ;;  %v14810_v53 = vrot.slane %v14778_v34, 1  ;;  %v14851_v62 = vmul.f32 0.25, %v14835_v56 }
 0x9b4   : > { %v14492_v49 = vrot.slane %v14491_v21, 1  ;;  %v14499_v18 = vadd.f32 %v14498_v32, %v14497_v6  ;;  %v14839_v6 = vadd.f32 %v14807_v4, %v14759_v41  ;;  %v14834_v32 = vadd.f32 %v14802_v8, %v14754_v5 }
 0x9b5   : > { %v14766_v52 = vadd.f32 %v14750_v58, %v14734_v2  ;;  %v14854_v39 = vmul.f32 0.25, %v14838_v22  ;;  %v14847_v29 = vadd.f32 %v14815_v7, %v14767_v31 }
 0x9b6   : > { %v14493_v1 = vadd.f32 %v14492_v49, %v14491_v21  ;;  %v14500_v13 = vrot.slane %v14499_v18, 1  ;;  %v14763_v21 = vadd.f32 %v14747_v46, %v14731_v61  ;;  %v14855_v40 = vmul.f32 0.25, %v14839_v6 }
 0x9b7   : > { %v14882_v49 = vcombine.high %v14866_v27, %v14866_v27  ;;  %v14850_v43 = vmul.f32 0.25, %v14834_v32  ;;  %v14846_v60 = vadd.f32 %v14814_v12, %v14766_v52  ;;  %v14902_v3 = vmul.f32 %v14868_v24, %v14854_v39 }
 0x9b8   : > { %v14504_v10 = vmul.f32 0.11111111, %v14493_v1  ;;  %v14501_v47 = vadd.f32 %v14500_v13, %v14499_v18  ;;  %v14842_v18 = vadd.f32 %v14810_v53, %v14762_v0  ;;  %v14843_v42 = vadd.f32 %v14811_v17, %v14763_v21  ;;  %v14660_v53 = vld [vmem:[#allocation5 + $0x10] sm:$0x1e]  ;;  %v14661_v17 = vld [vmem:[#allocation5 + $0x18] sm:$0x1e] }
 0x9b9   : > { %v14903_v1 = vmul.f32 %v14884_v35, %v14855_v40  ;;  %v14886_v13 = vcombine.high %v14870_v28, %v14870_v28  ;;  %v14898_v9 = vmul.f32 %v14866_v27, %v14850_v43  ;;  %v14899_v25 = vmul.f32 %v14882_v49, %v14851_v62  ;;  %v25695_v40 = vld [vmem:[#allocation5 + $0x90] sm:$0x1e]  ;;  %v25697_v49 = vld [vmem:[#allocation5 + $0x98] sm:$0x1e] }
 0x9ba   : > { %v14508_v19 = vadd.f32 1e-05, %v14504_v10  ;;  %v14505_v54 = vmul.f32 0.11111111, %v14501_v47  ;;  %v14858_v23 = vmul.f32 0.25, %v14842_v18  ;;  %v14859_v16 = vmul.f32 0.25, %v14843_v42 }
 0x9bb   : > { %v14862_v5 = vmul.f32 0.25, %v14846_v60  ;;  %v14863_v50 = vmul.f32 0.25, %v14847_v29  ;;  %v14916_v41 = vsel %vm14914_vm4, %v14902_v3, 0.0  ;;  %v14923_v63 = vsel %vm14914_vm4, %v14903_v1, 0.0  ;;  %v14644_v18 = vld [vmem:[#allocation5 + $0x10] sm:$0xf] }
 0x9bc   : > { %20483 = vrsqrt.f32 %v14508_v19  ;;  %v14509_v14 = vadd.f32 1e-05, %v14505_v54  ;;  %v14906_v10 = vmul.f32 %v14870_v28, %v14858_v23  ;;  %v14907_v47 = vmul.f32 %v14886_v13, %v14859_v16  ;;  %v14645_v43 = vld [vmem:[#allocation5 + $0x18] sm:$0xf]  ;;  %v25713_v13 = vld [vmem:[%s25772_s6 + $0x18] sm:$0xff] }
 0x9bd   : > { %v14915_v15 = vsel %vm14914_vm4, %v14898_v9, 0.0  ;;  %v14922_v61 = vsel %vm14914_vm4, %v14899_v25, 0.0  ;;  %v14910_v57 = vmul.f32 %v14872_v20, %v14862_v5  ;;  %v14911_v30 = vmul.f32 %v14888_v38, %v14863_v50  ;;  %v25708_v1 = vld [vmem:[%s25772_s6 + $0x8] sm:$0xff]  ;;  %v25723_v25 = vld [vmem:[%s25772_s6 + $0x38] sm:$0xff] }
 0x9be   : > { %20485 = vrsqrt.f32 %v14509_v14  ;;  %v14917_v51 = vadd.f32 %v14916_v41, %v14915_v15  ;;  %v14924_v58 = vadd.f32 %v14923_v63, %v14922_v61  ;;  %v14918_v48 = vsel %vm14914_vm4, %v14906_v10, 0.0  ;;  %v25718_v23 = vld [vmem:[%s25772_s6 + $0x28] sm:$0xff] }
 0x9bf   : > { %v14925_v37 = vsel %vm14914_vm4, %v14907_v47, 0.0  ;;  %v14927_v45 = vsel %vm14914_vm4, %v14911_v30, 0.0  ;;  %v14692_v62 = vrot.slane %v14660_v53, 1  ;;  %v14693_v28 = vrot.slane %v14661_v17, 1 }
 0x9c0   : > { %v14926_v46 = vadd.f32 %v14925_v37, %v14924_v58  ;;  %v14816_v20 = vrot.slane %v25695_v40, 1  ;;  %v14817_v3 = vrot.slane %v25697_v49, 1 }
 0x9c1   : > { %v14724_v15 = vadd.f32 %v14692_v62, %v14644_v18  ;;  %v14725_v61 = vadd.f32 %v14693_v28, %v14645_v43 }
 0x9c2   : > { %v14928_v56 = vadd.f32 %v14927_v45, %v14926_v46  ;;  %v14885_v46 = vcombine.high %v25713_v13, %v25713_v13 }
 0x9c4   : > { %v14950_v60 = vsel %vm14914_vm4, %v14928_v56, 0.0 }
 0x9c9   : > { %v20484_v12 = vpop.eup %20483 }
 0x9ca   : > { %v14516_v59 = vmul.f32 %v20484_v12, %v25646_v26  ;;  %v14520_v44 = vmul.f32 %v20484_v12, %v25648_v55  ;;  %v14919_v55 = vadd.f32 %v14918_v48, %v14917_v51  ;;  %v14951_v12 = vrot.slane %v14950_v60, 4 }
 0x9cb   : > { %v20486_v8 = vpop.eup %20485 }
 0x9cc   : > { %vm14524_vm5 = vcmp.gt.f32.partialorder %v14516_v59, 0.0  ;;  %vm14528_vm6 = vcmp.gt.f32.partialorder %v14520_v44, 0.0  ;;  %v14532_v4 = vmul.f32 0.2, %v14516_v59  ;;  %v14536_v19 = vmul.f32 0.2, %v14520_v44 }
 0x9cd   : > { %v14517_v54 = vmul.f32 %v20486_v8, %v25654_v33  ;;  %v14521_v2 = vmul.f32 %v20486_v8, %v25656_v36  ;;  %v14920_v36 = vsel %vm14914_vm4, %v14910_v57, 0.0 }
 0x9ce   : > { %v14540_v26 = vsel %vm14524_vm5, %v14516_v59, %v14532_v4  ;;  %v14544_v11 = vsel %vm14528_vm6, %v14520_v44, %v14536_v19  ;;  %v14921_v32 = vadd.f32 %v14920_v36, %v14919_v55  ;;  %v14752_v44 = vld [vmem:[#allocation5 + $0x90] sm:$0xf]  ;;  %v14883_v55 = vcombine.high %v25708_v1, %v25708_v1 }
 0x9cf   : > { %v14592_v7 = vrot.slane %v14540_v26, 7  ;;  %v14605_v22 = vrot.slane %v14540_v26, 2  ;;  %v14627_v6 = vrot.slane %v14540_v26, 5  ;;  %v14628_v24 = vrot.slane %v14544_v11, 5  ;;  %v14753_v11 = vld [vmem:[#allocation5 + $0x98] sm:$0xf] }
 0x9d0   : > { %vm14525_vm7 = vcmp.gt.f32.partialorder %v14517_v54, 0.0  ;;  %vm14529_vm8 = vcmp.gt.f32.partialorder %v14521_v2, 0.0  ;;  %v14533_v14 = vmul.f32 0.2, %v14517_v54  ;;  %v14537_v34 = vmul.f32 0.2, %v14521_v2 }
 0x9d1   : > { %14601 = vst [vmem:[#allocation5 + $0x30] sm:$0xe] %v14592_v7  ;;  %14614 = vst [vmem:[#allocation5 + $0x50] sm:$0xe] %v14605_v22  ;;  %v14629_v33 = vsel %vm14620_vm1, %v14627_v6, %v14628_v24  ;;  %v25700_v42 = vsel %vm14914_vm4, %v14921_v32, 0.0  ;;  %v14887_v7 = vcombine.high %v25718_v23, %v25718_v23  ;;  %v14889_v22 = vcombine.high %v25723_v25, %v25723_v25 }
 0x9d2   : > { %14640 = vst [vmem:[#allocation5 + $0x70] sm:$0xe] %v14629_v33  ;;  %v14541_v0 = vsel %vm14525_vm7, %v14517_v54, %v14533_v14  ;;  %v14545_v21 = vsel %vm14529_vm8, %v14521_v2, %v14537_v34  ;;  %v14944_v38 = vrot.slane %v25700_v42, 4  ;;  %v25734_v33 = vadd.f32 %v14951_v12, %v14950_v60 }
 0x9d3   : > { %v14593_v27 = vrot.slane %v14541_v0, 7  ;;  %v14606_v52 = vrot.slane %v14541_v0, 2  ;;  %v14630_v31 = vrot.slane %v14541_v0, 5  ;;  %v14631_v35 = vrot.slane %v14545_v21, 5 }
 0x9d4   : > { %v14945_v49 = vadd.f32 %v14944_v38, %v25700_v42 }
 0x9d5   : > { %14602 = vst [vmem:[#allocation5 + $0x38] sm:$0xe] %v14593_v27  ;;  %14615 = vst [vmem:[#allocation5 + $0x58] sm:$0xe] %v14606_v52  ;;  %v14632_v39 = vsel %vm14620_vm1, %v14630_v31, %v14631_v35 }
 0x9d6   : > { %14641 = vst [vmem:[#allocation5 + $0x78] sm:$0xe] %v14632_v39 }
 0x9d8   : > { %v14664_v29 = vld [vmem:[#allocation5 + $0x30] sm:$0x1e] }
 0x9d9   : > { %v14668_v16 = vld [vmem:[#allocation5 + $0x50] sm:$0x1e]  ;;  %v14696_v50 = vrot.slane %v14664_v29, 1 }
 0x9da   : > { %v14672_v9 = vld [vmem:[#allocation5 + $0x70] sm:$0x1e]  ;;  %v14700_v41 = vrot.slane %v14668_v16, 1 }
 0x9db   : > { %v14648_v5 = vld [vmem:[#allocation5 + $0x30] sm:$0xf]  ;;  %v14704_v63 = vrot.slane %v14672_v9, 1 }
 0x9dc   : > { %v14652_v10 = vld [vmem:[#allocation5 + $0x50] sm:$0xf]  ;;  %v14665_v51 = vld [vmem:[#allocation5 + $0x38] sm:$0x1e]  ;;  %v14728_v58 = vadd.f32 %v14696_v50, %v14648_v5 }
 0x9dd   : > { %v14656_v47 = vld [vmem:[#allocation5 + $0x70] sm:$0xf]  ;;  %v14732_v8 = vadd.f32 %v14700_v41, %v14652_v10  ;;  %v14649_v54 = vld [vmem:[#allocation5 + $0x38] sm:$0xf]  ;;  %v14697_v6 = vrot.slane %v14665_v51, 1 }
 0x9de   : > { %v14740_v59 = vld [vmem:[#allocation5 + $0x30] sm:$0xf]  ;;  %v14736_v57 = vadd.f32 %v14704_v63, %v14656_v47  ;;  %v14653_v2 = vld [vmem:[#allocation5 + $0x58] sm:$0xf] }
 0x9df   : > { %v14744_v30 = vld [vmem:[#allocation5 + $0x50] sm:$0xf]  ;;  %v14657_v48 = vld [vmem:[#allocation5 + $0x78] sm:$0xf]  ;;  %v14756_v0 = vadd.f32 %v14740_v59, %v14724_v15  ;;  %v14729_v52 = vadd.f32 %v14697_v6, %v14649_v54 }
 0x9e0   : > { %v14748_v4 = vld [vmem:[#allocation5 + $0x70] sm:$0xf]  ;;  %v14669_v37 = vld [vmem:[#allocation5 + $0x58] sm:$0x1e]  ;;  %v14760_v32 = vadd.f32 %v14744_v30, %v14728_v58  ;;  %v14768_v53 = vadd.f32 %v14752_v44, %v14736_v57 }
 0x9e1   : > { %v14772_v19 = vld [vmem:[#allocation5 + $0x30] sm:$0x1e]  ;;  %v14673_v26 = vld [vmem:[#allocation5 + $0x78] sm:$0x1e]  ;;  %v14701_v24 = vrot.slane %v14669_v37, 1  ;;  %v14764_v56 = vadd.f32 %v14748_v4, %v14732_v8 }
 0x9e2   : > { %v14705_v14 = vrot.slane %v14673_v26, 1  ;;  %v14741_v34 = vld [vmem:[#allocation5 + $0x38] sm:$0xf]  ;;  %v14776_v17 = vld [vmem:[#allocation5 + $0x50] sm:$0x1e]  ;;  %v14804_v62 = vrot.slane %v14772_v19, 1 }
 0x9e3   : > { %v14745_v36 = vld [vmem:[#allocation5 + $0x58] sm:$0xf]  ;;  %v14757_v21 = vadd.f32 %v14741_v34, %v14725_v61  ;;  %v14733_v31 = vadd.f32 %v14701_v24, %v14653_v2  ;;  %v14780_v18 = vld [vmem:[#allocation5 + $0x70] sm:$0x1e]  ;;  %v14808_v29 = vrot.slane %v14776_v17, 1  ;;  %v14848_v61 = vadd.f32 %v14816_v20, %v14768_v53 }
 0x9e4   : > { %v14749_v45 = vld [vmem:[#allocation5 + $0x78] sm:$0xf]  ;;  %v14737_v35 = vadd.f32 %v14705_v14, %v14657_v48  ;;  %v14761_v16 = vadd.f32 %v14745_v36, %v14729_v52  ;;  %v14812_v50 = vrot.slane %v14780_v18, 1  ;;  %v14836_v63 = vadd.f32 %v14804_v62, %v14756_v0 }
 0x9e5   : > { %v14773_v27 = vld [vmem:[#allocation5 + $0x38] sm:$0x1e]  ;;  %v14765_v9 = vadd.f32 %v14749_v45, %v14733_v31  ;;  %v14840_v10 = vadd.f32 %v14808_v29, %v14760_v32  ;;  %v14864_v4 = vmul.f32 0.25, %v14848_v61 }
 0x9e6   : > { %v14777_v39 = vld [vmem:[#allocation5 + $0x58] sm:$0x1e]  ;;  %v14805_v28 = vrot.slane %v14773_v27, 1  ;;  %v14769_v5 = vadd.f32 %v14753_v11, %v14737_v35  ;;  %v14844_v15 = vadd.f32 %v14812_v50, %v14764_v56  ;;  %v14852_v51 = vmul.f32 0.25, %v14836_v63  ;;  %v14976_v63 = vld [vmem:[#allocation9] sm:$0x1] }
 0x9e7   : > { %v14781_v43 = vld [vmem:[#allocation5 + $0x78] sm:$0x1e]  ;;  %v14809_v60 = vrot.slane %v14777_v39, 1  ;;  %v14856_v8 = vmul.f32 0.25, %v14840_v10 }
 0x9e8   : > { %v14813_v41 = vrot.slane %v14781_v43, 1  ;;  %v14837_v12 = vadd.f32 %v14805_v28, %v14757_v21  ;;  %v14849_v59 = vadd.f32 %v14817_v3, %v14769_v5  ;;  %v14860_v30 = vmul.f32 0.25, %v14844_v15 }
 0x9e9   : > { %v14841_v47 = vadd.f32 %v14809_v60, %v14761_v16  ;;  %v14900_v2 = vmul.f32 %v25708_v1, %v14852_v51  ;;  %v14904_v37 = vmul.f32 %v25713_v13, %v14856_v8  ;;  %v14912_v3 = vmul.f32 %v25723_v25, %v14864_v4 }
 0x9ea   : > { %v14845_v44 = vadd.f32 %v14813_v41, %v14765_v9  ;;  %v14853_v58 = vmul.f32 0.25, %v14837_v12  ;;  %v14865_v19 = vmul.f32 0.25, %v14849_v59  ;;  %v14908_v40 = vmul.f32 %v25718_v23, %v14860_v30 }
 0x9eb   : > { %v14857_v57 = vmul.f32 0.25, %v14841_v47  ;;  %v14929_v11 = vsel %vm14914_vm4, %v14900_v2, 0.0  ;;  %v14930_v6 = vsel %vm14914_vm4, %v14904_v37, 0.0  ;;  %v14934_v25 = vsel %vm14914_vm4, %v14912_v3, 0.0 }
 0x9ec   : > { %v14861_v54 = vmul.f32 0.25, %v14845_v44  ;;  %v14901_v48 = vmul.f32 %v14883_v55, %v14853_v58  ;;  %v14913_v24 = vmul.f32 %v14889_v22, %v14865_v19  ;;  %v14931_v14 = vadd.f32 %v14930_v6, %v14929_v11 }
 0x9ed   : > { %v14905_v26 = vmul.f32 %v14885_v46, %v14857_v57  ;;  %v14932_v55 = vsel %vm14914_vm4, %v14908_v40, 0.0  ;;  %v14953_v46 = vrot.slane %v25734_v33, 2 }
 0x9ee   : > { %v14909_v20 = vmul.f32 %v14887_v7, %v14861_v54  ;;  %v14936_v1 = vsel %vm14914_vm4, %v14901_v48, 0.0  ;;  %v14933_v34 = vadd.f32 %v14932_v55, %v14931_v14  ;;  %v14946_v7 = vrot.slane %v14945_v49, 2 }
 0x9ef   : > { %v14937_v13 = vsel %vm14914_vm4, %v14905_v26, 0.0  ;;  %v14941_v22 = vsel %vm14914_vm4, %v14913_v24, 0.0  ;;  %v14954_v0 = vadd.f32 %v14953_v46, %v25734_v33 }
 0x9f0   : > { %v14938_v23 = vadd.f32 %v14937_v13, %v14936_v1  ;;  %v14939_v42 = vsel %vm14914_vm4, %v14909_v20, 0.0  ;;  %v14935_v36 = vadd.f32 %v14934_v25, %v14933_v34  ;;  %v14947_v32 = vadd.f32 %v14946_v7, %v14945_v49 }
 0x9f1   : > { %v14955_v31 = vrot.slane %v14954_v0, 1 }
 0x9f2   : > { %v14940_v38 = vadd.f32 %v14939_v42, %v14938_v23  ;;  %v14957_v21 = vsel %vm14914_vm4, %v14935_v36, 0.0  ;;  %v14948_v17 = vrot.slane %v14947_v32, 1 }
 0x9f3   : > { %v14958_v56 = vrot.slane %v14957_v21, 4  ;;  %v14956_v43 = vadd.f32 %v14955_v31, %v14954_v0 }
 0x9f4   : > { %v14942_v45 = vadd.f32 %v14941_v22, %v14940_v38  ;;  %v14949_v29 = vadd.f32 %v14948_v17, %v14947_v32 }
 0x9f5   : > { %v14959_v35 = vadd.f32 %v14958_v56, %v14957_v21 }
 0x9f6   : > { %v14964_v27 = vsel %vm14914_vm4, %v14942_v45, 0.0  ;;  %v14971_v9 = vadd.f32 %v14956_v43, %v14949_v29 }
 0x9f7   : > { %v14965_v52 = vrot.slane %v14964_v27, 4  ;;  %v14960_v39 = vrot.slane %v14959_v35, 2 }
 0x9f9   : > { %v14966_v53 = vadd.f32 %v14965_v52, %v14964_v27  ;;  %v14961_v62 = vadd.f32 %v14960_v39, %v14959_v35 }
 0x9fb   : > { %v14967_v18 = vrot.slane %v14966_v53, 2  ;;  %v14962_v60 = vrot.slane %v14961_v62, 1 }
 0x9fd   : > { %v14968_v28 = vadd.f32 %v14967_v18, %v14966_v53  ;;  %v14963_v16 = vadd.f32 %v14962_v60, %v14961_v62 }
 0x9ff   : > { %v14969_v33 = vrot.slane %v14968_v28, 1  ;;  %v14972_v50 = vadd.f32 %v14971_v9, %v14963_v16 }
 0xa01   : > { %v14970_v5 = vadd.f32 %v14969_v33, %v14968_v28 }
 0xa03   : > { %v14973_v41 = vadd.f32 %v14972_v50, %v14970_v5 }
 0xa05   : > { %14974 = vadd.xlane.f32.xlu0 %v14973_v41 }
 0xa8e   : > { %v14975_v12 = vpop.xlane.xlu0 %14974 }
 0xa8f   : > { %v14977_v10 = vadd.f32 %v14976_v63, %v14975_v12 }
 0xa91   : > { %14979 = vst.msk [vmem:[%s303_s9] sm:$0x1] %vm14978_vm9, %v14977_v10 }
 0xa92 PF: > { %s20_s29 = sadd.s32 1, %s20495_s29  }
 0xa93   : > { %p17_p4 = scmp.ge.s32.totalorder %s20_s29, 4  }
 0xa95   :  { %19 = sbr.rel (!%p17_p4) target bundleno = 3 (0x3), region = 316 }

</bundles_post_ra>
